<compile_context>
chip_gen: v7x
topology: tpu7x:2x2x1
jax: 0.10.0
libtpu: 0.0.40
codegen_flags: <defaults>
</compile_context>

<pallas_src>
import numpy as np
import jax
import jax.numpy as jnp
from jax import lax
from jax.scipy.linalg import expm
from jax.experimental import pallas as pl
from jax.experimental.pallas import tpu as pltpu


# ----------------------------------------------------------------------------
# Kernel factory
# ----------------------------------------------------------------------------
def _make_cae_kernel(*, n_lin, n_chunks, block_rows, feat):
    """Per grid step: encode -> graph-mix -> decode -> per-tile MSE partial.

    Ref order: x_tile, B,
               enc_w[0..n_lin-1], enc_b[..], dec_w[..], dec_b[..],
               mse_partial_out
    """

    def mlp(h, w_refs, b_refs):
        # n_lin Linear layers with LeakyReLU(0.05) between them (not after the
        # last one) -- matches NonLinerTransformer.  Matmul operands are cast
        # to the weights' dtype (f32 or bf16, review #6); accumulation, bias
        # add and the activation stay f32 (v5e has no bf16 VPU/EUP).
        for li in range(n_lin):
            w = w_refs[li][...]
            h = jnp.dot(h.astype(w.dtype), w,
                        preferred_element_type=jnp.float32) + b_refs[li][...]
            if li < n_lin - 1:
                h = jnp.maximum(h, 0.05 * h)          # LeakyReLU(0.05), review #8
        return h

    def kernel(x_ref, b_ref, *rest):
        enc_w = rest[0 * n_lin:1 * n_lin]
        enc_b = rest[1 * n_lin:2 * n_lin]
        dec_w = rest[2 * n_lin:3 * n_lin]
        dec_b = rest[3 * n_lin:4 * n_lin]
        mse_ref = rest[4 * n_lin]

        B = b_ref[...]                                # kron(I_nb, W), (Rb, Rb)
        acc = jnp.zeros((block_rows, feat), jnp.float32)

        # Static chunk loop (n_chunks = tile_rows / block_rows, small): keeps
        # the graph operator at a fixed (Rb, Rb) regardless of the batch tile
        # (review #2).  Static starts -> aligned, unmasked VMEM slices.
        for c in range(n_chunks):
            xs = x_ref[c * block_rows:(c + 1) * block_rows, :]     # (Rb, F)
            h1 = mlp(xs, enc_w, enc_b)                             # (Rb, K)
            # h2[(s,l),k] = sum_j W[j,l]*h1[(s,j),k]  (einsum 'ijk,jl->ilk') as
            # ONE dim0/dim0 MXU contraction with the block-diagonal operator.
            h2 = lax.dot_general(B, h1.astype(B.dtype),
                                 dimension_numbers=(((0,), (0,)), ((), ())),
                                 preferred_element_type=jnp.float32)
            x_hat = mlp(h2, dec_w, dec_b)                          # (Rb, F)
            diff = x_hat - xs
            acc = acc + diff * diff          # elementwise; no XLU/SMEM per chunk

        # One cross-lane reduce per grid step, splatted into the lane-dense
        # per-tile output block.  No carried accumulator -> the grid axis is
        # truly parallel (review #3/#4).
        mse_ref[...] = jnp.broadcast_to(jnp.sum(acc), mse_ref.shape)

    return kernel


# ----------------------------------------------------------------------------
# Tiling helpers
# ----------------------------------------------------------------------------
def _pick_tile_n(n, d, target_rows=2048):
    """Samples per grid step.  tile_n must divide n and tile_n*d must be a
    multiple of 8 (sublane alignment) unless it covers the whole batch.
    target_rows ~2048 (review #1): the pipelined x tile is only
    target_rows*F*4 B double-buffered, so it costs almost no VMEM while the
    per-step pipeline overhead is amortised."""
    candidates = [t for t in range(1, n + 1)
                  if n % t == 0 and (t * d) % 8 == 0 and t * d <= target_rows]
    return max(candidates) if candidates else n


def _pick_block_rows(tile_rows, d, target=256):
    """Rows of the kron(I, W) graph operator: the largest multiple of d that
    divides the batch tile and is <= target (review #2).  Keeps B at
    ~target^2*4 B of VMEM on every TPU generation."""
    best = d
    c = 1
    while c * d <= tile_rows:
        rb = c * d
        if tile_rows % rb == 0 and rb <= target:
            best = rb
        c += 1
    return best


# ----------------------------------------------------------------------------
# Wrapper (glue)
# ----------------------------------------------------------------------------
def cae_forward(x, params, alpha, rho, *, d, n_layer, lambda_sparsity,
                psp=False, tile_n=None, graph_block_rows=None,
                compute_dtype=jnp.float32, target_rows=2048):
    """Returns (loss, loss_mse, loss_sparsity, h, W) like CAE.forward.

    The Pallas kernel does the O(n*d) heavy part (encoder, graph mixing,
    decoder, squared-error partial sums).  The O(d^2) scalar finalize
    (sparsity, trace(expm(W*W)), total loss) runs in plain JAX so the grid
    axis stays "parallel" (review #4).  Wrap the whole call in jax.jit inside
    a training loop."""
    n, dd, F = x.shape
    assert dd == d
    n_lin = n_layer + 1

    if tile_n is None:
        tile_n = _pick_tile_n(n, d, target_rows=target_rows)
    assert n % tile_n == 0, "tile_n must divide the batch size"
    R = tile_n * d                                     # rows per grid step
    assert (R % 8 == 0) or (tile_n == n), "row tile must be sublane-aligned"
    num_tiles = n // tile_n

    rb = _pick_block_rows(R, d) if graph_block_rows is None else int(graph_block_rows)
    assert rb % d == 0 and R % rb == 0, "graph block must be whole samples dividing the tile"
    n_chunks = R // rb
    # NOTE: if d % 8 != 0 the per-sample diagonal blocks inside B are not
    # sublane-aligned; still correct (B is built once in the wrapper).

    x2d = x.reshape(n * d, F).astype(jnp.float32)
    mask = 1.0 - jnp.eye(d, dtype=jnp.float32)
    W = params["W_pre"].astype(jnp.float32) * mask     # zero the diagonal

    # Block-diagonal graph operator, built once outside the kernel (one-time
    # O(rb^2) setup, <= ~256 KB), VMEM-resident across the whole grid.
    B = jnp.kron(jnp.eye(rb // d, dtype=jnp.float32), W).astype(compute_dtype)

    enc_w = [w.astype(compute_dtype) for w in params["enc_w"]]
    dec_w = [w.astype(compute_dtype) for w in params["dec_w"]]
    enc_b = [b.astype(jnp.float32) for b in params["enc_b"]]
    dec_b = [b.astype(jnp.float32) for b in params["dec_b"]]
    inputs = [x2d, B] + enc_w + enc_b + dec_w + dec_b

    kernel = _make_cae_kernel(n_lin=n_lin, n_chunks=n_chunks,
                              block_rows=rb, feat=F)

    # Per-tile MSE partials: disjoint, lane-dense (8,128) blocks -> no
    # reduction carried on the grid axis.
    out_shape = jax.ShapeDtypeStruct((num_tiles, 8, 128), jnp.float32)
    out_spec = pl.BlockSpec((1, 8, 128), lambda i: (i, 0, 0))

    def _resident(a, single_buffer):
        nd = a.ndim
        if single_buffer:
            # Constant-index block: one VMEM copy is enough (review #5).
            return pl.BlockSpec(a.shape, lambda i: (0,) * nd,
                                pipeline_mode=pl.Buffered(1))
        return pl.BlockSpec(a.shape, lambda i: (0,) * nd)

    mse_parts = None
    for single_buffer in (True, False):
        try:
            in_specs = ([pl.BlockSpec((R, F), lambda i: (i, 0))]   # pipelined x
                        + [_resident(a, single_buffer) for a in inputs[1:]])
            mse_parts = pl.pallas_call(
                kernel,
                out_shape=out_shape,
                grid=(num_tiles,),
                in_specs=in_specs,
                out_specs=out_spec,
                # Every step is independent (constant resident inputs, disjoint
                # output blocks, no cross-step scratch) -> parallel: uses both
                # v7x TensorCores, no-op on v5e/v6e (review #4).
                compiler_params=pltpu.CompilerParams(
                    dimension_semantics=("parallel",)),
            )(*inputs)
            if single_buffer:
                jax.block_until_ready(mse_parts)   # surface lowering errors here
            break
        except Exception:
            if not single_buffer:
                raise
            # pipeline_mode=pl.Buffered(1) unsupported on this JAX/libtpu:
            # fall back to default double-buffered resident weights.
            mse_parts = None

    # ---- wrapper-side finalize: tiny O(d^2) work on W (review #4) ----------
    loss_mse = jnp.sum(mse_parts[:, 0, 0])
    if psp:
        # eps guard: defined behavior for an all-zero W (reference would NaN).
        Wn = W / jnp.maximum(jnp.max(jnp.abs(W)), 1e-12)
        loss_sp = jnp.sum(jnp.abs(2.0 * jax.nn.sigmoid(2.0 * Wn) - 1.0)) / float(d * d)
    else:
        loss_sp = jnp.sum(jnp.abs(W))
    # torch.matrix_exp (adaptive Pade) -> jax.scipy.linalg.expm on the (d, d)
    # matrix; exact for any ||W*W|| (the old in-kernel fixed-s Taylor drifted).
    h = jnp.trace(expm(W * W)) - float(d)
    loss = ((0.5 / float(n)) * loss_mse + float(lambda_sparsity) * loss_sp
            + alpha * h + 0.5 * rho * h * h)
    return loss, loss_mse, loss_sp, h, W


# ----------------------------------------------------------------------------
# Deterministic parameter init (shapes from CAE.__init__ / NonLinerTransformer)
# ----------------------------------------------------------------------------
def init_cae_params(key, d, n_dim, n_hid, n_latent, n_layer):
    def mlp_dims(in_dim, out_dim):
        return [(in_dim, n_hid)] + [(n_hid, n_hid)] * (n_layer - 1) \
            + [(n_hid, out_dim)]

    def init_mlp(key, dims):
        ws, bs = [], []
        for (fi, fo) in dims:
            key, kw, kb = jax.random.split(key, 3)
            bound = float(np.sqrt(6.0 / (fi + fo)))            # xavier_uniform
            ws.append(jax.random.uniform(kw, (fi, fo), jnp.float32,
                                         -bound, bound))
            bb = float(1.0 / np.sqrt(fi))                      # torch bias init
            bs.append(jax.random.uniform(kb, (1, fo), jnp.float32, -bb, bb))
        return key, ws, bs

    key, enc_w, enc_b = init_mlp(key, mlp_dims(n_dim, n_latent))
    key, dec_w, dec_b = init_mlp(key, mlp_dims(n_latent, n_dim))
    key, kw = jax.random.split(key)
    W_pre = jax.random.uniform(kw, (d, d), jnp.float32, -0.1, 0.1)
    return {"W_pre": W_pre, "enc_w": enc_w, "enc_b": enc_b,
            "dec_w": dec_w, "dec_b": dec_b}


# ----------------------------------------------------------------------------
# Pure-JAX reference (for sanity checks)
# ----------------------------------------------------------------------------
def reference_forward(x, params, alpha, rho, d, n_layer, lambda_sparsity,
                      psp=False):
    n = x.shape[0]
    mask = 1.0 - jnp.eye(d)
    W = params["W_pre"] * mask

    def mlp(h, ws, bs):
        for i, (w, b) in enumerate(zip(ws, bs)):
            h = jnp.dot(h, w, precision=lax.Precision.HIGHEST) + b
            if i < len(ws) - 1:
                h = jnp.where(h >= 0, h, 0.05 * h)
        return h

    h1 = mlp(x.reshape(n * d, -1), params["enc_w"],
             params["enc_b"]).reshape(n, d, -1)
    h2 = jnp.einsum("ijk,jl->ilk", h1, W, precision=lax.Precision.HIGHEST)
    x_hat = mlp(h2.reshape(n * d, -1), params["dec_w"],
                params["dec_b"]).reshape(n, d, -1)
    loss_mse = jnp.sum((x_hat - x) ** 2)
    if psp:
        Wn = W / jnp.max(jnp.abs(W))
        loss_sp = jnp.sum(jnp.abs(2.0 * jax.nn.sigmoid(2.0 * Wn) - 1.0)) / d**2
    else:
        loss_sp = jnp.sum(jnp.abs(W))
    h = jnp.trace(expm(W * W)) - d
    loss = (0.5 / n) * loss_mse + lambda_sparsity * loss_sp \
        + alpha * h + 0.5 * rho * h * h
    return loss, loss_mse, loss_sp, h, W


# ----------------------------------------------------------------------------
if __name__ == "__main__":
    d, n_dim, n_hid, n_latent, n_layer = 8, 4, 32, 16, 2
    lambda_sparsity = 0.1
    n = 64
    alpha, rho = 0.05, 1.0

    key = jax.random.PRNGKey(0)
    kp, kx = jax.random.split(key)
    params = init_cae_params(kp, d, n_dim, n_hid, n_latent, n_layer)
    x = jax.random.normal(kx, (n, d, n_dim), jnp.float32)

    ref = reference_forward(x, params, alpha, rho, d, n_layer, lambda_sparsity)
    ref_p = reference_forward(x, params, alpha, rho, d, n_layer,
                              lambda_sparsity, psp=True)

    def check(out, ref_out):
        names = ("loss", "mse", "sparsity", "h", "W")
        tols = {"loss": (2e-2, 1e-3), "mse": (2e-2, 1e-3),
                "sparsity": (1e-4, 1e-6), "h": (1e-4, 1e-6), "W": (1e-5, 1e-6)}
        for o, r, name in zip(out, ref_out, names):
            rtol, atol = tols[name]
            np.testing.assert_allclose(np.array(o), np.array(r),
                                       rtol=rtol, atol=atol, err_msg=name)

    # 1) Default tiling: one big batch tile (grid=(1,), 512 rows), graph
    #    operator capped at 256 rows -> exercises the inner 2-chunk loop.
    out_a = jax.block_until_ready(
        cae_forward(x, params, alpha, rho, d=d, n_layer=n_layer,
                    lambda_sparsity=lambda_sparsity))
    check(out_a, ref)

    # 2) Explicit smaller tile: grid=(4,) exercises the pipelined batch
    #    tiling, per-tile partial outputs and the "parallel" grid axis.
    out_b = jax.block_until_ready(
        cae_forward(x, params, alpha, rho, d=d, n_layer=n_layer,
                    lambda_sparsity=lambda_sparsity, tile_n=16))
    check(out_b, ref)

    # 3) psp sparsity path.
    out_c = jax.block_until_ready(
        cae_forward(x, params, alpha, rho, d=d, n_layer=n_layer,
                    lambda_sparsity=lambda_sparsity, psp=True, tile_n=16))
    check(out_c, ref_p)

    print("KERNEL_OK")
</pallas_src>

<mosaic_0001>
module attributes {stable_mosaic.version = 11 : i64} {
  func.func @kernel(%arg0: i32, %arg1: memref<512x4xf32, #tpu.memory_space<vmem>>, %arg2: memref<256x256xf32, #tpu.memory_space<vmem>>, %arg3: memref<4x32xf32, #tpu.memory_space<vmem>>, %arg4: memref<32x32xf32, #tpu.memory_space<vmem>>, %arg5: memref<32x16xf32, #tpu.memory_space<vmem>>, %arg6: memref<1x32xf32, #tpu.memory_space<vmem>>, %arg7: memref<1x32xf32, #tpu.memory_space<vmem>>, %arg8: memref<1x16xf32, #tpu.memory_space<vmem>>, %arg9: memref<16x32xf32, #tpu.memory_space<vmem>>, %arg10: memref<32x32xf32, #tpu.memory_space<vmem>>, %arg11: memref<32x4xf32, #tpu.memory_space<vmem>>, %arg12: memref<1x32xf32, #tpu.memory_space<vmem>>, %arg13: memref<1x32xf32, #tpu.memory_space<vmem>>, %arg14: memref<1x4xf32, #tpu.memory_space<vmem>>, %arg15: memref<1x8x128xf32, #tpu.memory_space<vmem>>) attributes {dimension_semantics = [#tpu.dimension_semantics<parallel>], iteration_bounds = array<i64: 1>, scalar_prefetch = 0 : i64, scratch_operands = 0 : i64, tpu.core_type = #tpu.core_type<tc>, window_params = [{transform_indices = @transform_0, window_bounds = array<i64: 512, 4>}, {pipeline_mode = #tpu.pipeline_mode<synchronous>, transform_indices = @transform_1, window_bounds = array<i64: 256, 256>}, {pipeline_mode = #tpu.pipeline_mode<synchronous>, transform_indices = @transform_2, window_bounds = array<i64: 4, 32>}, {pipeline_mode = #tpu.pipeline_mode<synchronous>, transform_indices = @transform_3, window_bounds = array<i64: 32, 32>}, {pipeline_mode = #tpu.pipeline_mode<synchronous>, transform_indices = @transform_4, window_bounds = array<i64: 32, 16>}, {pipeline_mode = #tpu.pipeline_mode<synchronous>, transform_indices = @transform_5, window_bounds = array<i64: 1, 32>}, {pipeline_mode = #tpu.pipeline_mode<synchronous>, transform_indices = @transform_6, window_bounds = array<i64: 1, 32>}, {pipeline_mode = #tpu.pipeline_mode<synchronous>, transform_indices = @transform_7, window_bounds = array<i64: 1, 16>}, {pipeline_mode = #tpu.pipeline_mode<synchronous>, transform_indices = @transform_8, window_bounds = array<i64: 16, 32>}, {pipeline_mode = #tpu.pipeline_mode<synchronous>, transform_indices = @transform_9, window_bounds = array<i64: 32, 32>}, {pipeline_mode = #tpu.pipeline_mode<synchronous>, transform_indices = @transform_10, window_bounds = array<i64: 32, 4>}, {pipeline_mode = #tpu.pipeline_mode<synchronous>, transform_indices = @transform_11, window_bounds = array<i64: 1, 32>}, {pipeline_mode = #tpu.pipeline_mode<synchronous>, transform_indices = @transform_12, window_bounds = array<i64: 1, 32>}, {pipeline_mode = #tpu.pipeline_mode<synchronous>, transform_indices = @transform_13, window_bounds = array<i64: 1, 4>}, {transform_indices = @transform_14, window_bounds = array<i64: 1, 8, 128>}]} {
    %c0 = arith.constant 0 : index
    %c0_0 = arith.constant 0 : index
    %0 = vector.load %arg2[%c0, %c0_0] : memref<256x256xf32, #tpu.memory_space<vmem>>, vector<256x256xf32>
    %cst = arith.constant 0.000000e+00 : f32
    %1 = vector.broadcast %cst : f32 to vector<256x4xf32>
    %c0_1 = arith.constant 0 : index
    %c0_2 = arith.constant 0 : index
    %2 = vector.load %arg1[%c0_1, %c0_2] : memref<512x4xf32, #tpu.memory_space<vmem>>, vector<256x4xf32>
    %c0_3 = arith.constant 0 : index
    %c0_4 = arith.constant 0 : index
    %3 = vector.load %arg3[%c0_3, %c0_4] : memref<4x32xf32, #tpu.memory_space<vmem>>, vector<4x32xf32>
    %cst_5 = arith.constant dense<0.000000e+00> : vector<256x32xf32>
    %4 = tpu.matmul %2, %3, %cst_5 {dimension_numbers = #tpu.dot_dimension_numbers<[1], [0], [0], [1], [0, 0, 1, 1], [], []>} : vector<256x4xf32>, vector<4x32xf32>, vector<256x32xf32> -> vector<256x32xf32>
    %c0_6 = arith.constant 0 : index
    %c0_7 = arith.constant 0 : index
    %5 = vector.load %arg6[%c0_6, %c0_7] : memref<1x32xf32, #tpu.memory_space<vmem>>, vector<1x32xf32>
    %6 = vector.broadcast %5 : vector<1x32xf32> to vector<256x32xf32>
    %7 = arith.addf %4, %6 : vector<256x32xf32>
    %cst_8 = arith.constant 5.000000e-02 : f32
    %8 = vector.broadcast %cst_8 : f32 to vector<256x32xf32>
    %9 = arith.mulf %8, %7 : vector<256x32xf32>
    %10 = arith.maximumf %7, %9 : vector<256x32xf32>
    %c0_9 = arith.constant 0 : index
    %c0_10 = arith.constant 0 : index
    %11 = vector.load %arg4[%c0_9, %c0_10] : memref<32x32xf32, #tpu.memory_space<vmem>>, vector<32x32xf32>
    %cst_11 = arith.constant dense<0.000000e+00> : vector<256x32xf32>
    %12 = tpu.matmul %10, %11, %cst_11 {dimension_numbers = #tpu.dot_dimension_numbers<[1], [0], [0], [1], [0, 0, 1, 1], [], []>} : vector<256x32xf32>, vector<32x32xf32>, vector<256x32xf32> -> vector<256x32xf32>
    %c0_12 = arith.constant 0 : index
    %c0_13 = arith.constant 0 : index
    %13 = vector.load %arg7[%c0_12, %c0_13] : memref<1x32xf32, #tpu.memory_space<vmem>>, vector<1x32xf32>
    %14 = vector.broadcast %13 : vector<1x32xf32> to vector<256x32xf32>
    %15 = arith.addf %12, %14 : vector<256x32xf32>
    %cst_14 = arith.constant 5.000000e-02 : f32
    %16 = vector.broadcast %cst_14 : f32 to vector<256x32xf32>
    %17 = arith.mulf %16, %15 : vector<256x32xf32>
    %18 = arith.maximumf %15, %17 : vector<256x32xf32>
    %c0_15 = arith.constant 0 : index
    %c0_16 = arith.constant 0 : index
    %19 = vector.load %arg5[%c0_15, %c0_16] : memref<32x16xf32, #tpu.memory_space<vmem>>, vector<32x16xf32>
    %cst_17 = arith.constant dense<0.000000e+00> : vector<256x16xf32>
    %20 = tpu.matmul %18, %19, %cst_17 {dimension_numbers = #tpu.dot_dimension_numbers<[1], [0], [0], [1], [0, 0, 1, 1], [], []>} : vector<256x32xf32>, vector<32x16xf32>, vector<256x16xf32> -> vector<256x16xf32>
    %c0_18 = arith.constant 0 : index
    %c0_19 = arith.constant 0 : index
    %21 = vector.load %arg8[%c0_18, %c0_19] : memref<1x16xf32, #tpu.memory_space<vmem>>, vector<1x16xf32>
    %22 = vector.broadcast %21 : vector<1x16xf32> to vector<256x16xf32>
    %23 = arith.addf %20, %22 : vector<256x16xf32>
    %cst_20 = arith.constant dense<0.000000e+00> : vector<256x16xf32>
    %24 = tpu.matmul %0, %23, %cst_20 {dimension_numbers = #tpu.dot_dimension_numbers<[0], [0], [1], [1], [0, 1, 1, 1], [], []>} : vector<256x256xf32>, vector<256x16xf32>, vector<256x16xf32> -> vector<256x16xf32>
    %c0_21 = arith.constant 0 : index
    %c0_22 = arith.constant 0 : index
    %25 = vector.load %arg9[%c0_21, %c0_22] : memref<16x32xf32, #tpu.memory_space<vmem>>, vector<16x32xf32>
    %cst_23 = arith.constant dense<0.000000e+00> : vector<256x32xf32>
    %26 = tpu.matmul %24, %25, %cst_23 {dimension_numbers = #tpu.dot_dimension_numbers<[1], [0], [0], [1], [0, 0, 1, 1], [], []>} : vector<256x16xf32>, vector<16x32xf32>, vector<256x32xf32> -> vector<256x32xf32>
    %c0_24 = arith.constant 0 : index
    %c0_25 = arith.constant 0 : index
    %27 = vector.load %arg12[%c0_24, %c0_25] : memref<1x32xf32, #tpu.memory_space<vmem>>, vector<1x32xf32>
    %28 = vector.broadcast %27 : vector<1x32xf32> to vector<256x32xf32>
    %29 = arith.addf %26, %28 : vector<256x32xf32>
    %cst_26 = arith.constant 5.000000e-02 : f32
    %30 = vector.broadcast %cst_26 : f32 to vector<256x32xf32>
    %31 = arith.mulf %30, %29 : vector<256x32xf32>
    %32 = arith.maximumf %29, %31 : vector<256x32xf32>
    %c0_27 = arith.constant 0 : index
    %c0_28 = arith.constant 0 : index
    %33 = vector.load %arg10[%c0_27, %c0_28] : memref<32x32xf32, #tpu.memory_space<vmem>>, vector<32x32xf32>
    %cst_29 = arith.constant dense<0.000000e+00> : vector<256x32xf32>
    %34 = tpu.matmul %32, %33, %cst_29 {dimension_numbers = #tpu.dot_dimension_numbers<[1], [0], [0], [1], [0, 0, 1, 1], [], []>} : vector<256x32xf32>, vector<32x32xf32>, vector<256x32xf32> -> vector<256x32xf32>
    %c0_30 = arith.constant 0 : index
    %c0_31 = arith.constant 0 : index
    %35 = vector.load %arg13[%c0_30, %c0_31] : memref<1x32xf32, #tpu.memory_space<vmem>>, vector<1x32xf32>
    %36 = vector.broadcast %35 : vector<1x32xf32> to vector<256x32xf32>
    %37 = arith.addf %34, %36 : vector<256x32xf32>
    %cst_32 = arith.constant 5.000000e-02 : f32
    %38 = vector.broadcast %cst_32 : f32 to vector<256x32xf32>
    %39 = arith.mulf %38, %37 : vector<256x32xf32>
    %40 = arith.maximumf %37, %39 : vector<256x32xf32>
    %c0_33 = arith.constant 0 : index
    %c0_34 = arith.constant 0 : index
    %41 = vector.load %arg11[%c0_33, %c0_34] : memref<32x4xf32, #tpu.memory_space<vmem>>, vector<32x4xf32>
    %cst_35 = arith.constant dense<0.000000e+00> : vector<256x4xf32>
    %42 = tpu.matmul %40, %41, %cst_35 {dimension_numbers = #tpu.dot_dimension_numbers<[1], [0], [0], [1], [0, 0, 1, 1], [], []>} : vector<256x32xf32>, vector<32x4xf32>, vector<256x4xf32> -> vector<256x4xf32>
    %c0_36 = arith.constant 0 : index
    %c0_37 = arith.constant 0 : index
    %43 = vector.load %arg14[%c0_36, %c0_37] : memref<1x4xf32, #tpu.memory_space<vmem>>, vector<1x4xf32>
    %44 = vector.broadcast %43 : vector<1x4xf32> to vector<256x4xf32>
    %45 = arith.addf %42, %44 : vector<256x4xf32>
    %46 = arith.subf %45, %2 : vector<256x4xf32>
    %47 = arith.mulf %46, %46 : vector<256x4xf32>
    %48 = arith.addf %1, %47 : vector<256x4xf32>
    %c256 = arith.constant 256 : index
    %c0_38 = arith.constant 0 : index
    %49 = vector.load %arg1[%c256, %c0_38] : memref<512x4xf32, #tpu.memory_space<vmem>>, vector<256x4xf32>
    %c0_39 = arith.constant 0 : index
    %c0_40 = arith.constant 0 : index
    %50 = vector.load %arg3[%c0_39, %c0_40] : memref<4x32xf32, #tpu.memory_space<vmem>>, vector<4x32xf32>
    %cst_41 = arith.constant dense<0.000000e+00> : vector<256x32xf32>
    %51 = tpu.matmul %49, %50, %cst_41 {dimension_numbers = #tpu.dot_dimension_numbers<[1], [0], [0], [1], [0, 0, 1, 1], [], []>} : vector<256x4xf32>, vector<4x32xf32>, vector<256x32xf32> -> vector<256x32xf32>
    %c0_42 = arith.constant 0 : index
    %c0_43 = arith.constant 0 : index
    %52 = vector.load %arg6[%c0_42, %c0_43] : memref<1x32xf32, #tpu.memory_space<vmem>>, vector<1x32xf32>
    %53 = vector.broadcast %52 : vector<1x32xf32> to vector<256x32xf32>
    %54 = arith.addf %51, %53 : vector<256x32xf32>
    %cst_44 = arith.constant 5.000000e-02 : f32
    %55 = vector.broadcast %cst_44 : f32 to vector<256x32xf32>
    %56 = arith.mulf %55, %54 : vector<256x32xf32>
    %57 = arith.maximumf %54, %56 : vector<256x32xf32>
    %c0_45 = arith.constant 0 : index
    %c0_46 = arith.constant 0 : index
    %58 = vector.load %arg4[%c0_45, %c0_46] : memref<32x32xf32, #tpu.memory_space<vmem>>, vector<32x32xf32>
    %cst_47 = arith.constant dense<0.000000e+00> : vector<256x32xf32>
    %59 = tpu.matmul %57, %58, %cst_47 {dimension_numbers = #tpu.dot_dimension_numbers<[1], [0], [0], [1], [0, 0, 1, 1], [], []>} : vector<256x32xf32>, vector<32x32xf32>, vector<256x32xf32> -> vector<256x32xf32>
    %c0_48 = arith.constant 0 : index
    %c0_49 = arith.constant 0 : index
    %60 = vector.load %arg7[%c0_48, %c0_49] : memref<1x32xf32, #tpu.memory_space<vmem>>, vector<1x32xf32>
    %61 = vector.broadcast %60 : vector<1x32xf32> to vector<256x32xf32>
    %62 = arith.addf %59, %61 : vector<256x32xf32>
    %cst_50 = arith.constant 5.000000e-02 : f32
    %63 = vector.broadcast %cst_50 : f32 to vector<256x32xf32>
    %64 = arith.mulf %63, %62 : vector<256x32xf32>
    %65 = arith.maximumf %62, %64 : vector<256x32xf32>
    %c0_51 = arith.constant 0 : index
    %c0_52 = arith.constant 0 : index
    %66 = vector.load %arg5[%c0_51, %c0_52] : memref<32x16xf32, #tpu.memory_space<vmem>>, vector<32x16xf32>
    %cst_53 = arith.constant dense<0.000000e+00> : vector<256x16xf32>
    %67 = tpu.matmul %65, %66, %cst_53 {dimension_numbers = #tpu.dot_dimension_numbers<[1], [0], [0], [1], [0, 0, 1, 1], [], []>} : vector<256x32xf32>, vector<32x16xf32>, vector<256x16xf32> -> vector<256x16xf32>
    %c0_54 = arith.constant 0 : index
    %c0_55 = arith.constant 0 : index
    %68 = vector.load %arg8[%c0_54, %c0_55] : memref<1x16xf32, #tpu.memory_space<vmem>>, vector<1x16xf32>
    %69 = vector.broadcast %68 : vector<1x16xf32> to vector<256x16xf32>
    %70 = arith.addf %67, %69 : vector<256x16xf32>
    %cst_56 = arith.constant dense<0.000000e+00> : vector<256x16xf32>
    %71 = tpu.matmul %0, %70, %cst_56 {dimension_numbers = #tpu.dot_dimension_numbers<[0], [0], [1], [1], [0, 1, 1, 1], [], []>} : vector<256x256xf32>, vector<256x16xf32>, vector<256x16xf32> -> vector<256x16xf32>
    %c0_57 = arith.constant 0 : index
    %c0_58 = arith.constant 0 : index
    %72 = vector.load %arg9[%c0_57, %c0_58] : memref<16x32xf32, #tpu.memory_space<vmem>>, vector<16x32xf32>
    %cst_59 = arith.constant dense<0.000000e+00> : vector<256x32xf32>
    %73 = tpu.matmul %71, %72, %cst_59 {dimension_numbers = #tpu.dot_dimension_numbers<[1], [0], [0], [1], [0, 0, 1, 1], [], []>} : vector<256x16xf32>, vector<16x32xf32>, vector<256x32xf32> -> vector<256x32xf32>
    %c0_60 = arith.constant 0 : index
    %c0_61 = arith.constant 0 : index
    %74 = vector.load %arg12[%c0_60, %c0_61] : memref<1x32xf32, #tpu.memory_space<vmem>>, vector<1x32xf32>
    %75 = vector.broadcast %74 : vector<1x32xf32> to vector<256x32xf32>
    %76 = arith.addf %73, %75 : vector<256x32xf32>
    %cst_62 = arith.constant 5.000000e-02 : f32
    %77 = vector.broadcast %cst_62 : f32 to vector<256x32xf32>
    %78 = arith.mulf %77, %76 : vector<256x32xf32>
    %79 = arith.maximumf %76, %78 : vector<256x32xf32>
    %c0_63 = arith.constant 0 : index
    %c0_64 = arith.constant 0 : index
    %80 = vector.load %arg10[%c0_63, %c0_64] : memref<32x32xf32, #tpu.memory_space<vmem>>, vector<32x32xf32>
    %cst_65 = arith.constant dense<0.000000e+00> : vector<256x32xf32>
    %81 = tpu.matmul %79, %80, %cst_65 {dimension_numbers = #tpu.dot_dimension_numbers<[1], [0], [0], [1], [0, 0, 1, 1], [], []>} : vector<256x32xf32>, vector<32x32xf32>, vector<256x32xf32> -> vector<256x32xf32>
    %c0_66 = arith.constant 0 : index
    %c0_67 = arith.constant 0 : index
    %82 = vector.load %arg13[%c0_66, %c0_67] : memref<1x32xf32, #tpu.memory_space<vmem>>, vector<1x32xf32>
    %83 = vector.broadcast %82 : vector<1x32xf32> to vector<256x32xf32>
    %84 = arith.addf %81, %83 : vector<256x32xf32>
    %cst_68 = arith.constant 5.000000e-02 : f32
    %85 = vector.broadcast %cst_68 : f32 to vector<256x32xf32>
    %86 = arith.mulf %85, %84 : vector<256x32xf32>
    %87 = arith.maximumf %84, %86 : vector<256x32xf32>
    %c0_69 = arith.constant 0 : index
    %c0_70 = arith.constant 0 : index
    %88 = vector.load %arg11[%c0_69, %c0_70] : memref<32x4xf32, #tpu.memory_space<vmem>>, vector<32x4xf32>
    %cst_71 = arith.constant dense<0.000000e+00> : vector<256x4xf32>
    %89 = tpu.matmul %87, %88, %cst_71 {dimension_numbers = #tpu.dot_dimension_numbers<[1], [0], [0], [1], [0, 0, 1, 1], [], []>} : vector<256x32xf32>, vector<32x4xf32>, vector<256x4xf32> -> vector<256x4xf32>
    %c0_72 = arith.constant 0 : index
    %c0_73 = arith.constant 0 : index
    %90 = vector.load %arg14[%c0_72, %c0_73] : memref<1x4xf32, #tpu.memory_space<vmem>>, vector<1x4xf32>
    %91 = vector.broadcast %90 : vector<1x4xf32> to vector<256x4xf32>
    %92 = arith.addf %89, %91 : vector<256x4xf32>
    %93 = arith.subf %92, %49 : vector<256x4xf32>
    %94 = arith.mulf %93, %93 : vector<256x4xf32>
    %95 = arith.addf %48, %94 : vector<256x4xf32>
    %96 = vector.shape_cast %95 : vector<256x4xf32> to vector<1x256x4xf32>
    %cst_74 = arith.constant dense<0.000000e+00> : vector<1xf32>
    %97 = vector.multi_reduction <add>, %96, %cst_74 [1, 2] : vector<1x256x4xf32> to vector<1xf32>
    %98 = vector.shape_cast %97 : vector<1xf32> to vector<1x1x1xf32>
    %99 = vector.extract %98[0, 0, 0] : f32 from vector<1x1x1xf32>
    %100 = vector.broadcast %99 : f32 to vector<1x8x128xf32>
    %c0_75 = arith.constant 0 : index
    %c0_76 = arith.constant 0 : index
    %c0_77 = arith.constant 0 : index
    %101 = vector.load %arg15[%c0_75, %c0_76, %c0_77] : memref<1x8x128xf32, #tpu.memory_space<vmem>>, vector<1x8x128xf32>
    tpu.vector_store %arg15[%c0_75, %c0_76, %c0_77], %100 {strides = array<i32>} : memref<1x8x128xf32, #tpu.memory_space<vmem>>, vector<1x8x128xf32>,
    return
  }
  func.func @transform_0(%arg0: i32) -> (i32, i32) {
    %c0_i32 = arith.constant 0 : i32
    %c0_i32_0 = arith.constant 0 : i32
    return %arg0, %c0_i32 : i32, i32
  }
  func.func @transform_1(%arg0: i32) -> (i32, i32) {
    %c0_i32 = arith.constant 0 : i32
    %c0_i32_0 = arith.constant 0 : i32
    %c0_i32_1 = arith.constant 0 : i32
    return %c0_i32, %c0_i32_0 : i32, i32
  }
  func.func @transform_2(%arg0: i32) -> (i32, i32) {
    %c0_i32 = arith.constant 0 : i32
    %c0_i32_0 = arith.constant 0 : i32
    %c0_i32_1 = arith.constant 0 : i32
    return %c0_i32, %c0_i32_0 : i32, i32
  }
  func.func @transform_3(%arg0: i32) -> (i32, i32) {
    %c0_i32 = arith.constant 0 : i32
    %c0_i32_0 = arith.constant 0 : i32
    %c0_i32_1 = arith.constant 0 : i32
    return %c0_i32, %c0_i32_0 : i32, i32
  }
  func.func @transform_4(%arg0: i32) -> (i32, i32) {
    %c0_i32 = arith.constant 0 : i32
    %c0_i32_0 = arith.constant 0 : i32
    %c0_i32_1 = arith.constant 0 : i32
    return %c0_i32, %c0_i32_0 : i32, i32
  }
  func.func @transform_5(%arg0: i32) -> (i32, i32) {
    %c0_i32 = arith.constant 0 : i32
    %c0_i32_0 = arith.constant 0 : i32
    %c0_i32_1 = arith.constant 0 : i32
    return %c0_i32, %c0_i32_0 : i32, i32
  }
  func.func @transform_6(%arg0: i32) -> (i32, i32) {
    %c0_i32 = arith.constant 0 : i32
    %c0_i32_0 = arith.constant 0 : i32
    %c0_i32_1 = arith.constant 0 : i32
    return %c0_i32, %c0_i32_0 : i32, i32
  }
  func.func @transform_7(%arg0: i32) -> (i32, i32) {
    %c0_i32 = arith.constant 0 : i32
    %c0_i32_0 = arith.constant 0 : i32
    %c0_i32_1 = arith.constant 0 : i32
    return %c0_i32, %c0_i32_0 : i32, i32
  }
  func.func @transform_8(%arg0: i32) -> (i32, i32) {
    %c0_i32 = arith.constant 0 : i32
    %c0_i32_0 = arith.constant 0 : i32
    %c0_i32_1 = arith.constant 0 : i32
    return %c0_i32, %c0_i32_0 : i32, i32
  }
  func.func @transform_9(%arg0: i32) -> (i32, i32) {
    %c0_i32 = arith.constant 0 : i32
    %c0_i32_0 = arith.constant 0 : i32
    %c0_i32_1 = arith.constant 0 : i32
    return %c0_i32, %c0_i32_0 : i32, i32
  }
  func.func @transform_10(%arg0: i32) -> (i32, i32) {
    %c0_i32 = arith.constant 0 : i32
    %c0_i32_0 = arith.constant 0 : i32
    %c0_i32_1 = arith.constant 0 : i32
    return %c0_i32, %c0_i32_0 : i32, i32
  }
  func.func @transform_11(%arg0: i32) -> (i32, i32) {
    %c0_i32 = arith.constant 0 : i32
    %c0_i32_0 = arith.constant 0 : i32
    %c0_i32_1 = arith.constant 0 : i32
    return %c0_i32, %c0_i32_0 : i32, i32
  }
  func.func @transform_12(%arg0: i32) -> (i32, i32) {
    %c0_i32 = arith.constant 0 : i32
    %c0_i32_0 = arith.constant 0 : i32
    %c0_i32_1 = arith.constant 0 : i32
    return %c0_i32, %c0_i32_0 : i32, i32
  }
  func.func @transform_13(%arg0: i32) -> (i32, i32) {
    %c0_i32 = arith.constant 0 : i32
    %c0_i32_0 = arith.constant 0 : i32
    %c0_i32_1 = arith.constant 0 : i32
    return %c0_i32, %c0_i32_0 : i32, i32
  }
  func.func @transform_14(%arg0: i32) -> (i32, i32, i32) {
    %c0_i32 = arith.constant 0 : i32
    %c0_i32_0 = arith.constant 0 : i32
    %c0_i32_1 = arith.constant 0 : i32
    return %arg0, %c0_i32, %c0_i32_0 : i32, i32, i32
  }
}

module attributes {stable_mosaic.version = 11 : i64} {
  func.func @kernel(%arg0: i32, %arg1: memref<512x4xf32, #tpu.memory_space<vmem>>, %arg2: memref<256x256xf32, #tpu.memory_space<vmem>>, %arg3: memref<4x32xf32, #tpu.memory_space<vmem>>, %arg4: memref<32x32xf32, #tpu.memory_space<vmem>>, %arg5: memref<32x16xf32, #tpu.memory_space<vmem>>, %arg6: memref<1x32xf32, #tpu.memory_space<vmem>>, %arg7: memref<1x32xf32, #tpu.memory_space<vmem>>, %arg8: memref<1x16xf32, #tpu.memory_space<vmem>>, %arg9: memref<16x32xf32, #tpu.memory_space<vmem>>, %arg10: memref<32x32xf32, #tpu.memory_space<vmem>>, %arg11: memref<32x4xf32, #tpu.memory_space<vmem>>, %arg12: memref<1x32xf32, #tpu.memory_space<vmem>>, %arg13: memref<1x32xf32, #tpu.memory_space<vmem>>, %arg14: memref<1x4xf32, #tpu.memory_space<vmem>>, %arg15: memref<1x8x128xf32, #tpu.memory_space<vmem>>) attributes {dimension_semantics = [#tpu.dimension_semantics<parallel>], iteration_bounds = array<i64: 1>, scalar_prefetch = 0 : i64, scratch_operands = 0 : i64, tpu.core_type = #tpu.core_type<tc>, window_params = [{transform_indices = @transform_0, window_bounds = array<i64: 512, 4>}, {pipeline_mode = #tpu.pipeline_mode<synchronous>, transform_indices = @transform_1, window_bounds = array<i64: 256, 256>}, {pipeline_mode = #tpu.pipeline_mode<synchronous>, transform_indices = @transform_2, window_bounds = array<i64: 4, 32>}, {pipeline_mode = #tpu.pipeline_mode<synchronous>, transform_indices = @transform_3, window_bounds = array<i64: 32, 32>}, {pipeline_mode = #tpu.pipeline_mode<synchronous>, transform_indices = @transform_4, window_bounds = array<i64: 32, 16>}, {pipeline_mode = #tpu.pipeline_mode<synchronous>, transform_indices = @transform_5, window_bounds = array<i64: 1, 32>}, {pipeline_mode = #tpu.pipeline_mode<synchronous>, transform_indices = @transform_6, window_bounds = array<i64: 1, 32>}, {pipeline_mode = #tpu.pipeline_mode<synchronous>, transform_indices = @transform_7, window_bounds = array<i64: 1, 16>}, {pipeline_mode = #tpu.pipeline_mode<synchronous>, transform_indices = @transform_8, window_bounds = array<i64: 16, 32>}, {pipeline_mode = #tpu.pipeline_mode<synchronous>, transform_indices = @transform_9, window_bounds = array<i64: 32, 32>}, {pipeline_mode = #tpu.pipeline_mode<synchronous>, transform_indices = @transform_10, window_bounds = array<i64: 32, 4>}, {pipeline_mode = #tpu.pipeline_mode<synchronous>, transform_indices = @transform_11, window_bounds = array<i64: 1, 32>}, {pipeline_mode = #tpu.pipeline_mode<synchronous>, transform_indices = @transform_12, window_bounds = array<i64: 1, 32>}, {pipeline_mode = #tpu.pipeline_mode<synchronous>, transform_indices = @transform_13, window_bounds = array<i64: 1, 4>}, {transform_indices = @transform_14, window_bounds = array<i64: 1, 8, 128>}]} {
    %c0 = arith.constant 0 : index
    %c0_0 = arith.constant 0 : index
    %0 = vector.load %arg2[%c0, %c0_0] : memref<256x256xf32, #tpu.memory_space<vmem>>, vector<256x256xf32>
    %cst = arith.constant 0.000000e+00 : f32
    %1 = vector.broadcast %cst : f32 to vector<256x4xf32>
    %c0_1 = arith.constant 0 : index
    %c0_2 = arith.constant 0 : index
    %2 = vector.load %arg1[%c0_1, %c0_2] : memref<512x4xf32, #tpu.memory_space<vmem>>, vector<256x4xf32>
    %c0_3 = arith.constant 0 : index
    %c0_4 = arith.constant 0 : index
    %3 = vector.load %arg3[%c0_3, %c0_4] : memref<4x32xf32, #tpu.memory_space<vmem>>, vector<4x32xf32>
    %cst_5 = arith.constant dense<0.000000e+00> : vector<256x32xf32>
    %4 = tpu.matmul %2, %3, %cst_5 {dimension_numbers = #tpu.dot_dimension_numbers<[1], [0], [0], [1], [0, 0, 1, 1], [], []>} : vector<256x4xf32>, vector<4x32xf32>, vector<256x32xf32> -> vector<256x32xf32>
    %c0_6 = arith.constant 0 : index
    %c0_7 = arith.constant 0 : index
    %5 = vector.load %arg6[%c0_6, %c0_7] : memref<1x32xf32, #tpu.memory_space<vmem>>, vector<1x32xf32>
    %6 = vector.broadcast %5 : vector<1x32xf32> to vector<256x32xf32>
    %7 = arith.addf %4, %6 : vector<256x32xf32>
    %cst_8 = arith.constant 5.000000e-02 : f32
    %8 = vector.broadcast %cst_8 : f32 to vector<256x32xf32>
    %9 = arith.mulf %8, %7 : vector<256x32xf32>
    %10 = arith.maximumf %7, %9 : vector<256x32xf32>
    %c0_9 = arith.constant 0 : index
    %c0_10 = arith.constant 0 : index
    %11 = vector.load %arg4[%c0_9, %c0_10] : memref<32x32xf32, #tpu.memory_space<vmem>>, vector<32x32xf32>
    %cst_11 = arith.constant dense<0.000000e+00> : vector<256x32xf32>
    %12 = tpu.matmul %10, %11, %cst_11 {dimension_numbers = #tpu.dot_dimension_numbers<[1], [0], [0], [1], [0, 0, 1, 1], [], []>} : vector<256x32xf32>, vector<32x32xf32>, vector<256x32xf32> -> vector<256x32xf32>
    %c0_12 = arith.constant 0 : index
    %c0_13 = arith.constant 0 : index
    %13 = vector.load %arg7[%c0_12, %c0_13] : memref<1x32xf32, #tpu.memory_space<vmem>>, vector<1x32xf32>
    %14 = vector.broadcast %13 : vector<1x32xf32> to vector<256x32xf32>
    %15 = arith.addf %12, %14 : vector<256x32xf32>
    %cst_14 = arith.constant 5.000000e-02 : f32
    %16 = vector.broadcast %cst_14 : f32 to vector<256x32xf32>
    %17 = arith.mulf %16, %15 : vector<256x32xf32>
    %18 = arith.maximumf %15, %17 : vector<256x32xf32>
    %c0_15 = arith.constant 0 : index
    %c0_16 = arith.constant 0 : index
    %19 = vector.load %arg5[%c0_15, %c0_16] : memref<32x16xf32, #tpu.memory_space<vmem>>, vector<32x16xf32>
    %cst_17 = arith.constant dense<0.000000e+00> : vector<256x16xf32>
    %20 = tpu.matmul %18, %19, %cst_17 {dimension_numbers = #tpu.dot_dimension_numbers<[1], [0], [0], [1], [0, 0, 1, 1], [], []>} : vector<256x32xf32>, vector<32x16xf32>, vector<256x16xf32> -> vector<256x16xf32>
    %c0_18 = arith.constant 0 : index
    %c0_19 = arith.constant 0 : index
    %21 = vector.load %arg8[%c0_18, %c0_19] : memref<1x16xf32, #tpu.memory_space<vmem>>, vector<1x16xf32>
    %22 = vector.broadcast %21 : vector<1x16xf32> to vector<256x16xf32>
    %23 = arith.addf %20, %22 : vector<256x16xf32>
    %cst_20 = arith.constant dense<0.000000e+00> : vector<256x16xf32>
    %24 = tpu.matmul %0, %23, %cst_20 {dimension_numbers = #tpu.dot_dimension_numbers<[0], [0], [1], [1], [0, 1, 1, 1], [], []>} : vector<256x256xf32>, vector<256x16xf32>, vector<256x16xf32> -> vector<256x16xf32>
    %c0_21 = arith.constant 0 : index
    %c0_22 = arith.constant 0 : index
    %25 = vector.load %arg9[%c0_21, %c0_22] : memref<16x32xf32, #tpu.memory_space<vmem>>, vector<16x32xf32>
    %cst_23 = arith.constant dense<0.000000e+00> : vector<256x32xf32>
    %26 = tpu.matmul %24, %25, %cst_23 {dimension_numbers = #tpu.dot_dimension_numbers<[1], [0], [0], [1], [0, 0, 1, 1], [], []>} : vector<256x16xf32>, vector<16x32xf32>, vector<256x32xf32> -> vector<256x32xf32>
    %c0_24 = arith.constant 0 : index
    %c0_25 = arith.constant 0 : index
    %27 = vector.load %arg12[%c0_24, %c0_25] : memref<1x32xf32, #tpu.memory_space<vmem>>, vector<1x32xf32>
    %28 = vector.broadcast %27 : vector<1x32xf32> to vector<256x32xf32>
    %29 = arith.addf %26, %28 : vector<256x32xf32>
    %cst_26 = arith.constant 5.000000e-02 : f32
    %30 = vector.broadcast %cst_26 : f32 to vector<256x32xf32>
    %31 = arith.mulf %30, %29 : vector<256x32xf32>
    %32 = arith.maximumf %29, %31 : vector<256x32xf32>
    %c0_27 = arith.constant 0 : index
    %c0_28 = arith.constant 0 : index
    %33 = vector.load %arg10[%c0_27, %c0_28] : memref<32x32xf32, #tpu.memory_space<vmem>>, vector<32x32xf32>
    %cst_29 = arith.constant dense<0.000000e+00> : vector<256x32xf32>
    %34 = tpu.matmul %32, %33, %cst_29 {dimension_numbers = #tpu.dot_dimension_numbers<[1], [0], [0], [1], [0, 0, 1, 1], [], []>} : vector<256x32xf32>, vector<32x32xf32>, vector<256x32xf32> -> vector<256x32xf32>
    %c0_30 = arith.constant 0 : index
    %c0_31 = arith.constant 0 : index
    %35 = vector.load %arg13[%c0_30, %c0_31] : memref<1x32xf32, #tpu.memory_space<vmem>>, vector<1x32xf32>
    %36 = vector.broadcast %35 : vector<1x32xf32> to vector<256x32xf32>
    %37 = arith.addf %34, %36 : vector<256x32xf32>
    %cst_32 = arith.constant 5.000000e-02 : f32
    %38 = vector.broadcast %cst_32 : f32 to vector<256x32xf32>
    %39 = arith.mulf %38, %37 : vector<256x32xf32>
    %40 = arith.maximumf %37, %39 : vector<256x32xf32>
    %c0_33 = arith.constant 0 : index
    %c0_34 = arith.constant 0 : index
    %41 = vector.load %arg11[%c0_33, %c0_34] : memref<32x4xf32, #tpu.memory_space<vmem>>, vector<32x4xf32>
    %cst_35 = arith.constant dense<0.000000e+00> : vector<256x4xf32>
    %42 = tpu.matmul %40, %41, %cst_35 {dimension_numbers = #tpu.dot_dimension_numbers<[1], [0], [0], [1], [0, 0, 1, 1], [], []>} : vector<256x32xf32>, vector<32x4xf32>, vector<256x4xf32> -> vector<256x4xf32>
    %c0_36 = arith.constant 0 : index
    %c0_37 = arith.constant 0 : index
    %43 = vector.load %arg14[%c0_36, %c0_37] : memref<1x4xf32, #tpu.memory_space<vmem>>, vector<1x4xf32>
    %44 = vector.broadcast %43 : vector<1x4xf32> to vector<256x4xf32>
    %45 = arith.addf %42, %44 : vector<256x4xf32>
    %46 = arith.subf %45, %2 : vector<256x4xf32>
    %47 = arith.mulf %46, %46 : vector<256x4xf32>
    %48 = arith.addf %1, %47 : vector<256x4xf32>
    %c256 = arith.constant 256 : index
    %c0_38 = arith.constant 0 : index
    %49 = vector.load %arg1[%c256, %c0_38] : memref<512x4xf32, #tpu.memory_space<vmem>>, vector<256x4xf32>
    %c0_39 = arith.constant 0 : index
    %c0_40 = arith.constant 0 : index
    %50 = vector.load %arg3[%c0_39, %c0_40] : memref<4x32xf32, #tpu.memory_space<vmem>>, vector<4x32xf32>
    %cst_41 = arith.constant dense<0.000000e+00> : vector<256x32xf32>
    %51 = tpu.matmul %49, %50, %cst_41 {dimension_numbers = #tpu.dot_dimension_numbers<[1], [0], [0], [1], [0, 0, 1, 1], [], []>} : vector<256x4xf32>, vector<4x32xf32>, vector<256x32xf32> -> vector<256x32xf32>
    %c0_42 = arith.constant 0 : index
    %c0_43 = arith.constant 0 : index
    %52 = vector.load %arg6[%c0_42, %c0_43] : memref<1x32xf32, #tpu.memory_space<vmem>>, vector<1x32xf32>
    %53 = vector.broadcast %52 : vector<1x32xf32> to vector<256x32xf32>
    %54 = arith.addf %51, %53 : vector<256x32xf32>
    %cst_44 = arith.constant 5.000000e-02 : f32
    %55 = vector.broadcast %cst_44 : f32 to vector<256x32xf32>
    %56 = arith.mulf %55, %54 : vector<256x32xf32>
    %57 = arith.maximumf %54, %56 : vector<256x32xf32>
    %c0_45 = arith.constant 0 : index
    %c0_46 = arith.constant 0 : index
    %58 = vector.load %arg4[%c0_45, %c0_46] : memref<32x32xf32, #tpu.memory_space<vmem>>, vector<32x32xf32>
    %cst_47 = arith.constant dense<0.000000e+00> : vector<256x32xf32>
    %59 = tpu.matmul %57, %58, %cst_47 {dimension_numbers = #tpu.dot_dimension_numbers<[1], [0], [0], [1], [0, 0, 1, 1], [], []>} : vector<256x32xf32>, vector<32x32xf32>, vector<256x32xf32> -> vector<256x32xf32>
    %c0_48 = arith.constant 0 : index
    %c0_49 = arith.constant 0 : index
    %60 = vector.load %arg7[%c0_48, %c0_49] : memref<1x32xf32, #tpu.memory_space<vmem>>, vector<1x32xf32>
    %61 = vector.broadcast %60 : vector<1x32xf32> to vector<256x32xf32>
    %62 = arith.addf %59, %61 : vector<256x32xf32>
    %cst_50 = arith.constant 5.000000e-02 : f32
    %63 = vector.broadcast %cst_50 : f32 to vector<256x32xf32>
    %64 = arith.mulf %63, %62 : vector<256x32xf32>
    %65 = arith.maximumf %62, %64 : vector<256x32xf32>
    %c0_51 = arith.constant 0 : index
    %c0_52 = arith.constant 0 : index
    %66 = vector.load %arg5[%c0_51, %c0_52] : memref<32x16xf32, #tpu.memory_space<vmem>>, vector<32x16xf32>
    %cst_53 = arith.constant dense<0.000000e+00> : vector<256x16xf32>
    %67 = tpu.matmul %65, %66, %cst_53 {dimension_numbers = #tpu.dot_dimension_numbers<[1], [0], [0], [1], [0, 0, 1, 1], [], []>} : vector<256x32xf32>, vector<32x16xf32>, vector<256x16xf32> -> vector<256x16xf32>
    %c0_54 = arith.constant 0 : index
    %c0_55 = arith.constant 0 : index
    %68 = vector.load %arg8[%c0_54, %c0_55] : memref<1x16xf32, #tpu.memory_space<vmem>>, vector<1x16xf32>
    %69 = vector.broadcast %68 : vector<1x16xf32> to vector<256x16xf32>
    %70 = arith.addf %67, %69 : vector<256x16xf32>
    %cst_56 = arith.constant dense<0.000000e+00> : vector<256x16xf32>
    %71 = tpu.matmul %0, %70, %cst_56 {dimension_numbers = #tpu.dot_dimension_numbers<[0], [0], [1], [1], [0, 1, 1, 1], [], []>} : vector<256x256xf32>, vector<256x16xf32>, vector<256x16xf32> -> vector<256x16xf32>
    %c0_57 = arith.constant 0 : index
    %c0_58 = arith.constant 0 : index
    %72 = vector.load %arg9[%c0_57, %c0_58] : memref<16x32xf32, #tpu.memory_space<vmem>>, vector<16x32xf32>
    %cst_59 = arith.constant dense<0.000000e+00> : vector<256x32xf32>
    %73 = tpu.matmul %71, %72, %cst_59 {dimension_numbers = #tpu.dot_dimension_numbers<[1], [0], [0], [1], [0, 0, 1, 1], [], []>} : vector<256x16xf32>, vector<16x32xf32>, vector<256x32xf32> -> vector<256x32xf32>
    %c0_60 = arith.constant 0 : index
    %c0_61 = arith.constant 0 : index
    %74 = vector.load %arg12[%c0_60, %c0_61] : memref<1x32xf32, #tpu.memory_space<vmem>>, vector<1x32xf32>
    %75 = vector.broadcast %74 : vector<1x32xf32> to vector<256x32xf32>
    %76 = arith.addf %73, %75 : vector<256x32xf32>
    %cst_62 = arith.constant 5.000000e-02 : f32
    %77 = vector.broadcast %cst_62 : f32 to vector<256x32xf32>
    %78 = arith.mulf %77, %76 : vector<256x32xf32>
    %79 = arith.maximumf %76, %78 : vector<256x32xf32>
    %c0_63 = arith.constant 0 : index
    %c0_64 = arith.constant 0 : index
    %80 = vector.load %arg10[%c0_63, %c0_64] : memref<32x32xf32, #tpu.memory_space<vmem>>, vector<32x32xf32>
    %cst_65 = arith.constant dense<0.000000e+00> : vector<256x32xf32>
    %81 = tpu.matmul %79, %80, %cst_65 {dimension_numbers = #tpu.dot_dimension_numbers<[1], [0], [0], [1], [0, 0, 1, 1], [], []>} : vector<256x32xf32>, vector<32x32xf32>, vector<256x32xf32> -> vector<256x32xf32>
    %c0_66 = arith.constant 0 : index
    %c0_67 = arith.constant 0 : index
    %82 = vector.load %arg13[%c0_66, %c0_67] : memref<1x32xf32, #tpu.memory_space<vmem>>, vector<1x32xf32>
    %83 = vector.broadcast %82 : vector<1x32xf32> to vector<256x32xf32>
    %84 = arith.addf %81, %83 : vector<256x32xf32>
    %cst_68 = arith.constant 5.000000e-02 : f32
    %85 = vector.broadcast %cst_68 : f32 to vector<256x32xf32>
    %86 = arith.mulf %85, %84 : vector<256x32xf32>
    %87 = arith.maximumf %84, %86 : vector<256x32xf32>
    %c0_69 = arith.constant 0 : index
    %c0_70 = arith.constant 0 : index
    %88 = vector.load %arg11[%c0_69, %c0_70] : memref<32x4xf32, #tpu.memory_space<vmem>>, vector<32x4xf32>
    %cst_71 = arith.constant dense<0.000000e+00> : vector<256x4xf32>
    %89 = tpu.matmul %87, %88, %cst_71 {dimension_numbers = #tpu.dot_dimension_numbers<[1], [0], [0], [1], [0, 0, 1, 1], [], []>} : vector<256x32xf32>, vector<32x4xf32>, vector<256x4xf32> -> vector<256x4xf32>
    %c0_72 = arith.constant 0 : index
    %c0_73 = arith.constant 0 : index
    %90 = vector.load %arg14[%c0_72, %c0_73] : memref<1x4xf32, #tpu.memory_space<vmem>>, vector<1x4xf32>
    %91 = vector.broadcast %90 : vector<1x4xf32> to vector<256x4xf32>
    %92 = arith.addf %89, %91 : vector<256x4xf32>
    %93 = arith.subf %92, %49 : vector<256x4xf32>
    %94 = arith.mulf %93, %93 : vector<256x4xf32>
    %95 = arith.addf %48, %94 : vector<256x4xf32>
    %96 = vector.shape_cast %95 : vector<256x4xf32> to vector<1x256x4xf32>
    %cst_74 = arith.constant dense<0.000000e+00> : vector<1xf32>
    %97 = vector.multi_reduction <add>, %96, %cst_74 [1, 2] : vector<1x256x4xf32> to vector<1xf32>
    %98 = vector.shape_cast %97 : vector<1xf32> to vector<1x1x1xf32>
    %99 = vector.extract %98[0, 0, 0] : f32 from vector<1x1x1xf32>
    %100 = vector.broadcast %99 : f32 to vector<1x8x128xf32>
    %c0_75 = arith.constant 0 : index
    %c0_76 = arith.constant 0 : index
    %c0_77 = arith.constant 0 : index
    %101 = vector.load %arg15[%c0_75, %c0_76, %c0_77] : memref<1x8x128xf32, #tpu.memory_space<vmem>>, vector<1x8x128xf32>
    tpu.vector_store %arg15[%c0_75, %c0_76, %c0_77], %100 {strides = array<i32>} : memref<1x8x128xf32, #tpu.memory_space<vmem>>, vector<1x8x128xf32>,
    return
  }
  func.func @transform_0(%arg0: i32) -> (i32, i32) {
    %c0_i32 = arith.constant 0 : i32
    %c0_i32_0 = arith.constant 0 : i32
    return %arg0, %c0_i32 : i32, i32
  }
  func.func @transform_1(%arg0: i32) -> (i32, i32) {
    %c0_i32 = arith.constant 0 : i32
    %c0_i32_0 = arith.constant 0 : i32
    %c0_i32_1 = arith.constant 0 : i32
    return %c0_i32, %c0_i32_0 : i32, i32
  }
  func.func @transform_2(%arg0: i32) -> (i32, i32) {
    %c0_i32 = arith.constant 0 : i32
    %c0_i32_0 = arith.constant 0 : i32
    %c0_i32_1 = arith.constant 0 : i32
    return %c0_i32, %c0_i32_0 : i32, i32
  }
  func.func @transform_3(%arg0: i32) -> (i32, i32) {
    %c0_i32 = arith.constant 0 : i32
    %c0_i32_0 = arith.constant 0 : i32
    %c0_i32_1 = arith.constant 0 : i32
    return %c0_i32, %c0_i32_0 : i32, i32
  }
  func.func @transform_4(%arg0: i32) -> (i32, i32) {
    %c0_i32 = arith.constant 0 : i32
    %c0_i32_0 = arith.constant 0 : i32
    %c0_i32_1 = arith.constant 0 : i32
    return %c0_i32, %c0_i32_0 : i32, i32
  }
  func.func @transform_5(%arg0: i32) -> (i32, i32) {
    %c0_i32 = arith.constant 0 : i32
    %c0_i32_0 = arith.constant 0 : i32
    %c0_i32_1 = arith.constant 0 : i32
    return %c0_i32, %c0_i32_0 : i32, i32
  }
  func.func @transform_6(%arg0: i32) -> (i32, i32) {
    %c0_i32 = arith.constant 0 : i32
    %c0_i32_0 = arith.constant 0 : i32
    %c0_i32_1 = arith.constant 0 : i32
    return %c0_i32, %c0_i32_0 : i32, i32
  }
  func.func @transform_7(%arg0: i32) -> (i32, i32) {
    %c0_i32 = arith.constant 0 : i32
    %c0_i32_0 = arith.constant 0 : i32
    %c0_i32_1 = arith.constant 0 : i32
    return %c0_i32, %c0_i32_0 : i32, i32
  }
  func.func @transform_8(%arg0: i32) -> (i32, i32) {
    %c0_i32 = arith.constant 0 : i32
    %c0_i32_0 = arith.constant 0 : i32
    %c0_i32_1 = arith.constant 0 : i32
    return %c0_i32, %c0_i32_0 : i32, i32
  }
  func.func @transform_9(%arg0: i32) -> (i32, i32) {
    %c0_i32 = arith.constant 0 : i32
    %c0_i32_0 = arith.constant 0 : i32
    %c0_i32_1 = arith.constant 0 : i32
    return %c0_i32, %c0_i32_0 : i32, i32
  }
  func.func @transform_10(%arg0: i32) -> (i32, i32) {
    %c0_i32 = arith.constant 0 : i32
    %c0_i32_0 = arith.constant 0 : i32
    %c0_i32_1 = arith.constant 0 : i32
    return %c0_i32, %c0_i32_0 : i32, i32
  }
  func.func @transform_11(%arg0: i32) -> (i32, i32) {
    %c0_i32 = arith.constant 0 : i32
    %c0_i32_0 = arith.constant 0 : i32
    %c0_i32_1 = arith.constant 0 : i32
    return %c0_i32, %c0_i32_0 : i32, i32
  }
  func.func @transform_12(%arg0: i32) -> (i32, i32) {
    %c0_i32 = arith.constant 0 : i32
    %c0_i32_0 = arith.constant 0 : i32
    %c0_i32_1 = arith.constant 0 : i32
    return %c0_i32, %c0_i32_0 : i32, i32
  }
  func.func @transform_13(%arg0: i32) -> (i32, i32) {
    %c0_i32 = arith.constant 0 : i32
    %c0_i32_0 = arith.constant 0 : i32
    %c0_i32_1 = arith.constant 0 : i32
    return %c0_i32, %c0_i32_0 : i32, i32
  }
  func.func @transform_14(%arg0: i32) -> (i32, i32, i32) {
    %c0_i32 = arith.constant 0 : i32
    %c0_i32_0 = arith.constant 0 : i32
    %c0_i32_1 = arith.constant 0 : i32
    return %arg0, %c0_i32, %c0_i32_0 : i32, i32, i32
  }
}

</mosaic_0001>

<bundles_post_ra>
// kernel: tpu_custom_call.1
= control target key start
LH: loop header
LB: loop body
LE: loop exit
PB: predicated region body
PF: predicated region fallthrough
CT: control target
= control target key end

     0   :  { %vm249_vm0 = vcmask 1043456   ;;  %vm152_vm1 = vcmask 31744   ;;  %s9572_s0 = inlined_call_operand.vmem [shape: f32[512,4], index: 0, kind: input, shape index: {}]   ;;  %s9573_s1 = inlined_call_operand.vmem [shape: f32[256,256], index: 1, kind: input, shape index: {}]   ;;  %s9574_s2 = inlined_call_operand.vmem [shape: f32[4,32], index: 2, kind: input, shape index: {}]   ;;  %s9575_s3 = inlined_call_operand.vmem [shape: f32[32,32], index: 3, kind: input, shape index: {}]   ;;  %s9576_s4 = inlined_call_operand.vmem [shape: f32[32,16], index: 4, kind: input, shape index: {}]   ;;  %s9577_s5 = inlined_call_operand.vmem [shape: f32[1,32], index: 5, kind: input, shape index: {}]   ;;  %s9578_s6 = inlined_call_operand.vmem [shape: f32[1,32], index: 6, kind: input, shape index: {}]   ;;  %s9579_s7 = inlined_call_operand.vmem [shape: f32[1,16], index: 7, kind: input, shape index: {}]   ;;  %s9580_s8 = inlined_call_operand.vmem [shape: f32[16,32], index: 8, kind: input, shape index: {}]   ;;  %s9581_s9 = inlined_call_operand.vmem [shape: f32[32,32], index: 9, kind: input, shape index: {}]   ;;  %s9582_s10 = inlined_call_operand.vmem [shape: f32[32,4], index: 10, kind: input, shape index: {}]   ;;  %s9583_s11 = inlined_call_operand.vmem [shape: f32[1,32], index: 11, kind: input, shape index: {}]   ;;  %s9584_s12 = inlined_call_operand.vmem [shape: f32[1,32], index: 12, kind: input, shape index: {}]   ;;  %s9585_s13 = inlined_call_operand.vmem [shape: f32[1,4], index: 13, kind: input, shape index: {}]   ;;  %s9586_s14 = inlined_call_operand.hbm [shape: f32[1,8,128], index: 14, kind: output, shape index: {}]  }
   0x1   :  { %v144_v0 = vld [vmem:[%s9574_s2] sm:$0xf]  ;;  %v113_v2 = vld [vmem:[%s9572_s0 + $0x8] sm:$0xff]  ;;  %v114_v3 = vld [vmem:[%s9572_s0 + $0x10] sm:$0xff] }
   0x2   :  { %v112_v1 = vld [vmem:[%s9572_s0] sm:$0xff]  ;;  %6280 = vmatprep.subr.msk.mxu0 %vm249_vm0, %v144_v0  ;;  %v115_v4 = vld [vmem:[%s9572_s0 + $0x18] sm:$0xff]  ;;  %v117_v6 = vld [vmem:[%s9572_s0 + $0x28] sm:$0xff] }
   0x3   :  { %6282 = vmatprep.mubr.msk.f32.mxu0 %vm152_vm1, %v112_v1  ;;  %6281 = vmatpush3.msk.msra.mxu0 %vm249_vm0, %v144_v0  ;;  %v116_v5 = vld [vmem:[%s9572_s0 + $0x20] sm:$0xff]  ;;  %v118_v7 = vld [vmem:[%s9572_s0 + $0x30] sm:$0xff] }
   0x4   :  { %6283 = vmatmul.mubr.msk.f32.vlgmr.msra.gmra.mrb[0].mxu0 %vm152_vm1, %v113_v2 }
   0x5   :  { %6285 = vmatprep.mubr.msk.f32.mxu0 %vm152_vm1, %v114_v3 }
   0x8   :  { %6286 = vmatmul.mubr.msk.f32.gmra.mrb[2].mxu0 %vm152_vm1, %v115_v4 }
   0x9   :  { %6288 = vmatprep.mubr.msk.f32.mxu0 %vm152_vm1, %v116_v5 }
   0xc   :  { %6289 = vmatmul.mubr.msk.f32.gmra.mrb[4].mxu0 %vm152_vm1, %v117_v6 }
   0xd   :  { %19 = vsyncpa [#allocation3], 0  ;;  %6291 = vmatprep.mubr.msk.f32.mxu0 %vm152_vm1, %v118_v7  ;;  %v119_v8 = vld [vmem:[%s9572_s0 + $0x38] sm:$0xff]  ;;  %v120_v9 = vld [vmem:[%s9572_s0 + $0x40] sm:$0xff]  ;;  %vm553_vm2 = vcmask 261120   ;;  %vm1633_vm3 = vcmask 130048  }
   0xe   :  { %v121_v10 = vld [vmem:[%s9572_s0 + $0x48] sm:$0xff]  ;;  %v122_v11 = vld [vmem:[%s9572_s0 + $0x50] sm:$0xff]  ;;  %v123_v12 = vld [vmem:[%s9572_s0 + $0x58] sm:$0xff] }
   0xf   :  { %v124_v13 = vld [vmem:[%s9572_s0 + $0x60] sm:$0xff]  ;;  %v125_v14 = vld [vmem:[%s9572_s0 + $0x68] sm:$0xff]  ;;  %v126_v15 = vld [vmem:[%s9572_s0 + $0x70] sm:$0xff] }
  0x10   :  { %6292 = vmatmul.mubr.msk.f32.gmra.mrb[6].mxu0 %vm152_vm1, %v119_v8  ;;  %v127_v16 = vld [vmem:[%s9572_s0 + $0x78] sm:$0xff]  ;;  %v128_v17 = vld [vmem:[%s9572_s0 + $0x80] sm:$0xff]  ;;  %v129_v18 = vld [vmem:[%s9572_s0 + $0x88] sm:$0xff] }
  0x11   :  { %6294 = vmatprep.mubr.msk.f32.mxu0 %vm152_vm1, %v120_v9  ;;  %v130_v19 = vld [vmem:[%s9572_s0 + $0x90] sm:$0xff]  ;;  %v131_v20 = vld [vmem:[%s9572_s0 + $0x98] sm:$0xff]  ;;  %v132_v21 = vld [vmem:[%s9572_s0 + $0xa0] sm:$0xff] }
  0x12   :  { %v133_v22 = vld [vmem:[%s9572_s0 + $0xa8] sm:$0xff]  ;;  %v134_v23 = vld [vmem:[%s9572_s0 + $0xb0] sm:$0xff]  ;;  %v135_v24 = vld [vmem:[%s9572_s0 + $0xb8] sm:$0xff] }
  0x13   :  { %v136_v25 = vld [vmem:[%s9572_s0 + $0xc0] sm:$0xff]  ;;  %v137_v26 = vld [vmem:[%s9572_s0 + $0xc8] sm:$0xff]  ;;  %v138_v27 = vld [vmem:[%s9572_s0 + $0xd0] sm:$0xff] }
  0x14   :  { %6295 = vmatmul.mubr.msk.f32.gmra.mrb[8].mxu0 %vm152_vm1, %v121_v10  ;;  %v139_v28 = vld [vmem:[%s9572_s0 + $0xd8] sm:$0xff]  ;;  %v140_v29 = vld [vmem:[%s9572_s0 + $0xe0] sm:$0xff]  ;;  %v141_v30 = vld [vmem:[%s9572_s0 + $0xe8] sm:$0xff] }
  0x15   :  { %6297 = vmatprep.mubr.msk.f32.mxu0 %vm152_vm1, %v122_v11  ;;  %v142_v31 = vld [vmem:[%s9572_s0 + $0xf0] sm:$0xff]  ;;  %v143_v32 = vld [vmem:[%s9572_s0 + $0xf8] sm:$0xff]  ;;  %v542_v33 = vld [vmem:[%s9575_s3] sm:$0xff] }
  0x16   :  { %v543_v34 = vld [vmem:[%s9575_s3 + $0x8] sm:$0xff]  ;;  %v544_v36 = vld [vmem:[%s9575_s3 + $0x10] sm:$0xff]  ;;  %v545_v37 = vld [vmem:[%s9575_s3 + $0x18] sm:$0xff] }
  0x17   :  { %v7638_v35 = vpack.c.bf16 %v543_v34, %v542_v33  ;;  %v7648_v38 = vpack.c.bf16 %v545_v37, %v544_v36  ;;  %v939_v39 = vld [vmem:[%s9576_s4] sm:$0xff]  ;;  %v940_v40 = vld [vmem:[%s9576_s4 + $0x8] sm:$0xff]  ;;  %v941_v41 = vld [vmem:[%s9576_s4 + $0x10] sm:$0xff] }
  0x18   :  { %6298 = vmatmul.mubr.msk.f32.gmra.mrb[10].mxu0 %vm152_vm1, %v123_v12  ;;  %v7661_v42 = vpack.c.bf16 %v940_v40, %v939_v39  ;;  %v942_v43 = vld [vmem:[%s9576_s4 + $0x18] sm:$0xff]  ;;  %v7675_v45 = vld [vmem:[%s9577_s5] ss:$0 sm:$0xff] }
  0x19   :  { %6300 = vmatprep.mubr.msk.f32.mxu0 %vm152_vm1, %v124_v13  ;;  %6933 = vmatprep.subr.bf16.mxu1 %v7638_v35  ;;  %v7666_v44 = vpack.c.bf16 %v942_v43, %v941_v41 }
  0x1a   :  { %6935 = vmatpush3.bf16.msra.mxu1 %v7638_v35  ;;  %6941 = vmatprep.subr.bf16.mxu0 %v7661_v42 }
  0x1b   :  { %6937 = vmatprep.subr.bf16.mxu1 %v7648_v38  ;;  %6943 = vmatpush3.bf16.msra.mxu0 %v7661_v42 }
  0x1c   :  { %6301 = vmatmul.mubr.msk.f32.gmra.mrb[12].mxu0 %vm152_vm1, %v125_v14  ;;  %6945 = vmatprep.subr.bf16.mxu0 %v7666_v44 }
  0x1d   :  { %6303 = vmatprep.mubr.msk.f32.mxu0 %vm152_vm1, %v126_v15 }
  0x1e   :  { %6939 = vmatpush3.bf16.msra.mxu1 %v7648_v38 }
  0x1f   :  { %6947 = vmatpush3.bf16.msra.mxu0 %v7666_v44 }
  0x20   :  { %6304 = vmatmul.mubr.msk.f32.gmra.mrb[14].mxu0 %vm152_vm1, %v127_v16 }
  0x21   :  { %6306 = vmatprep.mubr.msk.f32.mxu0 %vm152_vm1, %v128_v17 }
  0x24   :  { %6307 = vmatmul.mubr.msk.f32.gmra.mrb[16].mxu0 %vm152_vm1, %v129_v18 }
  0x25   :  { %6309 = vmatprep.mubr.msk.f32.mxu0 %vm152_vm1, %v130_v19 }
  0x28   :  { %6310 = vmatmul.mubr.msk.f32.gmra.mrb[18].mxu0 %vm152_vm1, %v131_v20 }
  0x29   :  { %6312 = vmatprep.mubr.msk.f32.mxu0 %vm152_vm1, %v132_v21 }
  0x2c   :  { %6313 = vmatmul.mubr.msk.f32.gmra.mrb[20].mxu0 %vm152_vm1, %v133_v22 }
  0x2d   :  { %6315 = vmatprep.mubr.msk.f32.mxu0 %vm152_vm1, %v134_v23 }
  0x30   :  { %6316 = vmatmul.mubr.msk.f32.gmra.mrb[22].mxu0 %vm152_vm1, %v135_v24 }
  0x31   :  { %6318 = vmatprep.mubr.msk.f32.mxu0 %vm152_vm1, %v136_v25 }
  0x34   :  { %6319 = vmatmul.mubr.msk.f32.gmra.mrb[24].mxu0 %vm152_vm1, %v137_v26 }
  0x35   :  { %6321 = vmatprep.mubr.msk.f32.mxu0 %vm152_vm1, %v138_v27 }
  0x38   :  { %6322 = vmatmul.mubr.msk.f32.gmra.mrb[26].mxu0 %vm152_vm1, %v139_v28 }
  0x39   :  { %6324 = vmatprep.mubr.msk.f32.mxu0 %vm152_vm1, %v140_v29 }
  0x3c   :  { %6325 = vmatmul.mubr.msk.f32.gmra.mrb[28].mxu0 %vm152_vm1, %v141_v30 }
  0x3d   :  { %6327 = vmatprep.mubr.msk.f32.mxu0 %vm152_vm1, %v142_v31 }
  0x40   :  { %6328 = vmatmul.mubr.msk.f32.gmra.mrb[30].mxu0 %vm152_vm1, %v143_v32 }
  0xd7   :  { %v6284_v46 = vpop.f32.mrb[0].mxu0 }
  0xd8   :  { %v325_v47 = vadd.f32 %v6284_v46, %v7675_v45  ;;  %v319_v48 = vpop.f32.mrb[1].mxu0 }
  0xd9   :  { %v320_v49 = vadd.f32 %v7675_v45, %v319_v48 }
  0xda   :  { %v479_v50 = vmul.f32 0.05, %v325_v47 }
  0xdb   :  { %v478_v51 = vmul.f32 0.05, %v320_v49  ;;  %v6287_v52 = vpop.f32.mrb[2].mxu0 }
  0xdc   :  { %v335_v53 = vadd.f32 %v6287_v52, %v7675_v45  ;;  %v329_v54 = vpop.f32.mrb[3].mxu0  ;;  %v511_v57 = vmax.f32 %v325_v47, %v479_v50 }
  0xdd   :  { %v330_v55 = vadd.f32 %v7675_v45, %v329_v54  ;;  %v510_v56 = vmax.f32 %v320_v49, %v478_v51 }
  0xde   :  { %v481_v58 = vmul.f32 0.05, %v335_v53 }
  0xdf   :  { %v480_v59 = vmul.f32 0.05, %v330_v55  ;;  %v6290_v60 = vpop.f32.mrb[4].mxu0  ;;  %6338 = vmatprep.mubr.msk.f32.mxu1 %vm553_vm2, %v510_v56 }
  0xe0   :  { %v345_v61 = vadd.f32 %v6290_v60, %v7675_v45  ;;  %v339_v62 = vpop.f32.mrb[5].mxu0  ;;  %6339 = vmatmul.mubr.msk.f32.vlgmr.msra.gmra.mrb[0].mxu1 %vm553_vm2, %v511_v57  ;;  %v513_v1 = vmax.f32 %v335_v53, %v481_v58 }
  0xe1   :  { %v512_v63 = vmax.f32 %v330_v55, %v480_v59  ;;  %v340_v0 = vadd.f32 %v7675_v45, %v339_v62 }
  0xe2   :  { %v483_v2 = vmul.f32 0.05, %v345_v61 }
  0xe3   :  { %v482_v3 = vmul.f32 0.05, %v340_v0  ;;  %v6293_v4 = vpop.f32.mrb[6].mxu0  ;;  %6341 = vmatprep.mubr.msk.f32.mxu1 %vm553_vm2, %v512_v63 }
  0xe4   :  { %v355_v5 = vadd.f32 %v6293_v4, %v7675_v45  ;;  %v349_v6 = vpop.f32.mrb[7].mxu0  ;;  %6342 = vmatmul.mubr.msk.f32.gmra.mrb[2].mxu1 %vm553_vm2, %v513_v1  ;;  %v515_v9 = vmax.f32 %v345_v61, %v483_v2 }
  0xe5   :  { %v514_v7 = vmax.f32 %v340_v0, %v482_v3  ;;  %v350_v8 = vadd.f32 %v7675_v45, %v349_v6 }
  0xe6   :  { %v485_v10 = vmul.f32 0.05, %v355_v5 }
  0xe7   :  { %v484_v11 = vmul.f32 0.05, %v350_v8  ;;  %v6296_v12 = vpop.f32.mrb[8].mxu0  ;;  %6344 = vmatprep.mubr.msk.f32.mxu1 %vm553_vm2, %v514_v7 }
  0xe8   :  { %v365_v13 = vadd.f32 %v6296_v12, %v7675_v45  ;;  %v359_v14 = vpop.f32.mrb[9].mxu0  ;;  %6345 = vmatmul.mubr.msk.f32.gmra.mrb[4].mxu1 %vm553_vm2, %v515_v9  ;;  %v517_v17 = vmax.f32 %v355_v5, %v485_v10 }
  0xe9   :  { %v516_v15 = vmax.f32 %v350_v8, %v484_v11  ;;  %v360_v16 = vadd.f32 %v7675_v45, %v359_v14 }
  0xea   :  { %v487_v18 = vmul.f32 0.05, %v365_v13 }
  0xeb   :  { %v486_v19 = vmul.f32 0.05, %v360_v16  ;;  %v6299_v20 = vpop.f32.mrb[10].mxu0  ;;  %6347 = vmatprep.mubr.msk.f32.mxu1 %vm553_vm2, %v516_v15 }
  0xec   :  { %v375_v21 = vadd.f32 %v6299_v20, %v7675_v45  ;;  %v369_v22 = vpop.f32.mrb[11].mxu0  ;;  %6348 = vmatmul.mubr.msk.f32.gmra.mrb[6].mxu1 %vm553_vm2, %v517_v17  ;;  %v519_v25 = vmax.f32 %v365_v13, %v487_v18 }
  0xed   :  { %v518_v23 = vmax.f32 %v360_v16, %v486_v19  ;;  %v370_v24 = vadd.f32 %v7675_v45, %v369_v22 }
  0xee   :  { %v489_v26 = vmul.f32 0.05, %v375_v21 }
  0xef   :  { %v488_v27 = vmul.f32 0.05, %v370_v24  ;;  %v6302_v28 = vpop.f32.mrb[12].mxu0  ;;  %6350 = vmatprep.mubr.msk.f32.mxu1 %vm553_vm2, %v518_v23 }
  0xf0   :  { %v385_v29 = vadd.f32 %v6302_v28, %v7675_v45  ;;  %v379_v30 = vpop.f32.mrb[13].mxu0  ;;  %6351 = vmatmul.mubr.msk.f32.gmra.mrb[8].mxu1 %vm553_vm2, %v519_v25  ;;  %v521_v33 = vmax.f32 %v375_v21, %v489_v26 }
  0xf1   :  { %v520_v31 = vmax.f32 %v370_v24, %v488_v27  ;;  %v380_v32 = vadd.f32 %v7675_v45, %v379_v30 }
  0xf2   :  { %v491_v34 = vmul.f32 0.05, %v385_v29 }
  0xf3   :  { %v490_v36 = vmul.f32 0.05, %v380_v32  ;;  %v6305_v37 = vpop.f32.mrb[14].mxu0  ;;  %6353 = vmatprep.mubr.msk.f32.mxu1 %vm553_vm2, %v520_v31 }
  0xf4   :  { %v395_v39 = vadd.f32 %v6305_v37, %v7675_v45  ;;  %v389_v40 = vpop.f32.mrb[15].mxu0  ;;  %6354 = vmatmul.mubr.msk.f32.gmra.mrb[10].mxu1 %vm553_vm2, %v521_v33  ;;  %v523_v46 = vmax.f32 %v385_v29, %v491_v34 }
  0xf5   :  { %v522_v41 = vmax.f32 %v380_v32, %v490_v36  ;;  %v390_v43 = vadd.f32 %v7675_v45, %v389_v40 }
  0xf6   :  { %v493_v47 = vmul.f32 0.05, %v395_v39 }
  0xf7   :  { %v492_v48 = vmul.f32 0.05, %v390_v43  ;;  %v6308_v49 = vpop.f32.mrb[16].mxu0  ;;  %6356 = vmatprep.mubr.msk.f32.mxu1 %vm553_vm2, %v522_v41 }
  0xf8   :  { %v405_v50 = vadd.f32 %v6308_v49, %v7675_v45  ;;  %v399_v51 = vpop.f32.mrb[17].mxu0  ;;  %6357 = vmatmul.mubr.msk.f32.gmra.mrb[12].mxu1 %vm553_vm2, %v523_v46  ;;  %v525_v54 = vmax.f32 %v395_v39, %v493_v47 }
  0xf9   :  { %v524_v52 = vmax.f32 %v390_v43, %v492_v48  ;;  %v400_v53 = vadd.f32 %v7675_v45, %v399_v51 }
  0xfa   :  { %v495_v55 = vmul.f32 0.05, %v405_v50 }
  0xfb   :  { %v494_v56 = vmul.f32 0.05, %v400_v53  ;;  %v6311_v57 = vpop.f32.mrb[18].mxu0  ;;  %6359 = vmatprep.mubr.msk.f32.mxu1 %vm553_vm2, %v524_v52 }
  0xfc   :  { %v415_v58 = vadd.f32 %v6311_v57, %v7675_v45  ;;  %v409_v59 = vpop.f32.mrb[19].mxu0  ;;  %6360 = vmatmul.mubr.msk.f32.gmra.mrb[14].mxu1 %vm553_vm2, %v525_v54  ;;  %v527_v62 = vmax.f32 %v405_v50, %v495_v55  ;;  %v50_v57 = vld [vmem:[%s9573_s1 + $0x10] sm:$0xff] }
  0xfd   :  { %v526_v60 = vmax.f32 %v400_v53, %v494_v56  ;;  %v410_v61 = vadd.f32 %v7675_v45, %v409_v59  ;;  %v48_v56 = vld [vmem:[%s9573_s1] sm:$0xff]  ;;  %v82_v59 = vld [vmem:[%s9573_s1 + $0x110] sm:$0xff] }
  0xfe   :  { %v497_v63 = vmul.f32 0.05, %v415_v58 }
  0xff   :  { %v496_v0 = vmul.f32 0.05, %v410_v61  ;;  %v6314_v1 = vpop.f32.mrb[20].mxu0  ;;  %6362 = vmatprep.mubr.msk.f32.mxu1 %vm553_vm2, %v526_v60  ;;  %v7106_v60 = vpack.i.bf16 %v50_v57, %v82_v59 }
 0x100   :  { %v425_v2 = vadd.f32 %v6314_v1, %v7675_v45  ;;  %v419_v3 = vpop.f32.mrb[21].mxu0  ;;  %6363 = vmatmul.mubr.msk.f32.gmra.mrb[16].mxu1 %vm553_vm2, %v527_v62  ;;  %v529_v6 = vmax.f32 %v415_v58, %v497_v63  ;;  %v84_v62 = vld [vmem:[%s9573_s1 + $0x120] sm:$0xff]  ;;  %v86_v1 = vld [vmem:[%s9573_s1 + $0x130] sm:$0xff] }
 0x101   :  { %v528_v4 = vmax.f32 %v410_v61, %v496_v0  ;;  %v420_v5 = vadd.f32 %v7675_v45, %v419_v3  ;;  %v52_v61 = vld [vmem:[%s9573_s1 + $0x20] sm:$0xff]  ;;  %v54_v0 = vld [vmem:[%s9573_s1 + $0x30] sm:$0xff] }
 0x102   :  { %v499_v7 = vmul.f32 0.05, %v425_v2  ;;  %v7108_v63 = vpack.i.bf16 %v52_v61, %v84_v62  ;;  %v56_v3 = vld [vmem:[%s9573_s1 + $0x40] sm:$0xff] }
 0x103   :  { %v498_v8 = vmul.f32 0.05, %v420_v5  ;;  %v6317_v9 = vpop.f32.mrb[22].mxu0  ;;  %6365 = vmatprep.mubr.msk.f32.mxu1 %vm553_vm2, %v528_v4  ;;  %v88_v4 = vld [vmem:[%s9573_s1 + $0x140] sm:$0xff] }
 0x104   :  { %v435_v10 = vadd.f32 %v6317_v9, %v7675_v45  ;;  %v429_v11 = vpop.f32.mrb[23].mxu0  ;;  %6366 = vmatmul.mubr.msk.f32.gmra.mrb[18].mxu1 %vm553_vm2, %v529_v6  ;;  %v531_v14 = vmax.f32 %v425_v2, %v499_v7  ;;  %v7110_v2 = vpack.i.bf16 %v54_v0, %v86_v1  ;;  %v58_v6 = vld [vmem:[%s9573_s1 + $0x50] sm:$0xff]  ;;  %v60_v9 = vld [vmem:[%s9573_s1 + $0x60] sm:$0xff] }
 0x105   :  { %v530_v12 = vmax.f32 %v420_v5, %v498_v8  ;;  %v430_v13 = vadd.f32 %v7675_v45, %v429_v11  ;;  %v7112_v5 = vpack.i.bf16 %v56_v3, %v88_v4  ;;  %v90_v7 = vld [vmem:[%s9573_s1 + $0x150] sm:$0xff] }
 0x106   :  { %v501_v15 = vmul.f32 0.05, %v435_v10  ;;  %v7114_v8 = vpack.i.bf16 %v58_v6, %v90_v7 }
 0x107   :  { %v500_v16 = vmul.f32 0.05, %v430_v13  ;;  %v6320_v17 = vpop.f32.mrb[24].mxu0  ;;  %6368 = vmatprep.mubr.msk.f32.mxu1 %vm553_vm2, %v530_v12  ;;  %v62_v12 = vld [vmem:[%s9573_s1 + $0x70] sm:$0xff] }
 0x108   :  { %v445_v18 = vadd.f32 %v6320_v17, %v7675_v45  ;;  %v439_v19 = vpop.f32.mrb[25].mxu0  ;;  %6369 = vmatmul.mubr.msk.f32.gmra.mrb[20].mxu1 %vm553_vm2, %v531_v14  ;;  %v533_v22 = vmax.f32 %v435_v10, %v501_v15  ;;  %v92_v10 = vld [vmem:[%s9573_s1 + $0x160] sm:$0xff] }
 0x109   :  { %v532_v20 = vmax.f32 %v430_v13, %v500_v16  ;;  %v440_v21 = vadd.f32 %v7675_v45, %v439_v19  ;;  %v7116_v11 = vpack.i.bf16 %v60_v9, %v92_v10  ;;  %v94_v13 = vld [vmem:[%s9573_s1 + $0x170] sm:$0xff]  ;;  %v64_v15 = vld [vmem:[%s9573_s1 + $0x80] sm:$0xff] }
 0x10a   :  { %v503_v23 = vmul.f32 0.05, %v445_v18  ;;  %v7118_v14 = vpack.i.bf16 %v62_v12, %v94_v13  ;;  %v96_v16 = vld [vmem:[%s9573_s1 + $0x180] sm:$0xff]  ;;  %v98_v19 = vld [vmem:[%s9573_s1 + $0x190] sm:$0xff] }
 0x10b   :  { %v502_v24 = vmul.f32 0.05, %v440_v21  ;;  %v6323_v25 = vpop.f32.mrb[26].mxu0  ;;  %6371 = vmatprep.mubr.msk.f32.mxu1 %vm553_vm2, %v532_v20  ;;  %v7120_v17 = vpack.i.bf16 %v64_v15, %v96_v16 }
 0x10c   :  { %v455_v26 = vadd.f32 %v6323_v25, %v7675_v45  ;;  %v449_v27 = vpop.f32.mrb[27].mxu0  ;;  %6372 = vmatmul.mubr.msk.f32.gmra.mrb[22].mxu1 %vm553_vm2, %v533_v22  ;;  %v535_v30 = vmax.f32 %v445_v18, %v503_v23  ;;  %v66_v18 = vld [vmem:[%s9573_s1 + $0x90] sm:$0xff]  ;;  %v100_v22 = vld [vmem:[%s9573_s1 + $0x1a0] sm:$0xff] }
 0x10d   :  { %v534_v28 = vmax.f32 %v440_v21, %v502_v24  ;;  %v450_v29 = vadd.f32 %v7675_v45, %v449_v27  ;;  %v7122_v20 = vpack.i.bf16 %v66_v18, %v98_v19  ;;  %v68_v21 = vld [vmem:[%s9573_s1 + $0xa0] sm:$0xff]  ;;  %v70_v24 = vld [vmem:[%s9573_s1 + $0xb0] sm:$0xff] }
 0x10e   :  { %v505_v31 = vmul.f32 0.05, %v455_v26  ;;  %v7124_v23 = vpack.i.bf16 %v68_v21, %v100_v22  ;;  %v102_v25 = vld [vmem:[%s9573_s1 + $0x1b0] sm:$0xff]  ;;  %v72_v27 = vld [vmem:[%s9573_s1 + $0xc0] sm:$0xff] }
 0x10f   :  { %v504_v32 = vmul.f32 0.05, %v450_v29  ;;  %v6326_v33 = vpop.f32.mrb[28].mxu0  ;;  %6374 = vmatprep.mubr.msk.f32.mxu1 %vm553_vm2, %v534_v28  ;;  %v104_v28 = vld [vmem:[%s9573_s1 + $0x1c0] sm:$0xff] }
 0x110   :  { %v465_v34 = vadd.f32 %v6326_v33, %v7675_v45  ;;  %v459_v36 = vpop.f32.mrb[29].mxu0  ;;  %6375 = vmatmul.mubr.msk.f32.gmra.mrb[24].mxu1 %vm553_vm2, %v535_v30  ;;  %v537_v40 = vmax.f32 %v455_v26, %v505_v31  ;;  %v7126_v26 = vpack.i.bf16 %v70_v24, %v102_v25  ;;  %v74_v30 = vld [vmem:[%s9573_s1 + $0xd0] sm:$0xff]  ;;  %v76_v33 = vld [vmem:[%s9573_s1 + $0xe0] sm:$0xff] }
 0x111   :  { %v536_v37 = vmax.f32 %v450_v29, %v504_v32  ;;  %v460_v39 = vadd.f32 %v7675_v45, %v459_v36  ;;  %v7128_v29 = vpack.i.bf16 %v72_v27, %v104_v28  ;;  %v106_v31 = vld [vmem:[%s9573_s1 + $0x1d0] sm:$0xff] }
 0x112   :  { %v507_v41 = vmul.f32 0.05, %v465_v34  ;;  %v7130_v32 = vpack.i.bf16 %v74_v30, %v106_v31 }
 0x113   :  { %v506_v43 = vmul.f32 0.05, %v460_v39  ;;  %v6329_v46 = vpop.f32.mrb[30].mxu0  ;;  %6377 = vmatprep.mubr.msk.f32.mxu1 %vm553_vm2, %v536_v37  ;;  %v78_v37 = vld [vmem:[%s9573_s1 + $0xf0] sm:$0xff] }
 0x114   :  { %v475_v47 = vadd.f32 %v6329_v46, %v7675_v45  ;;  %v469_v48 = vpop.f32.mrb[31].mxu0  ;;  %6378 = vmatmul.mubr.msk.f32.gmra.mrb[26].mxu1 %vm553_vm2, %v537_v40  ;;  %v539_v51 = vmax.f32 %v465_v34, %v507_v41  ;;  %v108_v34 = vld [vmem:[%s9573_s1 + $0x1e0] sm:$0xff] }
 0x115   :  { %v538_v49 = vmax.f32 %v460_v39, %v506_v43  ;;  %v470_v50 = vadd.f32 %v7675_v45, %v469_v48  ;;  %v80_v45 = vld [vmem:[%s9573_s1 + $0x100] sm:$0xff]  ;;  %v7132_v36 = vpack.i.bf16 %v76_v33, %v108_v34  ;;  %v110_v39 = vld [vmem:[%s9573_s1 + $0x1f0] sm:$0xff] }
 0x116   :  { %v509_v52 = vmul.f32 0.05, %v475_v47  ;;  %v7104_v58 = vpack.i.bf16 %v48_v56, %v80_v45  ;;  %v7840_v40 = vld [vmem:[%s9578_s6] ss:$0 sm:$0xff]  ;;  %v7134_v43 = vpack.i.bf16 %v78_v37, %v110_v39 }
 0x117   :  { %v508_v53 = vmul.f32 0.05, %v470_v50  ;;  %6380 = vmatprep.mubr.msk.f32.mxu1 %vm553_vm2, %v538_v49 }
 0x118   :  { %6381 = vmatmul.mubr.msk.f32.gmra.mrb[28].mxu1 %vm553_vm2, %v539_v51  ;;  %v541_v55 = vmax.f32 %v475_v47, %v509_v52  ;;  %7105 = vxpose.xlu0.b32.start [1/16] %v7104_v58, 128 }
 0x119   :  { %v540_v54 = vmax.f32 %v470_v50, %v508_v53 }
 0x11b   :  { %6383 = vmatprep.mubr.msk.f32.mxu1 %vm553_vm2, %v540_v54 }
 0x11c   :  { %6384 = vmatmul.mubr.msk.f32.gmra.mrb[30].mxu1 %vm553_vm2, %v541_v55  ;;  %7107 = vxpose.xlu0.b32.cont [2/16] %v7106_v60, 128 }
 0x120   :  { %7109 = vxpose.xlu0.b32.cont [3/16] %v7108_v63, 128 }
 0x124   :  { %7111 = vxpose.xlu0.b32.cont [4/16] %v7110_v2, 128 }
 0x128   :  { %7113 = vxpose.xlu0.b32.cont [5/16] %v7112_v5, 128 }
 0x12c   :  { %7115 = vxpose.xlu0.b32.cont [6/16] %v7114_v8, 128 }
 0x130   :  { %7117 = vxpose.xlu0.b32.cont [7/16] %v7116_v11, 128 }
 0x134   :  { %7119 = vxpose.xlu0.b32.cont [8/16] %v7118_v14, 128 }
 0x138   :  { %7121 = vxpose.xlu0.b32.cont [9/16] %v7120_v17, 128 }
 0x13c   :  { %7123 = vxpose.xlu0.b32.cont [10/16] %v7122_v20, 128 }
 0x140   :  { %7125 = vxpose.xlu0.b32.cont [11/16] %v7124_v23, 128 }
 0x144   :  { %7127 = vxpose.xlu0.b32.cont [12/16] %v7126_v26, 128 }
 0x148   :  { %7129 = vxpose.xlu0.b32.cont [13/16] %v7128_v29, 128 }
 0x14c   :  { %7131 = vxpose.xlu0.b32.cont [14/16] %v7130_v32, 128 }
 0x150   :  { %7133 = vxpose.xlu0.b32.cont [15/16] %v7132_v36, 128 }
 0x154   :  { %7135 = vxpose.xlu0.b32.end [16/16] %v7134_v43, 128 }
 0x1b3   :  { %v6340_v41 = vpop.f32.mrb[0].mxu1 }
 0x1b4   :  { %v722_v46 = vadd.f32 %v6340_v41, %v7840_v40  ;;  %v716_v47 = vpop.f32.mrb[1].mxu1 }
 0x1b5   :  { %v717_v48 = vadd.f32 %v7840_v40, %v716_v47 }
 0x1b6   :  { %v876_v49 = vmul.f32 0.05, %v722_v46 }
 0x1b7   :  { %v875_v50 = vmul.f32 0.05, %v717_v48  ;;  %v6343_v51 = vpop.f32.mrb[2].mxu1 }
 0x1b8   :  { %v732_v52 = vadd.f32 %v6343_v51, %v7840_v40  ;;  %v726_v53 = vpop.f32.mrb[3].mxu1  ;;  %v908_v56 = vmax.f32 %v722_v46, %v876_v49 }
 0x1b9   :  { %v907_v54 = vmax.f32 %v717_v48, %v875_v50  ;;  %v727_v55 = vadd.f32 %v7840_v40, %v726_v53 }
 0x1ba   :  { %v878_v45 = vmul.f32 0.05, %v732_v52 }
 0x1bb   :  { %v877_v57 = vmul.f32 0.05, %v727_v55  ;;  %v6346_v58 = vpop.f32.mrb[4].mxu1  ;;  %6394 = vmatprep.mubr.msk.f32.mxu0 %vm553_vm2, %v907_v54 }
 0x1bc   :  { %v742_v59 = vadd.f32 %v6346_v58, %v7840_v40  ;;  %v736_v60 = vpop.f32.mrb[5].mxu1  ;;  %6395 = vmatmul.mubr.msk.f32.vlgmr.msra.gmra.mrb[32].mxu0 %vm553_vm2, %v908_v56  ;;  %v910_v63 = vmax.f32 %v732_v52, %v878_v45 }
 0x1bd   :  { %v909_v61 = vmax.f32 %v727_v55, %v877_v57  ;;  %v737_v62 = vadd.f32 %v7840_v40, %v736_v60 }
 0x1be   :  { %v880_v0 = vmul.f32 0.05, %v742_v59 }
 0x1bf   :  { %v879_v1 = vmul.f32 0.05, %v737_v62  ;;  %v6349_v2 = vpop.f32.mrb[6].mxu1  ;;  %6397 = vmatprep.mubr.msk.f32.mxu0 %vm553_vm2, %v909_v61 }
 0x1c0   :  { %v752_v3 = vadd.f32 %v6349_v2, %v7840_v40  ;;  %v746_v4 = vpop.f32.mrb[7].mxu1  ;;  %6398 = vmatmul.mubr.msk.f32.gmra.mrb[34].mxu0 %vm553_vm2, %v910_v63  ;;  %v912_v7 = vmax.f32 %v742_v59, %v880_v0 }
 0x1c1   :  { %v911_v5 = vmax.f32 %v737_v62, %v879_v1  ;;  %v747_v6 = vadd.f32 %v7840_v40, %v746_v4 }
 0x1c2   :  { %v882_v8 = vmul.f32 0.05, %v752_v3 }
 0x1c3   :  { %v881_v9 = vmul.f32 0.05, %v747_v6  ;;  %v6352_v10 = vpop.f32.mrb[8].mxu1  ;;  %6400 = vmatprep.mubr.msk.f32.mxu0 %vm553_vm2, %v911_v5 }
 0x1c4   :  { %v762_v11 = vadd.f32 %v6352_v10, %v7840_v40  ;;  %v756_v12 = vpop.f32.mrb[9].mxu1  ;;  %6401 = vmatmul.mubr.msk.f32.gmra.mrb[36].mxu0 %vm553_vm2, %v912_v7  ;;  %v914_v15 = vmax.f32 %v752_v3, %v882_v8 }
 0x1c5   :  { %v913_v13 = vmax.f32 %v747_v6, %v881_v9  ;;  %v757_v14 = vadd.f32 %v7840_v40, %v756_v12 }
 0x1c6   :  { %v884_v16 = vmul.f32 0.05, %v762_v11 }
 0x1c7   :  { %v883_v17 = vmul.f32 0.05, %v757_v14  ;;  %v6355_v18 = vpop.f32.mrb[10].mxu1  ;;  %6403 = vmatprep.mubr.msk.f32.mxu0 %vm553_vm2, %v913_v13 }
 0x1c8   :  { %v772_v19 = vadd.f32 %v6355_v18, %v7840_v40  ;;  %v766_v20 = vpop.f32.mrb[11].mxu1  ;;  %6404 = vmatmul.mubr.msk.f32.gmra.mrb[38].mxu0 %vm553_vm2, %v914_v15  ;;  %v916_v23 = vmax.f32 %v762_v11, %v884_v16 }
 0x1c9   :  { %v915_v21 = vmax.f32 %v757_v14, %v883_v17  ;;  %v767_v22 = vadd.f32 %v7840_v40, %v766_v20 }
 0x1ca   :  { %v886_v24 = vmul.f32 0.05, %v772_v19 }
 0x1cb   :  { %v885_v25 = vmul.f32 0.05, %v767_v22  ;;  %v6358_v26 = vpop.f32.mrb[12].mxu1  ;;  %6406 = vmatprep.mubr.msk.f32.mxu0 %vm553_vm2, %v915_v21 }
 0x1cc   :  { %v782_v27 = vadd.f32 %v6358_v26, %v7840_v40  ;;  %v776_v28 = vpop.f32.mrb[13].mxu1  ;;  %6407 = vmatmul.mubr.msk.f32.gmra.mrb[40].mxu0 %vm553_vm2, %v916_v23  ;;  %v918_v31 = vmax.f32 %v772_v19, %v886_v24 }
 0x1cd   :  { %v917_v29 = vmax.f32 %v767_v22, %v885_v25  ;;  %v777_v30 = vadd.f32 %v7840_v40, %v776_v28 }
 0x1ce   :  { %v888_v32 = vmul.f32 0.05, %v782_v27 }
 0x1cf   :  { %v887_v33 = vmul.f32 0.05, %v777_v30  ;;  %v6361_v34 = vpop.f32.mrb[14].mxu1  ;;  %6409 = vmatprep.mubr.msk.f32.mxu0 %vm553_vm2, %v917_v29 }
 0x1d0   :  { %v792_v36 = vadd.f32 %v6361_v34, %v7840_v40  ;;  %v786_v37 = vpop.f32.mrb[15].mxu1  ;;  %6410 = vmatmul.mubr.msk.f32.gmra.mrb[42].mxu0 %vm553_vm2, %v918_v31  ;;  %v920_v43 = vmax.f32 %v782_v27, %v888_v32 }
 0x1d1   :  { %v919_v39 = vmax.f32 %v777_v30, %v887_v33  ;;  %v787_v41 = vadd.f32 %v7840_v40, %v786_v37 }
 0x1d2   :  { %v890_v46 = vmul.f32 0.05, %v792_v36 }
 0x1d3   :  { %v889_v47 = vmul.f32 0.05, %v787_v41  ;;  %v6364_v48 = vpop.f32.mrb[16].mxu1  ;;  %6412 = vmatprep.mubr.msk.f32.mxu0 %vm553_vm2, %v919_v39 }
 0x1d4   :  { %v802_v49 = vadd.f32 %v6364_v48, %v7840_v40  ;;  %v796_v50 = vpop.f32.mrb[17].mxu1  ;;  %6413 = vmatmul.mubr.msk.f32.gmra.mrb[44].mxu0 %vm553_vm2, %v920_v43  ;;  %v922_v53 = vmax.f32 %v792_v36, %v890_v46 }
 0x1d5   :  { %v921_v51 = vmax.f32 %v787_v41, %v889_v47  ;;  %v797_v52 = vadd.f32 %v7840_v40, %v796_v50 }
 0x1d6   :  { %v892_v54 = vmul.f32 0.05, %v802_v49 }
 0x1d7   :  { %v891_v55 = vmul.f32 0.05, %v797_v52  ;;  %v6367_v56 = vpop.f32.mrb[18].mxu1  ;;  %6415 = vmatprep.mubr.msk.f32.mxu0 %vm553_vm2, %v921_v51 }
 0x1d8   :  { %v812_v45 = vadd.f32 %v6367_v56, %v7840_v40  ;;  %v806_v57 = vpop.f32.mrb[19].mxu1  ;;  %6416 = vmatmul.mubr.msk.f32.gmra.mrb[46].mxu0 %vm553_vm2, %v922_v53  ;;  %v924_v60 = vmax.f32 %v802_v49, %v892_v54 }
 0x1d9   :  { %v923_v58 = vmax.f32 %v797_v52, %v891_v55  ;;  %v807_v59 = vadd.f32 %v7840_v40, %v806_v57  ;;  %v49_v55 = vld [vmem:[%s9573_s1 + $0x8] sm:$0xff]  ;;  %v83_v57 = vld [vmem:[%s9573_s1 + $0x118] sm:$0xff] }
 0x1da   :  { %v894_v61 = vmul.f32 0.05, %v812_v45 }
 0x1db   :  { %v893_v62 = vmul.f32 0.05, %v807_v59  ;;  %v6370_v63 = vpop.f32.mrb[20].mxu1  ;;  %6418 = vmatprep.mubr.msk.f32.mxu0 %vm553_vm2, %v923_v58 }
 0x1dc   :  { %v822_v0 = vadd.f32 %v6370_v63, %v7840_v40  ;;  %v816_v1 = vpop.f32.mrb[21].mxu1  ;;  %6419 = vmatmul.mubr.msk.f32.gmra.mrb[48].mxu0 %vm553_vm2, %v924_v60  ;;  %v926_v4 = vmax.f32 %v812_v45, %v894_v61  ;;  %v51_v45 = vld [vmem:[%s9573_s1 + $0x18] sm:$0xff]  ;;  %v53_v60 = vld [vmem:[%s9573_s1 + $0x28] sm:$0xff] }
 0x1dd   :  { %v925_v2 = vmax.f32 %v807_v59, %v893_v62  ;;  %v817_v3 = vadd.f32 %v7840_v40, %v816_v1  ;;  %v7218_v58 = vpack.i.bf16 %v51_v45, %v83_v57  ;;  %v9650_v59 = vmov 0.0|0.0   ;;  %v85_v61 = vld [vmem:[%s9573_s1 + $0x128] sm:$0xff]  ;;  %v55_v63 = vld [vmem:[%s9573_s1 + $0x38] sm:$0xff] }
 0x1de   :  { %v896_v5 = vmul.f32 0.05, %v822_v0  ;;  %6948 = vmatprep.subr.bf16.mxu1 %v9650_v59  ;;  %v7220_v62 = vpack.i.bf16 %v53_v60, %v85_v61  ;;  %v8041_v60 = vld [vmem:[%s9579_s7] ss:$0 sm:$0xff] }
 0x1df   :  { %v895_v6 = vmul.f32 0.05, %v817_v3  ;;  %v6373_v7 = vpop.f32.mrb[22].mxu1  ;;  %6421 = vmatprep.mubr.msk.f32.mxu0 %vm553_vm2, %v925_v2  ;;  %v57_v2 = vld [vmem:[%s9573_s1 + $0x48] sm:$0xff] }
 0x1e0   :  { %v832_v8 = vadd.f32 %v6373_v7, %v7840_v40  ;;  %v826_v9 = vpop.f32.mrb[23].mxu1  ;;  %6422 = vmatmul.mubr.msk.f32.gmra.mrb[50].mxu0 %vm553_vm2, %v926_v4  ;;  %v928_v12 = vmax.f32 %v822_v0, %v896_v5  ;;  %v87_v0 = vld [vmem:[%s9573_s1 + $0x138] sm:$0xff] }
 0x1e1   :  { %v927_v10 = vmax.f32 %v817_v3, %v895_v6  ;;  %v827_v11 = vadd.f32 %v7840_v40, %v826_v9  ;;  %v7222_v1 = vpack.i.bf16 %v55_v63, %v87_v0  ;;  %v89_v3 = vld [vmem:[%s9573_s1 + $0x148] sm:$0xff]  ;;  %v59_v5 = vld [vmem:[%s9573_s1 + $0x58] sm:$0xff] }
 0x1e2   :  { %v898_v13 = vmul.f32 0.05, %v832_v8  ;;  %v7224_v4 = vpack.i.bf16 %v57_v2, %v89_v3  ;;  %v91_v6 = vld [vmem:[%s9573_s1 + $0x158] sm:$0xff]  ;;  %v93_v9 = vld [vmem:[%s9573_s1 + $0x168] sm:$0xff] }
 0x1e3   :  { %v897_v14 = vmul.f32 0.05, %v827_v11  ;;  %v6376_v15 = vpop.f32.mrb[24].mxu1  ;;  %6424 = vmatprep.mubr.msk.f32.mxu0 %vm553_vm2, %v927_v10  ;;  %v7226_v7 = vpack.i.bf16 %v59_v5, %v91_v6 }
 0x1e4   :  { %v842_v16 = vadd.f32 %v6376_v15, %v7840_v40  ;;  %v836_v17 = vpop.f32.mrb[25].mxu1  ;;  %6425 = vmatmul.mubr.msk.f32.gmra.mrb[52].mxu0 %vm553_vm2, %v928_v12  ;;  %v930_v20 = vmax.f32 %v832_v8, %v898_v13  ;;  %v61_v8 = vld [vmem:[%s9573_s1 + $0x68] sm:$0xff]  ;;  %v95_v12 = vld [vmem:[%s9573_s1 + $0x178] sm:$0xff] }
 0x1e5   :  { %v929_v18 = vmax.f32 %v827_v11, %v897_v14  ;;  %v837_v19 = vadd.f32 %v7840_v40, %v836_v17  ;;  %v7228_v10 = vpack.i.bf16 %v61_v8, %v93_v9  ;;  %v63_v11 = vld [vmem:[%s9573_s1 + $0x78] sm:$0xff]  ;;  %v65_v14 = vld [vmem:[%s9573_s1 + $0x88] sm:$0xff] }
 0x1e6   :  { %v900_v21 = vmul.f32 0.05, %v842_v16  ;;  %v7230_v13 = vpack.i.bf16 %v63_v11, %v95_v12  ;;  %v97_v15 = vld [vmem:[%s9573_s1 + $0x188] sm:$0xff]  ;;  %v67_v17 = vld [vmem:[%s9573_s1 + $0x98] sm:$0xff] }
 0x1e7   :  { %v899_v22 = vmul.f32 0.05, %v837_v19  ;;  %v6379_v23 = vpop.f32.mrb[26].mxu1  ;;  %6427 = vmatprep.mubr.msk.f32.mxu0 %vm553_vm2, %v929_v18  ;;  %v99_v18 = vld [vmem:[%s9573_s1 + $0x198] sm:$0xff] }
 0x1e8   :  { %v852_v24 = vadd.f32 %v6379_v23, %v7840_v40  ;;  %v846_v25 = vpop.f32.mrb[27].mxu1  ;;  %6428 = vmatmul.mubr.msk.f32.gmra.mrb[54].mxu0 %vm553_vm2, %v930_v20  ;;  %v932_v28 = vmax.f32 %v842_v16, %v900_v21  ;;  %v7232_v16 = vpack.i.bf16 %v65_v14, %v97_v15  ;;  %v69_v20 = vld [vmem:[%s9573_s1 + $0xa8] sm:$0xff]  ;;  %v71_v23 = vld [vmem:[%s9573_s1 + $0xb8] sm:$0xff] }
 0x1e9   :  { %v931_v26 = vmax.f32 %v837_v19, %v899_v22  ;;  %v847_v27 = vadd.f32 %v7840_v40, %v846_v25  ;;  %v7234_v19 = vpack.i.bf16 %v67_v17, %v99_v18  ;;  %v101_v21 = vld [vmem:[%s9573_s1 + $0x1a8] sm:$0xff] }
 0x1ea   :  { %v902_v29 = vmul.f32 0.05, %v852_v24  ;;  %v7236_v22 = vpack.i.bf16 %v69_v20, %v101_v21 }
 0x1eb   :  { %v901_v30 = vmul.f32 0.05, %v847_v27  ;;  %v6382_v31 = vpop.f32.mrb[28].mxu1  ;;  %6430 = vmatprep.mubr.msk.f32.mxu0 %vm553_vm2, %v931_v26  ;;  %v73_v26 = vld [vmem:[%s9573_s1 + $0xc8] sm:$0xff] }
 0x1ec   :  { %v862_v32 = vadd.f32 %v6382_v31, %v7840_v40  ;;  %v856_v33 = vpop.f32.mrb[29].mxu1  ;;  %6431 = vmatmul.mubr.msk.f32.gmra.mrb[56].mxu0 %vm553_vm2, %v932_v28  ;;  %v934_v37 = vmax.f32 %v852_v24, %v902_v29  ;;  %v103_v24 = vld [vmem:[%s9573_s1 + $0x1b8] sm:$0xff] }
 0x1ed   :  { %v933_v34 = vmax.f32 %v847_v27, %v901_v30  ;;  %v857_v36 = vadd.f32 %v7840_v40, %v856_v33  ;;  %v7238_v25 = vpack.i.bf16 %v71_v23, %v103_v24  ;;  %v105_v27 = vld [vmem:[%s9573_s1 + $0x1c8] sm:$0xff]  ;;  %v75_v29 = vld [vmem:[%s9573_s1 + $0xd8] sm:$0xff] }
 0x1ee   :  { %v904_v39 = vmul.f32 0.05, %v862_v32  ;;  %v7240_v28 = vpack.i.bf16 %v73_v26, %v105_v27  ;;  %v107_v30 = vld [vmem:[%s9573_s1 + $0x1d8] sm:$0xff]  ;;  %v109_v33 = vld [vmem:[%s9573_s1 + $0x1e8] sm:$0xff] }
 0x1ef   :  { %v903_v41 = vmul.f32 0.05, %v857_v36  ;;  %v6385_v43 = vpop.f32.mrb[30].mxu1  ;;  %6433 = vmatprep.mubr.msk.f32.mxu0 %vm553_vm2, %v933_v34  ;;  %v7242_v31 = vpack.i.bf16 %v75_v29, %v107_v30 }
 0x1f0   :  { %v872_v46 = vadd.f32 %v6385_v43, %v7840_v40  ;;  %v866_v47 = vpop.f32.mrb[31].mxu1  ;;  %6434 = vmatmul.mubr.msk.f32.gmra.mrb[58].mxu0 %vm553_vm2, %v934_v37  ;;  %v936_v50 = vmax.f32 %v862_v32, %v904_v39  ;;  %v77_v32 = vld [vmem:[%s9573_s1 + $0xe8] sm:$0xff]  ;;  %v111_v37 = vld [vmem:[%s9573_s1 + $0x1f8] sm:$0xff] }
 0x1f1   :  { %v935_v48 = vmax.f32 %v857_v36, %v903_v41  ;;  %v867_v49 = vadd.f32 %v7840_v40, %v866_v47  ;;  %v81_v40 = vld [vmem:[%s9573_s1 + $0x108] sm:$0xff]  ;;  %v7244_v34 = vpack.i.bf16 %v77_v32, %v109_v33  ;;  %v79_v36 = vld [vmem:[%s9573_s1 + $0xf8] sm:$0xff]  ;;  %v8003_v41 = vpop.trf.xlu0 }
 0x1f2   :  { %v906_v51 = vmul.f32 0.05, %v872_v46  ;;  %v7216_v56 = vpack.i.bf16 %v49_v55, %v81_v40  ;;  %v7246_v39 = vpack.i.bf16 %v79_v36, %v111_v37  ;;  %v7137_v43 = vunpack.i.l.bf16 %v8003_v41 }
 0x1f3   :  { %v905_v52 = vmul.f32 0.05, %v867_v49  ;;  %6436 = vmatprep.mubr.msk.f32.mxu0 %vm553_vm2, %v935_v48 }
 0x1f4   :  { %6437 = vmatmul.mubr.msk.f32.gmra.mrb[60].mxu0 %vm553_vm2, %v936_v50  ;;  %v938_v54 = vmax.f32 %v872_v46, %v906_v51  ;;  %7217 = vxpose.xlu1.b32.start [1/16] %v7216_v56, 128 }
 0x1f5   :  { %v937_v53 = vmax.f32 %v867_v49, %v905_v52  ;;  %1463 = vmatprep.mubr.f32.mxu1 %v7137_v43  ;;  %v8008_v46 = vpop.trf.xlu0 }
 0x1f7   :  { %6439 = vmatprep.mubr.msk.f32.mxu0 %vm553_vm2, %v937_v53 }
 0x1f8   :  { %6440 = vmatmul.mubr.msk.f32.gmra.mrb[62].mxu0 %vm553_vm2, %v938_v54  ;;  %7219 = vxpose.xlu1.b32.cont [2/16] %v7218_v58, 128 }
 0x1f9   :  { %v8010_v47 = vpop.trf.xlu0 }
 0x1fc   :  { %7221 = vxpose.xlu1.b32.cont [3/16] %v7220_v62, 128 }
 0x1fd   :  { %v8012_v48 = vpop.trf.xlu0 }
 0x200   :  { %7223 = vxpose.xlu1.b32.cont [4/16] %v7222_v1, 128 }
 0x201   :  { %v8014_v49 = vpop.trf.xlu0 }
 0x204   :  { %7225 = vxpose.xlu1.b32.cont [5/16] %v7224_v4, 128 }
 0x205   :  { %v8016_v50 = vpop.trf.xlu0 }
 0x208   :  { %7227 = vxpose.xlu1.b32.cont [6/16] %v7226_v7, 128 }
 0x209   :  { %v8018_v51 = vpop.trf.xlu0 }
 0x20c   :  { %7229 = vxpose.xlu1.b32.cont [7/16] %v7228_v10, 128 }
 0x20d   :  { %v8020_v52 = vpop.trf.xlu0 }
 0x210   :  { %7231 = vxpose.xlu1.b32.cont [8/16] %v7230_v13, 128 }
 0x211   :  { %v8022_v53 = vpop.trf.xlu0 }
 0x214   :  { %7233 = vxpose.xlu1.b32.cont [9/16] %v7232_v16, 128 }
 0x215   :  { %v8024_v54 = vpop.trf.xlu0 }
 0x218   :  { %7235 = vxpose.xlu1.b32.cont [10/16] %v7234_v19, 128 }
 0x219   :  { %v8026_v55 = vpop.trf.xlu0 }
 0x21c   :  { %7237 = vxpose.xlu1.b32.cont [11/16] %v7236_v22, 128 }
 0x21d   :  { %v8028_v40 = vpop.trf.xlu0 }
 0x220   :  { %7239 = vxpose.xlu1.b32.cont [12/16] %v7238_v25, 128 }
 0x221   :  { %v8030_v56 = vpop.trf.xlu0 }
 0x224   :  { %7241 = vxpose.xlu1.b32.cont [13/16] %v7240_v28, 128 }
 0x225   :  { %v8032_v45 = vpop.trf.xlu0 }
 0x228   :  { %7243 = vxpose.xlu1.b32.cont [14/16] %v7242_v31, 128 }
 0x229   :  { %v8034_v57 = vpop.trf.xlu0 }
 0x22c   :  { %7245 = vxpose.xlu1.b32.cont [15/16] %v7244_v34, 128 }
 0x22d   :  { %v8036_v58 = vpop.trf.xlu0 }
 0x230   :  { %7247 = vxpose.xlu1.b32.end [16/16] %v7246_v39, 128 }
 0x274   :  { %v8044_v0 = vpop.trf.xlu1 }
 0x278   :  { %v8048_v6 = vpop.trf.xlu1 }
 0x27c   :  { %v8053_v12 = vpop.trf.xlu1 }
 0x280   :  { %v8058_v18 = vpop.trf.xlu1 }
 0x284   :  { %v8063_v24 = vpop.trf.xlu1 }
 0x288   :  { %v8068_v30 = vpop.trf.xlu1 }
 0x28c   :  { %v8073_v37 = vpop.trf.xlu1 }
 0x28f   :  { %v6396_v61 = vpop.f32.mrb[32].mxu0 }
 0x290   :  { %v1118_v62 = vadd.f32 %v6396_v61, %v8041_v60  ;;  %v1112_v63 = vpop.f32.mrb[33].mxu0 }
 0x291   :  { %v1113_v1 = vadd.f32 %v8041_v60, %v1112_v63 }
 0x293   :  { %v6949_v2 = vpack.c.bf16 %v1118_v62, %v1113_v1  ;;  %v6399_v3 = vpop.f32.mrb[34].mxu0 }
 0x294   :  { %v1128_v4 = vadd.f32 %v6399_v3, %v8041_v60  ;;  %v1122_v5 = vpop.f32.mrb[35].mxu0 }
 0x295   :  { %v1123_v7 = vadd.f32 %v8041_v60, %v1122_v5  ;;  %6950 = vmatpush1.bf16.msra.mxu1 %v6949_v2  ;;  %v8078_v2 = vpop.trf.xlu1 }
 0x296   :  { %6951 = vmatprep.subr.bf16.mxu1 %v9650_v59 }
 0x297   :  { %v6952_v8 = vpack.c.bf16 %v1128_v4, %v1123_v7  ;;  %v6402_v9 = vpop.f32.mrb[36].mxu0 }
 0x298   :  { %v1138_v10 = vadd.f32 %v6402_v9, %v8041_v60  ;;  %v1132_v11 = vpop.f32.mrb[37].mxu0 }
 0x299   :  { %v1133_v13 = vadd.f32 %v8041_v60, %v1132_v11  ;;  %6953 = vmatpush1.bf16.msra.mxu1 %v6952_v8  ;;  %v8083_v9 = vpop.trf.xlu1 }
 0x29a   :  { %6954 = vmatprep.subr.bf16.mxu1 %v9650_v59 }
 0x29b   :  { %v6955_v14 = vpack.c.bf16 %v1138_v10, %v1133_v13  ;;  %v6405_v15 = vpop.f32.mrb[38].mxu0 }
 0x29c   :  { %v1148_v16 = vadd.f32 %v6405_v15, %v8041_v60  ;;  %v1142_v17 = vpop.f32.mrb[39].mxu0 }
 0x29d   :  { %v1143_v19 = vadd.f32 %v8041_v60, %v1142_v17  ;;  %6956 = vmatpush1.bf16.msra.mxu1 %v6955_v14 }
 0x29e   :  { %6957 = vmatprep.subr.bf16.mxu1 %v9650_v59 }
 0x29f   :  { %v6958_v20 = vpack.c.bf16 %v1148_v16, %v1143_v19  ;;  %v6408_v21 = vpop.f32.mrb[40].mxu0  ;;  %v8088_v16 = vpop.trf.xlu1 }
 0x2a0   :  { %v1158_v22 = vadd.f32 %v6408_v21, %v8041_v60  ;;  %v1152_v23 = vpop.f32.mrb[41].mxu0 }
 0x2a1   :  { %v1153_v25 = vadd.f32 %v8041_v60, %v1152_v23  ;;  %6959 = vmatpush1.bf16.msra.mxu1 %v6958_v20 }
 0x2a2   :  { %6960 = vmatprep.subr.bf16.mxu1 %v9650_v59 }
 0x2a3   :  { %v6961_v26 = vpack.c.bf16 %v1158_v22, %v1153_v25  ;;  %v6411_v27 = vpop.f32.mrb[42].mxu0  ;;  %v8093_v23 = vpop.trf.xlu1 }
 0x2a4   :  { %v1168_v28 = vadd.f32 %v6411_v27, %v8041_v60  ;;  %v1162_v29 = vpop.f32.mrb[43].mxu0 }
 0x2a5   :  { %v1163_v31 = vadd.f32 %v8041_v60, %v1162_v29  ;;  %6962 = vmatpush1.bf16.msra.mxu1 %v6961_v26 }
 0x2a6   :  { %6963 = vmatprep.subr.bf16.mxu1 %v9650_v59 }
 0x2a7   :  { %v6964_v32 = vpack.c.bf16 %v1168_v28, %v1163_v31  ;;  %v6414_v33 = vpop.f32.mrb[44].mxu0  ;;  %v8098_v31 = vpop.trf.xlu1 }
 0x2a8   :  { %v1178_v34 = vadd.f32 %v6414_v33, %v8041_v60  ;;  %v1172_v36 = vpop.f32.mrb[45].mxu0 }
 0x2a9   :  { %v1173_v39 = vadd.f32 %v8041_v60, %v1172_v36  ;;  %6965 = vmatpush1.bf16.msra.mxu1 %v6964_v32 }
 0x2aa   :  { %6966 = vmatprep.subr.bf16.mxu1 %v9650_v59 }
 0x2ab   :  { %v6967_v61 = vpack.c.bf16 %v1178_v34, %v1173_v39  ;;  %v6417_v62 = vpop.f32.mrb[46].mxu0 }
 0x2ac   :  { %v1188_v63 = vadd.f32 %v6417_v62, %v8041_v60  ;;  %v1182_v1 = vpop.f32.mrb[47].mxu0 }
 0x2ad   :  { %v1183_v3 = vadd.f32 %v8041_v60, %v1182_v1  ;;  %6968 = vmatpush1.bf16.msra.mxu1 %v6967_v61  ;;  %v8103_v61 = vpop.trf.xlu1 }
 0x2ae   :  { %6969 = vmatprep.subr.bf16.mxu1 %v9650_v59 }
 0x2af   :  { %v6970_v4 = vpack.c.bf16 %v1188_v63, %v1183_v3  ;;  %v6420_v5 = vpop.f32.mrb[48].mxu0 }
 0x2b0   :  { %v1198_v7 = vadd.f32 %v6420_v5, %v8041_v60  ;;  %v1192_v8 = vpop.f32.mrb[49].mxu0 }
 0x2b1   :  { %v1193_v10 = vadd.f32 %v8041_v60, %v1192_v8  ;;  %6971 = vmatpush1.bf16.msra.mxu1 %v6970_v4  ;;  %v8108_v5 = vpop.trf.xlu1 }
 0x2b2   :  { %6972 = vmatprep.subr.bf16.mxu1 %v9650_v59 }
 0x2b3   :  { %v6973_v11 = vpack.c.bf16 %v1198_v7, %v1193_v10  ;;  %v6423_v13 = vpop.f32.mrb[50].mxu0 }
 0x2b4   :  { %v1208_v14 = vadd.f32 %v6423_v13, %v8041_v60  ;;  %v1202_v15 = vpop.f32.mrb[51].mxu0 }
 0x2b5   :  { %v1203_v17 = vadd.f32 %v8041_v60, %v1202_v15  ;;  %6974 = vmatpush1.bf16.msra.mxu1 %v6973_v11 }
 0x2b6   :  { %6975 = vmatprep.subr.bf16.mxu1 %v9650_v59 }
 0x2b7   :  { %v6976_v19 = vpack.c.bf16 %v1208_v14, %v1203_v17  ;;  %v6426_v20 = vpop.f32.mrb[52].mxu0  ;;  %v8113_v14 = vpop.trf.xlu1 }
 0x2b8   :  { %v1218_v21 = vadd.f32 %v6426_v20, %v8041_v60  ;;  %v1212_v22 = vpop.f32.mrb[53].mxu0 }
 0x2b9   :  { %v1213_v25 = vadd.f32 %v8041_v60, %v1212_v22  ;;  %6977 = vmatpush1.bf16.msra.mxu1 %v6976_v19 }
 0x2ba   :  { %6978 = vmatprep.subr.bf16.mxu1 %v9650_v59 }
 0x2bb   :  { %v6979_v26 = vpack.c.bf16 %v1218_v21, %v1213_v25  ;;  %v6429_v27 = vpop.f32.mrb[54].mxu0  ;;  %v8118_v22 = vpop.trf.xlu1 }
 0x2bc   :  { %v1228_v28 = vadd.f32 %v6429_v27, %v8041_v60  ;;  %v1222_v29 = vpop.f32.mrb[55].mxu0  ;;  %v9649_v27 = vunpack.i.h.bf16 %v8003_v41 }
 0x2bd   :  { %v1223_v32 = vadd.f32 %v8041_v60, %v1222_v29  ;;  %6980 = vmatpush1.bf16.msra.mxu1 %v6979_v26  ;;  %v9647_v29 = vunpack.i.h.bf16 %v8008_v46 }
 0x2be   :  { %6981 = vmatprep.subr.bf16.mxu1 %v9650_v59 }
 0x2bf   :  { %v6982_v33 = vpack.c.bf16 %v1228_v28, %v1223_v32  ;;  %v6432_v34 = vpop.f32.mrb[56].mxu0  ;;  %v9648_v28 = vunpack.i.l.bf16 %v8008_v46  ;;  %v9646_v32 = vunpack.i.l.bf16 %v8010_v47 }
 0x2c0   :  { %v1238_v36 = vadd.f32 %v6432_v34, %v8041_v60  ;;  %v1232_v39 = vpop.f32.mrb[57].mxu0  ;;  %v9643_v34 = vunpack.i.h.bf16 %v8012_v48 }
 0x2c1   :  { %v1233_v62 = vadd.f32 %v8041_v60, %v1232_v39  ;;  %6983 = vmatpush1.bf16.msra.mxu1 %v6982_v33  ;;  %v9644_v33 = vunpack.i.l.bf16 %v8012_v48  ;;  %v9641_v39 = vunpack.i.h.bf16 %v8014_v49 }
 0x2c2   :  { %6984 = vmatprep.subr.bf16.mxu1 %v9650_v59 }
 0x2c3   :  { %v6985_v63 = vpack.c.bf16 %v1238_v36, %v1233_v62  ;;  %v6435_v1 = vpop.f32.mrb[58].mxu0  ;;  %v9642_v36 = vunpack.i.l.bf16 %v8014_v49  ;;  %v9640_v62 = vunpack.i.l.bf16 %v8016_v50 }
 0x2c4   :  { %v1248_v3 = vadd.f32 %v6435_v1, %v8041_v60  ;;  %v1242_v4 = vpop.f32.mrb[59].mxu0  ;;  %v9638_v1 = vunpack.i.l.bf16 %v8018_v51 }
 0x2c5   :  { %v1243_v7 = vadd.f32 %v8041_v60, %v1242_v4  ;;  %6986 = vmatpush1.bf16.msra.mxu1 %v6985_v63  ;;  %v9639_v63 = vunpack.i.h.bf16 %v8016_v50  ;;  %v9636_v4 = vunpack.i.l.bf16 %v8020_v52 }
 0x2c6   :  { %6987 = vmatprep.subr.bf16.mxu1 %v9650_v59 }
 0x2c7   :  { %v6988_v8 = vpack.c.bf16 %v1248_v3, %v1243_v7  ;;  %v6438_v10 = vpop.f32.mrb[60].mxu0  ;;  %v9637_v3 = vunpack.i.h.bf16 %v8018_v51  ;;  %v9634_v7 = vunpack.i.h.bf16 %v8020_v52 }
 0x2c8   :  { %v1258_v11 = vadd.f32 %v6438_v10, %v8041_v60  ;;  %v1252_v13 = vpop.f32.mrb[61].mxu0  ;;  %v9630_v10 = vunpack.i.h.bf16 %v8022_v53 }
 0x2c9   :  { %v1253_v15 = vadd.f32 %v8041_v60, %v1252_v13  ;;  %6989 = vmatpush1.bf16.msra.mxu1 %v6988_v8  ;;  %v9632_v8 = vunpack.i.l.bf16 %v8022_v53  ;;  %v9624_v13 = vunpack.i.h.bf16 %v8024_v54 }
 0x2ca   :  { %6990 = vmatprep.subr.bf16.mxu1 %v9650_v59 }
 0x2cb   :  { %v6991_v17 = vpack.c.bf16 %v1258_v11, %v1253_v15  ;;  %v6441_v19 = vpop.f32.mrb[62].mxu0  ;;  %v9629_v11 = vunpack.i.l.bf16 %v8024_v54  ;;  %v9607_v15 = vunpack.i.l.bf16 %v8026_v55 }
 0x2cc   :  { %v1268_v20 = vadd.f32 %v6441_v19, %v8041_v60  ;;  %v1262_v21 = vpop.f32.mrb[63].mxu0  ;;  %v9588_v19 = vunpack.i.l.bf16 %v8028_v40 }
 0x2cd   :  { %v1263_v25 = vadd.f32 %v8041_v60, %v1262_v21  ;;  %6992 = vmatpush1.bf16.msra.mxu1 %v6991_v17  ;;  %v9645_v60 = vunpack.i.h.bf16 %v8010_v47  ;;  %v9587_v17 = vunpack.i.h.bf16 %v8026_v55  ;;  %v9590_v21 = vunpack.i.l.bf16 %v8030_v56 }
 0x2ce   :  { %6993 = vmatprep.subr.bf16.mxu1 %v9650_v59 }
 0x2cf   :  { %v6994_v26 = vpack.c.bf16 %v1268_v20, %v1263_v25  ;;  %v9589_v20 = vunpack.i.h.bf16 %v8028_v40  ;;  %v9591_v25 = vunpack.i.h.bf16 %v8030_v56 }
 0x2d1   :  { %6995 = vmatpush1.bf16.msra.mxu1 %v6994_v26  ;;  %v9592_v26 = vunpack.i.l.bf16 %v8032_v45 }
 0x2d4   :  { %1464 = vmatmul.mubr.f32.vlgmr.msra.gmra.mrb[32].mxu1 %v9649_v27 }
 0x2d5   :  { %1468 = vmatprep.mubr.f32.mxu1 %v9648_v28 }
 0x2d8   :  { %1469 = vmatmul.mubr.f32.gmra.mrb[34].mxu1 %v9647_v29 }
 0x2d9   :  { %1473 = vmatprep.mubr.f32.mxu1 %v9646_v32 }
 0x2dc   :  { %1474 = vmatmul.mubr.f32.gmra.mrb[36].mxu1 %v9645_v60 }
 0x2dd   :  { %1478 = vmatprep.mubr.f32.mxu1 %v9644_v33 }
 0x2e0   :  { %1479 = vmatmul.mubr.f32.gmra.mrb[38].mxu1 %v9643_v34 }
 0x2e1   :  { %1483 = vmatprep.mubr.f32.mxu1 %v9642_v36 }
 0x2e4   :  { %1484 = vmatmul.mubr.f32.gmra.mrb[40].mxu1 %v9641_v39 }
 0x2e5   :  { %1488 = vmatprep.mubr.f32.mxu1 %v9640_v62 }
 0x2e8   :  { %1489 = vmatmul.mubr.f32.gmra.mrb[42].mxu1 %v9639_v63 }
 0x2e9   :  { %1493 = vmatprep.mubr.f32.mxu1 %v9638_v1 }
 0x2ec   :  { %1494 = vmatmul.mubr.f32.gmra.mrb[44].mxu1 %v9637_v3 }
 0x2ed   :  { %1498 = vmatprep.mubr.f32.mxu1 %v9636_v4 }
 0x2f0   :  { %1499 = vmatmul.mubr.f32.gmra.mrb[46].mxu1 %v9634_v7 }
 0x2f1   :  { %1503 = vmatprep.mubr.f32.mxu1 %v9632_v8 }
 0x2f4   :  { %1504 = vmatmul.mubr.f32.gmra.mrb[48].mxu1 %v9630_v10 }
 0x2f5   :  { %1508 = vmatprep.mubr.f32.mxu1 %v9629_v11 }
 0x2f8   :  { %1509 = vmatmul.mubr.f32.gmra.mrb[50].mxu1 %v9624_v13  ;;  %v9635_v13 = vunpack.i.h.bf16 %v8118_v22 }
 0x2f9   :  { %1513 = vmatprep.mubr.f32.mxu1 %v9607_v15 }
 0x2fc   :  { %1514 = vmatmul.mubr.f32.gmra.mrb[52].mxu1 %v9587_v17  ;;  %v9593_v17 = vunpack.i.h.bf16 %v8032_v45 }
 0x2fd   :  { %1518 = vmatprep.mubr.f32.mxu1 %v9588_v19  ;;  %v9594_v19 = vunpack.i.l.bf16 %v8034_v57 }
 0x300   :  { %1519 = vmatmul.mubr.f32.gmra.mrb[54].mxu1 %v9589_v20  ;;  %v9595_v20 = vunpack.i.h.bf16 %v8034_v57 }
 0x301   :  { %1523 = vmatprep.mubr.f32.mxu1 %v9590_v21  ;;  %v9596_v21 = vunpack.i.l.bf16 %v8036_v58 }
 0x304   :  { %1524 = vmatmul.mubr.f32.gmra.mrb[56].mxu1 %v9591_v25  ;;  %v9597_v25 = vunpack.i.h.bf16 %v8036_v58 }
 0x305   :  { %1528 = vmatprep.mubr.f32.mxu1 %v9592_v26  ;;  %v9598_v26 = vunpack.i.l.bf16 %v8044_v0 }
 0x308   :  { %1529 = vmatmul.mubr.f32.gmra.mrb[58].mxu1 %v9593_v17  ;;  %v9599_v17 = vunpack.i.h.bf16 %v8044_v0 }
 0x309   :  { %1533 = vmatprep.mubr.f32.mxu1 %v9594_v19  ;;  %v9600_v19 = vunpack.i.l.bf16 %v8048_v6 }
 0x30c   :  { %1534 = vmatmul.mubr.f32.gmra.mrb[60].mxu1 %v9595_v20  ;;  %v9601_v20 = vunpack.i.h.bf16 %v8048_v6 }
 0x30d   :  { %1538 = vmatprep.mubr.f32.mxu1 %v9596_v21  ;;  %v9602_v21 = vunpack.i.l.bf16 %v8053_v12 }
 0x310   :  { %1539 = vmatmul.mubr.f32.gmra.mrb[62].mxu1 %v9597_v25  ;;  %v9603_v25 = vunpack.i.h.bf16 %v8053_v12 }
 0x311   :  { %1543 = vmatprep.mubr.f32.mxu1 %v9598_v26  ;;  %v9604_v26 = vunpack.i.l.bf16 %v8058_v18 }
 0x314   :  { %1544 = vmatmul.mubr.f32.gmra.mrb[64].mxu1 %v9599_v17  ;;  %v9605_v17 = vunpack.i.h.bf16 %v8058_v18 }
 0x315   :  { %1548 = vmatprep.mubr.f32.mxu1 %v9600_v19  ;;  %v9606_v19 = vunpack.i.l.bf16 %v8063_v24 }
 0x318   :  { %1549 = vmatmul.mubr.f32.gmra.mrb[66].mxu1 %v9601_v20  ;;  %v9608_v20 = vunpack.i.h.bf16 %v8063_v24 }
 0x319   :  { %1553 = vmatprep.mubr.f32.mxu1 %v9602_v21  ;;  %v9609_v21 = vunpack.i.l.bf16 %v8068_v30 }
 0x31c   :  { %1554 = vmatmul.mubr.f32.gmra.mrb[68].mxu1 %v9603_v25  ;;  %v9610_v25 = vunpack.i.h.bf16 %v8068_v30 }
 0x31d   :  { %1558 = vmatprep.mubr.f32.mxu1 %v9604_v26  ;;  %v9611_v26 = vunpack.i.l.bf16 %v8073_v37 }
 0x320   :  { %1559 = vmatmul.mubr.f32.gmra.mrb[70].mxu1 %v9605_v17  ;;  %v1624_v17 = vld [vmem:[%s9580_s8] sm:$0xff] }
 0x321   :  { %1563 = vmatprep.mubr.f32.mxu1 %v9606_v19  ;;  %v1625_v19 = vld [vmem:[%s9580_s8 + $0x8] sm:$0xff] }
 0x322   :  { %v8256_v15 = vpack.c.bf16 %v1625_v19, %v1624_v17  ;;  %v9614_v17 = vunpack.i.h.bf16 %v8078_v2  ;;  %v9615_v19 = vunpack.i.l.bf16 %v8083_v9 }
 0x324   :  { %1564 = vmatmul.mubr.f32.gmra.mrb[72].mxu1 %v9608_v20  ;;  %v9612_v20 = vunpack.i.h.bf16 %v8073_v37  ;;  %6997 = vmatprep.subr.bf16.mxu0 %v8256_v15 }
 0x325   :  { %1568 = vmatprep.mubr.f32.mxu1 %v9609_v21  ;;  %v9613_v21 = vunpack.i.l.bf16 %v8078_v2  ;;  %6999 = vmatpush3.bf16.msra.mxu0 %v8256_v15 }
 0x328   :  { %1569 = vmatmul.mubr.f32.gmra.mrb[74].mxu1 %v9610_v25  ;;  %v9616_v25 = vunpack.i.h.bf16 %v8083_v9 }
 0x329   :  { %1573 = vmatprep.mubr.f32.mxu1 %v9611_v26  ;;  %v9617_v26 = vunpack.i.l.bf16 %v8088_v16 }
 0x32c   :  { %1574 = vmatmul.mubr.f32.gmra.mrb[76].mxu1 %v9612_v20  ;;  %v9618_v20 = vunpack.i.h.bf16 %v8088_v16 }
 0x32d   :  { %1578 = vmatprep.mubr.f32.mxu1 %v9613_v21  ;;  %v9619_v21 = vunpack.i.l.bf16 %v8093_v23 }
 0x330   :  { %1579 = vmatmul.mubr.f32.gmra.mrb[78].mxu1 %v9614_v17  ;;  %v9620_v17 = vunpack.i.h.bf16 %v8093_v23 }
 0x331   :  { %1583 = vmatprep.mubr.f32.mxu1 %v9615_v19  ;;  %v9621_v19 = vunpack.i.l.bf16 %v8098_v31 }
 0x334   :  { %1584 = vmatmul.mubr.f32.gmra.mrb[80].mxu1 %v9616_v25  ;;  %v9622_v25 = vunpack.i.h.bf16 %v8098_v31 }
 0x335   :  { %1588 = vmatprep.mubr.f32.mxu1 %v9617_v26  ;;  %v9623_v26 = vunpack.i.l.bf16 %v8103_v61 }
 0x338   :  { %1589 = vmatmul.mubr.f32.gmra.mrb[82].mxu1 %v9618_v20  ;;  %v9627_v20 = vunpack.i.h.bf16 %v8103_v61 }
 0x339   :  { %1593 = vmatprep.mubr.f32.mxu1 %v9619_v21  ;;  %v9626_v21 = vunpack.i.l.bf16 %v8108_v5 }
 0x33c   :  { %1594 = vmatmul.mubr.f32.gmra.mrb[84].mxu1 %v9620_v17  ;;  %v9625_v17 = vunpack.i.h.bf16 %v8108_v5 }
 0x33d   :  { %1598 = vmatprep.mubr.f32.mxu1 %v9621_v19  ;;  %v9628_v19 = vunpack.i.l.bf16 %v8113_v14 }
 0x340   :  { %1599 = vmatmul.mubr.f32.gmra.mrb[86].mxu1 %v9622_v25  ;;  %v9631_v25 = vunpack.i.h.bf16 %v8113_v14 }
 0x341   :  { %1603 = vmatprep.mubr.f32.mxu1 %v9623_v26  ;;  %v9633_v26 = vunpack.i.l.bf16 %v8118_v22 }
 0x344   :  { %1604 = vmatmul.mubr.f32.gmra.mrb[88].mxu1 %v9627_v20 }
 0x345   :  { %1608 = vmatprep.mubr.f32.mxu1 %v9626_v21 }
 0x348   :  { %1609 = vmatmul.mubr.f32.gmra.mrb[90].mxu1 %v9625_v17 }
 0x349   :  { %1613 = vmatprep.mubr.f32.mxu1 %v9628_v19 }
 0x34c   :  { %1614 = vmatmul.mubr.f32.gmra.mrb[92].mxu1 %v9631_v25 }
 0x34d   :  { %1618 = vmatprep.mubr.f32.mxu1 %v9633_v26 }
 0x350   :  { %1619 = vmatmul.mubr.f32.gmra.mrb[94].mxu1 %v9635_v13 }
 0x3a7   :  { %v1465_v17 = vpop.f32.mrb[32].mxu1 }
 0x3a8   :  { %v1467_v21 = vpop.f32.mrb[33].mxu1  ;;  %6446 = vmatprep.mubr.msk.f32.mxu0 %vm1633_vm3, %v1465_v17 }
 0x3ab   :  { %v1470_v20 = vpop.f32.mrb[34].mxu1 }
 0x3ac   :  { %v1472_v19 = vpop.f32.mrb[35].mxu1  ;;  %6447 = vmatmul.mubr.msk.f32.vlgmr.msra.gmra.mrb[64].mxu0 %vm1633_vm3, %v1470_v20 }
 0x3af   :  { %v1475_v11 = vpop.f32.mrb[36].mxu1 }
 0x3b0   :  { %v1477_v10 = vpop.f32.mrb[37].mxu1  ;;  %6449 = vmatprep.mubr.msk.f32.mxu0 %vm1633_vm3, %v1475_v11 }
 0x3b3   :  { %v1480_v25 = vpop.f32.mrb[38].mxu1 }
 0x3b4   :  { %v1482_v8 = vpop.f32.mrb[39].mxu1  ;;  %6450 = vmatmul.mubr.msk.f32.gmra.mrb[66].mxu0 %vm1633_vm3, %v1480_v25 }
 0x3b7   :  { %v1485_v26 = vpop.f32.mrb[40].mxu1 }
 0x3b8   :  { %v1487_v7 = vpop.f32.mrb[41].mxu1  ;;  %6452 = vmatprep.mubr.msk.f32.mxu0 %vm1633_vm3, %v1485_v26 }
 0x3bb   :  { %v1490_v13 = vpop.f32.mrb[42].mxu1 }
 0x3bc   :  { %v1492_v21 = vpop.f32.mrb[43].mxu1  ;;  %6453 = vmatmul.mubr.msk.f32.gmra.mrb[68].mxu0 %vm1633_vm3, %v1490_v13 }
 0x3bf   :  { %v1495_v17 = vpop.f32.mrb[44].mxu1 }
 0x3c0   :  { %v1497_v19 = vpop.f32.mrb[45].mxu1  ;;  %6455 = vmatprep.mubr.msk.f32.mxu0 %vm1633_vm3, %v1495_v17 }
 0x3c3   :  { %v1500_v20 = vpop.f32.mrb[46].mxu1 }
 0x3c4   :  { %v1502_v10 = vpop.f32.mrb[47].mxu1  ;;  %6456 = vmatmul.mubr.msk.f32.gmra.mrb[70].mxu0 %vm1633_vm3, %v1500_v20 }
 0x3c7   :  { %v1505_v11 = vpop.f32.mrb[48].mxu1 }
 0x3c8   :  { %v1507_v8 = vpop.f32.mrb[49].mxu1  ;;  %6458 = vmatprep.mubr.msk.f32.mxu0 %vm1633_vm3, %v1505_v11 }
 0x3cb   :  { %v1510_v25 = vpop.f32.mrb[50].mxu1 }
 0x3cc   :  { %v1512_v7 = vpop.f32.mrb[51].mxu1  ;;  %6459 = vmatmul.mubr.msk.f32.gmra.mrb[72].mxu0 %vm1633_vm3, %v1510_v25 }
 0x3cf   :  { %v1515_v26 = vpop.f32.mrb[52].mxu1 }
 0x3d0   :  { %v1517_v21 = vpop.f32.mrb[53].mxu1  ;;  %6461 = vmatprep.mubr.msk.f32.mxu0 %vm1633_vm3, %v1515_v26 }
 0x3d3   :  { %v1520_v13 = vpop.f32.mrb[54].mxu1 }
 0x3d4   :  { %v1522_v19 = vpop.f32.mrb[55].mxu1  ;;  %6462 = vmatmul.mubr.msk.f32.gmra.mrb[74].mxu0 %vm1633_vm3, %v1520_v13 }
 0x3d7   :  { %v1525_v17 = vpop.f32.mrb[56].mxu1 }
 0x3d8   :  { %v1527_v10 = vpop.f32.mrb[57].mxu1  ;;  %6464 = vmatprep.mubr.msk.f32.mxu0 %vm1633_vm3, %v1525_v17 }
 0x3db   :  { %v1530_v20 = vpop.f32.mrb[58].mxu1 }
 0x3dc   :  { %v1532_v8 = vpop.f32.mrb[59].mxu1  ;;  %6465 = vmatmul.mubr.msk.f32.gmra.mrb[76].mxu0 %vm1633_vm3, %v1530_v20 }
 0x3df   :  { %v1535_v11 = vpop.f32.mrb[60].mxu1 }
 0x3e0   :  { %v1537_v7 = vpop.f32.mrb[61].mxu1  ;;  %6467 = vmatprep.mubr.msk.f32.mxu0 %vm1633_vm3, %v1535_v11 }
 0x3e3   :  { %v1540_v25 = vpop.f32.mrb[62].mxu1 }
 0x3e4   :  { %v1542_v21 = vpop.f32.mrb[63].mxu1  ;;  %6468 = vmatmul.mubr.msk.f32.gmra.mrb[78].mxu0 %vm1633_vm3, %v1540_v25 }
 0x3e7   :  { %v1545_v26 = vpop.f32.mrb[64].mxu1 }
 0x3e8   :  { %v1547_v19 = vpop.f32.mrb[65].mxu1  ;;  %6470 = vmatprep.mubr.msk.f32.mxu0 %vm1633_vm3, %v1545_v26  ;;  %v2019_v26 = vld [vmem:[%s9581_s9] sm:$0xff] }
 0x3eb   :  { %v1550_v13 = vpop.f32.mrb[66].mxu1 }
 0x3ec   :  { %v1552_v10 = vpop.f32.mrb[67].mxu1  ;;  %6471 = vmatmul.mubr.msk.f32.gmra.mrb[80].mxu0 %vm1633_vm3, %v1550_v13  ;;  %v2020_v13 = vld [vmem:[%s9581_s9 + $0x8] sm:$0xff] }
 0x3ed   :  { %v8349_v10 = vpack.c.bf16 %v2020_v13, %v2019_v26 }
 0x3ef   :  { %v1555_v17 = vpop.f32.mrb[68].mxu1  ;;  %7001 = vmatprep.subr.bf16.mxu0 %v8349_v10 }
 0x3f0   :  { %v1557_v8 = vpop.f32.mrb[69].mxu1  ;;  %6473 = vmatprep.mubr.msk.f32.mxu0 %vm1633_vm3, %v1555_v17  ;;  %7003 = vmatpush3.bf16.msra.mxu0 %v8349_v10 }
 0x3f3   :  { %v1560_v20 = vpop.f32.mrb[70].mxu1 }
 0x3f4   :  { %v1562_v7 = vpop.f32.mrb[71].mxu1  ;;  %6474 = vmatmul.mubr.msk.f32.gmra.mrb[82].mxu0 %vm1633_vm3, %v1560_v20  ;;  %v2021_v20 = vld [vmem:[%s9581_s9 + $0x10] sm:$0xff] }
 0x3f5   :  { %v2022_v7 = vld [vmem:[%s9581_s9 + $0x18] sm:$0xff] }
 0x3f7   :  { %v1565_v11 = vpop.f32.mrb[72].mxu1 }
 0x3f8   :  { %v1567_v21 = vpop.f32.mrb[73].mxu1  ;;  %6476 = vmatprep.mubr.msk.f32.mxu0 %vm1633_vm3, %v1565_v11  ;;  %v8360_v11 = vpack.c.bf16 %v2022_v7, %v2021_v20 }
 0x3fa   :  { %7005 = vmatprep.subr.bf16.mxu0 %v8360_v11 }
 0x3fb   :  { %v1570_v25 = vpop.f32.mrb[74].mxu1  ;;  %7007 = vmatpush3.bf16.msra.mxu0 %v8360_v11 }
 0x3fc   :  { %v1572_v19 = vpop.f32.mrb[75].mxu1  ;;  %6477 = vmatmul.mubr.msk.f32.gmra.mrb[84].mxu0 %vm1633_vm3, %v1570_v25 }
 0x3fd   :  { %v7328_v19 = vld [vmem:[%s9574_s2] sm:$0xf] }
 0x3fe   :  { %6606 = vmatprep.subr.msk.mxu0 %vm249_vm0, %v7328_v19 }
 0x3ff   :  { %v1575_v17 = vpop.f32.mrb[76].mxu1 }
 0x400   :  { %v1577_v8 = vpop.f32.mrb[77].mxu1  ;;  %6479 = vmatprep.mubr.msk.f32.mxu0 %vm1633_vm3, %v1575_v17 }
 0x403   :  { %v1580_v21 = vpop.f32.mrb[78].mxu1 }
 0x404   :  { %v1582_v25 = vpop.f32.mrb[79].mxu1  ;;  %6480 = vmatmul.mubr.msk.f32.gmra.mrb[86].mxu0 %vm1633_vm3, %v1580_v21 }
 0x407   :  { %v1585_v26 = vpop.f32.mrb[80].mxu1 }
 0x408   :  { %v1587_v13 = vpop.f32.mrb[81].mxu1  ;;  %6482 = vmatprep.mubr.msk.f32.mxu0 %vm1633_vm3, %v1585_v26 }
 0x40b   :  { %v1590_v17 = vpop.f32.mrb[82].mxu1 }
 0x40c   :  { %v1592_v8 = vpop.f32.mrb[83].mxu1  ;;  %6483 = vmatmul.mubr.msk.f32.gmra.mrb[88].mxu0 %vm1633_vm3, %v1590_v17 }
 0x40f   :  { %v1595_v20 = vpop.f32.mrb[84].mxu1 }
 0x410   :  { %v1597_v7 = vpop.f32.mrb[85].mxu1  ;;  %6485 = vmatprep.mubr.msk.f32.mxu0 %vm1633_vm3, %v1595_v20  ;;  %v8380_v20 = vld [vmem:[%s9583_s11] ss:$0 sm:$0xff] }
 0x413   :  { %v1600_v21 = vpop.f32.mrb[86].mxu1 }
 0x414   :  { %v1602_v25 = vpop.f32.mrb[87].mxu1  ;;  %6486 = vmatmul.mubr.msk.f32.gmra.mrb[90].mxu0 %vm1633_vm3, %v1600_v21 }
 0x417   :  { %v1605_v4 = vpop.f32.mrb[88].mxu1 }
 0x418   :  { %v1607_v3 = vpop.f32.mrb[89].mxu1  ;;  %6488 = vmatprep.mubr.msk.f32.mxu0 %vm1633_vm3, %v1605_v4 }
 0x41b   :  { %v1610_v1 = vpop.f32.mrb[90].mxu1 }
 0x41c   :  { %v1612_v13 = vpop.f32.mrb[91].mxu1  ;;  %6489 = vmatmul.mubr.msk.f32.gmra.mrb[92].mxu0 %vm1633_vm3, %v1610_v1 }
 0x41f   :  { %v1615_v26 = vpop.f32.mrb[92].mxu1 }
 0x420   :  { %v1617_v8 = vpop.f32.mrb[93].mxu1  ;;  %6491 = vmatprep.mubr.msk.f32.mxu0 %vm1633_vm3, %v1615_v26 }
 0x423   :  { %v1620_v17 = vpop.f32.mrb[94].mxu1 }
 0x424   :  { %v1622_v7 = vpop.f32.mrb[95].mxu1  ;;  %6492 = vmatmul.mubr.msk.f32.gmra.mrb[94].mxu0 %vm1633_vm3, %v1620_v17 }
 0x47f   :  { %v6448_v3 = vpop.f32.mrb[64].mxu0 }
 0x480   :  { %v1802_v4 = vadd.f32 %v6448_v3, %v8380_v20  ;;  %v1796_v21 = vpop.f32.mrb[65].mxu0 }
 0x481   :  { %v1797_v25 = vadd.f32 %v8380_v20, %v1796_v21 }
 0x482   :  { %v1956_v1 = vmul.f32 0.05, %v1802_v4 }
 0x483   :  { %v1955_v13 = vmul.f32 0.05, %v1797_v25 }
 0x484   :  { %v1988_v63 = vmax.f32 %v1802_v4, %v1956_v1 }
 0x485   :  { %v1987_v8 = vmax.f32 %v1797_v25, %v1955_v13 }
 0x487   :  { %v6451_v26 = vpop.f32.mrb[66].mxu0  ;;  %6502 = vmatprep.mubr.msk.f32.mxu0 %vm553_vm2, %v1987_v8 }
 0x488   :  { %v1812_v17 = vadd.f32 %v6451_v26, %v8380_v20  ;;  %v1806_v7 = vpop.f32.mrb[67].mxu0  ;;  %6503 = vmatmul.mubr.msk.f32.vlgmr.msra.gmra.mrb[96].mxu0 %vm553_vm2, %v1988_v63 }
 0x489   :  { %v1807_v62 = vadd.f32 %v8380_v20, %v1806_v7  ;;  %6607 = vmatpush3.msk.msra.mxu0 %vm249_vm0, %v7328_v19 }
 0x48a   :  { %v1958_v3 = vmul.f32 0.05, %v1812_v17  ;;  %7025 = vmatprep.subr.bf16.mxu0 %v7661_v42 }
 0x48b   :  { %v1957_v21 = vmul.f32 0.05, %v1807_v62 }
 0x48c   :  { %v1990_v36 = vmax.f32 %v1812_v17, %v1958_v3 }
 0x48d   :  { %v1989_v39 = vmax.f32 %v1807_v62, %v1957_v21 }
 0x48f   :  { %v6454_v25 = vpop.f32.mrb[68].mxu0  ;;  %6505 = vmatprep.mubr.msk.f32.mxu0 %vm553_vm2, %v1989_v39 }
 0x490   :  { %v1822_v4 = vadd.f32 %v6454_v25, %v8380_v20  ;;  %v1816_v1 = vpop.f32.mrb[69].mxu0  ;;  %6506 = vmatmul.mubr.msk.f32.gmra.mrb[98].mxu0 %vm553_vm2, %v1990_v36  ;;  %v2415_v36 = vld [vmem:[%s9582_s10] sm:$0xff] }
 0x491   :  { %v1817_v63 = vadd.f32 %v8380_v20, %v1816_v1 }
 0x492   :  { %v1960_v13 = vmul.f32 0.05, %v1822_v4 }
 0x493   :  { %v1959_v8 = vmul.f32 0.05, %v1817_v63 }
 0x494   :  { %v1992_v19 = vmax.f32 %v1822_v4, %v1960_v13  ;;  %v2416_v4 = vld [vmem:[%s9582_s10 + $0x8] sm:$0xff] }
 0x495   :  { %v1991_v26 = vmax.f32 %v1817_v63, %v1959_v8  ;;  %v8404_v63 = vpack.c.bf16 %v2416_v4, %v2415_v36 }
 0x497   :  { %v6457_v7 = vpop.f32.mrb[70].mxu0  ;;  %6508 = vmatprep.mubr.msk.f32.mxu0 %vm553_vm2, %v1991_v26  ;;  %7009 = vmatprep.subr.bf16.mxu1 %v8404_v63 }
 0x498   :  { %v1832_v62 = vadd.f32 %v6457_v7, %v8380_v20  ;;  %v1826_v17 = vpop.f32.mrb[71].mxu0  ;;  %6509 = vmatmul.mubr.msk.f32.gmra.mrb[100].mxu0 %vm553_vm2, %v1992_v19  ;;  %7011 = vmatpush3.bf16.msra.mxu1 %v8404_v63 }
 0x499   :  { %v1827_v39 = vadd.f32 %v8380_v20, %v1826_v17 }
 0x49a   :  { %v1962_v3 = vmul.f32 0.05, %v1832_v62 }
 0x49b   :  { %v1961_v21 = vmul.f32 0.05, %v1827_v39 }
 0x49c   :  { %v1994_v1 = vmax.f32 %v1832_v62, %v1962_v3 }
 0x49d   :  { %v1993_v25 = vmax.f32 %v1827_v39, %v1961_v21 }
 0x49f   :  { %v6460_v13 = vpop.f32.mrb[72].mxu0  ;;  %6511 = vmatprep.mubr.msk.f32.mxu0 %vm553_vm2, %v1993_v25 }
 0x4a0   :  { %v1842_v8 = vadd.f32 %v6460_v13, %v8380_v20  ;;  %v1836_v26 = vpop.f32.mrb[73].mxu0  ;;  %6512 = vmatmul.mubr.msk.f32.gmra.mrb[102].mxu0 %vm553_vm2, %v1994_v1 }
 0x4a1   :  { %v1837_v19 = vadd.f32 %v8380_v20, %v1836_v26 }
 0x4a2   :  { %v1964_v7 = vmul.f32 0.05, %v1842_v8 }
 0x4a3   :  { %v1963_v17 = vmul.f32 0.05, %v1837_v19 }
 0x4a4   :  { %v1996_v62 = vmax.f32 %v1842_v8, %v1964_v7 }
 0x4a5   :  { %v1995_v39 = vmax.f32 %v1837_v19, %v1963_v17 }
 0x4a7   :  { %v6463_v3 = vpop.f32.mrb[74].mxu0  ;;  %6514 = vmatprep.mubr.msk.f32.mxu0 %vm553_vm2, %v1995_v39 }
 0x4a8   :  { %v1852_v21 = vadd.f32 %v6463_v3, %v8380_v20  ;;  %v1846_v25 = vpop.f32.mrb[75].mxu0  ;;  %6515 = vmatmul.mubr.msk.f32.gmra.mrb[104].mxu0 %vm553_vm2, %v1996_v62 }
 0x4a9   :  { %v1847_v36 = vadd.f32 %v8380_v20, %v1846_v25 }
 0x4aa   :  { %v1966_v4 = vmul.f32 0.05, %v1852_v21 }
 0x4ab   :  { %v1965_v1 = vmul.f32 0.05, %v1847_v36 }
 0x4ac   :  { %v1998_v26 = vmax.f32 %v1852_v21, %v1966_v4 }
 0x4ad   :  { %v1997_v13 = vmax.f32 %v1847_v36, %v1965_v1 }
 0x4af   :  { %v6466_v34 = vpop.f32.mrb[76].mxu0  ;;  %6517 = vmatprep.mubr.msk.f32.mxu0 %vm553_vm2, %v1997_v13 }
 0x4b0   :  { %v1862_v19 = vadd.f32 %v6466_v34, %v8380_v20  ;;  %v1856_v8 = vpop.f32.mrb[77].mxu0  ;;  %6518 = vmatmul.mubr.msk.f32.gmra.mrb[106].mxu0 %vm553_vm2, %v1998_v26 }
 0x4b1   :  { %v1857_v7 = vadd.f32 %v8380_v20, %v1856_v8 }
 0x4b2   :  { %v1968_v17 = vmul.f32 0.05, %v1862_v19 }
 0x4b3   :  { %v1967_v39 = vmul.f32 0.05, %v1857_v7 }
 0x4b4   :  { %v2000_v62 = vmax.f32 %v1862_v19, %v1968_v17 }
 0x4b5   :  { %v1999_v3 = vmax.f32 %v1857_v7, %v1967_v39 }
 0x4b7   :  { %v6469_v33 = vpop.f32.mrb[78].mxu0  ;;  %6520 = vmatprep.mubr.msk.f32.mxu0 %vm553_vm2, %v1999_v3 }
 0x4b8   :  { %v1872_v25 = vadd.f32 %v6469_v33, %v8380_v20  ;;  %v1866_v21 = vpop.f32.mrb[79].mxu0  ;;  %6521 = vmatmul.mubr.msk.f32.gmra.mrb[108].mxu0 %vm553_vm2, %v2000_v62 }
 0x4b9   :  { %v1867_v36 = vadd.f32 %v8380_v20, %v1866_v21 }
 0x4ba   :  { %v1970_v34 = vmul.f32 0.05, %v1872_v25 }
 0x4bb   :  { %v1969_v4 = vmul.f32 0.05, %v1867_v36 }
 0x4bc   :  { %v2002_v13 = vmax.f32 %v1872_v25, %v1970_v34 }
 0x4bd   :  { %v2001_v1 = vmax.f32 %v1867_v36, %v1969_v4 }
 0x4bf   :  { %v6472_v26 = vpop.f32.mrb[80].mxu0  ;;  %6523 = vmatprep.mubr.msk.f32.mxu0 %vm553_vm2, %v2001_v1 }
 0x4c0   :  { %v1882_v8 = vadd.f32 %v6472_v26, %v8380_v20  ;;  %v1876_v19 = vpop.f32.mrb[81].mxu0  ;;  %6524 = vmatmul.mubr.msk.f32.gmra.mrb[110].mxu0 %vm553_vm2, %v2002_v13 }
 0x4c1   :  { %v1877_v7 = vadd.f32 %v8380_v20, %v1876_v19 }
 0x4c2   :  { %v1972_v33 = vmul.f32 0.05, %v1882_v8 }
 0x4c3   :  { %v1971_v17 = vmul.f32 0.05, %v1877_v7 }
 0x4c4   :  { %v2004_v3 = vmax.f32 %v1882_v8, %v1972_v33 }
 0x4c5   :  { %v2003_v39 = vmax.f32 %v1877_v7, %v1971_v17 }
 0x4c7   :  { %v6475_v62 = vpop.f32.mrb[82].mxu0  ;;  %6526 = vmatprep.mubr.msk.f32.mxu0 %vm553_vm2, %v2003_v39 }
 0x4c8   :  { %v1892_v21 = vadd.f32 %v6475_v62, %v8380_v20  ;;  %v1886_v25 = vpop.f32.mrb[83].mxu0  ;;  %6527 = vmatmul.mubr.msk.f32.gmra.mrb[112].mxu0 %vm553_vm2, %v2004_v3 }
 0x4c9   :  { %v1887_v36 = vadd.f32 %v8380_v20, %v1886_v25 }
 0x4ca   :  { %v1974_v34 = vmul.f32 0.05, %v1892_v21 }
 0x4cb   :  { %v1973_v4 = vmul.f32 0.05, %v1887_v36 }
 0x4cc   :  { %v2006_v13 = vmax.f32 %v1892_v21, %v1974_v34 }
 0x4cd   :  { %v2005_v1 = vmax.f32 %v1887_v36, %v1973_v4 }
 0x4cf   :  { %v6478_v26 = vpop.f32.mrb[84].mxu0  ;;  %6529 = vmatprep.mubr.msk.f32.mxu0 %vm553_vm2, %v2005_v1 }
 0x4d0   :  { %v1902_v19 = vadd.f32 %v6478_v26, %v8380_v20  ;;  %v1896_v8 = vpop.f32.mrb[85].mxu0  ;;  %6530 = vmatmul.mubr.msk.f32.gmra.mrb[114].mxu0 %vm553_vm2, %v2006_v13  ;;  %v2417_v13 = vld [vmem:[%s9582_s10 + $0x10] sm:$0xff]  ;;  %v2418_v26 = vld [vmem:[%s9582_s10 + $0x18] sm:$0xff] }
 0x4d1   :  { %v1897_v7 = vadd.f32 %v8380_v20, %v1896_v8  ;;  %v8446_v8 = vpack.c.bf16 %v2418_v26, %v2417_v13 }
 0x4d2   :  { %v1976_v33 = vmul.f32 0.05, %v1902_v19 }
 0x4d3   :  { %v1975_v17 = vmul.f32 0.05, %v1897_v7  ;;  %7013 = vmatprep.subr.bf16.mxu1 %v8446_v8 }
 0x4d4   :  { %v2008_v3 = vmax.f32 %v1902_v19, %v1976_v33  ;;  %7015 = vmatpush3.bf16.msra.mxu1 %v8446_v8 }
 0x4d5   :  { %v2007_v39 = vmax.f32 %v1897_v7, %v1975_v17  ;;  %7017 = vmatprep.subr.bf16.mxu1 %v7638_v35 }
 0x4d7   :  { %v6481_v62 = vpop.f32.mrb[86].mxu0  ;;  %6532 = vmatprep.mubr.msk.f32.mxu0 %vm553_vm2, %v2007_v39 }
 0x4d8   :  { %v1912_v25 = vadd.f32 %v6481_v62, %v8380_v20  ;;  %v1906_v21 = vpop.f32.mrb[87].mxu0  ;;  %6533 = vmatmul.mubr.msk.f32.gmra.mrb[116].mxu0 %vm553_vm2, %v2008_v3 }
 0x4d9   :  { %v1907_v36 = vadd.f32 %v8380_v20, %v1906_v21 }
 0x4da   :  { %v1978_v34 = vmul.f32 0.05, %v1912_v25 }
 0x4db   :  { %v1977_v4 = vmul.f32 0.05, %v1907_v36 }
 0x4dc   :  { %v2010_v19 = vmax.f32 %v1912_v25, %v1978_v34 }
 0x4dd   :  { %v2009_v1 = vmax.f32 %v1907_v36, %v1977_v4 }
 0x4df   :  { %v6484_v7 = vpop.f32.mrb[88].mxu0  ;;  %6535 = vmatprep.mubr.msk.f32.mxu0 %vm553_vm2, %v2009_v1 }
 0x4e0   :  { %v1922_v33 = vadd.f32 %v6484_v7, %v8380_v20  ;;  %v1916_v17 = vpop.f32.mrb[89].mxu0  ;;  %6536 = vmatmul.mubr.msk.f32.gmra.mrb[118].mxu0 %vm553_vm2, %v2010_v19 }
 0x4e1   :  { %v1917_v39 = vadd.f32 %v8380_v20, %v1916_v17 }
 0x4e2   :  { %v1980_v3 = vmul.f32 0.05, %v1922_v33 }
 0x4e3   :  { %v1979_v62 = vmul.f32 0.05, %v1917_v39 }
 0x4e4   :  { %v2012_v21 = vmax.f32 %v1922_v33, %v1980_v3 }
 0x4e5   :  { %v2011_v25 = vmax.f32 %v1917_v39, %v1979_v62 }
 0x4e7   :  { %v6487_v36 = vpop.f32.mrb[90].mxu0  ;;  %6538 = vmatprep.mubr.msk.f32.mxu0 %vm553_vm2, %v2011_v25 }
 0x4e8   :  { %v1932_v34 = vadd.f32 %v6487_v36, %v8380_v20  ;;  %v1926_v4 = vpop.f32.mrb[91].mxu0  ;;  %6539 = vmatmul.mubr.msk.f32.gmra.mrb[120].mxu0 %vm553_vm2, %v2012_v21 }
 0x4e9   :  { %v1927_v1 = vadd.f32 %v8380_v20, %v1926_v4 }
 0x4ea   :  { %v1982_v13 = vmul.f32 0.05, %v1932_v34 }
 0x4eb   :  { %v1981_v26 = vmul.f32 0.05, %v1927_v1 }
 0x4ec   :  { %v2014_v7 = vmax.f32 %v1932_v34, %v1982_v13 }
 0x4ed   :  { %v2013_v19 = vmax.f32 %v1927_v1, %v1981_v26 }
 0x4ef   :  { %v6490_v17 = vpop.f32.mrb[92].mxu0  ;;  %6541 = vmatprep.mubr.msk.f32.mxu0 %vm553_vm2, %v2013_v19 }
 0x4f0   :  { %v1942_v39 = vadd.f32 %v6490_v17, %v8380_v20  ;;  %v1936_v33 = vpop.f32.mrb[93].mxu0  ;;  %6542 = vmatmul.mubr.msk.f32.gmra.mrb[122].mxu0 %vm553_vm2, %v2014_v7  ;;  %v2843_v17 = vld [vmem:[%s9572_s0 + $0x100] sm:$0xff] }
 0x4f1   :  { %v1937_v3 = vadd.f32 %v8380_v20, %v1936_v33  ;;  %v2847_v33 = vld [vmem:[%s9572_s0 + $0x120] sm:$0xff] }
 0x4f2   :  { %v1984_v62 = vmul.f32 0.05, %v1942_v39 }
 0x4f3   :  { %v1983_v25 = vmul.f32 0.05, %v1937_v3 }
 0x4f4   :  { %v2016_v21 = vmax.f32 %v1942_v39, %v1984_v62  ;;  %v2846_v39 = vld [vmem:[%s9572_s0 + $0x118] sm:$0xff] }
 0x4f5   :  { %v2015_v36 = vmax.f32 %v1937_v3, %v1983_v25  ;;  %v2848_v3 = vld [vmem:[%s9572_s0 + $0x128] sm:$0xff]  ;;  %v2850_v62 = vld [vmem:[%s9572_s0 + $0x138] sm:$0xff]  ;;  %v2851_v25 = vld [vmem:[%s9572_s0 + $0x140] sm:$0xff] }
 0x4f7   :  { %v6493_v60 = vpop.f32.mrb[94].mxu0  ;;  %6544 = vmatprep.mubr.msk.f32.mxu0 %vm553_vm2, %v2015_v36  ;;  %v2853_v36 = vld [vmem:[%s9572_s0 + $0x150] sm:$0xff] }
 0x4f8   :  { %v1952_v4 = vadd.f32 %v6493_v60, %v8380_v20  ;;  %v1946_v34 = vpop.f32.mrb[95].mxu0  ;;  %6545 = vmatmul.mubr.msk.f32.gmra.mrb[124].mxu0 %vm553_vm2, %v2016_v21  ;;  %v2844_v60 = vld [vmem:[%s9572_s0 + $0x108] sm:$0xff]  ;;  %v2854_v21 = vld [vmem:[%s9572_s0 + $0x158] sm:$0xff] }
 0x4f9   :  { %v1947_v1 = vadd.f32 %v8380_v20, %v1946_v34  ;;  %v2845_v20 = vld [vmem:[%s9572_s0 + $0x110] sm:$0xff]  ;;  %v2856_v34 = vld [vmem:[%s9572_s0 + $0x168] sm:$0xff] }
 0x4fa   :  { %v1986_v13 = vmul.f32 0.05, %v1952_v4 }
 0x4fb   :  { %v1985_v26 = vmul.f32 0.05, %v1947_v1 }
 0x4fc   :  { %v2018_v7 = vmax.f32 %v1952_v4, %v1986_v13  ;;  %v2855_v4 = vld [vmem:[%s9572_s0 + $0x160] sm:$0xff]  ;;  %v2858_v13 = vld [vmem:[%s9572_s0 + $0x178] sm:$0xff] }
 0x4fd   :  { %v2017_v19 = vmax.f32 %v1947_v1, %v1985_v26  ;;  %v2857_v1 = vld [vmem:[%s9572_s0 + $0x170] sm:$0xff]  ;;  %v2859_v26 = vld [vmem:[%s9572_s0 + $0x180] sm:$0xff] }
 0x4ff   :  { %6547 = vmatprep.mubr.msk.f32.mxu0 %vm553_vm2, %v2017_v19  ;;  %v2860_v19 = vld [vmem:[%s9572_s0 + $0x188] sm:$0xff] }
 0x500   :  { %6548 = vmatmul.mubr.msk.f32.gmra.mrb[126].mxu0 %vm553_vm2, %v2018_v7  ;;  %v2861_v7 = vld [vmem:[%s9572_s0 + $0x190] sm:$0xff] }
 0x501   :  { %6608 = vmatprep.mubr.msk.f32.mxu0 %vm152_vm1, %v2843_v17  ;;  %v2862_v17 = vld [vmem:[%s9572_s0 + $0x198] sm:$0xff] }
 0x504   :  { %6609 = vmatmul.mubr.msk.f32.vlgmr.msra.gmra.mrb[128].mxu0 %vm152_vm1, %v2844_v60  ;;  %v2863_v60 = vld [vmem:[%s9572_s0 + $0x1a0] sm:$0xff] }
 0x505   :  { %6611 = vmatprep.mubr.msk.f32.mxu0 %vm152_vm1, %v2845_v20  ;;  %7027 = vmatpush3.bf16.msra.mxu0 %v7661_v42  ;;  %v2849_v42 = vld [vmem:[%s9572_s0 + $0x130] sm:$0xff]  ;;  %v2864_v20 = vld [vmem:[%s9572_s0 + $0x1a8] sm:$0xff] }
 0x506   :  { %7029 = vmatprep.subr.bf16.mxu0 %v7666_v44 }
 0x508   :  { %6612 = vmatmul.mubr.msk.f32.gmra.mrb[130].mxu0 %vm152_vm1, %v2846_v39  ;;  %v2865_v39 = vld [vmem:[%s9572_s0 + $0x1b0] sm:$0xff] }
 0x509   :  { %6614 = vmatprep.mubr.msk.f32.mxu0 %vm152_vm1, %v2847_v33  ;;  %7031 = vmatpush3.bf16.msra.mxu0 %v7666_v44  ;;  %v2852_v44 = vld [vmem:[%s9572_s0 + $0x148] sm:$0xff]  ;;  %v2866_v33 = vld [vmem:[%s9572_s0 + $0x1b8] sm:$0xff] }
 0x50a   :  { %7081 = vmatprep.subr.bf16.mxu0 %v8256_v15 }
 0x50c   :  { %6615 = vmatmul.mubr.msk.f32.gmra.mrb[132].mxu0 %vm152_vm1, %v2848_v3  ;;  %v2867_v3 = vld [vmem:[%s9572_s0 + $0x1c0] sm:$0xff] }
 0x50d   :  { %6617 = vmatprep.mubr.msk.f32.mxu0 %vm152_vm1, %v2849_v42  ;;  %v2868_v42 = vld [vmem:[%s9572_s0 + $0x1c8] sm:$0xff] }
 0x510   :  { %6618 = vmatmul.mubr.msk.f32.gmra.mrb[134].mxu0 %vm152_vm1, %v2850_v62  ;;  %v2869_v62 = vld [vmem:[%s9572_s0 + $0x1d0] sm:$0xff] }
 0x511   :  { %6620 = vmatprep.mubr.msk.f32.mxu0 %vm152_vm1, %v2851_v25  ;;  %v2870_v25 = vld [vmem:[%s9572_s0 + $0x1d8] sm:$0xff] }
 0x514   :  { %6621 = vmatmul.mubr.msk.f32.gmra.mrb[136].mxu0 %vm152_vm1, %v2852_v44  ;;  %v2871_v44 = vld [vmem:[%s9572_s0 + $0x1e0] sm:$0xff] }
 0x515   :  { %6623 = vmatprep.mubr.msk.f32.mxu0 %vm152_vm1, %v2853_v36  ;;  %v2872_v36 = vld [vmem:[%s9572_s0 + $0x1e8] sm:$0xff] }
 0x518   :  { %6624 = vmatmul.mubr.msk.f32.gmra.mrb[138].mxu0 %vm152_vm1, %v2854_v21  ;;  %v2873_v21 = vld [vmem:[%s9572_s0 + $0x1f0] sm:$0xff] }
 0x519   :  { %6626 = vmatprep.mubr.msk.f32.mxu0 %vm152_vm1, %v2855_v4  ;;  %v2874_v4 = vld [vmem:[%s9572_s0 + $0x1f8] sm:$0xff] }
 0x51c   :  { %6627 = vmatmul.mubr.msk.f32.gmra.mrb[140].mxu0 %vm152_vm1, %v2856_v34  ;;  %v8604_v34 = vld [vmem:[%s9584_s12] ss:$0 sm:$0xff] }
 0x51d   :  { %6629 = vmatprep.mubr.msk.f32.mxu0 %vm152_vm1, %v2857_v1 }
 0x520   :  { %6630 = vmatmul.mubr.msk.f32.gmra.mrb[142].mxu0 %vm152_vm1, %v2858_v13 }
 0x521   :  { %6632 = vmatprep.mubr.msk.f32.mxu0 %vm152_vm1, %v2859_v26 }
 0x524   :  { %6633 = vmatmul.mubr.msk.f32.gmra.mrb[144].mxu0 %vm152_vm1, %v2860_v19 }
 0x525   :  { %6635 = vmatprep.mubr.msk.f32.mxu0 %vm152_vm1, %v2861_v7 }
 0x528   :  { %6636 = vmatmul.mubr.msk.f32.gmra.mrb[146].mxu0 %vm152_vm1, %v2862_v17 }
 0x529   :  { %6638 = vmatprep.mubr.msk.f32.mxu0 %vm152_vm1, %v2863_v60 }
 0x52c   :  { %6639 = vmatmul.mubr.msk.f32.gmra.mrb[148].mxu0 %vm152_vm1, %v2864_v20 }
 0x52d   :  { %6641 = vmatprep.mubr.msk.f32.mxu0 %vm152_vm1, %v2865_v39 }
 0x530   :  { %6642 = vmatmul.mubr.msk.f32.gmra.mrb[150].mxu0 %vm152_vm1, %v2866_v33 }
 0x531   :  { %6644 = vmatprep.mubr.msk.f32.mxu0 %vm152_vm1, %v2867_v3 }
 0x534   :  { %6645 = vmatmul.mubr.msk.f32.gmra.mrb[152].mxu0 %vm152_vm1, %v2868_v42 }
 0x535   :  { %6647 = vmatprep.mubr.msk.f32.mxu0 %vm152_vm1, %v2869_v62 }
 0x538   :  { %6648 = vmatmul.mubr.msk.f32.gmra.mrb[154].mxu0 %vm152_vm1, %v2870_v25 }
 0x539   :  { %6650 = vmatprep.mubr.msk.f32.mxu0 %vm152_vm1, %v2871_v44 }
 0x53c   :  { %6651 = vmatmul.mubr.msk.f32.gmra.mrb[156].mxu0 %vm152_vm1, %v2872_v36 }
 0x53d   :  { %6653 = vmatprep.mubr.msk.f32.mxu0 %vm152_vm1, %v2873_v21 }
 0x540   :  { %6654 = vmatmul.mubr.msk.f32.gmra.mrb[158].mxu0 %vm152_vm1, %v2874_v4 }
 0x55b   :  { %v6504_v1 = vpop.f32.mrb[96].mxu0 }
 0x55c   :  { %v2198_v13 = vadd.f32 %v6504_v1, %v8604_v34  ;;  %v2192_v26 = vpop.f32.mrb[97].mxu0 }
 0x55d   :  { %v2193_v19 = vadd.f32 %v8604_v34, %v2192_v26 }
 0x55e   :  { %v2352_v7 = vmul.f32 0.05, %v2198_v13 }
 0x55f   :  { %v2351_v17 = vmul.f32 0.05, %v2193_v19 }
 0x560   :  { %v2384_v20 = vmax.f32 %v2198_v13, %v2352_v7 }
 0x561   :  { %v2383_v60 = vmax.f32 %v2193_v19, %v2351_v17 }
 0x563   :  { %v6507_v39 = vpop.f32.mrb[98].mxu0  ;;  %6558 = vmatprep.mubr.msk.f32.mxu1 %vm553_vm2, %v2383_v60 }
 0x564   :  { %v2208_v33 = vadd.f32 %v6507_v39, %v8604_v34  ;;  %v2202_v3 = vpop.f32.mrb[99].mxu0  ;;  %6559 = vmatmul.mubr.msk.f32.vlgmr.msra.gmra.mrb[96].mxu1 %vm553_vm2, %v2384_v20 }
 0x565   :  { %v2203_v42 = vadd.f32 %v8604_v34, %v2202_v3  ;;  %7019 = vmatpush3.bf16.msra.mxu1 %v7638_v35 }
 0x566   :  { %v2354_v62 = vmul.f32 0.05, %v2208_v33  ;;  %7021 = vmatprep.subr.bf16.mxu1 %v7648_v38 }
 0x567   :  { %v2353_v25 = vmul.f32 0.05, %v2203_v42 }
 0x568   :  { %v2386_v36 = vmax.f32 %v2208_v33, %v2354_v62 }
 0x569   :  { %v2385_v44 = vmax.f32 %v2203_v42, %v2353_v25  ;;  %7023 = vmatpush3.bf16.msra.mxu1 %v7648_v38 }
 0x56a   :  { %7032 = vmatprep.subr.bf16.mxu1 %v9650_v59 }
 0x56b   :  { %v6510_v21 = vpop.f32.mrb[100].mxu0  ;;  %6561 = vmatprep.mubr.msk.f32.mxu1 %vm553_vm2, %v2385_v44 }
 0x56c   :  { %v2218_v4 = vadd.f32 %v6510_v21, %v8604_v34  ;;  %v2212_v1 = vpop.f32.mrb[101].mxu0  ;;  %6562 = vmatmul.mubr.msk.f32.gmra.mrb[98].mxu1 %vm553_vm2, %v2386_v36 }
 0x56d   :  { %v2213_v35 = vadd.f32 %v8604_v34, %v2212_v1 }
 0x56e   :  { %v2356_v13 = vmul.f32 0.05, %v2218_v4 }
 0x56f   :  { %v2355_v26 = vmul.f32 0.05, %v2213_v35 }
 0x570   :  { %v2388_v7 = vmax.f32 %v2218_v4, %v2356_v13 }
 0x571   :  { %v2387_v19 = vmax.f32 %v2213_v35, %v2355_v26 }
 0x573   :  { %v6513_v17 = vpop.f32.mrb[102].mxu0  ;;  %6564 = vmatprep.mubr.msk.f32.mxu1 %vm553_vm2, %v2387_v19 }
 0x574   :  { %v2228_v38 = vadd.f32 %v6513_v17, %v8604_v34  ;;  %v2222_v60 = vpop.f32.mrb[103].mxu0  ;;  %6565 = vmatmul.mubr.msk.f32.gmra.mrb[100].mxu1 %vm553_vm2, %v2388_v7 }
 0x575   :  { %v2223_v20 = vadd.f32 %v8604_v34, %v2222_v60 }
 0x576   :  { %v2358_v39 = vmul.f32 0.05, %v2228_v38 }
 0x577   :  { %v2357_v33 = vmul.f32 0.05, %v2223_v20 }
 0x578   :  { %v2390_v42 = vmax.f32 %v2228_v38, %v2358_v39 }
 0x579   :  { %v2389_v3 = vmax.f32 %v2223_v20, %v2357_v33 }
 0x57b   :  { %v6516_v62 = vpop.f32.mrb[104].mxu0  ;;  %6567 = vmatprep.mubr.msk.f32.mxu1 %vm553_vm2, %v2389_v3 }
 0x57c   :  { %v2238_v25 = vadd.f32 %v6516_v62, %v8604_v34  ;;  %v2232_v44 = vpop.f32.mrb[105].mxu0  ;;  %6568 = vmatmul.mubr.msk.f32.gmra.mrb[102].mxu1 %vm553_vm2, %v2390_v42 }
 0x57d   :  { %v2233_v36 = vadd.f32 %v8604_v34, %v2232_v44 }
 0x57e   :  { %v2360_v21 = vmul.f32 0.05, %v2238_v25 }
 0x57f   :  { %v2359_v4 = vmul.f32 0.05, %v2233_v36 }
 0x580   :  { %v2392_v35 = vmax.f32 %v2238_v25, %v2360_v21 }
 0x581   :  { %v2391_v1 = vmax.f32 %v2233_v36, %v2359_v4 }
 0x583   :  { %v6519_v13 = vpop.f32.mrb[106].mxu0  ;;  %6570 = vmatprep.mubr.msk.f32.mxu1 %vm553_vm2, %v2391_v1 }
 0x584   :  { %v2248_v26 = vadd.f32 %v6519_v13, %v8604_v34  ;;  %v2242_v19 = vpop.f32.mrb[107].mxu0  ;;  %6571 = vmatmul.mubr.msk.f32.gmra.mrb[104].mxu1 %vm553_vm2, %v2392_v35 }
 0x585   :  { %v2243_v7 = vadd.f32 %v8604_v34, %v2242_v19 }
 0x586   :  { %v2362_v17 = vmul.f32 0.05, %v2248_v26 }
 0x587   :  { %v2361_v38 = vmul.f32 0.05, %v2243_v7 }
 0x588   :  { %v2394_v20 = vmax.f32 %v2248_v26, %v2362_v17 }
 0x589   :  { %v2393_v60 = vmax.f32 %v2243_v7, %v2361_v38 }
 0x58b   :  { %v6522_v39 = vpop.f32.mrb[108].mxu0  ;;  %6573 = vmatprep.mubr.msk.f32.mxu1 %vm553_vm2, %v2393_v60 }
 0x58c   :  { %v2258_v33 = vadd.f32 %v6522_v39, %v8604_v34  ;;  %v2252_v3 = vpop.f32.mrb[109].mxu0  ;;  %6574 = vmatmul.mubr.msk.f32.gmra.mrb[106].mxu1 %vm553_vm2, %v2394_v20 }
 0x58d   :  { %v2253_v42 = vadd.f32 %v8604_v34, %v2252_v3 }
 0x58e   :  { %v2364_v62 = vmul.f32 0.05, %v2258_v33 }
 0x58f   :  { %v2363_v25 = vmul.f32 0.05, %v2253_v42 }
 0x590   :  { %v2396_v36 = vmax.f32 %v2258_v33, %v2364_v62 }
 0x591   :  { %v2395_v44 = vmax.f32 %v2253_v42, %v2363_v25 }
 0x593   :  { %v6525_v21 = vpop.f32.mrb[110].mxu0  ;;  %6576 = vmatprep.mubr.msk.f32.mxu1 %vm553_vm2, %v2395_v44 }
 0x594   :  { %v2268_v4 = vadd.f32 %v6525_v21, %v8604_v34  ;;  %v2262_v1 = vpop.f32.mrb[111].mxu0  ;;  %6577 = vmatmul.mubr.msk.f32.gmra.mrb[108].mxu1 %vm553_vm2, %v2396_v36 }
 0x595   :  { %v2263_v35 = vadd.f32 %v8604_v34, %v2262_v1 }
 0x596   :  { %v2366_v13 = vmul.f32 0.05, %v2268_v4 }
 0x597   :  { %v2365_v26 = vmul.f32 0.05, %v2263_v35 }
 0x598   :  { %v2398_v7 = vmax.f32 %v2268_v4, %v2366_v13 }
 0x599   :  { %v2397_v19 = vmax.f32 %v2263_v35, %v2365_v26 }
 0x59b   :  { %v6528_v17 = vpop.f32.mrb[112].mxu0  ;;  %6579 = vmatprep.mubr.msk.f32.mxu1 %vm553_vm2, %v2397_v19 }
 0x59c   :  { %v2278_v38 = vadd.f32 %v6528_v17, %v8604_v34  ;;  %v2272_v60 = vpop.f32.mrb[113].mxu0  ;;  %6580 = vmatmul.mubr.msk.f32.gmra.mrb[110].mxu1 %vm553_vm2, %v2398_v7 }
 0x59d   :  { %v2273_v20 = vadd.f32 %v8604_v34, %v2272_v60 }
 0x59e   :  { %v2368_v39 = vmul.f32 0.05, %v2278_v38 }
 0x59f   :  { %v2367_v33 = vmul.f32 0.05, %v2273_v20 }
 0x5a0   :  { %v2400_v42 = vmax.f32 %v2278_v38, %v2368_v39 }
 0x5a1   :  { %v2399_v3 = vmax.f32 %v2273_v20, %v2367_v33 }
 0x5a3   :  { %v6531_v62 = vpop.f32.mrb[114].mxu0  ;;  %6582 = vmatprep.mubr.msk.f32.mxu1 %vm553_vm2, %v2399_v3 }
 0x5a4   :  { %v2288_v25 = vadd.f32 %v6531_v62, %v8604_v34  ;;  %v2282_v44 = vpop.f32.mrb[115].mxu0  ;;  %6583 = vmatmul.mubr.msk.f32.gmra.mrb[112].mxu1 %vm553_vm2, %v2400_v42 }
 0x5a5   :  { %v2283_v36 = vadd.f32 %v8604_v34, %v2282_v44 }
 0x5a6   :  { %v2370_v21 = vmul.f32 0.05, %v2288_v25 }
 0x5a7   :  { %v2369_v4 = vmul.f32 0.05, %v2283_v36 }
 0x5a8   :  { %v2402_v35 = vmax.f32 %v2288_v25, %v2370_v21 }
 0x5a9   :  { %v2401_v1 = vmax.f32 %v2283_v36, %v2369_v4 }
 0x5ab   :  { %v6534_v13 = vpop.f32.mrb[116].mxu0  ;;  %6585 = vmatprep.mubr.msk.f32.mxu1 %vm553_vm2, %v2401_v1 }
 0x5ac   :  { %v2298_v26 = vadd.f32 %v6534_v13, %v8604_v34  ;;  %v2292_v19 = vpop.f32.mrb[117].mxu0  ;;  %6586 = vmatmul.mubr.msk.f32.gmra.mrb[114].mxu1 %vm553_vm2, %v2402_v35 }
 0x5ad   :  { %v2293_v7 = vadd.f32 %v8604_v34, %v2292_v19 }
 0x5ae   :  { %v2372_v17 = vmul.f32 0.05, %v2298_v26 }
 0x5af   :  { %v2371_v38 = vmul.f32 0.05, %v2293_v7 }
 0x5b0   :  { %v2404_v20 = vmax.f32 %v2298_v26, %v2372_v17 }
 0x5b1   :  { %v2403_v60 = vmax.f32 %v2293_v7, %v2371_v38 }
 0x5b3   :  { %v6537_v39 = vpop.f32.mrb[118].mxu0  ;;  %6588 = vmatprep.mubr.msk.f32.mxu1 %vm553_vm2, %v2403_v60 }
 0x5b4   :  { %v2308_v33 = vadd.f32 %v6537_v39, %v8604_v34  ;;  %v2302_v3 = vpop.f32.mrb[119].mxu0  ;;  %6589 = vmatmul.mubr.msk.f32.gmra.mrb[116].mxu1 %vm553_vm2, %v2404_v20 }
 0x5b5   :  { %v2303_v42 = vadd.f32 %v8604_v34, %v2302_v3 }
 0x5b6   :  { %v2374_v62 = vmul.f32 0.05, %v2308_v33 }
 0x5b7   :  { %v2373_v25 = vmul.f32 0.05, %v2303_v42 }
 0x5b8   :  { %v2406_v36 = vmax.f32 %v2308_v33, %v2374_v62 }
 0x5b9   :  { %v2405_v44 = vmax.f32 %v2303_v42, %v2373_v25 }
 0x5bb   :  { %v6540_v21 = vpop.f32.mrb[120].mxu0  ;;  %6591 = vmatprep.mubr.msk.f32.mxu1 %vm553_vm2, %v2405_v44 }
 0x5bc   :  { %v2318_v4 = vadd.f32 %v6540_v21, %v8604_v34  ;;  %v2312_v1 = vpop.f32.mrb[121].mxu0  ;;  %6592 = vmatmul.mubr.msk.f32.gmra.mrb[118].mxu1 %vm553_vm2, %v2406_v36 }
 0x5bd   :  { %v2313_v35 = vadd.f32 %v8604_v34, %v2312_v1 }
 0x5be   :  { %v2376_v13 = vmul.f32 0.05, %v2318_v4 }
 0x5bf   :  { %v2375_v26 = vmul.f32 0.05, %v2313_v35 }
 0x5c0   :  { %v2408_v7 = vmax.f32 %v2318_v4, %v2376_v13 }
 0x5c1   :  { %v2407_v19 = vmax.f32 %v2313_v35, %v2375_v26 }
 0x5c3   :  { %v6543_v17 = vpop.f32.mrb[122].mxu0  ;;  %6594 = vmatprep.mubr.msk.f32.mxu1 %vm553_vm2, %v2407_v19 }
 0x5c4   :  { %v2328_v38 = vadd.f32 %v6543_v17, %v8604_v34  ;;  %v2322_v60 = vpop.f32.mrb[123].mxu0  ;;  %6595 = vmatmul.mubr.msk.f32.gmra.mrb[120].mxu1 %vm553_vm2, %v2408_v7 }
 0x5c5   :  { %v2323_v20 = vadd.f32 %v8604_v34, %v2322_v60 }
 0x5c6   :  { %v2378_v39 = vmul.f32 0.05, %v2328_v38 }
 0x5c7   :  { %v2377_v33 = vmul.f32 0.05, %v2323_v20 }
 0x5c8   :  { %v2410_v42 = vmax.f32 %v2328_v38, %v2378_v39 }
 0x5c9   :  { %v2409_v3 = vmax.f32 %v2323_v20, %v2377_v33  ;;  %v8675_v20 = vld [vmem:[%s9577_s5] ss:$0 sm:$0xff] }
 0x5cb   :  { %v6546_v62 = vpop.f32.mrb[124].mxu0  ;;  %6597 = vmatprep.mubr.msk.f32.mxu1 %vm553_vm2, %v2409_v3 }
 0x5cc   :  { %v2338_v25 = vadd.f32 %v6546_v62, %v8604_v34  ;;  %v2332_v44 = vpop.f32.mrb[125].mxu0  ;;  %6598 = vmatmul.mubr.msk.f32.gmra.mrb[122].mxu1 %vm553_vm2, %v2410_v42 }
 0x5cd   :  { %v2333_v36 = vadd.f32 %v8604_v34, %v2332_v44 }
 0x5ce   :  { %v2380_v21 = vmul.f32 0.05, %v2338_v25 }
 0x5cf   :  { %v2379_v4 = vmul.f32 0.05, %v2333_v36 }
 0x5d0   :  { %v2412_v35 = vmax.f32 %v2338_v25, %v2380_v21 }
 0x5d1   :  { %v2411_v1 = vmax.f32 %v2333_v36, %v2379_v4 }
 0x5d3   :  { %v6549_v13 = vpop.f32.mrb[126].mxu0  ;;  %6600 = vmatprep.mubr.msk.f32.mxu1 %vm553_vm2, %v2411_v1 }
 0x5d4   :  { %v2348_v26 = vadd.f32 %v6549_v13, %v8604_v34  ;;  %v2342_v19 = vpop.f32.mrb[127].mxu0  ;;  %6601 = vmatmul.mubr.msk.f32.gmra.mrb[124].mxu1 %vm553_vm2, %v2412_v35 }
 0x5d5   :  { %v2343_v7 = vadd.f32 %v8604_v34, %v2342_v19 }
 0x5d6   :  { %v2382_v17 = vmul.f32 0.05, %v2348_v26 }
 0x5d7   :  { %v2381_v38 = vmul.f32 0.05, %v2343_v7  ;;  %v6610_v60 = vpop.f32.mrb[128].mxu0 }
 0x5d8   :  { %v3043_v39 = vadd.f32 %v8675_v20, %v6610_v60  ;;  %v3037_v33 = vpop.f32.mrb[129].mxu0  ;;  %v2414_v62 = vmax.f32 %v2348_v26, %v2382_v17 }
 0x5d9   :  { %v2413_v3 = vmax.f32 %v2343_v7, %v2381_v38  ;;  %v3038_v42 = vadd.f32 %v8675_v20, %v3037_v33 }
 0x5da   :  { %v3197_v25 = vmul.f32 0.05, %v3043_v39 }
 0x5db   :  { %v3196_v44 = vmul.f32 0.05, %v3038_v42  ;;  %6603 = vmatprep.mubr.msk.f32.mxu1 %vm553_vm2, %v2413_v3  ;;  %v6613_v34 = vpop.f32.mrb[130].mxu0 }
 0x5dc   :  { %v3053_v36 = vadd.f32 %v8675_v20, %v6613_v34  ;;  %6604 = vmatmul.mubr.msk.f32.gmra.mrb[126].mxu1 %vm553_vm2, %v2414_v62  ;;  %v3047_v21 = vpop.f32.mrb[131].mxu0  ;;  %v3229_v35 = vmax.f32 %v3043_v39, %v3197_v25 }
 0x5dd   :  { %v3228_v4 = vmax.f32 %v3038_v42, %v3196_v44  ;;  %v3048_v1 = vadd.f32 %v8675_v20, %v3047_v21 }
 0x5de   :  { %v3199_v13 = vmul.f32 0.05, %v3053_v36 }
 0x5df   :  { %v3198_v19 = vmul.f32 0.05, %v3048_v1  ;;  %v6616_v7 = vpop.f32.mrb[132].mxu0  ;;  %6664 = vmatprep.mubr.msk.f32.mxu1 %vm553_vm2, %v3228_v4 }
 0x5e0   :  { %v3063_v26 = vadd.f32 %v8675_v20, %v6616_v7  ;;  %v3057_v17 = vpop.f32.mrb[133].mxu0  ;;  %6665 = vmatmul.mubr.msk.f32.vlgmr.msra.gmra.mrb[128].mxu1 %vm553_vm2, %v3229_v35  ;;  %v3231_v33 = vmax.f32 %v3053_v36, %v3199_v13 }
 0x5e1   :  { %v3230_v38 = vmax.f32 %v3048_v1, %v3198_v19  ;;  %v3058_v60 = vadd.f32 %v8675_v20, %v3057_v17 }
 0x5e2   :  { %v3201_v3 = vmul.f32 0.05, %v3063_v26 }
 0x5e3   :  { %v3200_v62 = vmul.f32 0.05, %v3058_v60  ;;  %v6619_v42 = vpop.f32.mrb[134].mxu0  ;;  %6667 = vmatprep.mubr.msk.f32.mxu1 %vm553_vm2, %v3230_v38 }
 0x5e4   :  { %v3073_v39 = vadd.f32 %v8675_v20, %v6619_v42  ;;  %v3067_v25 = vpop.f32.mrb[135].mxu0  ;;  %6668 = vmatmul.mubr.msk.f32.gmra.mrb[130].mxu1 %vm553_vm2, %v3231_v33  ;;  %v3233_v21 = vmax.f32 %v3063_v26, %v3201_v3 }
 0x5e5   :  { %v3232_v44 = vmax.f32 %v3058_v60, %v3200_v62  ;;  %v3068_v34 = vadd.f32 %v8675_v20, %v3067_v25 }
 0x5e6   :  { %v3203_v4 = vmul.f32 0.05, %v3073_v39 }
 0x5e7   :  { %v3202_v35 = vmul.f32 0.05, %v3068_v34  ;;  %v6622_v1 = vpop.f32.mrb[136].mxu0  ;;  %6670 = vmatprep.mubr.msk.f32.mxu1 %vm553_vm2, %v3232_v44 }
 0x5e8   :  { %v3083_v36 = vadd.f32 %v8675_v20, %v6622_v1  ;;  %v3077_v13 = vpop.f32.mrb[137].mxu0  ;;  %6671 = vmatmul.mubr.msk.f32.gmra.mrb[132].mxu1 %vm553_vm2, %v3233_v21  ;;  %v3235_v17 = vmax.f32 %v3073_v39, %v3203_v4 }
 0x5e9   :  { %v3234_v19 = vmax.f32 %v3068_v34, %v3202_v35  ;;  %v3078_v7 = vadd.f32 %v8675_v20, %v3077_v13 }
 0x5ea   :  { %v3205_v38 = vmul.f32 0.05, %v3083_v36 }
 0x5eb   :  { %v3204_v33 = vmul.f32 0.05, %v3078_v7  ;;  %v6625_v60 = vpop.f32.mrb[138].mxu0  ;;  %6673 = vmatprep.mubr.msk.f32.mxu1 %vm553_vm2, %v3234_v19 }
 0x5ec   :  { %v3093_v26 = vadd.f32 %v8675_v20, %v6625_v60  ;;  %v3087_v3 = vpop.f32.mrb[139].mxu0  ;;  %6674 = vmatmul.mubr.msk.f32.gmra.mrb[134].mxu1 %vm553_vm2, %v3235_v17  ;;  %v3237_v25 = vmax.f32 %v3083_v36, %v3205_v38 }
 0x5ed   :  { %v3236_v62 = vmax.f32 %v3078_v7, %v3204_v33  ;;  %v3088_v42 = vadd.f32 %v8675_v20, %v3087_v3 }
 0x5ee   :  { %v3207_v44 = vmul.f32 0.05, %v3093_v26 }
 0x5ef   :  { %v3206_v21 = vmul.f32 0.05, %v3088_v42  ;;  %v6628_v34 = vpop.f32.mrb[140].mxu0  ;;  %6676 = vmatprep.mubr.msk.f32.mxu1 %vm553_vm2, %v3236_v62 }
 0x5f0   :  { %v3103_v39 = vadd.f32 %v8675_v20, %v6628_v34  ;;  %v3097_v4 = vpop.f32.mrb[141].mxu0  ;;  %6677 = vmatmul.mubr.msk.f32.gmra.mrb[136].mxu1 %vm553_vm2, %v3237_v25  ;;  %v3239_v13 = vmax.f32 %v3093_v26, %v3207_v44 }
 0x5f1   :  { %v3238_v35 = vmax.f32 %v3088_v42, %v3206_v21  ;;  %v3098_v1 = vadd.f32 %v8675_v20, %v3097_v4 }
 0x5f2   :  { %v3209_v19 = vmul.f32 0.05, %v3103_v39 }
 0x5f3   :  { %v3208_v17 = vmul.f32 0.05, %v3098_v1  ;;  %v6631_v7 = vpop.f32.mrb[142].mxu0  ;;  %6679 = vmatprep.mubr.msk.f32.mxu1 %vm553_vm2, %v3238_v35 }
 0x5f4   :  { %v3113_v36 = vadd.f32 %v8675_v20, %v6631_v7  ;;  %v3107_v38 = vpop.f32.mrb[143].mxu0  ;;  %6680 = vmatmul.mubr.msk.f32.gmra.mrb[138].mxu1 %vm553_vm2, %v3239_v13  ;;  %v3241_v3 = vmax.f32 %v3103_v39, %v3209_v19 }
 0x5f5   :  { %v3240_v33 = vmax.f32 %v3098_v1, %v3208_v17  ;;  %v3108_v60 = vadd.f32 %v8675_v20, %v3107_v38 }
 0x5f6   :  { %v3211_v62 = vmul.f32 0.05, %v3113_v36 }
 0x5f7   :  { %v3210_v25 = vmul.f32 0.05, %v3108_v60  ;;  %v6634_v42 = vpop.f32.mrb[144].mxu0  ;;  %6682 = vmatprep.mubr.msk.f32.mxu1 %vm553_vm2, %v3240_v33 }
 0x5f8   :  { %v3123_v26 = vadd.f32 %v8675_v20, %v6634_v42  ;;  %v3117_v44 = vpop.f32.mrb[145].mxu0  ;;  %6683 = vmatmul.mubr.msk.f32.gmra.mrb[140].mxu1 %vm553_vm2, %v3241_v3  ;;  %v3243_v4 = vmax.f32 %v3113_v36, %v3211_v62 }
 0x5f9   :  { %v3242_v21 = vmax.f32 %v3108_v60, %v3210_v25  ;;  %v3118_v34 = vadd.f32 %v8675_v20, %v3117_v44 }
 0x5fa   :  { %v3213_v35 = vmul.f32 0.05, %v3123_v26 }
 0x5fb   :  { %v3212_v13 = vmul.f32 0.05, %v3118_v34  ;;  %v6637_v1 = vpop.f32.mrb[146].mxu0  ;;  %6685 = vmatprep.mubr.msk.f32.mxu1 %vm553_vm2, %v3242_v21 }
 0x5fc   :  { %v3133_v39 = vadd.f32 %v8675_v20, %v6637_v1  ;;  %v3127_v19 = vpop.f32.mrb[147].mxu0  ;;  %6686 = vmatmul.mubr.msk.f32.gmra.mrb[142].mxu1 %vm553_vm2, %v3243_v4  ;;  %v3245_v38 = vmax.f32 %v3123_v26, %v3213_v35 }
 0x5fd   :  { %v3244_v17 = vmax.f32 %v3118_v34, %v3212_v13  ;;  %v3128_v7 = vadd.f32 %v8675_v20, %v3127_v19 }
 0x5fe   :  { %v3215_v33 = vmul.f32 0.05, %v3133_v39 }
 0x5ff   :  { %v3214_v3 = vmul.f32 0.05, %v3128_v7  ;;  %v6640_v60 = vpop.f32.mrb[148].mxu0  ;;  %6688 = vmatprep.mubr.msk.f32.mxu1 %vm553_vm2, %v3244_v17 }
 0x600   :  { %v3143_v36 = vadd.f32 %v8675_v20, %v6640_v60  ;;  %v3137_v62 = vpop.f32.mrb[149].mxu0  ;;  %6689 = vmatmul.mubr.msk.f32.gmra.mrb[144].mxu1 %vm553_vm2, %v3245_v38  ;;  %v3247_v44 = vmax.f32 %v3133_v39, %v3215_v33 }
 0x601   :  { %v3246_v25 = vmax.f32 %v3128_v7, %v3214_v3  ;;  %v3138_v42 = vadd.f32 %v8675_v20, %v3137_v62 }
 0x602   :  { %v3217_v21 = vmul.f32 0.05, %v3143_v36 }
 0x603   :  { %v3216_v4 = vmul.f32 0.05, %v3138_v42  ;;  %v6643_v34 = vpop.f32.mrb[150].mxu0  ;;  %6691 = vmatprep.mubr.msk.f32.mxu1 %vm553_vm2, %v3246_v25 }
 0x604   :  { %v3153_v26 = vadd.f32 %v8675_v20, %v6643_v34  ;;  %v3147_v35 = vpop.f32.mrb[151].mxu0  ;;  %6692 = vmatmul.mubr.msk.f32.gmra.mrb[146].mxu1 %vm553_vm2, %v3247_v44  ;;  %v3249_v19 = vmax.f32 %v3143_v36, %v3217_v21 }
 0x605   :  { %v3248_v13 = vmax.f32 %v3138_v42, %v3216_v4  ;;  %v3148_v1 = vadd.f32 %v8675_v20, %v3147_v35 }
 0x606   :  { %v3219_v17 = vmul.f32 0.05, %v3153_v26 }
 0x607   :  { %v3218_v38 = vmul.f32 0.05, %v3148_v1  ;;  %v6646_v7 = vpop.f32.mrb[152].mxu0  ;;  %6694 = vmatprep.mubr.msk.f32.mxu1 %vm553_vm2, %v3248_v13 }
 0x608   :  { %v3163_v39 = vadd.f32 %v8675_v20, %v6646_v7  ;;  %v3157_v33 = vpop.f32.mrb[153].mxu0  ;;  %6695 = vmatmul.mubr.msk.f32.gmra.mrb[148].mxu1 %vm553_vm2, %v3249_v19  ;;  %v3251_v62 = vmax.f32 %v3153_v26, %v3219_v17 }
 0x609   :  { %v3250_v3 = vmax.f32 %v3148_v1, %v3218_v38  ;;  %v3158_v60 = vadd.f32 %v8675_v20, %v3157_v33 }
 0x60a   :  { %v3221_v25 = vmul.f32 0.05, %v3163_v39 }
 0x60b   :  { %v3220_v44 = vmul.f32 0.05, %v3158_v60  ;;  %v6649_v42 = vpop.f32.mrb[154].mxu0  ;;  %6697 = vmatprep.mubr.msk.f32.mxu1 %vm553_vm2, %v3250_v3 }
 0x60c   :  { %v3173_v36 = vadd.f32 %v8675_v20, %v6649_v42  ;;  %v3167_v21 = vpop.f32.mrb[155].mxu0  ;;  %6698 = vmatmul.mubr.msk.f32.gmra.mrb[150].mxu1 %vm553_vm2, %v3251_v62  ;;  %v3253_v35 = vmax.f32 %v3163_v39, %v3221_v25 }
 0x60d   :  { %v3252_v4 = vmax.f32 %v3158_v60, %v3220_v44  ;;  %v3168_v34 = vadd.f32 %v8675_v20, %v3167_v21 }
 0x60e   :  { %v3223_v13 = vmul.f32 0.05, %v3173_v36 }
 0x60f   :  { %v3222_v19 = vmul.f32 0.05, %v3168_v34  ;;  %v6652_v1 = vpop.f32.mrb[156].mxu0  ;;  %6700 = vmatprep.mubr.msk.f32.mxu1 %vm553_vm2, %v3252_v4 }
 0x610   :  { %v3183_v26 = vadd.f32 %v8675_v20, %v6652_v1  ;;  %v3177_v17 = vpop.f32.mrb[157].mxu0  ;;  %6701 = vmatmul.mubr.msk.f32.gmra.mrb[152].mxu1 %vm553_vm2, %v3253_v35  ;;  %v3255_v33 = vmax.f32 %v3173_v36, %v3223_v13 }
 0x611   :  { %v3254_v38 = vmax.f32 %v3168_v34, %v3222_v19  ;;  %v3178_v7 = vadd.f32 %v8675_v20, %v3177_v17 }
 0x612   :  { %v3225_v3 = vmul.f32 0.05, %v3183_v26 }
 0x613   :  { %v3224_v62 = vmul.f32 0.05, %v3178_v7  ;;  %v6655_v60 = vpop.f32.mrb[158].mxu0  ;;  %6703 = vmatprep.mubr.msk.f32.mxu1 %vm553_vm2, %v3254_v38 }
 0x614   :  { %v3193_v39 = vadd.f32 %v8675_v20, %v6655_v60  ;;  %v3187_v25 = vpop.f32.mrb[159].mxu0  ;;  %6704 = vmatmul.mubr.msk.f32.gmra.mrb[154].mxu1 %vm553_vm2, %v3255_v33  ;;  %v3257_v21 = vmax.f32 %v3183_v26, %v3225_v3 }
 0x615   :  { %v3256_v44 = vmax.f32 %v3178_v7, %v3224_v62  ;;  %v3188_v42 = vadd.f32 %v8675_v20, %v3187_v25 }
 0x616   :  { %v3227_v4 = vmul.f32 0.05, %v3193_v39 }
 0x617   :  { %v3226_v35 = vmul.f32 0.05, %v3188_v42  ;;  %6706 = vmatprep.mubr.msk.f32.mxu1 %vm553_vm2, %v3256_v44 }
 0x618   :  { %6707 = vmatmul.mubr.msk.f32.gmra.mrb[156].mxu1 %vm553_vm2, %v3257_v21  ;;  %v3259_v34 = vmax.f32 %v3193_v39, %v3227_v4 }
 0x619   :  { %v3258_v36 = vmax.f32 %v3188_v42, %v3226_v35 }
 0x61b   :  { %6709 = vmatprep.mubr.msk.f32.mxu1 %vm553_vm2, %v3258_v36 }
 0x61c   :  { %6710 = vmatmul.mubr.msk.f32.gmra.mrb[158].mxu1 %vm553_vm2, %v3259_v34 }
 0x61d   :  { %4030 = vmatprep.mubr.f32.mxu1 %v7137_v43 }
 0x637   :  { %v8745_v13 = vpop.f32.mrb[96].mxu1 }
 0x638   :  { %v8747_v19 = vpop.f32.mrb[97].mxu1 }
 0x63f   :  { %v8749_v20 = vpop.f32.mrb[98].mxu1 }
 0x640   :  { %v8751_v1 = vpop.f32.mrb[99].mxu1 }
 0x647   :  { %v8753_v26 = vpop.f32.mrb[100].mxu1 }
 0x648   :  { %v8755_v17 = vpop.f32.mrb[101].mxu1 }
 0x64f   :  { %v8757_v38 = vpop.f32.mrb[102].mxu1 }
 0x650   :  { %v8759_v7 = vpop.f32.mrb[103].mxu1 }
 0x657   :  { %v8761_v33 = vpop.f32.mrb[104].mxu1 }
 0x658   :  { %9652 = vst [vmem:[#allocation5_spill] sm:$0xff] %v8761_v33  ;;  %v8763_v3 = vpop.f32.mrb[105].mxu1 }
 0x659   :  { %9653 = vst [vmem:[#allocation6_spill] sm:$0xff] %v8763_v3 }
 0x65f   :  { %v8765_v43 = vpop.f32.mrb[106].mxu1 }
 0x660   :  { %9654 = vst [vmem:[#allocation7_spill] sm:$0xff] %v8765_v43  ;;  %v8767_v62 = vpop.f32.mrb[107].mxu1 }
 0x661   :  { %9655 = vst [vmem:[#allocation8_spill] sm:$0xff] %v8767_v62 }
 0x667   :  { %v8769_v60 = vpop.f32.mrb[108].mxu1 }
 0x668   :  { %9656 = vst [vmem:[#allocation9_spill] sm:$0xff] %v8769_v60  ;;  %v8771_v39 = vpop.f32.mrb[109].mxu1 }
 0x669   :  { %9657 = vst [vmem:[#allocation10_spill] sm:$0xff] %v8771_v39 }
 0x66f   :  { %v8773_v25 = vpop.f32.mrb[110].mxu1 }
 0x670   :  { %9658 = vst [vmem:[#allocation11_spill] sm:$0xff] %v8773_v25  ;;  %v8775_v44 = vpop.f32.mrb[111].mxu1 }
 0x671   :  { %9659 = vst [vmem:[#allocation12_spill] sm:$0xff] %v8775_v44 }
 0x677   :  { %v8777_v42 = vpop.f32.mrb[112].mxu1 }
 0x678   :  { %9660 = vst [vmem:[#allocation13_spill] sm:$0xff] %v8777_v42  ;;  %v8779_v21 = vpop.f32.mrb[113].mxu1 }
 0x679   :  { %9661 = vst [vmem:[#allocation14_spill] sm:$0xff] %v8779_v21 }
 0x67f   :  { %v8781_v4 = vpop.f32.mrb[114].mxu1 }
 0x680   :  { %9662 = vst [vmem:[#allocation15_spill] sm:$0xff] %v8781_v4  ;;  %v8783_v35 = vpop.f32.mrb[115].mxu1 }
 0x681   :  { %9663 = vst [vmem:[#allocation16_spill] sm:$0xff] %v8783_v35 }
 0x687   :  { %v8785_v36 = vpop.f32.mrb[116].mxu1 }
 0x688   :  { %9664 = vst [vmem:[#allocation17_spill] sm:$0xff] %v8785_v36  ;;  %v8787_v34 = vpop.f32.mrb[117].mxu1 }
 0x689   :  { %9665 = vst [vmem:[#allocation18_spill] sm:$0xff] %v8787_v34 }
 0x68f   :  { %v8789_v32 = vpop.f32.mrb[118].mxu1 }
 0x690   :  { %9666 = vst [vmem:[#allocation19_spill] sm:$0xff] %v8789_v32  ;;  %v8791_v29 = vpop.f32.mrb[119].mxu1 }
 0x691   :  { %9667 = vst [vmem:[#allocation20_spill] sm:$0xff] %v8791_v29  ;;  %v8812_v29 = vld [vmem:[%s9578_s6] ss:$0 sm:$0xff] }
 0x697   :  { %v8793_v28 = vpop.f32.mrb[120].mxu1 }
 0x698   :  { %9668 = vst [vmem:[#allocation21_spill] sm:$0xff] %v8793_v28  ;;  %v8795_v27 = vpop.f32.mrb[121].mxu1 }
 0x699   :  { %9669 = vst [vmem:[#allocation22_spill] sm:$0xff] %v8795_v27 }
 0x69f   :  { %v8797_v59 = vpop.f32.mrb[122].mxu1 }
 0x6a0   :  { %9670 = vst [vmem:[#allocation23_spill] sm:$0xff] %v8797_v59  ;;  %v8799_v42 = vpop.f32.mrb[123].mxu1 }
 0x6a1   :  { %9671 = vst [vmem:[#allocation24_spill] sm:$0xff] %v8799_v42 }
 0x6a7   :  { %v8801_v21 = vpop.f32.mrb[124].mxu1 }
 0x6a8   :  { %9672 = vst [vmem:[#allocation25_spill] sm:$0xff] %v8801_v21  ;;  %v8803_v4 = vpop.f32.mrb[125].mxu1 }
 0x6a9   :  { %9673 = vst [vmem:[#allocation26_spill] sm:$0xff] %v8803_v4 }
 0x6af   :  { %v8805_v35 = vpop.f32.mrb[126].mxu1 }
 0x6b0   :  { %9674 = vst [vmem:[#allocation27_spill] sm:$0xff] %v8805_v35  ;;  %v8807_v36 = vpop.f32.mrb[127].mxu1 }
 0x6b1   :  { %9675 = vst [vmem:[#allocation28_spill] sm:$0xff] %v8807_v36 }
 0x6b3   :  { %v6666_v34 = vpop.f32.mrb[128].mxu1 }
 0x6b4   :  { %v3428_v27 = vadd.f32 %v8812_v29, %v6666_v34  ;;  %v3422_v28 = vpop.f32.mrb[129].mxu1 }
 0x6b5   :  { %v3423_v59 = vadd.f32 %v8812_v29, %v3422_v28 }
 0x6b6   :  { %v3582_v42 = vmul.f32 0.05, %v3428_v27 }
 0x6b7   :  { %v3581_v32 = vmul.f32 0.05, %v3423_v59  ;;  %v6669_v21 = vpop.f32.mrb[130].mxu1 }
 0x6b8   :  { %v3438_v4 = vadd.f32 %v8812_v29, %v6669_v21  ;;  %v3432_v44 = vpop.f32.mrb[131].mxu1  ;;  %v3614_v25 = vmax.f32 %v3428_v27, %v3582_v42 }
 0x6b9   :  { %v3613_v35 = vmax.f32 %v3423_v59, %v3581_v32  ;;  %v3433_v36 = vadd.f32 %v8812_v29, %v3432_v44 }
 0x6ba   :  { %v3584_v39 = vmul.f32 0.05, %v3438_v4 }
 0x6bb   :  { %v3583_v60 = vmul.f32 0.05, %v3433_v36  ;;  %v6672_v62 = vpop.f32.mrb[132].mxu1  ;;  %6720 = vmatprep.mubr.msk.f32.mxu0 %vm553_vm2, %v3613_v35 }
 0x6bc   :  { %v3448_v34 = vadd.f32 %v8812_v29, %v6672_v62  ;;  %v3442_v43 = vpop.f32.mrb[133].mxu1  ;;  %6721 = vmatmul.mubr.msk.f32.vlgmr.msra.gmra.mrb[160].mxu0 %vm553_vm2, %v3614_v25  ;;  %v3616_v21 = vmax.f32 %v3438_v4, %v3584_v39 }
 0x6bd   :  { %v3615_v28 = vmax.f32 %v3433_v36, %v3583_v60  ;;  %v3443_v3 = vadd.f32 %v8812_v29, %v3442_v43  ;;  %7083 = vmatpush3.bf16.msra.mxu0 %v8256_v15 }
 0x6be   :  { %v3586_v59 = vmul.f32 0.05, %v3448_v34  ;;  %7085 = vmatprep.subr.bf16.mxu0 %v8349_v10 }
 0x6bf   :  { %v3585_v27 = vmul.f32 0.05, %v3443_v3  ;;  %v6675_v32 = vpop.f32.mrb[134].mxu1  ;;  %6723 = vmatprep.mubr.msk.f32.mxu0 %vm553_vm2, %v3615_v28 }
 0x6c0   :  { %v3458_v44 = vadd.f32 %v8812_v29, %v6675_v32  ;;  %v3452_v42 = vpop.f32.mrb[135].mxu1  ;;  %6724 = vmatmul.mubr.msk.f32.gmra.mrb[162].mxu0 %vm553_vm2, %v3616_v21  ;;  %v3618_v25 = vmax.f32 %v3448_v34, %v3586_v59 }
 0x6c1   :  { %v3617_v62 = vmax.f32 %v3443_v3, %v3585_v27  ;;  %v3453_v60 = vadd.f32 %v8812_v29, %v3452_v42 }
 0x6c2   :  { %v3588_v43 = vmul.f32 0.05, %v3458_v44 }
 0x6c3   :  { %v3587_v35 = vmul.f32 0.05, %v3453_v60  ;;  %v6678_v15 = vpop.f32.mrb[136].mxu1  ;;  %6726 = vmatprep.mubr.msk.f32.mxu0 %vm553_vm2, %v3617_v62 }
 0x6c4   :  { %v3468_v39 = vadd.f32 %v8812_v29, %v6678_v15  ;;  %v3462_v4 = vpop.f32.mrb[137].mxu1  ;;  %6727 = vmatmul.mubr.msk.f32.gmra.mrb[164].mxu0 %vm553_vm2, %v3618_v25  ;;  %v3620_v32 = vmax.f32 %v3458_v44, %v3588_v43 }
 0x6c5   :  { %v3619_v36 = vmax.f32 %v3453_v60, %v3587_v35  ;;  %v3463_v28 = vadd.f32 %v8812_v29, %v3462_v4 }
 0x6c6   :  { %v3590_v33 = vmul.f32 0.05, %v3468_v39 }
 0x6c7   :  { %v3589_v21 = vmul.f32 0.05, %v3463_v28  ;;  %v6681_v3 = vpop.f32.mrb[138].mxu1  ;;  %6729 = vmatprep.mubr.msk.f32.mxu0 %vm553_vm2, %v3619_v36 }
 0x6c8   :  { %v3478_v34 = vadd.f32 %v8812_v29, %v6681_v3  ;;  %v3472_v59 = vpop.f32.mrb[139].mxu1  ;;  %6730 = vmatmul.mubr.msk.f32.gmra.mrb[166].mxu0 %vm553_vm2, %v3620_v32  ;;  %v3622_v62 = vmax.f32 %v3468_v39, %v3590_v33 }
 0x6c9   :  { %v3621_v27 = vmax.f32 %v3463_v28, %v3589_v21  ;;  %v3473_v42 = vadd.f32 %v8812_v29, %v3472_v59 }
 0x6ca   :  { %v3592_v15 = vmul.f32 0.05, %v3478_v34 }
 0x6cb   :  { %v3591_v25 = vmul.f32 0.05, %v3473_v42  ;;  %v6684_v60 = vpop.f32.mrb[140].mxu1  ;;  %6732 = vmatprep.mubr.msk.f32.mxu0 %vm553_vm2, %v3621_v27 }
 0x6cc   :  { %v3488_v44 = vadd.f32 %v8812_v29, %v6684_v60  ;;  %v3482_v43 = vpop.f32.mrb[141].mxu1  ;;  %6733 = vmatmul.mubr.msk.f32.gmra.mrb[168].mxu0 %vm553_vm2, %v3622_v62  ;;  %v3624_v36 = vmax.f32 %v3478_v34, %v3592_v15 }
 0x6cd   :  { %v3623_v35 = vmax.f32 %v3473_v42, %v3591_v25  ;;  %v3483_v4 = vadd.f32 %v8812_v29, %v3482_v43 }
 0x6ce   :  { %v3594_v3 = vmul.f32 0.05, %v3488_v44 }
 0x6cf   :  { %v3593_v32 = vmul.f32 0.05, %v3483_v4  ;;  %v6687_v28 = vpop.f32.mrb[142].mxu1  ;;  %6735 = vmatprep.mubr.msk.f32.mxu0 %vm553_vm2, %v3623_v35 }
 0x6d0   :  { %v3498_v33 = vadd.f32 %v8812_v29, %v6687_v28  ;;  %v3492_v39 = vpop.f32.mrb[143].mxu1  ;;  %6736 = vmatmul.mubr.msk.f32.gmra.mrb[170].mxu0 %vm553_vm2, %v3624_v36  ;;  %v3626_v27 = vmax.f32 %v3488_v44, %v3594_v3 }
 0x6d1   :  { %v3625_v21 = vmax.f32 %v3483_v4, %v3593_v32  ;;  %v3493_v59 = vadd.f32 %v8812_v29, %v3492_v39 }
 0x6d2   :  { %v3596_v60 = vmul.f32 0.05, %v3498_v33 }
 0x6d3   :  { %v3595_v62 = vmul.f32 0.05, %v3493_v59  ;;  %v6690_v42 = vpop.f32.mrb[144].mxu1  ;;  %6738 = vmatprep.mubr.msk.f32.mxu0 %vm553_vm2, %v3625_v21 }
 0x6d4   :  { %v3508_v34 = vadd.f32 %v8812_v29, %v6690_v42  ;;  %v3502_v15 = vpop.f32.mrb[145].mxu1  ;;  %6739 = vmatmul.mubr.msk.f32.gmra.mrb[172].mxu0 %vm553_vm2, %v3626_v27  ;;  %v3628_v35 = vmax.f32 %v3498_v33, %v3596_v60 }
 0x6d5   :  { %v3627_v25 = vmax.f32 %v3493_v59, %v3595_v62  ;;  %v3503_v43 = vadd.f32 %v8812_v29, %v3502_v15 }
 0x6d6   :  { %v3598_v28 = vmul.f32 0.05, %v3508_v34 }
 0x6d7   :  { %v3597_v36 = vmul.f32 0.05, %v3503_v43  ;;  %v6693_v4 = vpop.f32.mrb[146].mxu1  ;;  %6741 = vmatprep.mubr.msk.f32.mxu0 %vm553_vm2, %v3627_v25 }
 0x6d8   :  { %v3518_v44 = vadd.f32 %v8812_v29, %v6693_v4  ;;  %v3512_v3 = vpop.f32.mrb[147].mxu1  ;;  %6742 = vmatmul.mubr.msk.f32.gmra.mrb[174].mxu0 %vm553_vm2, %v3628_v35  ;;  %v3630_v21 = vmax.f32 %v3508_v34, %v3598_v28 }
 0x6d9   :  { %v3629_v32 = vmax.f32 %v3503_v43, %v3597_v36  ;;  %v3513_v39 = vadd.f32 %v8812_v29, %v3512_v3 }
 0x6da   :  { %v3600_v42 = vmul.f32 0.05, %v3518_v44 }
 0x6db   :  { %v3599_v27 = vmul.f32 0.05, %v3513_v39  ;;  %v6696_v59 = vpop.f32.mrb[148].mxu1  ;;  %6744 = vmatprep.mubr.msk.f32.mxu0 %vm553_vm2, %v3629_v32 }
 0x6dc   :  { %v3528_v33 = vadd.f32 %v8812_v29, %v6696_v59  ;;  %v3522_v60 = vpop.f32.mrb[149].mxu1  ;;  %6745 = vmatmul.mubr.msk.f32.gmra.mrb[176].mxu0 %vm553_vm2, %v3630_v21  ;;  %v3632_v25 = vmax.f32 %v3518_v44, %v3600_v42 }
 0x6dd   :  { %v3631_v62 = vmax.f32 %v3513_v39, %v3599_v27  ;;  %v3523_v15 = vadd.f32 %v8812_v29, %v3522_v60 }
 0x6de   :  { %v3602_v4 = vmul.f32 0.05, %v3528_v33 }
 0x6df   :  { %v3601_v35 = vmul.f32 0.05, %v3523_v15  ;;  %v6699_v43 = vpop.f32.mrb[150].mxu1  ;;  %6747 = vmatprep.mubr.msk.f32.mxu0 %vm553_vm2, %v3631_v62 }
 0x6e0   :  { %v3538_v34 = vadd.f32 %v8812_v29, %v6699_v43  ;;  %v3532_v28 = vpop.f32.mrb[151].mxu1  ;;  %6748 = vmatmul.mubr.msk.f32.gmra.mrb[178].mxu0 %vm553_vm2, %v3632_v25  ;;  %v3634_v32 = vmax.f32 %v3528_v33, %v3602_v4 }
 0x6e1   :  { %v3633_v36 = vmax.f32 %v3523_v15, %v3601_v35  ;;  %v3533_v3 = vadd.f32 %v8812_v29, %v3532_v28 }
 0x6e2   :  { %v3604_v59 = vmul.f32 0.05, %v3538_v34 }
 0x6e3   :  { %v3603_v21 = vmul.f32 0.05, %v3533_v3  ;;  %v6702_v39 = vpop.f32.mrb[152].mxu1  ;;  %6750 = vmatprep.mubr.msk.f32.mxu0 %vm553_vm2, %v3633_v36 }
 0x6e4   :  { %v3548_v44 = vadd.f32 %v8812_v29, %v6702_v39  ;;  %v3542_v42 = vpop.f32.mrb[153].mxu1  ;;  %6751 = vmatmul.mubr.msk.f32.gmra.mrb[180].mxu0 %vm553_vm2, %v3634_v32  ;;  %v3636_v62 = vmax.f32 %v3538_v34, %v3604_v59 }
 0x6e5   :  { %v3635_v27 = vmax.f32 %v3533_v3, %v3603_v21  ;;  %v3543_v60 = vadd.f32 %v8812_v29, %v3542_v42 }
 0x6e6   :  { %v3606_v43 = vmul.f32 0.05, %v3548_v44 }
 0x6e7   :  { %v3605_v25 = vmul.f32 0.05, %v3543_v60  ;;  %v6705_v15 = vpop.f32.mrb[154].mxu1  ;;  %6753 = vmatprep.mubr.msk.f32.mxu0 %vm553_vm2, %v3635_v27 }
 0x6e8   :  { %v3558_v33 = vadd.f32 %v8812_v29, %v6705_v15  ;;  %v3552_v4 = vpop.f32.mrb[155].mxu1  ;;  %6754 = vmatmul.mubr.msk.f32.gmra.mrb[182].mxu0 %vm553_vm2, %v3636_v62  ;;  %v3638_v36 = vmax.f32 %v3548_v44, %v3606_v43 }
 0x6e9   :  { %v3637_v35 = vmax.f32 %v3543_v60, %v3605_v25  ;;  %v3553_v28 = vadd.f32 %v8812_v29, %v3552_v4 }
 0x6ea   :  { %v3608_v39 = vmul.f32 0.05, %v3558_v33 }
 0x6eb   :  { %v3607_v32 = vmul.f32 0.05, %v3553_v28  ;;  %v6708_v3 = vpop.f32.mrb[156].mxu1  ;;  %6756 = vmatprep.mubr.msk.f32.mxu0 %vm553_vm2, %v3637_v35 }
 0x6ec   :  { %v3568_v34 = vadd.f32 %v8812_v29, %v6708_v3  ;;  %v3562_v59 = vpop.f32.mrb[157].mxu1  ;;  %6757 = vmatmul.mubr.msk.f32.gmra.mrb[184].mxu0 %vm553_vm2, %v3638_v36  ;;  %v3640_v27 = vmax.f32 %v3558_v33, %v3608_v39 }
 0x6ed   :  { %v3639_v21 = vmax.f32 %v3553_v28, %v3607_v32  ;;  %v3563_v42 = vadd.f32 %v8812_v29, %v3562_v59  ;;  %v8883_v32 = vld [vmem:[%s9579_s7] ss:$0 sm:$0xff] }
 0x6ee   :  { %v3610_v15 = vmul.f32 0.05, %v3568_v34 }
 0x6ef   :  { %v3609_v62 = vmul.f32 0.05, %v3563_v42  ;;  %v6711_v60 = vpop.f32.mrb[158].mxu1  ;;  %6759 = vmatprep.mubr.msk.f32.mxu0 %vm553_vm2, %v3639_v21 }
 0x6f0   :  { %v3578_v44 = vadd.f32 %v8812_v29, %v6711_v60  ;;  %v3572_v43 = vpop.f32.mrb[159].mxu1  ;;  %6760 = vmatmul.mubr.msk.f32.gmra.mrb[186].mxu0 %vm553_vm2, %v3640_v27  ;;  %v3642_v35 = vmax.f32 %v3568_v34, %v3610_v15  ;;  %v9676_v60 = vmov 0.0|0.0  }
 0x6f1   :  { %v3641_v25 = vmax.f32 %v3563_v42, %v3609_v62  ;;  %v3573_v4 = vadd.f32 %v8812_v29, %v3572_v43 }
 0x6f2   :  { %v3612_v3 = vmul.f32 0.05, %v3578_v44 }
 0x6f3   :  { %v3611_v36 = vmul.f32 0.05, %v3573_v4  ;;  %6762 = vmatprep.mubr.msk.f32.mxu0 %vm553_vm2, %v3641_v25 }
 0x6f4   :  { %6763 = vmatmul.mubr.msk.f32.gmra.mrb[188].mxu0 %vm553_vm2, %v3642_v35  ;;  %v3644_v28 = vmax.f32 %v3578_v44, %v3612_v3 }
 0x6f5   :  { %v3643_v33 = vmax.f32 %v3573_v4, %v3611_v36 }
 0x6f7   :  { %6765 = vmatprep.mubr.msk.f32.mxu0 %vm553_vm2, %v3643_v33 }
 0x6f8   :  { %6766 = vmatmul.mubr.msk.f32.gmra.mrb[190].mxu0 %vm553_vm2, %v3644_v28 }
 0x78f   :  { %v6722_v39 = vpop.f32.mrb[160].mxu0 }
 0x790   :  { %v3813_v29 = vadd.f32 %v8883_v32, %v6722_v39  ;;  %v3807_v34 = vpop.f32.mrb[161].mxu0 }
 0x791   :  { %v3808_v59 = vadd.f32 %v8883_v32, %v3807_v34 }
 0x793   :  { %v7033_v21 = vpack.c.bf16 %v3813_v29, %v3808_v59  ;;  %v6725_v42 = vpop.f32.mrb[162].mxu0 }
 0x794   :  { %v3823_v27 = vadd.f32 %v8883_v32, %v6725_v42  ;;  %v3817_v15 = vpop.f32.mrb[163].mxu0 }
 0x795   :  { %v3818_v62 = vadd.f32 %v8883_v32, %v3817_v15  ;;  %7034 = vmatpush1.bf16.msra.mxu1 %v7033_v21 }
 0x796   :  { %7035 = vmatprep.subr.bf16.mxu1 %v9676_v60 }
 0x797   :  { %v7036_v44 = vpack.c.bf16 %v3823_v27, %v3818_v62  ;;  %v6728_v43 = vpop.f32.mrb[164].mxu0 }
 0x798   :  { %v3833_v25 = vadd.f32 %v8883_v32, %v6728_v43  ;;  %v3827_v4 = vpop.f32.mrb[165].mxu0 }
 0x799   :  { %v3828_v35 = vadd.f32 %v8883_v32, %v3827_v4  ;;  %7037 = vmatpush1.bf16.msra.mxu1 %v7036_v44 }
 0x79a   :  { %7038 = vmatprep.subr.bf16.mxu1 %v9676_v60 }
 0x79b   :  { %v7039_v3 = vpack.c.bf16 %v3833_v25, %v3828_v35  ;;  %v6731_v36 = vpop.f32.mrb[166].mxu0 }
 0x79c   :  { %v3843_v33 = vadd.f32 %v8883_v32, %v6731_v36  ;;  %v3837_v28 = vpop.f32.mrb[167].mxu0 }
 0x79d   :  { %v3838_v39 = vadd.f32 %v8883_v32, %v3837_v28  ;;  %7040 = vmatpush1.bf16.msra.mxu1 %v7039_v3 }
 0x79e   :  { %7041 = vmatprep.subr.bf16.mxu1 %v9676_v60 }
 0x79f   :  { %v7042_v29 = vpack.c.bf16 %v3843_v33, %v3838_v39  ;;  %v6734_v34 = vpop.f32.mrb[168].mxu0 }
 0x7a0   :  { %v3853_v59 = vadd.f32 %v8883_v32, %v6734_v34  ;;  %v3847_v21 = vpop.f32.mrb[169].mxu0 }
 0x7a1   :  { %v3848_v42 = vadd.f32 %v8883_v32, %v3847_v21  ;;  %7043 = vmatpush1.bf16.msra.mxu1 %v7042_v29 }
 0x7a2   :  { %7044 = vmatprep.subr.bf16.mxu1 %v9676_v60 }
 0x7a3   :  { %v7045_v27 = vpack.c.bf16 %v3853_v59, %v3848_v42  ;;  %v6737_v15 = vpop.f32.mrb[170].mxu0 }
 0x7a4   :  { %v3863_v62 = vadd.f32 %v8883_v32, %v6737_v15  ;;  %v3857_v44 = vpop.f32.mrb[171].mxu0 }
 0x7a5   :  { %v3858_v43 = vadd.f32 %v8883_v32, %v3857_v44  ;;  %7046 = vmatpush1.bf16.msra.mxu1 %v7045_v27 }
 0x7a6   :  { %7047 = vmatprep.subr.bf16.mxu1 %v9676_v60 }
 0x7a7   :  { %v7048_v25 = vpack.c.bf16 %v3863_v62, %v3858_v43  ;;  %v6740_v4 = vpop.f32.mrb[172].mxu0 }
 0x7a8   :  { %v3873_v35 = vadd.f32 %v8883_v32, %v6740_v4  ;;  %v3867_v3 = vpop.f32.mrb[173].mxu0 }
 0x7a9   :  { %v3868_v36 = vadd.f32 %v8883_v32, %v3867_v3  ;;  %7049 = vmatpush1.bf16.msra.mxu1 %v7048_v25 }
 0x7aa   :  { %7050 = vmatprep.subr.bf16.mxu1 %v9676_v60 }
 0x7ab   :  { %v7051_v33 = vpack.c.bf16 %v3873_v35, %v3868_v36  ;;  %v6743_v28 = vpop.f32.mrb[174].mxu0 }
 0x7ac   :  { %v3883_v39 = vadd.f32 %v8883_v32, %v6743_v28  ;;  %v3877_v29 = vpop.f32.mrb[175].mxu0 }
 0x7ad   :  { %v3878_v34 = vadd.f32 %v8883_v32, %v3877_v29  ;;  %7052 = vmatpush1.bf16.msra.mxu1 %v7051_v33 }
 0x7ae   :  { %7053 = vmatprep.subr.bf16.mxu1 %v9676_v60 }
 0x7af   :  { %v7054_v59 = vpack.c.bf16 %v3883_v39, %v3878_v34  ;;  %v6746_v21 = vpop.f32.mrb[176].mxu0 }
 0x7b0   :  { %v3893_v42 = vadd.f32 %v8883_v32, %v6746_v21  ;;  %v3887_v27 = vpop.f32.mrb[177].mxu0 }
 0x7b1   :  { %v3888_v15 = vadd.f32 %v8883_v32, %v3887_v27  ;;  %7055 = vmatpush1.bf16.msra.mxu1 %v7054_v59 }
 0x7b2   :  { %7056 = vmatprep.subr.bf16.mxu1 %v9676_v60 }
 0x7b3   :  { %v7057_v62 = vpack.c.bf16 %v3893_v42, %v3888_v15  ;;  %v6749_v44 = vpop.f32.mrb[178].mxu0 }
 0x7b4   :  { %v3903_v43 = vadd.f32 %v8883_v32, %v6749_v44  ;;  %v3897_v25 = vpop.f32.mrb[179].mxu0 }
 0x7b5   :  { %v3898_v4 = vadd.f32 %v8883_v32, %v3897_v25  ;;  %7058 = vmatpush1.bf16.msra.mxu1 %v7057_v62 }
 0x7b6   :  { %7059 = vmatprep.subr.bf16.mxu1 %v9676_v60 }
 0x7b7   :  { %v7060_v35 = vpack.c.bf16 %v3903_v43, %v3898_v4  ;;  %v6752_v3 = vpop.f32.mrb[180].mxu0 }
 0x7b8   :  { %v3913_v36 = vadd.f32 %v8883_v32, %v6752_v3  ;;  %v3907_v33 = vpop.f32.mrb[181].mxu0 }
 0x7b9   :  { %v3908_v28 = vadd.f32 %v8883_v32, %v3907_v33  ;;  %7061 = vmatpush1.bf16.msra.mxu1 %v7060_v35 }
 0x7ba   :  { %7062 = vmatprep.subr.bf16.mxu1 %v9676_v60 }
 0x7bb   :  { %v7063_v39 = vpack.c.bf16 %v3913_v36, %v3908_v28  ;;  %v6755_v29 = vpop.f32.mrb[182].mxu0 }
 0x7bc   :  { %v3923_v34 = vadd.f32 %v8883_v32, %v6755_v29  ;;  %v3917_v59 = vpop.f32.mrb[183].mxu0 }
 0x7bd   :  { %v3918_v21 = vadd.f32 %v8883_v32, %v3917_v59  ;;  %7064 = vmatpush1.bf16.msra.mxu1 %v7063_v39 }
 0x7be   :  { %7065 = vmatprep.subr.bf16.mxu1 %v9676_v60 }
 0x7bf   :  { %v7066_v42 = vpack.c.bf16 %v3923_v34, %v3918_v21  ;;  %v6758_v27 = vpop.f32.mrb[184].mxu0 }
 0x7c0   :  { %v3933_v15 = vadd.f32 %v8883_v32, %v6758_v27  ;;  %v3927_v62 = vpop.f32.mrb[185].mxu0 }
 0x7c1   :  { %v3928_v44 = vadd.f32 %v8883_v32, %v3927_v62  ;;  %7067 = vmatpush1.bf16.msra.mxu1 %v7066_v42  ;;  %v9677_v62 = vunpack.i.h.bf16 %v8003_v41  ;;  %v9682_v41 = vunpack.i.l.bf16 %v8012_v48 }
 0x7c2   :  { %7068 = vmatprep.subr.bf16.mxu1 %v9676_v60 }
 0x7c3   :  { %v7069_v43 = vpack.c.bf16 %v3933_v15, %v3928_v44  ;;  %v6761_v25 = vpop.f32.mrb[186].mxu0  ;;  %v9678_v44 = vunpack.i.l.bf16 %v8008_v46 }
 0x7c4   :  { %v3943_v4 = vadd.f32 %v8883_v32, %v6761_v25  ;;  %v3937_v35 = vpop.f32.mrb[187].mxu0  ;;  %v9683_v25 = vunpack.i.h.bf16 %v8012_v48  ;;  %v9690_v48 = vunpack.i.l.bf16 %v8020_v52 }
 0x7c5   :  { %v3938_v3 = vadd.f32 %v8883_v32, %v3937_v35  ;;  %7070 = vmatpush1.bf16.msra.mxu1 %v7069_v43  ;;  %v9679_v43 = vunpack.i.h.bf16 %v8008_v46  ;;  %v9685_v46 = vunpack.i.h.bf16 %v8014_v49  ;;  %v9689_v35 = vunpack.i.h.bf16 %v8018_v51 }
 0x7c6   :  { %7071 = vmatprep.subr.bf16.mxu1 %v9676_v60 }
 0x7c7   :  { %v7072_v36 = vpack.c.bf16 %v3943_v4, %v3938_v3  ;;  %v6764_v33 = vpop.f32.mrb[188].mxu0  ;;  %v9686_v4 = vunpack.i.l.bf16 %v8016_v50  ;;  %v9691_v3 = vunpack.i.h.bf16 %v8020_v52  ;;  %v9698_v52 = vunpack.i.l.bf16 %v8028_v40 }
 0x7c8   :  { %v3953_v28 = vadd.f32 %v8883_v32, %v6764_v33  ;;  %v3947_v39 = vpop.f32.mrb[189].mxu0  ;;  %v9695_v33 = vunpack.i.h.bf16 %v8024_v54 }
 0x7c9   :  { %v3948_v29 = vadd.f32 %v8883_v32, %v3947_v39  ;;  %7073 = vmatpush1.bf16.msra.mxu1 %v7072_v36  ;;  %v9693_v36 = vunpack.i.h.bf16 %v8022_v53  ;;  %v9699_v39 = vunpack.i.h.bf16 %v8028_v40  ;;  %v9706_v40 = vunpack.i.l.bf16 %v8036_v58 }
 0x7ca   :  { %7074 = vmatprep.subr.bf16.mxu1 %v9676_v60 }
 0x7cb   :  { %v7075_v34 = vpack.c.bf16 %v3953_v28, %v3948_v29  ;;  %v6767_v59 = vpop.f32.mrb[190].mxu0  ;;  %v9697_v28 = vunpack.i.h.bf16 %v8026_v55  ;;  %v9701_v29 = vunpack.i.h.bf16 %v8030_v56 }
 0x7cc   :  { %v3963_v21 = vadd.f32 %v8883_v32, %v6767_v59  ;;  %v3957_v42 = vpop.f32.mrb[191].mxu0  ;;  %v9705_v59 = vunpack.i.h.bf16 %v8034_v57 }
 0x7cd   :  { %v3958_v27 = vadd.f32 %v8883_v32, %v3957_v42  ;;  %7076 = vmatpush1.bf16.msra.mxu1 %v7075_v34  ;;  %v9680_v32 = vunpack.i.l.bf16 %v8010_v47  ;;  %v9703_v34 = vunpack.i.h.bf16 %v8032_v45  ;;  %v9709_v42 = vunpack.i.h.bf16 %v8044_v0 }
 0x7ce   :  { %7077 = vmatprep.subr.bf16.mxu1 %v9676_v60  ;;  %v9681_v60 = vunpack.i.h.bf16 %v8010_v47  ;;  %v9688_v47 = vunpack.i.l.bf16 %v8018_v51  ;;  %v9696_v51 = vunpack.i.l.bf16 %v8026_v55  ;;  %v9704_v55 = vunpack.i.l.bf16 %v8034_v57 }
 0x7cf   :  { %v7078_v15 = vpack.c.bf16 %v3963_v21, %v3958_v27  ;;  %v9707_v21 = vunpack.i.h.bf16 %v8036_v58  ;;  %v9711_v27 = vunpack.i.h.bf16 %v8048_v6  ;;  %v9712_v57 = vunpack.i.l.bf16 %v8053_v12 }
 0x7d0   :  { %v9714_v58 = vunpack.i.l.bf16 %v8058_v18 }
 0x7d1   :  { %7079 = vmatpush1.bf16.msra.mxu1 %v7078_v15  ;;  %v9713_v15 = vunpack.i.h.bf16 %v8053_v12  ;;  %v9720_v12 = vunpack.i.l.bf16 %v8073_v37 }
 0x7d2   :  { %7093 = vmatprep.subr.bf16.mxu1 %v8404_v63 }
 0x7d4   :  { %4031 = vmatmul.mubr.f32.vlgmr.msra.gmra.mrb[160].mxu1 %v9677_v62  ;;  %v9715_v62 = vunpack.i.h.bf16 %v8058_v18  ;;  %v9722_v18 = vunpack.i.l.bf16 %v8078_v2 }
 0x7d5   :  { %4035 = vmatprep.mubr.f32.mxu1 %v9678_v44  ;;  %7095 = vmatpush3.bf16.msra.mxu1 %v8404_v63  ;;  %v9684_v63 = vunpack.i.l.bf16 %v8014_v49  ;;  %v9692_v49 = vunpack.i.l.bf16 %v8022_v53  ;;  %v9700_v53 = vunpack.i.l.bf16 %v8030_v56  ;;  %v9708_v56 = vunpack.i.l.bf16 %v8044_v0 }
 0x7d6   :  { %7097 = vmatprep.subr.bf16.mxu1 %v8446_v8  ;;  %v9716_v0 = vunpack.i.l.bf16 %v8063_v24  ;;  %v9717_v44 = vunpack.i.h.bf16 %v8063_v24  ;;  %v9724_v24 = vunpack.i.l.bf16 %v8083_v9 }
 0x7d8   :  { %4036 = vmatmul.mubr.f32.gmra.mrb[162].mxu1 %v9679_v43  ;;  %v9719_v43 = vunpack.i.h.bf16 %v8068_v30 }
 0x7d9   :  { %4040 = vmatprep.mubr.f32.mxu1 %v9680_v32  ;;  %7099 = vmatpush3.bf16.msra.mxu1 %v8446_v8  ;;  %v9687_v8 = vunpack.i.h.bf16 %v8016_v50  ;;  %v9694_v50 = vunpack.i.l.bf16 %v8024_v54  ;;  %v9702_v54 = vunpack.i.l.bf16 %v8032_v45  ;;  %v9710_v45 = vunpack.i.l.bf16 %v8048_v6 }
 0x7da   :  { %v9718_v6 = vunpack.i.l.bf16 %v8068_v30  ;;  %v9721_v32 = vunpack.i.h.bf16 %v8073_v37  ;;  %v9726_v30 = vunpack.i.l.bf16 %v8088_v16  ;;  %v9728_v37 = vunpack.i.l.bf16 %v8093_v23 }
 0x7dc   :  { %4041 = vmatmul.mubr.f32.gmra.mrb[164].mxu1 %v9681_v60  ;;  %v9723_v60 = vunpack.i.h.bf16 %v8078_v2  ;;  %v9730_v2 = vunpack.i.l.bf16 %v8098_v31 }
 0x7dd   :  { %4045 = vmatprep.mubr.f32.mxu1 %v9682_v41  ;;  %v9725_v41 = vunpack.i.h.bf16 %v8083_v9  ;;  %v9732_v9 = vunpack.i.l.bf16 %v8103_v61 }
 0x7e0   :  { %4046 = vmatmul.mubr.f32.gmra.mrb[166].mxu1 %v9683_v25  ;;  %v9727_v25 = vunpack.i.h.bf16 %v8088_v16  ;;  %v9734_v16 = vunpack.i.l.bf16 %v8108_v5 }
 0x7e1   :  { %4050 = vmatprep.mubr.f32.mxu1 %v9684_v63  ;;  %v9729_v63 = vunpack.i.h.bf16 %v8093_v23  ;;  %v9736_v23 = vunpack.i.l.bf16 %v8113_v14 }
 0x7e4   :  { %4051 = vmatmul.mubr.f32.gmra.mrb[168].mxu1 %v9685_v46  ;;  %v9731_v46 = vunpack.i.h.bf16 %v8098_v31  ;;  %v9738_v31 = vunpack.i.l.bf16 %v8118_v22 }
 0x7e5   :  { %4055 = vmatprep.mubr.f32.mxu1 %v9686_v4  ;;  %v9733_v4 = vunpack.i.h.bf16 %v8103_v61 }
 0x7e8   :  { %4056 = vmatmul.mubr.f32.gmra.mrb[170].mxu1 %v9687_v8  ;;  %v9735_v8 = vunpack.i.h.bf16 %v8108_v5 }
 0x7e9   :  { %4060 = vmatprep.mubr.f32.mxu1 %v9688_v47  ;;  %v9737_v47 = vunpack.i.h.bf16 %v8113_v14 }
 0x7ec   :  { %4061 = vmatmul.mubr.f32.gmra.mrb[172].mxu1 %v9689_v35  ;;  %v9739_v35 = vunpack.i.h.bf16 %v8118_v22 }
 0x7ed   :  { %4065 = vmatprep.mubr.f32.mxu1 %v9690_v48 }
 0x7f0   :  { %4066 = vmatmul.mubr.f32.gmra.mrb[174].mxu1 %v9691_v3 }
 0x7f1   :  { %4070 = vmatprep.mubr.f32.mxu1 %v9692_v49 }
 0x7f4   :  { %4071 = vmatmul.mubr.f32.gmra.mrb[176].mxu1 %v9693_v36 }
 0x7f5   :  { %4075 = vmatprep.mubr.f32.mxu1 %v9694_v50 }
 0x7f8   :  { %4076 = vmatmul.mubr.f32.gmra.mrb[178].mxu1 %v9695_v33 }
 0x7f9   :  { %4080 = vmatprep.mubr.f32.mxu1 %v9696_v51 }
 0x7fc   :  { %4081 = vmatmul.mubr.f32.gmra.mrb[180].mxu1 %v9697_v28 }
 0x7fd   :  { %4085 = vmatprep.mubr.f32.mxu1 %v9698_v52 }
 0x800   :  { %4086 = vmatmul.mubr.f32.gmra.mrb[182].mxu1 %v9699_v39 }
 0x801   :  { %4090 = vmatprep.mubr.f32.mxu1 %v9700_v53 }
 0x804   :  { %4091 = vmatmul.mubr.f32.gmra.mrb[184].mxu1 %v9701_v29 }
 0x805   :  { %4095 = vmatprep.mubr.f32.mxu1 %v9702_v54 }
 0x808   :  { %4096 = vmatmul.mubr.f32.gmra.mrb[186].mxu1 %v9703_v34 }
 0x809   :  { %4100 = vmatprep.mubr.f32.mxu1 %v9704_v55 }
 0x80c   :  { %4101 = vmatmul.mubr.f32.gmra.mrb[188].mxu1 %v9705_v59 }
 0x80d   :  { %4105 = vmatprep.mubr.f32.mxu1 %v9706_v40 }
 0x810   :  { %4106 = vmatmul.mubr.f32.gmra.mrb[190].mxu1 %v9707_v21 }
 0x811   :  { %4110 = vmatprep.mubr.f32.mxu1 %v9708_v56 }
 0x814   :  { %4111 = vmatmul.mubr.f32.gmra.mrb[192].mxu1 %v9709_v42 }
 0x815   :  { %4115 = vmatprep.mubr.f32.mxu1 %v9710_v45 }
 0x818   :  { %4116 = vmatmul.mubr.f32.gmra.mrb[194].mxu1 %v9711_v27 }
 0x819   :  { %4120 = vmatprep.mubr.f32.mxu1 %v9712_v57 }
 0x81c   :  { %4121 = vmatmul.mubr.f32.gmra.mrb[196].mxu1 %v9713_v15 }
 0x81d   :  { %4125 = vmatprep.mubr.f32.mxu1 %v9714_v58 }
 0x820   :  { %4126 = vmatmul.mubr.f32.gmra.mrb[198].mxu1 %v9715_v62 }
 0x821   :  { %4130 = vmatprep.mubr.f32.mxu1 %v9716_v0 }
 0x824   :  { %4131 = vmatmul.mubr.f32.gmra.mrb[200].mxu1 %v9717_v44 }
 0x825   :  { %4135 = vmatprep.mubr.f32.mxu1 %v9718_v6 }
 0x828   :  { %4136 = vmatmul.mubr.f32.gmra.mrb[202].mxu1 %v9719_v43 }
 0x829   :  { %4140 = vmatprep.mubr.f32.mxu1 %v9720_v12 }
 0x82c   :  { %4141 = vmatmul.mubr.f32.gmra.mrb[204].mxu1 %v9721_v32 }
 0x82d   :  { %4145 = vmatprep.mubr.f32.mxu1 %v9722_v18 }
 0x830   :  { %4146 = vmatmul.mubr.f32.gmra.mrb[206].mxu1 %v9723_v60 }
 0x831   :  { %4150 = vmatprep.mubr.f32.mxu1 %v9724_v24 }
 0x834   :  { %4151 = vmatmul.mubr.f32.gmra.mrb[208].mxu1 %v9725_v41 }
 0x835   :  { %4155 = vmatprep.mubr.f32.mxu1 %v9726_v30 }
 0x838   :  { %4156 = vmatmul.mubr.f32.gmra.mrb[210].mxu1 %v9727_v25 }
 0x839   :  { %4160 = vmatprep.mubr.f32.mxu1 %v9728_v37 }
 0x83c   :  { %4161 = vmatmul.mubr.f32.gmra.mrb[212].mxu1 %v9729_v63 }
 0x83d   :  { %4165 = vmatprep.mubr.f32.mxu1 %v9730_v2 }
 0x840   :  { %4166 = vmatmul.mubr.f32.gmra.mrb[214].mxu1 %v9731_v46 }
 0x841   :  { %4170 = vmatprep.mubr.f32.mxu1 %v9732_v9 }
 0x844   :  { %4171 = vmatmul.mubr.f32.gmra.mrb[216].mxu1 %v9733_v4 }
 0x845   :  { %4175 = vmatprep.mubr.f32.mxu1 %v9734_v16 }
 0x848   :  { %4176 = vmatmul.mubr.f32.gmra.mrb[218].mxu1 %v9735_v8 }
 0x849   :  { %4180 = vmatprep.mubr.f32.mxu1 %v9736_v23 }
 0x84c   :  { %4181 = vmatmul.mubr.f32.gmra.mrb[220].mxu1 %v9737_v47 }
 0x84d   :  { %4185 = vmatprep.mubr.f32.mxu1 %v9738_v31 }
 0x850   :  { %4186 = vmatmul.mubr.f32.gmra.mrb[222].mxu1 %v9739_v35 }
 0x8a7   :  { %v4032_v61 = vpop.f32.mrb[160].mxu1 }
 0x8a8   :  { %v4034_v48 = vpop.f32.mrb[161].mxu1  ;;  %6772 = vmatprep.mubr.msk.f32.mxu0 %vm1633_vm3, %v4032_v61 }
 0x8ab   :  { %v4037_v3 = vpop.f32.mrb[162].mxu1 }
 0x8ac   :  { %v4039_v49 = vpop.f32.mrb[163].mxu1  ;;  %6773 = vmatmul.mubr.msk.f32.vlgmr.msra.gmra.mrb[192].mxu0 %vm1633_vm3, %v4037_v3 }
 0x8ad   :  { %7087 = vmatpush3.bf16.msra.mxu0 %v8349_v10 }
 0x8ae   :  { %7089 = vmatprep.subr.bf16.mxu0 %v8360_v11 }
 0x8af   :  { %v4042_v5 = vpop.f32.mrb[164].mxu1 }
 0x8b0   :  { %v4044_v14 = vpop.f32.mrb[165].mxu1  ;;  %6775 = vmatprep.mubr.msk.f32.mxu0 %vm1633_vm3, %v4042_v5 }
 0x8b1   :  { %7091 = vmatpush3.bf16.msra.mxu0 %v8360_v11 }
 0x8b3   :  { %v4047_v22 = vpop.f32.mrb[166].mxu1 }
 0x8b4   :  { %v4049_v36 = vpop.f32.mrb[167].mxu1  ;;  %6776 = vmatmul.mubr.msk.f32.gmra.mrb[194].mxu0 %vm1633_vm3, %v4047_v22 }
 0x8b7   :  { %v4052_v50 = vpop.f32.mrb[168].mxu1 }
 0x8b8   :  { %v4054_v33 = vpop.f32.mrb[169].mxu1  ;;  %6778 = vmatprep.mubr.msk.f32.mxu0 %vm1633_vm3, %v4052_v50 }
 0x8b9   :  { %v9100_v33 = vld [vmem:[%s9583_s11] ss:$0 sm:$0xff] }
 0x8bb   :  { %v4057_v51 = vpop.f32.mrb[170].mxu1 }
 0x8bc   :  { %v4059_v28 = vpop.f32.mrb[171].mxu1  ;;  %6779 = vmatmul.mubr.msk.f32.gmra.mrb[196].mxu0 %vm1633_vm3, %v4057_v51 }
 0x8bf   :  { %v4062_v10 = vpop.f32.mrb[172].mxu1 }
 0x8c0   :  { %v4064_v52 = vpop.f32.mrb[173].mxu1  ;;  %6781 = vmatprep.mubr.msk.f32.mxu0 %vm1633_vm3, %v4062_v10 }
 0x8c3   :  { %v4067_v39 = vpop.f32.mrb[174].mxu1 }
 0x8c4   :  { %v4069_v53 = vpop.f32.mrb[175].mxu1  ;;  %6782 = vmatmul.mubr.msk.f32.gmra.mrb[198].mxu0 %vm1633_vm3, %v4067_v39 }
 0x8c7   :  { %v4072_v11 = vpop.f32.mrb[176].mxu1 }
 0x8c8   :  { %v4074_v29 = vpop.f32.mrb[177].mxu1  ;;  %6784 = vmatprep.mubr.msk.f32.mxu0 %vm1633_vm3, %v4072_v11 }
 0x8cb   :  { %v4077_v54 = vpop.f32.mrb[178].mxu1 }
 0x8cc   :  { %v4079_v34 = vpop.f32.mrb[179].mxu1  ;;  %6785 = vmatmul.mubr.msk.f32.gmra.mrb[200].mxu0 %vm1633_vm3, %v4077_v54 }
 0x8cf   :  { %v4082_v55 = vpop.f32.mrb[180].mxu1 }
 0x8d0   :  { %v4084_v59 = vpop.f32.mrb[181].mxu1  ;;  %6787 = vmatprep.mubr.msk.f32.mxu0 %vm1633_vm3, %v4082_v55 }
 0x8d3   :  { %v4087_v40 = vpop.f32.mrb[182].mxu1 }
 0x8d4   :  { %v4089_v21 = vpop.f32.mrb[183].mxu1  ;;  %6788 = vmatmul.mubr.msk.f32.gmra.mrb[202].mxu0 %vm1633_vm3, %v4087_v40 }
 0x8d7   :  { %v4092_v56 = vpop.f32.mrb[184].mxu1 }
 0x8d8   :  { %v4094_v42 = vpop.f32.mrb[185].mxu1  ;;  %6790 = vmatprep.mubr.msk.f32.mxu0 %vm1633_vm3, %v4092_v56 }
 0x8db   :  { %v4097_v45 = vpop.f32.mrb[186].mxu1 }
 0x8dc   :  { %v4099_v27 = vpop.f32.mrb[187].mxu1  ;;  %6791 = vmatmul.mubr.msk.f32.gmra.mrb[204].mxu0 %vm1633_vm3, %v4097_v45 }
 0x8df   :  { %v4102_v57 = vpop.f32.mrb[188].mxu1 }
 0x8e0   :  { %v4104_v15 = vpop.f32.mrb[189].mxu1  ;;  %6793 = vmatprep.mubr.msk.f32.mxu0 %vm1633_vm3, %v4102_v57 }
 0x8e3   :  { %v4107_v58 = vpop.f32.mrb[190].mxu1 }
 0x8e4   :  { %v4109_v62 = vpop.f32.mrb[191].mxu1  ;;  %6794 = vmatmul.mubr.msk.f32.gmra.mrb[206].mxu0 %vm1633_vm3, %v4107_v58 }
 0x8e7   :  { %v4112_v0 = vpop.f32.mrb[192].mxu1 }
 0x8e8   :  { %v4114_v44 = vpop.f32.mrb[193].mxu1  ;;  %6796 = vmatprep.mubr.msk.f32.mxu0 %vm1633_vm3, %v4112_v0 }
 0x8eb   :  { %v4117_v6 = vpop.f32.mrb[194].mxu1 }
 0x8ec   :  { %v4119_v43 = vpop.f32.mrb[195].mxu1  ;;  %6797 = vmatmul.mubr.msk.f32.gmra.mrb[208].mxu0 %vm1633_vm3, %v4117_v6 }
 0x8ef   :  { %v4122_v12 = vpop.f32.mrb[196].mxu1 }
 0x8f0   :  { %v4124_v32 = vpop.f32.mrb[197].mxu1  ;;  %6799 = vmatprep.mubr.msk.f32.mxu0 %vm1633_vm3, %v4122_v12 }
 0x8f3   :  { %v4127_v18 = vpop.f32.mrb[198].mxu1 }
 0x8f4   :  { %v4129_v60 = vpop.f32.mrb[199].mxu1  ;;  %6800 = vmatmul.mubr.msk.f32.gmra.mrb[210].mxu0 %vm1633_vm3, %v4127_v18 }
 0x8f7   :  { %v4132_v24 = vpop.f32.mrb[200].mxu1 }
 0x8f8   :  { %v4134_v41 = vpop.f32.mrb[201].mxu1  ;;  %6802 = vmatprep.mubr.msk.f32.mxu0 %vm1633_vm3, %v4132_v24 }
 0x8fb   :  { %v4137_v30 = vpop.f32.mrb[202].mxu1 }
 0x8fc   :  { %v4139_v25 = vpop.f32.mrb[203].mxu1  ;;  %6803 = vmatmul.mubr.msk.f32.gmra.mrb[212].mxu0 %vm1633_vm3, %v4137_v30 }
 0x8ff   :  { %v4142_v37 = vpop.f32.mrb[204].mxu1 }
 0x900   :  { %v4144_v63 = vpop.f32.mrb[205].mxu1  ;;  %6805 = vmatprep.mubr.msk.f32.mxu0 %vm1633_vm3, %v4142_v37 }
 0x903   :  { %v4147_v2 = vpop.f32.mrb[206].mxu1 }
 0x904   :  { %v4149_v46 = vpop.f32.mrb[207].mxu1  ;;  %6806 = vmatmul.mubr.msk.f32.gmra.mrb[214].mxu0 %vm1633_vm3, %v4147_v2 }
 0x907   :  { %v4152_v9 = vpop.f32.mrb[208].mxu1 }
 0x908   :  { %v4154_v4 = vpop.f32.mrb[209].mxu1  ;;  %6808 = vmatprep.mubr.msk.f32.mxu0 %vm1633_vm3, %v4152_v9 }
 0x90b   :  { %v4157_v16 = vpop.f32.mrb[210].mxu1 }
 0x90c   :  { %v4159_v8 = vpop.f32.mrb[211].mxu1  ;;  %6809 = vmatmul.mubr.msk.f32.gmra.mrb[216].mxu0 %vm1633_vm3, %v4157_v16 }
 0x90f   :  { %v4162_v23 = vpop.f32.mrb[212].mxu1 }
 0x910   :  { %v4164_v47 = vpop.f32.mrb[213].mxu1  ;;  %6811 = vmatprep.mubr.msk.f32.mxu0 %vm1633_vm3, %v4162_v23 }
 0x913   :  { %v4167_v31 = vpop.f32.mrb[214].mxu1 }
 0x914   :  { %v4169_v35 = vpop.f32.mrb[215].mxu1  ;;  %6812 = vmatmul.mubr.msk.f32.gmra.mrb[218].mxu0 %vm1633_vm3, %v4167_v31 }
 0x917   :  { %v4172_v61 = vpop.f32.mrb[216].mxu1 }
 0x918   :  { %v4174_v48 = vpop.f32.mrb[217].mxu1  ;;  %6814 = vmatprep.mubr.msk.f32.mxu0 %vm1633_vm3, %v4172_v61 }
 0x91b   :  { %v4177_v3 = vpop.f32.mrb[218].mxu1 }
 0x91c   :  { %v4179_v49 = vpop.f32.mrb[219].mxu1  ;;  %6815 = vmatmul.mubr.msk.f32.gmra.mrb[220].mxu0 %vm1633_vm3, %v4177_v3 }
 0x91f   :  { %v4182_v5 = vpop.f32.mrb[220].mxu1 }
 0x920   :  { %v4184_v14 = vpop.f32.mrb[221].mxu1  ;;  %6817 = vmatprep.mubr.msk.f32.mxu0 %vm1633_vm3, %v4182_v5 }
 0x923   :  { %v4187_v22 = vpop.f32.mrb[222].mxu1 }
 0x924   :  { %v4189_v36 = vpop.f32.mrb[223].mxu1  ;;  %6818 = vmatmul.mubr.msk.f32.gmra.mrb[222].mxu0 %vm1633_vm3, %v4187_v22 }
 0x97f   :  { %v6774_v50 = vpop.f32.mrb[192].mxu0 }
 0x980   :  { %v4359_v51 = vadd.f32 %v9100_v33, %v6774_v50  ;;  %v4353_v28 = vpop.f32.mrb[193].mxu0 }
 0x981   :  { %v4354_v10 = vadd.f32 %v9100_v33, %v4353_v28 }
 0x982   :  { %v4513_v52 = vmul.f32 0.05, %v4359_v51 }
 0x983   :  { %v4512_v39 = vmul.f32 0.05, %v4354_v10 }
 0x984   :  { %v4545_v11 = vmax.f32 %v4359_v51, %v4513_v52 }
 0x985   :  { %v4544_v53 = vmax.f32 %v4354_v10, %v4512_v39 }
 0x987   :  { %v6777_v29 = vpop.f32.mrb[194].mxu0  ;;  %6828 = vmatprep.mubr.msk.f32.mxu0 %vm553_vm2, %v4544_v53 }
 0x988   :  { %v4369_v54 = vadd.f32 %v9100_v33, %v6777_v29  ;;  %v4363_v34 = vpop.f32.mrb[195].mxu0  ;;  %6829 = vmatmul.mubr.msk.f32.vlgmr.msra.gmra.mrb[224].mxu0 %vm553_vm2, %v4545_v11 }
 0x989   :  { %v4364_v55 = vadd.f32 %v9100_v33, %v4363_v34 }
 0x98a   :  { %v4515_v59 = vmul.f32 0.05, %v4369_v54 }
 0x98b   :  { %v4514_v40 = vmul.f32 0.05, %v4364_v55 }
 0x98c   :  { %v4547_v56 = vmax.f32 %v4369_v54, %v4515_v59 }
 0x98d   :  { %v4546_v21 = vmax.f32 %v4364_v55, %v4514_v40 }
 0x98f   :  { %v6780_v42 = vpop.f32.mrb[196].mxu0  ;;  %6831 = vmatprep.mubr.msk.f32.mxu0 %vm553_vm2, %v4546_v21 }
 0x990   :  { %v4379_v45 = vadd.f32 %v9100_v33, %v6780_v42  ;;  %v4373_v27 = vpop.f32.mrb[197].mxu0  ;;  %6832 = vmatmul.mubr.msk.f32.gmra.mrb[226].mxu0 %vm553_vm2, %v4547_v56 }
 0x991   :  { %v4374_v57 = vadd.f32 %v9100_v33, %v4373_v27 }
 0x992   :  { %v4517_v15 = vmul.f32 0.05, %v4379_v45 }
 0x993   :  { %v4516_v58 = vmul.f32 0.05, %v4374_v57 }
 0x994   :  { %v4549_v0 = vmax.f32 %v4379_v45, %v4517_v15 }
 0x995   :  { %v4548_v62 = vmax.f32 %v4374_v57, %v4516_v58 }
 0x997   :  { %v6783_v44 = vpop.f32.mrb[198].mxu0  ;;  %6834 = vmatprep.mubr.msk.f32.mxu0 %vm553_vm2, %v4548_v62 }
 0x998   :  { %v4389_v6 = vadd.f32 %v9100_v33, %v6783_v44  ;;  %v4383_v43 = vpop.f32.mrb[199].mxu0  ;;  %6835 = vmatmul.mubr.msk.f32.gmra.mrb[228].mxu0 %vm553_vm2, %v4549_v0 }
 0x999   :  { %v4384_v12 = vadd.f32 %v9100_v33, %v4383_v43 }
 0x99a   :  { %v4519_v32 = vmul.f32 0.05, %v4389_v6 }
 0x99b   :  { %v4518_v18 = vmul.f32 0.05, %v4384_v12 }
 0x99c   :  { %v4551_v24 = vmax.f32 %v4389_v6, %v4519_v32 }
 0x99d   :  { %v4550_v60 = vmax.f32 %v4384_v12, %v4518_v18 }
 0x99f   :  { %v6786_v41 = vpop.f32.mrb[200].mxu0  ;;  %6837 = vmatprep.mubr.msk.f32.mxu0 %vm553_vm2, %v4550_v60 }
 0x9a0   :  { %v4399_v30 = vadd.f32 %v9100_v33, %v6786_v41  ;;  %v4393_v25 = vpop.f32.mrb[201].mxu0  ;;  %6838 = vmatmul.mubr.msk.f32.gmra.mrb[230].mxu0 %vm553_vm2, %v4551_v24 }
 0x9a1   :  { %v4394_v37 = vadd.f32 %v9100_v33, %v4393_v25 }
 0x9a2   :  { %v4521_v63 = vmul.f32 0.05, %v4399_v30 }
 0x9a3   :  { %v4520_v2 = vmul.f32 0.05, %v4394_v37 }
 0x9a4   :  { %v4553_v9 = vmax.f32 %v4399_v30, %v4521_v63 }
 0x9a5   :  { %v4552_v46 = vmax.f32 %v4394_v37, %v4520_v2 }
 0x9a7   :  { %v6789_v4 = vpop.f32.mrb[202].mxu0  ;;  %6840 = vmatprep.mubr.msk.f32.mxu0 %vm553_vm2, %v4552_v46 }
 0x9a8   :  { %v4409_v16 = vadd.f32 %v9100_v33, %v6789_v4  ;;  %v4403_v8 = vpop.f32.mrb[203].mxu0  ;;  %6841 = vmatmul.mubr.msk.f32.gmra.mrb[232].mxu0 %vm553_vm2, %v4553_v9 }
 0x9a9   :  { %v4404_v23 = vadd.f32 %v9100_v33, %v4403_v8 }
 0x9aa   :  { %v4523_v47 = vmul.f32 0.05, %v4409_v16 }
 0x9ab   :  { %v4522_v31 = vmul.f32 0.05, %v4404_v23 }
 0x9ac   :  { %v4555_v61 = vmax.f32 %v4409_v16, %v4523_v47 }
 0x9ad   :  { %v4554_v35 = vmax.f32 %v4404_v23, %v4522_v31 }
 0x9af   :  { %v6792_v48 = vpop.f32.mrb[204].mxu0  ;;  %6843 = vmatprep.mubr.msk.f32.mxu0 %vm553_vm2, %v4554_v35 }
 0x9b0   :  { %v4419_v3 = vadd.f32 %v9100_v33, %v6792_v48  ;;  %v4413_v49 = vpop.f32.mrb[205].mxu0  ;;  %6844 = vmatmul.mubr.msk.f32.gmra.mrb[234].mxu0 %vm553_vm2, %v4555_v61 }
 0x9b1   :  { %v4414_v5 = vadd.f32 %v9100_v33, %v4413_v49 }
 0x9b2   :  { %v4525_v14 = vmul.f32 0.05, %v4419_v3 }
 0x9b3   :  { %v4524_v22 = vmul.f32 0.05, %v4414_v5 }
 0x9b4   :  { %v4557_v50 = vmax.f32 %v4419_v3, %v4525_v14 }
 0x9b5   :  { %v4556_v36 = vmax.f32 %v4414_v5, %v4524_v22 }
 0x9b7   :  { %v6795_v51 = vpop.f32.mrb[206].mxu0  ;;  %6846 = vmatprep.mubr.msk.f32.mxu0 %vm553_vm2, %v4556_v36 }
 0x9b8   :  { %v4429_v28 = vadd.f32 %v9100_v33, %v6795_v51  ;;  %v4423_v10 = vpop.f32.mrb[207].mxu0  ;;  %6847 = vmatmul.mubr.msk.f32.gmra.mrb[236].mxu0 %vm553_vm2, %v4557_v50 }
 0x9b9   :  { %v4424_v52 = vadd.f32 %v9100_v33, %v4423_v10 }
 0x9ba   :  { %v4527_v39 = vmul.f32 0.05, %v4429_v28 }
 0x9bb   :  { %v4526_v53 = vmul.f32 0.05, %v4424_v52 }
 0x9bc   :  { %v4559_v29 = vmax.f32 %v4429_v28, %v4527_v39 }
 0x9bd   :  { %v4558_v11 = vmax.f32 %v4424_v52, %v4526_v53 }
 0x9bf   :  { %v6798_v54 = vpop.f32.mrb[208].mxu0  ;;  %6849 = vmatprep.mubr.msk.f32.mxu0 %vm553_vm2, %v4558_v11 }
 0x9c0   :  { %v4439_v34 = vadd.f32 %v9100_v33, %v6798_v54  ;;  %v4433_v55 = vpop.f32.mrb[209].mxu0  ;;  %6850 = vmatmul.mubr.msk.f32.gmra.mrb[238].mxu0 %vm553_vm2, %v4559_v29 }
 0x9c1   :  { %v4434_v59 = vadd.f32 %v9100_v33, %v4433_v55 }
 0x9c2   :  { %v4529_v40 = vmul.f32 0.05, %v4439_v34 }
 0x9c3   :  { %v4528_v21 = vmul.f32 0.05, %v4434_v59 }
 0x9c4   :  { %v4561_v42 = vmax.f32 %v4439_v34, %v4529_v40 }
 0x9c5   :  { %v4560_v56 = vmax.f32 %v4434_v59, %v4528_v21 }
 0x9c7   :  { %v6801_v45 = vpop.f32.mrb[210].mxu0  ;;  %6852 = vmatprep.mubr.msk.f32.mxu0 %vm553_vm2, %v4560_v56 }
 0x9c8   :  { %v4449_v27 = vadd.f32 %v9100_v33, %v6801_v45  ;;  %v4443_v57 = vpop.f32.mrb[211].mxu0  ;;  %6853 = vmatmul.mubr.msk.f32.gmra.mrb[240].mxu0 %vm553_vm2, %v4561_v42 }
 0x9c9   :  { %v4444_v15 = vadd.f32 %v9100_v33, %v4443_v57  ;;  %v9169_v57 = vld [vmem:[%s9584_s12] ss:$0 sm:$0xff] }
 0x9ca   :  { %v4531_v58 = vmul.f32 0.05, %v4449_v27 }
 0x9cb   :  { %v4530_v62 = vmul.f32 0.05, %v4444_v15 }
 0x9cc   :  { %v4563_v44 = vmax.f32 %v4449_v27, %v4531_v58 }
 0x9cd   :  { %v4562_v0 = vmax.f32 %v4444_v15, %v4530_v62 }
 0x9cf   :  { %v6804_v6 = vpop.f32.mrb[212].mxu0  ;;  %6855 = vmatprep.mubr.msk.f32.mxu0 %vm553_vm2, %v4562_v0 }
 0x9d0   :  { %v4459_v43 = vadd.f32 %v9100_v33, %v6804_v6  ;;  %v4453_v12 = vpop.f32.mrb[213].mxu0  ;;  %6856 = vmatmul.mubr.msk.f32.gmra.mrb[242].mxu0 %vm553_vm2, %v4563_v44 }
 0x9d1   :  { %v4454_v32 = vadd.f32 %v9100_v33, %v4453_v12 }
 0x9d2   :  { %v4533_v18 = vmul.f32 0.05, %v4459_v43 }
 0x9d3   :  { %v4532_v60 = vmul.f32 0.05, %v4454_v32 }
 0x9d4   :  { %v4565_v41 = vmax.f32 %v4459_v43, %v4533_v18 }
 0x9d5   :  { %v4564_v24 = vmax.f32 %v4454_v32, %v4532_v60 }
 0x9d7   :  { %v6807_v30 = vpop.f32.mrb[214].mxu0  ;;  %6858 = vmatprep.mubr.msk.f32.mxu0 %vm553_vm2, %v4564_v24 }
 0x9d8   :  { %v4469_v25 = vadd.f32 %v9100_v33, %v6807_v30  ;;  %v4463_v37 = vpop.f32.mrb[215].mxu0  ;;  %6859 = vmatmul.mubr.msk.f32.gmra.mrb[244].mxu0 %vm553_vm2, %v4565_v41 }
 0x9d9   :  { %v4464_v63 = vadd.f32 %v9100_v33, %v4463_v37 }
 0x9da   :  { %v4535_v2 = vmul.f32 0.05, %v4469_v25 }
 0x9db   :  { %v4534_v46 = vmul.f32 0.05, %v4464_v63 }
 0x9dc   :  { %v4567_v4 = vmax.f32 %v4469_v25, %v4535_v2 }
 0x9dd   :  { %v4566_v9 = vmax.f32 %v4464_v63, %v4534_v46 }
 0x9df   :  { %v6810_v16 = vpop.f32.mrb[216].mxu0  ;;  %6861 = vmatprep.mubr.msk.f32.mxu0 %vm553_vm2, %v4566_v9 }
 0x9e0   :  { %v4479_v8 = vadd.f32 %v9100_v33, %v6810_v16  ;;  %v4473_v23 = vpop.f32.mrb[217].mxu0  ;;  %6862 = vmatmul.mubr.msk.f32.gmra.mrb[246].mxu0 %vm553_vm2, %v4567_v4 }
 0x9e1   :  { %v4474_v47 = vadd.f32 %v9100_v33, %v4473_v23 }
 0x9e2   :  { %v4537_v31 = vmul.f32 0.05, %v4479_v8 }
 0x9e3   :  { %v4536_v35 = vmul.f32 0.05, %v4474_v47 }
 0x9e4   :  { %v4569_v48 = vmax.f32 %v4479_v8, %v4537_v31 }
 0x9e5   :  { %v4568_v61 = vmax.f32 %v4474_v47, %v4536_v35 }
 0x9e7   :  { %v6813_v3 = vpop.f32.mrb[218].mxu0  ;;  %6864 = vmatprep.mubr.msk.f32.mxu0 %vm553_vm2, %v4568_v61 }
 0x9e8   :  { %v4489_v49 = vadd.f32 %v9100_v33, %v6813_v3  ;;  %v4483_v5 = vpop.f32.mrb[219].mxu0  ;;  %6865 = vmatmul.mubr.msk.f32.gmra.mrb[248].mxu0 %vm553_vm2, %v4569_v48 }
 0x9e9   :  { %v4484_v14 = vadd.f32 %v9100_v33, %v4483_v5 }
 0x9ea   :  { %v4539_v22 = vmul.f32 0.05, %v4489_v49 }
 0x9eb   :  { %v4538_v36 = vmul.f32 0.05, %v4484_v14 }
 0x9ec   :  { %v4571_v51 = vmax.f32 %v4489_v49, %v4539_v22 }
 0x9ed   :  { %v4570_v50 = vmax.f32 %v4484_v14, %v4538_v36 }
 0x9ef   :  { %v6816_v28 = vpop.f32.mrb[220].mxu0  ;;  %6867 = vmatprep.mubr.msk.f32.mxu0 %vm553_vm2, %v4570_v50 }
 0x9f0   :  { %v4499_v10 = vadd.f32 %v9100_v33, %v6816_v28  ;;  %v4493_v52 = vpop.f32.mrb[221].mxu0  ;;  %6868 = vmatmul.mubr.msk.f32.gmra.mrb[250].mxu0 %vm553_vm2, %v4571_v51 }
 0x9f1   :  { %v4494_v39 = vadd.f32 %v9100_v33, %v4493_v52 }
 0x9f2   :  { %v4541_v53 = vmul.f32 0.05, %v4499_v10 }
 0x9f3   :  { %v4540_v11 = vmul.f32 0.05, %v4494_v39 }
 0x9f4   :  { %v4573_v54 = vmax.f32 %v4499_v10, %v4541_v53 }
 0x9f5   :  { %v4572_v29 = vmax.f32 %v4494_v39, %v4540_v11 }
 0x9f7   :  { %v6819_v34 = vpop.f32.mrb[222].mxu0  ;;  %6870 = vmatprep.mubr.msk.f32.mxu0 %vm553_vm2, %v4572_v29 }
 0x9f8   :  { %v4509_v55 = vadd.f32 %v9100_v33, %v6819_v34  ;;  %v4503_v59 = vpop.f32.mrb[223].mxu0  ;;  %6871 = vmatmul.mubr.msk.f32.gmra.mrb[252].mxu0 %vm553_vm2, %v4573_v54 }
 0x9f9   :  { %v4504_v40 = vadd.f32 %v9100_v33, %v4503_v59 }
 0x9fa   :  { %v4543_v21 = vmul.f32 0.05, %v4509_v55 }
 0x9fb   :  { %v4542_v56 = vmul.f32 0.05, %v4504_v40 }
 0x9fc   :  { %v4575_v45 = vmax.f32 %v4509_v55, %v4543_v21 }
 0x9fd   :  { %v4574_v42 = vmax.f32 %v4504_v40, %v4542_v56 }
 0x9ff   :  { %6873 = vmatprep.mubr.msk.f32.mxu0 %vm553_vm2, %v4574_v42 }
 0xa00   :  { %6874 = vmatmul.mubr.msk.f32.gmra.mrb[254].mxu0 %vm553_vm2, %v4575_v45 }
 0xa5b   :  { %v6830_v27 = vpop.f32.mrb[224].mxu0 }
 0xa5c   :  { %v4744_v15 = vadd.f32 %v9169_v57, %v6830_v27  ;;  %v4738_v58 = vpop.f32.mrb[225].mxu0 }
 0xa5d   :  { %v4739_v62 = vadd.f32 %v9169_v57, %v4738_v58 }
 0xa5e   :  { %v4898_v33 = vmul.f32 0.05, %v4744_v15 }
 0xa5f   :  { %v4897_v0 = vmul.f32 0.05, %v4739_v62 }
 0xa60   :  { %v4930_v6 = vmax.f32 %v4744_v15, %v4898_v33 }
 0xa61   :  { %v4929_v44 = vmax.f32 %v4739_v62, %v4897_v0 }
 0xa63   :  { %v6833_v43 = vpop.f32.mrb[226].mxu0  ;;  %6884 = vmatprep.mubr.msk.f32.mxu1 %vm553_vm2, %v4929_v44 }
 0xa64   :  { %v4754_v12 = vadd.f32 %v9169_v57, %v6833_v43  ;;  %v4748_v32 = vpop.f32.mrb[227].mxu0  ;;  %6885 = vmatmul.mubr.msk.f32.vlgmr.msra.gmra.mrb[224].mxu1 %vm553_vm2, %v4930_v6 }
 0xa65   :  { %v4749_v18 = vadd.f32 %v9169_v57, %v4748_v32 }
 0xa66   :  { %v4900_v60 = vmul.f32 0.05, %v4754_v12 }
 0xa67   :  { %v4899_v24 = vmul.f32 0.05, %v4749_v18 }
 0xa68   :  { %v4932_v30 = vmax.f32 %v4754_v12, %v4900_v60 }
 0xa69   :  { %v4931_v41 = vmax.f32 %v4749_v18, %v4899_v24 }
 0xa6b   :  { %v6836_v25 = vpop.f32.mrb[228].mxu0  ;;  %6887 = vmatprep.mubr.msk.f32.mxu1 %vm553_vm2, %v4931_v41 }
 0xa6c   :  { %v4764_v37 = vadd.f32 %v9169_v57, %v6836_v25  ;;  %v4758_v63 = vpop.f32.mrb[229].mxu0  ;;  %6888 = vmatmul.mubr.msk.f32.gmra.mrb[226].mxu1 %vm553_vm2, %v4932_v30 }
 0xa6d   :  { %v4759_v2 = vadd.f32 %v9169_v57, %v4758_v63 }
 0xa6e   :  { %v4902_v46 = vmul.f32 0.05, %v4764_v37 }
 0xa6f   :  { %v4901_v9 = vmul.f32 0.05, %v4759_v2 }
 0xa70   :  { %v4934_v16 = vmax.f32 %v4764_v37, %v4902_v46 }
 0xa71   :  { %v4933_v4 = vmax.f32 %v4759_v2, %v4901_v9 }
 0xa73   :  { %v6839_v8 = vpop.f32.mrb[230].mxu0  ;;  %6890 = vmatprep.mubr.msk.f32.mxu1 %vm553_vm2, %v4933_v4 }
 0xa74   :  { %v4774_v23 = vadd.f32 %v9169_v57, %v6839_v8  ;;  %v4768_v47 = vpop.f32.mrb[231].mxu0  ;;  %6891 = vmatmul.mubr.msk.f32.gmra.mrb[228].mxu1 %vm553_vm2, %v4934_v16 }
 0xa75   :  { %v4769_v31 = vadd.f32 %v9169_v57, %v4768_v47 }
 0xa76   :  { %v4904_v35 = vmul.f32 0.05, %v4774_v23 }
 0xa77   :  { %v4903_v61 = vmul.f32 0.05, %v4769_v31 }
 0xa78   :  { %v4936_v3 = vmax.f32 %v4774_v23, %v4904_v35 }
 0xa79   :  { %v4935_v48 = vmax.f32 %v4769_v31, %v4903_v61 }
 0xa7b   :  { %v6842_v49 = vpop.f32.mrb[232].mxu0  ;;  %6893 = vmatprep.mubr.msk.f32.mxu1 %vm553_vm2, %v4935_v48 }
 0xa7c   :  { %v4784_v5 = vadd.f32 %v9169_v57, %v6842_v49  ;;  %v4778_v14 = vpop.f32.mrb[233].mxu0  ;;  %6894 = vmatmul.mubr.msk.f32.gmra.mrb[230].mxu1 %vm553_vm2, %v4936_v3 }
 0xa7d   :  { %v4779_v22 = vadd.f32 %v9169_v57, %v4778_v14 }
 0xa7e   :  { %v4906_v36 = vmul.f32 0.05, %v4784_v5 }
 0xa7f   :  { %v4905_v50 = vmul.f32 0.05, %v4779_v22 }
 0xa80   :  { %v4938_v28 = vmax.f32 %v4784_v5, %v4906_v36 }
 0xa81   :  { %v4937_v51 = vmax.f32 %v4779_v22, %v4905_v50 }
 0xa83   :  { %v6845_v10 = vpop.f32.mrb[234].mxu0  ;;  %6896 = vmatprep.mubr.msk.f32.mxu1 %vm553_vm2, %v4937_v51 }
 0xa84   :  { %v4794_v52 = vadd.f32 %v9169_v57, %v6845_v10  ;;  %v4788_v39 = vpop.f32.mrb[235].mxu0  ;;  %6897 = vmatmul.mubr.msk.f32.gmra.mrb[232].mxu1 %vm553_vm2, %v4938_v28 }
 0xa85   :  { %v4789_v53 = vadd.f32 %v9169_v57, %v4788_v39 }
 0xa86   :  { %v4908_v11 = vmul.f32 0.05, %v4794_v52 }
 0xa87   :  { %v4907_v29 = vmul.f32 0.05, %v4789_v53 }
 0xa88   :  { %v4940_v34 = vmax.f32 %v4794_v52, %v4908_v11 }
 0xa89   :  { %v4939_v54 = vmax.f32 %v4789_v53, %v4907_v29 }
 0xa8b   :  { %v6848_v55 = vpop.f32.mrb[236].mxu0  ;;  %6899 = vmatprep.mubr.msk.f32.mxu1 %vm553_vm2, %v4939_v54 }
 0xa8c   :  { %v4804_v59 = vadd.f32 %v9169_v57, %v6848_v55  ;;  %v4798_v40 = vpop.f32.mrb[237].mxu0  ;;  %6900 = vmatmul.mubr.msk.f32.gmra.mrb[234].mxu1 %vm553_vm2, %v4940_v34 }
 0xa8d   :  { %v4799_v21 = vadd.f32 %v9169_v57, %v4798_v40 }
 0xa8e   :  { %v4910_v56 = vmul.f32 0.05, %v4804_v59 }
 0xa8f   :  { %v4909_v42 = vmul.f32 0.05, %v4799_v21 }
 0xa90   :  { %v4942_v27 = vmax.f32 %v4804_v59, %v4910_v56 }
 0xa91   :  { %v4941_v45 = vmax.f32 %v4799_v21, %v4909_v42 }
 0xa93   :  { %v6851_v15 = vpop.f32.mrb[238].mxu0  ;;  %6902 = vmatprep.mubr.msk.f32.mxu1 %vm553_vm2, %v4941_v45 }
 0xa94   :  { %v4814_v58 = vadd.f32 %v9169_v57, %v6851_v15  ;;  %v4808_v62 = vpop.f32.mrb[239].mxu0  ;;  %6903 = vmatmul.mubr.msk.f32.gmra.mrb[236].mxu1 %vm553_vm2, %v4942_v27 }
 0xa95   :  { %v4809_v33 = vadd.f32 %v9169_v57, %v4808_v62 }
 0xa96   :  { %v4912_v0 = vmul.f32 0.05, %v4814_v58 }
 0xa97   :  { %v4911_v44 = vmul.f32 0.05, %v4809_v33 }
 0xa98   :  { %v4944_v43 = vmax.f32 %v4814_v58, %v4912_v0 }
 0xa99   :  { %v4943_v6 = vmax.f32 %v4809_v33, %v4911_v44 }
 0xa9b   :  { %v6854_v12 = vpop.f32.mrb[240].mxu0  ;;  %6905 = vmatprep.mubr.msk.f32.mxu1 %vm553_vm2, %v4943_v6 }
 0xa9c   :  { %v4824_v32 = vadd.f32 %v9169_v57, %v6854_v12  ;;  %v4818_v18 = vpop.f32.mrb[241].mxu0  ;;  %6906 = vmatmul.mubr.msk.f32.gmra.mrb[238].mxu1 %vm553_vm2, %v4944_v43 }
 0xa9d   :  { %v4819_v60 = vadd.f32 %v9169_v57, %v4818_v18 }
 0xa9e   :  { %v4914_v24 = vmul.f32 0.05, %v4824_v32 }
 0xa9f   :  { %v4913_v41 = vmul.f32 0.05, %v4819_v60 }
 0xaa0   :  { %v4946_v25 = vmax.f32 %v4824_v32, %v4914_v24 }
 0xaa1   :  { %v4945_v30 = vmax.f32 %v4819_v60, %v4913_v41 }
 0xaa3   :  { %v6857_v37 = vpop.f32.mrb[242].mxu0  ;;  %6908 = vmatprep.mubr.msk.f32.mxu1 %vm553_vm2, %v4945_v30 }
 0xaa4   :  { %v4834_v63 = vadd.f32 %v9169_v57, %v6857_v37  ;;  %v4828_v2 = vpop.f32.mrb[243].mxu0  ;;  %6909 = vmatmul.mubr.msk.f32.gmra.mrb[240].mxu1 %vm553_vm2, %v4946_v25 }
 0xaa5   :  { %v4829_v46 = vadd.f32 %v9169_v57, %v4828_v2 }
 0xaa6   :  { %v4916_v9 = vmul.f32 0.05, %v4834_v63 }
 0xaa7   :  { %v4915_v4 = vmul.f32 0.05, %v4829_v46 }
 0xaa8   :  { %v4948_v8 = vmax.f32 %v4834_v63, %v4916_v9  ;;  %v9238_v63 = vld [vmem:[%s9585_s13] ss:$0 sm:$0xff]  ;;  %v7334_v9 = vld [vmem:[%s9572_s0 + $0x8] sm:$0xff] }
 0xaa9   :  { %v4947_v16 = vmax.f32 %v4829_v46, %v4915_v4  ;;  %v2594_v2 = vadd.f32 %v8745_v13, %v9238_v63  ;;  %v2589_v46 = vadd.f32 %v9238_v63, %v8747_v19  ;;  %v7336_v13 = vld [vmem:[%s9572_s0 + $0x108] sm:$0xff] }
 0xaab   :  { %v6860_v23 = vpop.f32.mrb[244].mxu0  ;;  %6911 = vmatprep.mubr.msk.f32.mxu1 %vm553_vm2, %v4947_v16  ;;  %v2748_v4 = vsub.f32 %v2594_v2, %v7334_v9  ;;  %v2624_v2 = vadd.f32 %v8757_v38, %v9238_v63  ;;  %v7347_v38 = vld [vmem:[%s9572_s0 + $0x30] sm:$0xff] }
 0xaac   :  { %v4844_v47 = vadd.f32 %v9169_v57, %v6860_v23  ;;  %v4838_v31 = vpop.f32.mrb[245].mxu0  ;;  %6912 = vmatmul.mubr.msk.f32.gmra.mrb[242].mxu1 %vm553_vm2, %v4948_v8  ;;  %v7335_v23 = vld [vmem:[%s9572_s0] sm:$0xff] }
 0xaad   :  { %v4839_v35 = vadd.f32 %v9169_v57, %v4838_v31 }
 0xaae   :  { %v4918_v61 = vmul.f32 0.05, %v4844_v47 }
 0xaaf   :  { %v4917_v48 = vmul.f32 0.05, %v4839_v35 }
 0xab0   :  { %v4950_v49 = vmax.f32 %v4844_v47, %v4918_v61  ;;  %v2747_v47 = vsub.f32 %v2589_v46, %v7335_v23 }
 0xab1   :  { %v4949_v3 = vmax.f32 %v4839_v35, %v4917_v48  ;;  %v7337_v35 = vld [vmem:[%s9572_s0 + $0x100] sm:$0xff]  ;;  %v2780_v48 = vmul.f32 %v2748_v4, %v2748_v4  ;;  %v2619_v4 = vadd.f32 %v9238_v63, %v8759_v7 }
 0xab3   :  { %v6863_v5 = vpop.f32.mrb[246].mxu0  ;;  %6914 = vmatprep.mubr.msk.f32.mxu1 %vm553_vm2, %v4949_v3  ;;  %v2604_v3 = vadd.f32 %v8749_v20, %v9238_v63  ;;  %v7339_v20 = vld [vmem:[%s9572_s0 + $0x10] sm:$0xff] }
 0xab4   :  { %v4854_v14 = vadd.f32 %v9169_v57, %v6863_v5  ;;  %v4848_v22 = vpop.f32.mrb[247].mxu0  ;;  %6915 = vmatmul.mubr.msk.f32.gmra.mrb[244].mxu1 %vm553_vm2, %v4950_v49  ;;  %v2779_v5 = vmul.f32 %v2747_v47, %v2747_v47 }
 0xab5   :  { %v4849_v36 = vadd.f32 %v9169_v57, %v4848_v22 }
 0xab6   :  { %v4920_v50 = vmul.f32 0.05, %v4854_v14 }
 0xab7   :  { %v4919_v51 = vmul.f32 0.05, %v4849_v36 }
 0xab8   :  { %v4952_v10 = vmax.f32 %v4854_v14, %v4920_v50  ;;  %v2599_v14 = vadd.f32 %v9238_v63, %v8751_v1 }
 0xab9   :  { %v4951_v28 = vmax.f32 %v4849_v36, %v4919_v51 }
 0xabb   :  { %v6866_v52 = vpop.f32.mrb[248].mxu0  ;;  %6917 = vmatprep.mubr.msk.f32.mxu1 %vm553_vm2, %v4951_v28  ;;  %v7338_v28 = vld [vmem:[%s9572_s0 + $0x18] sm:$0xff] }
 0xabc   :  { %v4864_v39 = vadd.f32 %v9169_v57, %v6866_v52  ;;  %v4858_v53 = vpop.f32.mrb[249].mxu0  ;;  %6918 = vmatmul.mubr.msk.f32.gmra.mrb[246].mxu1 %vm553_vm2, %v4952_v10  ;;  %v2750_v10 = vsub.f32 %v2604_v3, %v7338_v28 }
 0xabd   :  { %v4859_v11 = vadd.f32 %v9169_v57, %v4858_v53 }
 0xabe   :  { %v4922_v29 = vmul.f32 0.05, %v4864_v39 }
 0xabf   :  { %v4921_v54 = vmul.f32 0.05, %v4859_v11 }
 0xac0   :  { %v4954_v55 = vmax.f32 %v4864_v39, %v4922_v29 }
 0xac1   :  { %v4953_v34 = vmax.f32 %v4859_v11, %v4921_v54  ;;  %v2749_v11 = vsub.f32 %v2599_v14, %v7339_v20 }
 0xac3   :  { %v6869_v59 = vpop.f32.mrb[250].mxu0  ;;  %6920 = vmatprep.mubr.msk.f32.mxu1 %vm553_vm2, %v4953_v34  ;;  %v7340_v34 = vld [vmem:[%s9572_s0 + $0x118] sm:$0xff] }
 0xac4   :  { %v4874_v40 = vadd.f32 %v9169_v57, %v6869_v59  ;;  %v4868_v21 = vpop.f32.mrb[251].mxu0  ;;  %6921 = vmatmul.mubr.msk.f32.gmra.mrb[248].mxu1 %vm553_vm2, %v4954_v55  ;;  %v7341_v59 = vld [vmem:[%s9572_s0 + $0x110] sm:$0xff] }
 0xac5   :  { %v4869_v56 = vadd.f32 %v9169_v57, %v4868_v21  ;;  %v2782_v21 = vmul.f32 %v2750_v10, %v2750_v10 }
 0xac6   :  { %v4924_v42 = vmul.f32 0.05, %v4874_v40 }
 0xac7   :  { %v4923_v45 = vmul.f32 0.05, %v4869_v56 }
 0xac8   :  { %v4956_v15 = vmax.f32 %v4874_v40, %v4924_v42 }
 0xac9   :  { %v4955_v27 = vmax.f32 %v4869_v56, %v4923_v45  ;;  %v2614_v56 = vadd.f32 %v8753_v26, %v9238_v63  ;;  %v2781_v45 = vmul.f32 %v2749_v11, %v2749_v11  ;;  %v7343_v26 = vld [vmem:[%s9572_s0 + $0x20] sm:$0xff] }
 0xacb   :  { %v6872_v58 = vpop.f32.mrb[252].mxu0  ;;  %6923 = vmatprep.mubr.msk.f32.mxu1 %vm553_vm2, %v4955_v27  ;;  %v2609_v27 = vadd.f32 %v9238_v63, %v8755_v17 }
 0xacc   :  { %v4884_v62 = vadd.f32 %v9169_v57, %v6872_v58  ;;  %v4878_v33 = vpop.f32.mrb[253].mxu0  ;;  %6924 = vmatmul.mubr.msk.f32.gmra.mrb[250].mxu1 %vm553_vm2, %v4956_v15 }
 0xacd   :  { %v4879_v0 = vadd.f32 %v9169_v57, %v4878_v33 }
 0xace   :  { %v4926_v44 = vmul.f32 0.05, %v4884_v62 }
 0xacf   :  { %v4925_v6 = vmul.f32 0.05, %v4879_v0 }
 0xad0   :  { %v4958_v12 = vmax.f32 %v4884_v62, %v4926_v44 }
 0xad1   :  { %v4957_v43 = vmax.f32 %v4879_v0, %v4925_v6  ;;  %v7342_v0 = vld [vmem:[%s9572_s0 + $0x28] sm:$0xff] }
 0xad2   :  { %v2752_v44 = vsub.f32 %v2614_v56, %v7342_v0 }
 0xad3   :  { %v6875_v32 = vpop.f32.mrb[254].mxu0  ;;  %6926 = vmatprep.mubr.msk.f32.mxu1 %vm553_vm2, %v4957_v43 }
 0xad4   :  { %v4894_v18 = vadd.f32 %v9169_v57, %v6875_v32  ;;  %v4888_v60 = vpop.f32.mrb[255].mxu0  ;;  %6927 = vmatmul.mubr.msk.f32.gmra.mrb[252].mxu1 %vm553_vm2, %v4958_v12  ;;  %v2751_v12 = vsub.f32 %v2609_v27, %v7343_v26 }
 0xad5   :  { %v4889_v24 = vadd.f32 %v9169_v57, %v4888_v60  ;;  %v7344_v60 = vld [vmem:[%s9572_s0 + $0x128] sm:$0xff] }
 0xad6   :  { %v4928_v41 = vmul.f32 0.05, %v4894_v18  ;;  %v2783_v9 = vmul.f32 %v2751_v12, %v2751_v12 }
 0xad7   :  { %v4927_v30 = vmul.f32 0.05, %v4889_v24 }
 0xad8   :  { %v4960_v37 = vmax.f32 %v4894_v18, %v4928_v41 }
 0xad9   :  { %v4959_v25 = vmax.f32 %v4889_v24, %v4927_v30  ;;  %v7345_v30 = vld [vmem:[%s9572_s0 + $0x120] sm:$0xff] }
 0xadb   :  { %6929 = vmatprep.mubr.msk.f32.mxu1 %vm553_vm2, %v4959_v25 }
 0xadc   :  { %6930 = vmatmul.mubr.msk.f32.gmra.mrb[254].mxu1 %vm553_vm2, %v4960_v37  ;;  %v2784_v37 = vmul.f32 %v2752_v44, %v2752_v44 }
 0xb37   :  { %v6886_v57 = vpop.f32.mrb[224].mxu1 }
 0xb38   :  { %v5129_v16 = vadd.f32 %v6886_v57, %v9238_v63  ;;  %v5123_v8 = vpop.f32.mrb[225].mxu1 }
 0xb39   :  { %v5124_v31 = vadd.f32 %v9238_v63, %v5123_v8 }
 0xb3a   :  { %v5283_v19 = vsub.f32 %v5129_v16, %v7336_v13 }
 0xb3b   :  { %v5282_v61 = vsub.f32 %v5124_v31, %v7337_v35  ;;  %v7346_v31 = vld [vmem:[%s9572_s0 + $0x38] sm:$0xff] }
 0xb3c   :  { %v5315_v49 = vmul.f32 %v5283_v19, %v5283_v19  ;;  %v2754_v13 = vsub.f32 %v2624_v2, %v7346_v31 }
 0xb3d   :  { %v5314_v22 = vmul.f32 %v5282_v61, %v5282_v61  ;;  %v2753_v61 = vsub.f32 %v2619_v4, %v7347_v38  ;;  %v9744_v38 = vld [vmem:[#allocation9_spill] sm:$0xff] }
 0xb3e   :  { %v5347_v36 = vadd.f32 %v5315_v49, %v2780_v48  ;;  %v7348_v49 = vld [vmem:[%s9572_s0 + $0x138] sm:$0xff] }
 0xb3f   :  { %v5346_v50 = vadd.f32 %v5314_v22, %v2779_v5  ;;  %v6889_v51 = vpop.f32.mrb[226].mxu1  ;;  %v7349_v22 = vld [vmem:[%s9572_s0 + $0x130] sm:$0xff] }
 0xb40   :  { %v5379_v52 = vsel %vm152_vm1, %v5347_v36, 0.0  ;;  %v5139_v39 = vadd.f32 %v6889_v51, %v9238_v63  ;;  %v5133_v53 = vpop.f32.mrb[227].mxu1  ;;  %v9740_v51 = vld [vmem:[#allocation5_spill] sm:$0xff] }
 0xb41   :  { %v5378_v1 = vsel %vm152_vm1, %v5346_v50, 0.0  ;;  %v5134_v29 = vadd.f32 %v9238_v63, %v5133_v53  ;;  %v2786_v50 = vmul.f32 %v2754_v13, %v2754_v13  ;;  %v2634_v28 = vadd.f32 %v9740_v51, %v9238_v63  ;;  %v9741_v53 = vld [vmem:[#allocation6_spill] sm:$0xff]  ;;  %v7358_v51 = vld [vmem:[%s9572_s0 + $0x68] sm:$0xff] }
 0xb42   :  { %v5380_v54 = vadd.f32 %v5379_v52, %v5378_v1  ;;  %v5285_v55 = vsub.f32 %v5139_v39, %v7340_v34  ;;  %v2785_v39 = vmul.f32 %v2753_v61, %v2753_v61  ;;  %v2629_v20 = vadd.f32 %v9238_v63, %v9741_v53  ;;  %v7350_v34 = vld [vmem:[%s9572_s0 + $0x48] sm:$0xff]  ;;  %v7357_v13 = vld [vmem:[%s9572_s0 + $0x150] sm:$0xff] }
 0xb43   :  { %v5284_v40 = vsub.f32 %v5134_v29, %v7341_v59  ;;  %v2654_v61 = vadd.f32 %v9744_v38, %v9238_v63  ;;  %v7366_v38 = vld [vmem:[%s9572_s0 + $0x88] sm:$0xff] }
 0xb44   :  { %v5317_v42 = vmul.f32 %v5285_v55, %v5285_v55  ;;  %v2756_v55 = vsub.f32 %v2634_v28, %v7350_v34 }
 0xb45   :  { %v5316_v15 = vmul.f32 %v5284_v40, %v5284_v40  ;;  %v2760_v28 = vsub.f32 %v2654_v61, %v7358_v51 }
 0xb46   :  { %v5349_v58 = vadd.f32 %v5317_v42, %v2782_v21  ;;  %v7351_v21 = vld [vmem:[%s9572_s0 + $0x40] sm:$0xff]  ;;  %v2788_v44 = vmul.f32 %v2756_v55, %v2756_v55 }
 0xb47   :  { %v5348_v62 = vadd.f32 %v5316_v15, %v2781_v45  ;;  %v6892_v33 = vpop.f32.mrb[228].mxu1  ;;  %v2755_v56 = vsub.f32 %v2629_v20, %v7351_v21  ;;  %v7352_v15 = vld [vmem:[%s9572_s0 + $0x148] sm:$0xff]  ;;  %v7361_v55 = vld [vmem:[%s9572_s0 + $0x160] sm:$0xff]  ;;  %v9746_v21 = vld [vmem:[#allocation11_spill] sm:$0xff] }
 0xb48   :  { %v5149_v6 = vadd.f32 %v6892_v33, %v9238_v63  ;;  %v5143_v43 = vpop.f32.mrb[229].mxu1  ;;  %v5383_v41 = vsel %vm152_vm1, %v5349_v58, 0.0  ;;  %v7353_v33 = vld [vmem:[%s9572_s0 + $0x140] sm:$0xff] }
 0xb49   :  { %v5381_v32 = vsel %vm152_vm1, %v5348_v62, 0.0  ;;  %v5144_v17 = vadd.f32 %v9238_v63, %v5143_v43 }
 0xb4a   :  { %v5382_v18 = vadd.f32 %v5381_v32, %v5380_v54  ;;  %v5287_v24 = vsub.f32 %v5149_v6, %v7344_v60  ;;  %v9742_v6 = vld [vmem:[#allocation7_spill] sm:$0xff]  ;;  %v2787_v32 = vmul.f32 %v2755_v56, %v2755_v56  ;;  %v2664_v56 = vadd.f32 %v9746_v21, %v9238_v63 }
 0xb4b   :  { %v5286_v25 = vsub.f32 %v5144_v17, %v7345_v30  ;;  %v2644_v43 = vadd.f32 %v9742_v6, %v9238_v63  ;;  %v9743_v17 = vld [vmem:[#allocation8_spill] sm:$0xff]  ;;  %v7362_v6 = vld [vmem:[%s9572_s0 + $0x78] sm:$0xff] }
 0xb4c   :  { %v5319_v46 = vmul.f32 %v5287_v24, %v5287_v24  ;;  %v5384_v57 = vadd.f32 %v5383_v41, %v5382_v18  ;;  %v2639_v18 = vadd.f32 %v9238_v63, %v9743_v17  ;;  %v7370_v21 = vld [vmem:[%s9572_s0 + $0x98] sm:$0xff] }
 0xb4d   :  { %v5318_v16 = vmul.f32 %v5286_v25, %v5286_v25  ;;  %v7354_v25 = vld [vmem:[%s9572_s0 + $0x58] sm:$0xff] }
 0xb4e   :  { %v5351_v8 = vadd.f32 %v5319_v46, %v2784_v37  ;;  %v2758_v37 = vsub.f32 %v2644_v43, %v7354_v25  ;;  %v2762_v43 = vsub.f32 %v2664_v56, %v7362_v6 }
 0xb4f   :  { %v5350_v23 = vadd.f32 %v5318_v16, %v2783_v9  ;;  %v6895_v47 = vpop.f32.mrb[230].mxu1 }
 0xb50   :  { %v5159_v19 = vadd.f32 %v6895_v47, %v9238_v63  ;;  %v5153_v35 = vpop.f32.mrb[231].mxu1  ;;  %v5387_v14 = vsel %vm152_vm1, %v5351_v8, 0.0 }
 0xb51   :  { %v5385_v48 = vsel %vm152_vm1, %v5350_v23, 0.0  ;;  %v5154_v7 = vadd.f32 %v9238_v63, %v5153_v35  ;;  %v7356_v23 = vld [vmem:[%s9572_s0 + $0x158] sm:$0xff]  ;;  %v2790_v35 = vmul.f32 %v2758_v37, %v2758_v37  ;;  %v7365_v37 = vld [vmem:[%s9572_s0 + $0x170] sm:$0xff] }
 0xb52   :  { %v5386_v3 = vadd.f32 %v5385_v48, %v5384_v57  ;;  %v5289_v5 = vsub.f32 %v5159_v19, %v7348_v49  ;;  %v7355_v57 = vld [vmem:[%s9572_s0 + $0x50] sm:$0xff] }
 0xb53   :  { %v5288_v36 = vsub.f32 %v5154_v7, %v7349_v22  ;;  %v2757_v9 = vsub.f32 %v2639_v18, %v7355_v57  ;;  %v9745_v49 = vld [vmem:[#allocation10_spill] sm:$0xff]  ;;  %v9748_v57 = vld [vmem:[#allocation13_spill] sm:$0xff] }
 0xb54   :  { %v5321_v10 = vmul.f32 %v5289_v5, %v5289_v5  ;;  %v5388_v52 = vadd.f32 %v5387_v14, %v5386_v3  ;;  %v2649_v5 = vadd.f32 %v9238_v63, %v9745_v49 }
 0xb55   :  { %v5320_v11 = vmul.f32 %v5288_v36, %v5288_v36  ;;  %v2789_v3 = vmul.f32 %v2757_v9, %v2757_v9  ;;  %v2674_v9 = vadd.f32 %v9748_v57, %v9238_v63  ;;  %v7374_v57 = vld [vmem:[%s9572_s0 + $0xa8] sm:$0xff] }
 0xb56   :  { %v5353_v1 = vadd.f32 %v5321_v10, %v2786_v50 }
 0xb57   :  { %v5352_v29 = vadd.f32 %v5320_v11, %v2785_v39  ;;  %v6898_v54 = vpop.f32.mrb[232].mxu1  ;;  %v7359_v39 = vld [vmem:[%s9572_s0 + $0x60] sm:$0xff]  ;;  %v2764_v61 = vsub.f32 %v2674_v9, %v7366_v38 }
 0xb58   :  { %v5169_v59 = vadd.f32 %v6898_v54, %v9238_v63  ;;  %v5163_v40 = vpop.f32.mrb[233].mxu1  ;;  %v5391_v62 = vsel %vm152_vm1, %v5353_v1, 0.0  ;;  %v2759_v53 = vsub.f32 %v2649_v5, %v7359_v39  ;;  %v9750_v39 = vld [vmem:[#allocation15_spill] sm:$0xff] }
 0xb59   :  { %v5389_v42 = vsel %vm152_vm1, %v5352_v29, 0.0  ;;  %v5164_v45 = vadd.f32 %v9238_v63, %v5163_v40  ;;  %v7360_v29 = vld [vmem:[%s9572_s0 + $0x168] sm:$0xff]  ;;  %v2792_v40 = vmul.f32 %v2760_v28, %v2760_v28  ;;  %v7369_v28 = vld [vmem:[%s9572_s0 + $0x180] sm:$0xff] }
 0xb5a   :  { %v5390_v27 = vadd.f32 %v5389_v42, %v5388_v52  ;;  %v5291_v58 = vsub.f32 %v5169_v59, %v7352_v15  ;;  %v9747_v15 = vld [vmem:[#allocation12_spill] sm:$0xff] }
 0xb5b   :  { %v5290_v0 = vsub.f32 %v5164_v45, %v7353_v33 }
 0xb5c   :  { %v5323_v26 = vmul.f32 %v5291_v58, %v5291_v58  ;;  %v5392_v12 = vadd.f32 %v5391_v62, %v5390_v27  ;;  %v2791_v27 = vmul.f32 %v2759_v53, %v2759_v53  ;;  %v2659_v58 = vadd.f32 %v9238_v63, %v9747_v15 }
 0xb5d   :  { %v5322_v60 = vmul.f32 %v5290_v0, %v5290_v0  ;;  %v2684_v53 = vadd.f32 %v9750_v39, %v9238_v63  ;;  %v7378_v39 = vld [vmem:[%s9572_s0 + $0xb8] sm:$0xff] }
 0xb5e   :  { %v5355_v24 = vadd.f32 %v5323_v26, %v2788_v44 }
 0xb5f   :  { %v5354_v41 = vadd.f32 %v5322_v60, %v2787_v32  ;;  %v6901_v30 = vpop.f32.mrb[234].mxu1  ;;  %v7363_v32 = vld [vmem:[%s9572_s0 + $0x70] sm:$0xff]  ;;  %v2766_v56 = vsub.f32 %v2684_v53, %v7370_v21 }
 0xb60   :  { %v5179_v2 = vadd.f32 %v6901_v30, %v9238_v63  ;;  %v5173_v46 = vpop.f32.mrb[235].mxu1  ;;  %v5395_v31 = vsel %vm152_vm1, %v5355_v24, 0.0  ;;  %v2761_v17 = vsub.f32 %v2659_v58, %v7363_v32  ;;  %v9752_v32 = vld [vmem:[#allocation17_spill] sm:$0xff] }
 0xb61   :  { %v5393_v4 = vsel %vm152_vm1, %v5354_v41, 0.0  ;;  %v5174_v16 = vadd.f32 %v9238_v63, %v5173_v46  ;;  %v7364_v41 = vld [vmem:[%s9572_s0 + $0x178] sm:$0xff]  ;;  %v2794_v46 = vmul.f32 %v2762_v43, %v2762_v43  ;;  %v7373_v43 = vld [vmem:[%s9572_s0 + $0x190] sm:$0xff] }
 0xb62   :  { %v5394_v8 = vadd.f32 %v5393_v4, %v5392_v12  ;;  %v5293_v47 = vsub.f32 %v5179_v2, %v7356_v23  ;;  %v9749_v23 = vld [vmem:[#allocation14_spill] sm:$0xff] }
 0xb63   :  { %v5292_v19 = vsub.f32 %v5174_v16, %v7357_v13 }
 0xb64   :  { %v5325_v48 = vmul.f32 %v5293_v47, %v5293_v47  ;;  %v5396_v7 = vadd.f32 %v5395_v31, %v5394_v8  ;;  %v2793_v8 = vmul.f32 %v2761_v17, %v2761_v17  ;;  %v2669_v47 = vadd.f32 %v9238_v63, %v9749_v23 }
 0xb65   :  { %v5324_v14 = vmul.f32 %v5292_v19, %v5292_v19  ;;  %v2694_v17 = vadd.f32 %v9752_v32, %v9238_v63  ;;  %v7382_v32 = vld [vmem:[%s9572_s0 + $0xc8] sm:$0xff] }
 0xb66   :  { %v5357_v22 = vadd.f32 %v5325_v48, %v2790_v35 }
 0xb67   :  { %v5356_v36 = vadd.f32 %v5324_v14, %v2789_v3  ;;  %v6904_v50 = vpop.f32.mrb[236].mxu1  ;;  %v7367_v3 = vld [vmem:[%s9572_s0 + $0x80] sm:$0xff]  ;;  %v2768_v9 = vsub.f32 %v2694_v17, %v7374_v57 }
 0xb68   :  { %v5189_v10 = vadd.f32 %v6904_v50, %v9238_v63  ;;  %v5183_v52 = vpop.f32.mrb[237].mxu1  ;;  %v5399_v34 = vsel %vm152_vm1, %v5357_v22, 0.0  ;;  %v2763_v49 = vsub.f32 %v2669_v47, %v7367_v3  ;;  %v9754_v3 = vld [vmem:[#allocation19_spill] sm:$0xff] }
 0xb69   :  { %v5397_v20 = vsel %vm152_vm1, %v5356_v36, 0.0  ;;  %v5184_v11 = vadd.f32 %v9238_v63, %v5183_v52  ;;  %v7368_v36 = vld [vmem:[%s9572_s0 + $0x188] sm:$0xff]  ;;  %v2796_v52 = vmul.f32 %v2764_v61, %v2764_v61  ;;  %v7377_v61 = vld [vmem:[%s9572_s0 + $0x1a0] sm:$0xff] }
 0xb6a   :  { %v5398_v1 = vadd.f32 %v5397_v20, %v5396_v7  ;;  %v5295_v54 = vsub.f32 %v5189_v10, %v7360_v29  ;;  %v9751_v29 = vld [vmem:[#allocation16_spill] sm:$0xff] }
 0xb6b   :  { %v5294_v59 = vsub.f32 %v5184_v11, %v7361_v55 }
 0xb6c   :  { %v5327_v42 = vmul.f32 %v5295_v54, %v5295_v54  ;;  %v5400_v45 = vadd.f32 %v5399_v34, %v5398_v1  ;;  %v2795_v1 = vmul.f32 %v2763_v49, %v2763_v49  ;;  %v2679_v54 = vadd.f32 %v9238_v63, %v9751_v29 }
 0xb6d   :  { %v5326_v62 = vmul.f32 %v5294_v59, %v5294_v59  ;;  %v2704_v49 = vadd.f32 %v9754_v3, %v9238_v63  ;;  %v7386_v3 = vld [vmem:[%s9572_s0 + $0xd8] sm:$0xff] }
 0xb6e   :  { %v5359_v33 = vadd.f32 %v5327_v42, %v2792_v40 }
 0xb6f   :  { %v5358_v0 = vadd.f32 %v5326_v62, %v2791_v27  ;;  %v6907_v44 = vpop.f32.mrb[238].mxu1  ;;  %v7371_v27 = vld [vmem:[%s9572_s0 + $0x90] sm:$0xff]  ;;  %v2770_v53 = vsub.f32 %v2704_v49, %v7378_v39 }
 0xb70   :  { %v5199_v26 = vadd.f32 %v6907_v44, %v9238_v63  ;;  %v5193_v12 = vpop.f32.mrb[239].mxu1  ;;  %v5403_v25 = vsel %vm152_vm1, %v5359_v33, 0.0  ;;  %v2765_v15 = vsub.f32 %v2679_v54, %v7371_v27  ;;  %v9756_v27 = vld [vmem:[#allocation21_spill] sm:$0xff] }
 0xb71   :  { %v5401_v18 = vsel %vm152_vm1, %v5358_v0, 0.0  ;;  %v5194_v60 = vadd.f32 %v9238_v63, %v5193_v12  ;;  %v7372_v0 = vld [vmem:[%s9572_s0 + $0x198] sm:$0xff]  ;;  %v2798_v12 = vmul.f32 %v2766_v56, %v2766_v56  ;;  %v7381_v56 = vld [vmem:[%s9572_s0 + $0x1b0] sm:$0xff] }
 0xb72   :  { %v5402_v24 = vadd.f32 %v5401_v18, %v5400_v45  ;;  %v5297_v30 = vsub.f32 %v5199_v26, %v7364_v41  ;;  %v9753_v41 = vld [vmem:[#allocation18_spill] sm:$0xff] }
 0xb73   :  { %v5296_v2 = vsub.f32 %v5194_v60, %v7365_v37 }
 0xb74   :  { %v5329_v4 = vmul.f32 %v5297_v30, %v5297_v30  ;;  %v5404_v16 = vadd.f32 %v5403_v25, %v5402_v24  ;;  %v2797_v24 = vmul.f32 %v2765_v15, %v2765_v15  ;;  %v2689_v30 = vadd.f32 %v9238_v63, %v9753_v41 }
 0xb75   :  { %v5328_v31 = vmul.f32 %v5296_v2, %v5296_v2  ;;  %v2714_v15 = vadd.f32 %v9756_v27, %v9238_v63  ;;  %v7390_v27 = vld [vmem:[%s9572_s0 + $0xe8] sm:$0xff] }
 0xb76   :  { %v5361_v13 = vadd.f32 %v5329_v4, %v2794_v46 }
 0xb77   :  { %v5360_v19 = vadd.f32 %v5328_v31, %v2793_v8  ;;  %v6910_v35 = vpop.f32.mrb[240].mxu1  ;;  %v7375_v8 = vld [vmem:[%s9572_s0 + $0xa0] sm:$0xff]  ;;  %v2772_v17 = vsub.f32 %v2714_v15, %v7382_v32 }
 0xb78   :  { %v5209_v48 = vadd.f32 %v6910_v35, %v9238_v63  ;;  %v5203_v7 = vpop.f32.mrb[241].mxu1  ;;  %v5407_v51 = vsel %vm152_vm1, %v5361_v13, 0.0  ;;  %v2767_v23 = vsub.f32 %v2689_v30, %v7375_v8  ;;  %v9758_v8 = vld [vmem:[#allocation23_spill] sm:$0xff] }
 0xb79   :  { %v5405_v5 = vsel %vm152_vm1, %v5360_v19, 0.0  ;;  %v5204_v14 = vadd.f32 %v9238_v63, %v5203_v7  ;;  %v7376_v19 = vld [vmem:[%s9572_s0 + $0x1a8] sm:$0xff]  ;;  %v2800_v7 = vmul.f32 %v2768_v9, %v2768_v9  ;;  %v7385_v9 = vld [vmem:[%s9572_s0 + $0x1c0] sm:$0xff] }
 0xb7a   :  { %v5406_v22 = vadd.f32 %v5405_v5, %v5404_v16  ;;  %v5299_v50 = vsub.f32 %v5209_v48, %v7368_v36  ;;  %v9755_v36 = vld [vmem:[#allocation20_spill] sm:$0xff] }
 0xb7b   :  { %v5298_v10 = vsub.f32 %v5204_v14, %v7369_v28 }
 0xb7c   :  { %v5331_v20 = vmul.f32 %v5299_v50, %v5299_v50  ;;  %v5408_v11 = vadd.f32 %v5407_v51, %v5406_v22  ;;  %v2799_v22 = vmul.f32 %v2767_v23, %v2767_v23  ;;  %v2699_v50 = vadd.f32 %v9238_v63, %v9755_v36 }
 0xb7d   :  { %v5330_v34 = vmul.f32 %v5298_v10, %v5298_v10  ;;  %v2724_v23 = vadd.f32 %v9758_v8, %v9238_v63  ;;  %v7394_v8 = vld [vmem:[%s9572_s0 + $0xf8] sm:$0xff] }
 0xb7e   :  { %v5363_v55 = vadd.f32 %v5331_v20, %v2796_v52 }
 0xb7f   :  { %v5362_v59 = vadd.f32 %v5330_v34, %v2795_v1  ;;  %v6913_v40 = vpop.f32.mrb[242].mxu1  ;;  %v7379_v1 = vld [vmem:[%s9572_s0 + $0xb0] sm:$0xff]  ;;  %v2774_v49 = vsub.f32 %v2724_v23, %v7386_v3 }
 0xb80   :  { %v5219_v42 = vadd.f32 %v6913_v40, %v9238_v63  ;;  %v5213_v45 = vpop.f32.mrb[243].mxu1  ;;  %v5411_v6 = vsel %vm152_vm1, %v5363_v55, 0.0  ;;  %v2769_v29 = vsub.f32 %v2699_v50, %v7379_v1  ;;  %v9760_v1 = vld [vmem:[#allocation25_spill] sm:$0xff]  ;;  %v7397_v3 = vld [vmem:[%s9572_s0 + $0x1f0] sm:$0xff] }
 0xb81   :  { %v5409_v58 = vsel %vm152_vm1, %v5362_v59, 0.0  ;;  %v5214_v62 = vadd.f32 %v9238_v63, %v5213_v45  ;;  %v7380_v59 = vld [vmem:[%s9572_s0 + $0x1b8] sm:$0xff]  ;;  %v2802_v45 = vmul.f32 %v2770_v53, %v2770_v53  ;;  %v7389_v53 = vld [vmem:[%s9572_s0 + $0x1d0] sm:$0xff] }
 0xb82   :  { %v5410_v33 = vadd.f32 %v5409_v58, %v5408_v11  ;;  %v5301_v44 = vsub.f32 %v5219_v42, %v7372_v0  ;;  %v9757_v0 = vld [vmem:[#allocation22_spill] sm:$0xff] }
 0xb83   :  { %v5300_v26 = vsub.f32 %v5214_v62, %v7373_v43 }
 0xb84   :  { %v5333_v18 = vmul.f32 %v5301_v44, %v5301_v44  ;;  %v5412_v60 = vadd.f32 %v5411_v6, %v5410_v33  ;;  %v2801_v33 = vmul.f32 %v2769_v29, %v2769_v29  ;;  %v2709_v44 = vadd.f32 %v9238_v63, %v9757_v0 }
 0xb85   :  { %v5332_v25 = vmul.f32 %v5300_v26, %v5300_v26  ;;  %v2734_v29 = vadd.f32 %v9760_v1, %v9238_v63 }
 0xb86   :  { %v5365_v37 = vadd.f32 %v5333_v18, %v2798_v12 }
 0xb87   :  { %v5364_v2 = vadd.f32 %v5332_v25, %v2797_v24  ;;  %v6916_v46 = vpop.f32.mrb[244].mxu1  ;;  %v7383_v24 = vld [vmem:[%s9572_s0 + $0xc0] sm:$0xff]  ;;  %v2776_v15 = vsub.f32 %v2734_v29, %v7390_v27 }
 0xb88   :  { %v5229_v4 = vadd.f32 %v6916_v46, %v9238_v63  ;;  %v5223_v16 = vpop.f32.mrb[245].mxu1  ;;  %v5415_v38 = vsel %vm152_vm1, %v5365_v37, 0.0  ;;  %v2771_v41 = vsub.f32 %v2709_v44, %v7383_v24  ;;  %v9762_v24 = vld [vmem:[#allocation27_spill] sm:$0xff] }
 0xb89   :  { %v5413_v47 = vsel %vm152_vm1, %v5364_v2, 0.0  ;;  %v5224_v31 = vadd.f32 %v9238_v63, %v5223_v16  ;;  %v7384_v2 = vld [vmem:[%s9572_s0 + $0x1c8] sm:$0xff]  ;;  %v2804_v16 = vmul.f32 %v2772_v17, %v2772_v17  ;;  %v7393_v17 = vld [vmem:[%s9572_s0 + $0x1e0] sm:$0xff] }
 0xb8a   :  { %v5414_v13 = vadd.f32 %v5413_v47, %v5412_v60  ;;  %v5303_v35 = vsub.f32 %v5229_v4, %v7376_v19  ;;  %v9759_v19 = vld [vmem:[#allocation24_spill] sm:$0xff] }
 0xb8b   :  { %v5302_v48 = vsub.f32 %v5224_v31, %v7377_v61 }
 0xb8c   :  { %v5335_v5 = vmul.f32 %v5303_v35, %v5303_v35  ;;  %v5416_v14 = vadd.f32 %v5415_v38, %v5414_v13  ;;  %v2803_v13 = vmul.f32 %v2771_v41, %v2771_v41  ;;  %v2719_v35 = vadd.f32 %v9238_v63, %v9759_v19 }
 0xb8d   :  { %v5334_v51 = vmul.f32 %v5302_v48, %v5302_v48  ;;  %v2744_v41 = vadd.f32 %v9762_v24, %v9238_v63 }
 0xb8e   :  { %v5367_v28 = vadd.f32 %v5335_v5, %v2800_v7 }
 0xb8f   :  { %v5366_v10 = vadd.f32 %v5334_v51, %v2799_v22  ;;  %v6919_v52 = vpop.f32.mrb[246].mxu1  ;;  %v7387_v22 = vld [vmem:[%s9572_s0 + $0xd0] sm:$0xff]  ;;  %v2778_v23 = vsub.f32 %v2744_v41, %v7394_v8 }
 0xb90   :  { %v5239_v20 = vadd.f32 %v6919_v52, %v9238_v63  ;;  %v5233_v11 = vpop.f32.mrb[247].mxu1  ;;  %v5419_v21 = vsel %vm152_vm1, %v5367_v28, 0.0  ;;  %v2773_v36 = vsub.f32 %v2719_v35, %v7387_v22 }
 0xb91   :  { %v5417_v54 = vsel %vm152_vm1, %v5366_v10, 0.0  ;;  %v5234_v34 = vadd.f32 %v9238_v63, %v5233_v11  ;;  %v7388_v10 = vld [vmem:[%s9572_s0 + $0x1d8] sm:$0xff]  ;;  %v2806_v11 = vmul.f32 %v2774_v49, %v2774_v49 }
 0xb92   :  { %v5418_v55 = vadd.f32 %v5417_v54, %v5416_v14  ;;  %v5305_v40 = vsub.f32 %v5239_v20, %v7380_v59  ;;  %v9761_v59 = vld [vmem:[#allocation26_spill] sm:$0xff] }
 0xb93   :  { %v5304_v42 = vsub.f32 %v5234_v34, %v7381_v56 }
 0xb94   :  { %v5337_v58 = vmul.f32 %v5305_v40, %v5305_v40  ;;  %v5420_v62 = vadd.f32 %v5419_v21, %v5418_v55  ;;  %v2805_v55 = vmul.f32 %v2773_v36, %v2773_v36  ;;  %v2729_v40 = vadd.f32 %v9238_v63, %v9761_v59 }
 0xb95   :  { %v5336_v6 = vmul.f32 %v5304_v42, %v5304_v42 }
 0xb96   :  { %v5369_v43 = vadd.f32 %v5337_v58, %v2802_v45 }
 0xb97   :  { %v5368_v26 = vadd.f32 %v5336_v6, %v2801_v33  ;;  %v6922_v12 = vpop.f32.mrb[248].mxu1  ;;  %v7391_v33 = vld [vmem:[%s9572_s0 + $0xe0] sm:$0xff] }
 0xb98   :  { %v5249_v18 = vadd.f32 %v6922_v12, %v9238_v63  ;;  %v5243_v60 = vpop.f32.mrb[249].mxu1  ;;  %v5423_v57 = vsel %vm152_vm1, %v5369_v43, 0.0  ;;  %v2775_v0 = vsub.f32 %v2729_v40, %v7391_v33 }
 0xb99   :  { %v5421_v30 = vsel %vm152_vm1, %v5368_v26, 0.0  ;;  %v5244_v25 = vadd.f32 %v9238_v63, %v5243_v60  ;;  %v7392_v26 = vld [vmem:[%s9572_s0 + $0x1e8] sm:$0xff]  ;;  %v2808_v60 = vmul.f32 %v2776_v15, %v2776_v15 }
 0xb9a   :  { %v5422_v37 = vadd.f32 %v5421_v30, %v5420_v62  ;;  %v5307_v46 = vsub.f32 %v5249_v18, %v7384_v2  ;;  %v9763_v2 = vld [vmem:[#allocation28_spill] sm:$0xff] }
 0xb9b   :  { %v5306_v4 = vsub.f32 %v5244_v25, %v7385_v9 }
 0xb9c   :  { %v5339_v47 = vmul.f32 %v5307_v46, %v5307_v46  ;;  %v5424_v31 = vadd.f32 %v5423_v57, %v5422_v37  ;;  %v2807_v37 = vmul.f32 %v2775_v0, %v2775_v0  ;;  %v2739_v46 = vadd.f32 %v9238_v63, %v9763_v2 }
 0xb9d   :  { %v5338_v38 = vmul.f32 %v5306_v4, %v5306_v4 }
 0xb9e   :  { %v5371_v61 = vadd.f32 %v5339_v47, %v2804_v16 }
 0xb9f   :  { %v5370_v48 = vadd.f32 %v5338_v38, %v2803_v13  ;;  %v6925_v7 = vpop.f32.mrb[250].mxu1  ;;  %v7395_v13 = vld [vmem:[%s9572_s0 + $0xf0] sm:$0xff] }
 0xba0   :  { %v5259_v5 = vadd.f32 %v6925_v7, %v9238_v63  ;;  %v5253_v14 = vpop.f32.mrb[251].mxu1  ;;  %v5427_v39 = vsel %vm152_vm1, %v5371_v61, 0.0  ;;  %v2777_v19 = vsub.f32 %v2739_v46, %v7395_v13  ;;  %v7396_v61 = vld [vmem:[%s9572_s0 + $0x1f8] sm:$0xff]  ;;  %s7423_s0 = smov [#allocation2]  }
 0xba1   :  { %v5425_v50 = vsel %vm152_vm1, %v5370_v48, 0.0  ;;  %v5254_v51 = vadd.f32 %v9238_v63, %v5253_v14  ;;  %v2810_v14 = vmul.f32 %v2778_v23, %v2778_v23  ;;  %s5458_s4 = sshll.u32 %s7423_s0, 4  ;;  %s5459_s4 = int_to_ptr.vmem [resolvable:$true] %s5458_s4 }
 0xba2   :  { %v5426_v28 = vadd.f32 %v5425_v50, %v5424_v31  ;;  %v5309_v52 = vsub.f32 %v5259_v5, %v7388_v10  ;;  %v2809_v50 = vmul.f32 %v2777_v19, %v2777_v19  ;;  %s7398_s17 = scalar_lea.vmem %s5459_s4, 128  ;;  %p7403_p1 = scmp.lt.s32.totalorder %s5459_s4, %s5459_s4 }
 0xba3   :  { %v5308_v20 = vsub.f32 %v5254_v51, %v7389_v53  ;;  %p7399_p0 = scmp.ne.s32.totalorder %s5459_s4, %s7398_s17  ;;  %p7404_p2 = scmp.lt.s32.totalorder %s7398_s17, %s7398_s17 }
 0xba4   :  { %v5341_v54 = vmul.f32 %v5309_v52, %v5309_v52  ;;  %v5428_v34 = vadd.f32 %v5427_v39, %v5426_v28 }
 0xba5   :  { %v5340_v21 = vmul.f32 %v5308_v20, %v5308_v20  ;;  %p7405_p3 = por %p7404_p2, %p7403_p1 }
 0xba6   :  { %v5373_v56 = vadd.f32 %v5341_v54, %v2806_v11 }
 0xba7   :  { %v5372_v42 = vadd.f32 %v5340_v21, %v2805_v55  ;;  %v6928_v45 = vpop.f32.mrb[252].mxu1  ;;  %p7406_p4 = pnand %p7405_p3, %p7399_p0 }
 0xba8   :  { %v5269_v58 = vadd.f32 %v6928_v45, %v9238_v63  ;;  %v5263_v62 = vpop.f32.mrb[253].mxu1  ;;  %v5431_v32 = vsel %vm152_vm1, %v5373_v56, 0.0 }
 0xba9   :  { %v5429_v44 = vsel %vm152_vm1, %v5372_v42, 0.0  ;;  %v5264_v6 = vadd.f32 %v9238_v63, %v5263_v62 }
 0xbaa   :  { %v5430_v43 = vadd.f32 %v5429_v44, %v5428_v34  ;;  %v5311_v12 = vsub.f32 %v5269_v58, %v7392_v26 }
 0xbab   :  { %v5310_v18 = vsub.f32 %v5264_v6, %v7393_v17 }
 0xbac   :  { %v5343_v30 = vmul.f32 %v5311_v12, %v5311_v12  ;;  %v5432_v25 = vadd.f32 %v5431_v32, %v5430_v43 }
 0xbad   :  { %v5342_v57 = vmul.f32 %v5310_v18, %v5310_v18 }
 0xbae   :  { %v5375_v9 = vadd.f32 %v5343_v30, %v2808_v60 }
 0xbaf   :  { %v5374_v4 = vadd.f32 %v5342_v57, %v2807_v37  ;;  %v6931_v16 = vpop.f32.mrb[254].mxu1 }
 0xbb0   :  { %v5279_v47 = vadd.f32 %v6931_v16, %v9238_v63  ;;  %v5273_v31 = vpop.f32.mrb[255].mxu1  ;;  %v5435_v5 = vsel %vm152_vm1, %v5375_v9, 0.0 }
 0xbb1   :  { %v5433_v35 = vsel %vm152_vm1, %v5374_v4, 0.0  ;;  %v5274_v38 = vadd.f32 %v9238_v63, %v5273_v31 }
 0xbb2   :  { %v5313_v48 = vsub.f32 %v5279_v47, %v7396_v61  ;;  %v5434_v7 = vadd.f32 %v5433_v35, %v5432_v25 }
 0xbb3   :  { %v5312_v49 = vsub.f32 %v5274_v38, %v7397_v3 }
 0xbb4   :  { %v5345_v22 = vmul.f32 %v5313_v48, %v5313_v48  ;;  %v5436_v36 = vadd.f32 %v5435_v5, %v5434_v7 }
 0xbb5   :  { %v5344_v51 = vmul.f32 %v5312_v49, %v5312_v49 }
 0xbb6   :  { %v5377_v28 = vadd.f32 %v5345_v22, %v2810_v14 }
 0xbb7   :  { %v5376_v63 = vadd.f32 %v5344_v51, %v2809_v50 }
 0xbb8   :  { %v5439_v39 = vsel %vm152_vm1, %v5377_v28, 0.0 }
 0xbb9   :  { %v5437_v10 = vsel %vm152_vm1, %v5376_v63, 0.0 }
 0xbba   :  { %v5438_v52 = vadd.f32 %v5437_v10, %v5436_v36 }
 0xbbc   :  { %v5440_v53 = vadd.f32 %v5439_v39, %v5438_v52 }
 0xbbe   :  { %5441 = vadd.xlane.f32.xlu0 %v5440_v53 }
 0xc4b   :  { %v5442_v20 = vpop.xlane.xlu0 %5441 }
 0xc4c   :  { %v5443_v11 = vrot.slane %v5442_v20, 4 }
 0xc4e   :  { %v5444_v1 = vadd.f32 %v5443_v11, %v5442_v20 }
 0xc50   :  { %v5445_v29 = vrot.slane %v5444_v1, 2 }
 0xc52   :  { %v5446_v54 = vadd.f32 %v5445_v29, %v5444_v1 }
 0xc54   :  { %v5447_v34 = vrot.slane %v5446_v54, 1 }
 0xc56   :  { %v5448_v55 = vadd.f32 %v5447_v34, %v5446_v54 }
 0xc58   :  { %7100 = vpush %v5448_v55 }
 0xc89   :  { %s7101_s16 = spop %7100 }
 0xc8a   :  { %v5450_v59 = vstv %s7101_s16 }
 0xc8b   :  { %5451 = vst [vmem:[#allocation2] sm:$0xff] %v5450_v59 }
 0xc8c   :  { %7409 = shalt.err (!%p7406_p4)
}
 0xc8d   :  { %s7410_s19 = scalar_lea.hbm %s9586_s14, 128 }
 0xc8e   :  { %p7411_p5 = scmp.ne.s32.totalorder %s9586_s14, %s7410_s19  ;;  %p7414_p6 = scmp.lt.u32.totalorder %s7410_s19, %s9586_s14 }
 0xc90   :  { %p7416_p7 = pnand %p7414_p6, %p7411_p5 }
 0xc92   :  { %7419 = shalt.err (!%p7416_p7)
}
 0xc93   :  { %5461 = dma.vmem_to_hbm [thread:$0]  %s5459_s4, 128, %s9586_s14, [#allocation3]  }
 0xc94   :  { %7420 = dma.done.wait [#allocation3], 128  }
 0xc95   :  { %7421 = vsyncadd [#allocation3], 4294967168 }
 0xc96   :  { %5465 = vsyncpa [#allocation3], 1 }

// kernel: tpu_custom_call.1
= control target key start
LH: loop header
LB: loop body
LE: loop exit
PB: predicated region body
PF: predicated region fallthrough
CT: control target
= control target key end

     0   :  { %vm249_vm0 = vcmask 1043456   ;;  %vm152_vm1 = vcmask 31744   ;;  %s9572_s0 = inlined_call_operand.vmem [shape: f32[512,4], index: 0, kind: input, shape index: {}]   ;;  %s9573_s1 = inlined_call_operand.vmem [shape: f32[256,256], index: 1, kind: input, shape index: {}]   ;;  %s9574_s2 = inlined_call_operand.vmem [shape: f32[4,32], index: 2, kind: input, shape index: {}]   ;;  %s9575_s3 = inlined_call_operand.vmem [shape: f32[32,32], index: 3, kind: input, shape index: {}]   ;;  %s9576_s4 = inlined_call_operand.vmem [shape: f32[32,16], index: 4, kind: input, shape index: {}]   ;;  %s9577_s5 = inlined_call_operand.vmem [shape: f32[1,32], index: 5, kind: input, shape index: {}]   ;;  %s9578_s6 = inlined_call_operand.vmem [shape: f32[1,32], index: 6, kind: input, shape index: {}]   ;;  %s9579_s7 = inlined_call_operand.vmem [shape: f32[1,16], index: 7, kind: input, shape index: {}]   ;;  %s9580_s8 = inlined_call_operand.vmem [shape: f32[16,32], index: 8, kind: input, shape index: {}]   ;;  %s9581_s9 = inlined_call_operand.vmem [shape: f32[32,32], index: 9, kind: input, shape index: {}]   ;;  %s9582_s10 = inlined_call_operand.vmem [shape: f32[32,4], index: 10, kind: input, shape index: {}]   ;;  %s9583_s11 = inlined_call_operand.vmem [shape: f32[1,32], index: 11, kind: input, shape index: {}]   ;;  %s9584_s12 = inlined_call_operand.vmem [shape: f32[1,32], index: 12, kind: input, shape index: {}]   ;;  %s9585_s13 = inlined_call_operand.vmem [shape: f32[1,4], index: 13, kind: input, shape index: {}]   ;;  %s9586_s14 = inlined_call_operand.hbm [shape: f32[1,8,128], index: 14, kind: output, shape index: {}]  }
   0x1   :  { %v144_v0 = vld [vmem:[%s9574_s2] sm:$0xf]  ;;  %v113_v2 = vld [vmem:[%s9572_s0 + $0x8] sm:$0xff]  ;;  %v114_v3 = vld [vmem:[%s9572_s0 + $0x10] sm:$0xff] }
   0x2   :  { %v112_v1 = vld [vmem:[%s9572_s0] sm:$0xff]  ;;  %6280 = vmatprep.subr.msk.mxu0 %vm249_vm0, %v144_v0  ;;  %v115_v4 = vld [vmem:[%s9572_s0 + $0x18] sm:$0xff]  ;;  %v117_v6 = vld [vmem:[%s9572_s0 + $0x28] sm:$0xff] }
   0x3   :  { %6282 = vmatprep.mubr.msk.f32.mxu0 %vm152_vm1, %v112_v1  ;;  %6281 = vmatpush3.msk.msra.mxu0 %vm249_vm0, %v144_v0  ;;  %v116_v5 = vld [vmem:[%s9572_s0 + $0x20] sm:$0xff]  ;;  %v118_v7 = vld [vmem:[%s9572_s0 + $0x30] sm:$0xff] }
   0x4   :  { %6283 = vmatmul.mubr.msk.f32.vlgmr.msra.gmra.mrb[0].mxu0 %vm152_vm1, %v113_v2 }
   0x5   :  { %6285 = vmatprep.mubr.msk.f32.mxu0 %vm152_vm1, %v114_v3 }
   0x8   :  { %6286 = vmatmul.mubr.msk.f32.gmra.mrb[2].mxu0 %vm152_vm1, %v115_v4 }
   0x9   :  { %6288 = vmatprep.mubr.msk.f32.mxu0 %vm152_vm1, %v116_v5 }
   0xc   :  { %6289 = vmatmul.mubr.msk.f32.gmra.mrb[4].mxu0 %vm152_vm1, %v117_v6 }
   0xd   :  { %19 = vsyncpa [#allocation3], 0  ;;  %6291 = vmatprep.mubr.msk.f32.mxu0 %vm152_vm1, %v118_v7  ;;  %v119_v8 = vld [vmem:[%s9572_s0 + $0x38] sm:$0xff]  ;;  %v120_v9 = vld [vmem:[%s9572_s0 + $0x40] sm:$0xff]  ;;  %vm553_vm2 = vcmask 261120   ;;  %vm1633_vm3 = vcmask 130048  }
   0xe   :  { %v121_v10 = vld [vmem:[%s9572_s0 + $0x48] sm:$0xff]  ;;  %v122_v11 = vld [vmem:[%s9572_s0 + $0x50] sm:$0xff]  ;;  %v123_v12 = vld [vmem:[%s9572_s0 + $0x58] sm:$0xff] }
   0xf   :  { %v124_v13 = vld [vmem:[%s9572_s0 + $0x60] sm:$0xff]  ;;  %v125_v14 = vld [vmem:[%s9572_s0 + $0x68] sm:$0xff]  ;;  %v126_v15 = vld [vmem:[%s9572_s0 + $0x70] sm:$0xff] }
  0x10   :  { %6292 = vmatmul.mubr.msk.f32.gmra.mrb[6].mxu0 %vm152_vm1, %v119_v8  ;;  %v127_v16 = vld [vmem:[%s9572_s0 + $0x78] sm:$0xff]  ;;  %v128_v17 = vld [vmem:[%s9572_s0 + $0x80] sm:$0xff]  ;;  %v129_v18 = vld [vmem:[%s9572_s0 + $0x88] sm:$0xff] }
  0x11   :  { %6294 = vmatprep.mubr.msk.f32.mxu0 %vm152_vm1, %v120_v9  ;;  %v130_v19 = vld [vmem:[%s9572_s0 + $0x90] sm:$0xff]  ;;  %v131_v20 = vld [vmem:[%s9572_s0 + $0x98] sm:$0xff]  ;;  %v132_v21 = vld [vmem:[%s9572_s0 + $0xa0] sm:$0xff] }
  0x12   :  { %v133_v22 = vld [vmem:[%s9572_s0 + $0xa8] sm:$0xff]  ;;  %v134_v23 = vld [vmem:[%s9572_s0 + $0xb0] sm:$0xff]  ;;  %v135_v24 = vld [vmem:[%s9572_s0 + $0xb8] sm:$0xff] }
  0x13   :  { %v136_v25 = vld [vmem:[%s9572_s0 + $0xc0] sm:$0xff]  ;;  %v137_v26 = vld [vmem:[%s9572_s0 + $0xc8] sm:$0xff]  ;;  %v138_v27 = vld [vmem:[%s9572_s0 + $0xd0] sm:$0xff] }
  0x14   :  { %6295 = vmatmul.mubr.msk.f32.gmra.mrb[8].mxu0 %vm152_vm1, %v121_v10  ;;  %v139_v28 = vld [vmem:[%s9572_s0 + $0xd8] sm:$0xff]  ;;  %v140_v29 = vld [vmem:[%s9572_s0 + $0xe0] sm:$0xff]  ;;  %v141_v30 = vld [vmem:[%s9572_s0 + $0xe8] sm:$0xff] }
  0x15   :  { %6297 = vmatprep.mubr.msk.f32.mxu0 %vm152_vm1, %v122_v11  ;;  %v142_v31 = vld [vmem:[%s9572_s0 + $0xf0] sm:$0xff]  ;;  %v143_v32 = vld [vmem:[%s9572_s0 + $0xf8] sm:$0xff]  ;;  %v542_v33 = vld [vmem:[%s9575_s3] sm:$0xff] }
  0x16   :  { %v543_v34 = vld [vmem:[%s9575_s3 + $0x8] sm:$0xff]  ;;  %v544_v36 = vld [vmem:[%s9575_s3 + $0x10] sm:$0xff]  ;;  %v545_v37 = vld [vmem:[%s9575_s3 + $0x18] sm:$0xff] }
  0x17   :  { %v7638_v35 = vpack.c.bf16 %v543_v34, %v542_v33  ;;  %v7648_v38 = vpack.c.bf16 %v545_v37, %v544_v36  ;;  %v939_v39 = vld [vmem:[%s9576_s4] sm:$0xff]  ;;  %v940_v40 = vld [vmem:[%s9576_s4 + $0x8] sm:$0xff]  ;;  %v941_v41 = vld [vmem:[%s9576_s4 + $0x10] sm:$0xff] }
  0x18   :  { %6298 = vmatmul.mubr.msk.f32.gmra.mrb[10].mxu0 %vm152_vm1, %v123_v12  ;;  %v7661_v42 = vpack.c.bf16 %v940_v40, %v939_v39  ;;  %v942_v43 = vld [vmem:[%s9576_s4 + $0x18] sm:$0xff]  ;;  %v7675_v45 = vld [vmem:[%s9577_s5] ss:$0 sm:$0xff] }
  0x19   :  { %6300 = vmatprep.mubr.msk.f32.mxu0 %vm152_vm1, %v124_v13  ;;  %6933 = vmatprep.subr.bf16.mxu1 %v7638_v35  ;;  %v7666_v44 = vpack.c.bf16 %v942_v43, %v941_v41 }
  0x1a   :  { %6935 = vmatpush3.bf16.msra.mxu1 %v7638_v35  ;;  %6941 = vmatprep.subr.bf16.mxu0 %v7661_v42 }
  0x1b   :  { %6937 = vmatprep.subr.bf16.mxu1 %v7648_v38  ;;  %6943 = vmatpush3.bf16.msra.mxu0 %v7661_v42 }
  0x1c   :  { %6301 = vmatmul.mubr.msk.f32.gmra.mrb[12].mxu0 %vm152_vm1, %v125_v14  ;;  %6945 = vmatprep.subr.bf16.mxu0 %v7666_v44 }
  0x1d   :  { %6303 = vmatprep.mubr.msk.f32.mxu0 %vm152_vm1, %v126_v15 }
  0x1e   :  { %6939 = vmatpush3.bf16.msra.mxu1 %v7648_v38 }
  0x1f   :  { %6947 = vmatpush3.bf16.msra.mxu0 %v7666_v44 }
  0x20   :  { %6304 = vmatmul.mubr.msk.f32.gmra.mrb[14].mxu0 %vm152_vm1, %v127_v16 }
  0x21   :  { %6306 = vmatprep.mubr.msk.f32.mxu0 %vm152_vm1, %v128_v17 }
  0x24   :  { %6307 = vmatmul.mubr.msk.f32.gmra.mrb[16].mxu0 %vm152_vm1, %v129_v18 }
  0x25   :  { %6309 = vmatprep.mubr.msk.f32.mxu0 %vm152_vm1, %v130_v19 }
  0x28   :  { %6310 = vmatmul.mubr.msk.f32.gmra.mrb[18].mxu0 %vm152_vm1, %v131_v20 }
  0x29   :  { %6312 = vmatprep.mubr.msk.f32.mxu0 %vm152_vm1, %v132_v21 }
  0x2c   :  { %6313 = vmatmul.mubr.msk.f32.gmra.mrb[20].mxu0 %vm152_vm1, %v133_v22 }
  0x2d   :  { %6315 = vmatprep.mubr.msk.f32.mxu0 %vm152_vm1, %v134_v23 }
  0x30   :  { %6316 = vmatmul.mubr.msk.f32.gmra.mrb[22].mxu0 %vm152_vm1, %v135_v24 }
  0x31   :  { %6318 = vmatprep.mubr.msk.f32.mxu0 %vm152_vm1, %v136_v25 }
  0x34   :  { %6319 = vmatmul.mubr.msk.f32.gmra.mrb[24].mxu0 %vm152_vm1, %v137_v26 }
  0x35   :  { %6321 = vmatprep.mubr.msk.f32.mxu0 %vm152_vm1, %v138_v27 }
  0x38   :  { %6322 = vmatmul.mubr.msk.f32.gmra.mrb[26].mxu0 %vm152_vm1, %v139_v28 }
  0x39   :  { %6324 = vmatprep.mubr.msk.f32.mxu0 %vm152_vm1, %v140_v29 }
  0x3c   :  { %6325 = vmatmul.mubr.msk.f32.gmra.mrb[28].mxu0 %vm152_vm1, %v141_v30 }
  0x3d   :  { %6327 = vmatprep.mubr.msk.f32.mxu0 %vm152_vm1, %v142_v31 }
  0x40   :  { %6328 = vmatmul.mubr.msk.f32.gmra.mrb[30].mxu0 %vm152_vm1, %v143_v32 }
  0xd7   :  { %v6284_v46 = vpop.f32.mrb[0].mxu0 }
  0xd8   :  { %v325_v47 = vadd.f32 %v6284_v46, %v7675_v45  ;;  %v319_v48 = vpop.f32.mrb[1].mxu0 }
  0xd9   :  { %v320_v49 = vadd.f32 %v7675_v45, %v319_v48 }
  0xda   :  { %v479_v50 = vmul.f32 0.05, %v325_v47 }
  0xdb   :  { %v478_v51 = vmul.f32 0.05, %v320_v49  ;;  %v6287_v52 = vpop.f32.mrb[2].mxu0 }
  0xdc   :  { %v335_v53 = vadd.f32 %v6287_v52, %v7675_v45  ;;  %v329_v54 = vpop.f32.mrb[3].mxu0  ;;  %v511_v57 = vmax.f32 %v325_v47, %v479_v50 }
  0xdd   :  { %v330_v55 = vadd.f32 %v7675_v45, %v329_v54  ;;  %v510_v56 = vmax.f32 %v320_v49, %v478_v51 }
  0xde   :  { %v481_v58 = vmul.f32 0.05, %v335_v53 }
  0xdf   :  { %v480_v59 = vmul.f32 0.05, %v330_v55  ;;  %v6290_v60 = vpop.f32.mrb[4].mxu0  ;;  %6338 = vmatprep.mubr.msk.f32.mxu1 %vm553_vm2, %v510_v56 }
  0xe0   :  { %v345_v61 = vadd.f32 %v6290_v60, %v7675_v45  ;;  %v339_v62 = vpop.f32.mrb[5].mxu0  ;;  %6339 = vmatmul.mubr.msk.f32.vlgmr.msra.gmra.mrb[0].mxu1 %vm553_vm2, %v511_v57  ;;  %v513_v1 = vmax.f32 %v335_v53, %v481_v58 }
  0xe1   :  { %v512_v63 = vmax.f32 %v330_v55, %v480_v59  ;;  %v340_v0 = vadd.f32 %v7675_v45, %v339_v62 }
  0xe2   :  { %v483_v2 = vmul.f32 0.05, %v345_v61 }
  0xe3   :  { %v482_v3 = vmul.f32 0.05, %v340_v0  ;;  %v6293_v4 = vpop.f32.mrb[6].mxu0  ;;  %6341 = vmatprep.mubr.msk.f32.mxu1 %vm553_vm2, %v512_v63 }
  0xe4   :  { %v355_v5 = vadd.f32 %v6293_v4, %v7675_v45  ;;  %v349_v6 = vpop.f32.mrb[7].mxu0  ;;  %6342 = vmatmul.mubr.msk.f32.gmra.mrb[2].mxu1 %vm553_vm2, %v513_v1  ;;  %v515_v9 = vmax.f32 %v345_v61, %v483_v2 }
  0xe5   :  { %v514_v7 = vmax.f32 %v340_v0, %v482_v3  ;;  %v350_v8 = vadd.f32 %v7675_v45, %v349_v6 }
  0xe6   :  { %v485_v10 = vmul.f32 0.05, %v355_v5 }
  0xe7   :  { %v484_v11 = vmul.f32 0.05, %v350_v8  ;;  %v6296_v12 = vpop.f32.mrb[8].mxu0  ;;  %6344 = vmatprep.mubr.msk.f32.mxu1 %vm553_vm2, %v514_v7 }
  0xe8   :  { %v365_v13 = vadd.f32 %v6296_v12, %v7675_v45  ;;  %v359_v14 = vpop.f32.mrb[9].mxu0  ;;  %6345 = vmatmul.mubr.msk.f32.gmra.mrb[4].mxu1 %vm553_vm2, %v515_v9  ;;  %v517_v17 = vmax.f32 %v355_v5, %v485_v10 }
  0xe9   :  { %v516_v15 = vmax.f32 %v350_v8, %v484_v11  ;;  %v360_v16 = vadd.f32 %v7675_v45, %v359_v14 }
  0xea   :  { %v487_v18 = vmul.f32 0.05, %v365_v13 }
  0xeb   :  { %v486_v19 = vmul.f32 0.05, %v360_v16  ;;  %v6299_v20 = vpop.f32.mrb[10].mxu0  ;;  %6347 = vmatprep.mubr.msk.f32.mxu1 %vm553_vm2, %v516_v15 }
  0xec   :  { %v375_v21 = vadd.f32 %v6299_v20, %v7675_v45  ;;  %v369_v22 = vpop.f32.mrb[11].mxu0  ;;  %6348 = vmatmul.mubr.msk.f32.gmra.mrb[6].mxu1 %vm553_vm2, %v517_v17  ;;  %v519_v25 = vmax.f32 %v365_v13, %v487_v18 }
  0xed   :  { %v518_v23 = vmax.f32 %v360_v16, %v486_v19  ;;  %v370_v24 = vadd.f32 %v7675_v45, %v369_v22 }
  0xee   :  { %v489_v26 = vmul.f32 0.05, %v375_v21 }
  0xef   :  { %v488_v27 = vmul.f32 0.05, %v370_v24  ;;  %v6302_v28 = vpop.f32.mrb[12].mxu0  ;;  %6350 = vmatprep.mubr.msk.f32.mxu1 %vm553_vm2, %v518_v23 }
  0xf0   :  { %v385_v29 = vadd.f32 %v6302_v28, %v7675_v45  ;;  %v379_v30 = vpop.f32.mrb[13].mxu0  ;;  %6351 = vmatmul.mubr.msk.f32.gmra.mrb[8].mxu1 %vm553_vm2, %v519_v25  ;;  %v521_v33 = vmax.f32 %v375_v21, %v489_v26 }
  0xf1   :  { %v520_v31 = vmax.f32 %v370_v24, %v488_v27  ;;  %v380_v32 = vadd.f32 %v7675_v45, %v379_v30 }
  0xf2   :  { %v491_v34 = vmul.f32 0.05, %v385_v29 }
  0xf3   :  { %v490_v36 = vmul.f32 0.05, %v380_v32  ;;  %v6305_v37 = vpop.f32.mrb[14].mxu0  ;;  %6353 = vmatprep.mubr.msk.f32.mxu1 %vm553_vm2, %v520_v31 }
  0xf4   :  { %v395_v39 = vadd.f32 %v6305_v37, %v7675_v45  ;;  %v389_v40 = vpop.f32.mrb[15].mxu0  ;;  %6354 = vmatmul.mubr.msk.f32.gmra.mrb[10].mxu1 %vm553_vm2, %v521_v33  ;;  %v523_v46 = vmax.f32 %v385_v29, %v491_v34 }
  0xf5   :  { %v522_v41 = vmax.f32 %v380_v32, %v490_v36  ;;  %v390_v43 = vadd.f32 %v7675_v45, %v389_v40 }
  0xf6   :  { %v493_v47 = vmul.f32 0.05, %v395_v39 }
  0xf7   :  { %v492_v48 = vmul.f32 0.05, %v390_v43  ;;  %v6308_v49 = vpop.f32.mrb[16].mxu0  ;;  %6356 = vmatprep.mubr.msk.f32.mxu1 %vm553_vm2, %v522_v41 }
  0xf8   :  { %v405_v50 = vadd.f32 %v6308_v49, %v7675_v45  ;;  %v399_v51 = vpop.f32.mrb[17].mxu0  ;;  %6357 = vmatmul.mubr.msk.f32.gmra.mrb[12].mxu1 %vm553_vm2, %v523_v46  ;;  %v525_v54 = vmax.f32 %v395_v39, %v493_v47 }
  0xf9   :  { %v524_v52 = vmax.f32 %v390_v43, %v492_v48  ;;  %v400_v53 = vadd.f32 %v7675_v45, %v399_v51 }
  0xfa   :  { %v495_v55 = vmul.f32 0.05, %v405_v50 }
  0xfb   :  { %v494_v56 = vmul.f32 0.05, %v400_v53  ;;  %v6311_v57 = vpop.f32.mrb[18].mxu0  ;;  %6359 = vmatprep.mubr.msk.f32.mxu1 %vm553_vm2, %v524_v52 }
  0xfc   :  { %v415_v58 = vadd.f32 %v6311_v57, %v7675_v45  ;;  %v409_v59 = vpop.f32.mrb[19].mxu0  ;;  %6360 = vmatmul.mubr.msk.f32.gmra.mrb[14].mxu1 %vm553_vm2, %v525_v54  ;;  %v527_v62 = vmax.f32 %v405_v50, %v495_v55  ;;  %v50_v57 = vld [vmem:[%s9573_s1 + $0x10] sm:$0xff] }
  0xfd   :  { %v526_v60 = vmax.f32 %v400_v53, %v494_v56  ;;  %v410_v61 = vadd.f32 %v7675_v45, %v409_v59  ;;  %v48_v56 = vld [vmem:[%s9573_s1] sm:$0xff]  ;;  %v82_v59 = vld [vmem:[%s9573_s1 + $0x110] sm:$0xff] }
  0xfe   :  { %v497_v63 = vmul.f32 0.05, %v415_v58 }
  0xff   :  { %v496_v0 = vmul.f32 0.05, %v410_v61  ;;  %v6314_v1 = vpop.f32.mrb[20].mxu0  ;;  %6362 = vmatprep.mubr.msk.f32.mxu1 %vm553_vm2, %v526_v60  ;;  %v7106_v60 = vpack.i.bf16 %v50_v57, %v82_v59 }
 0x100   :  { %v425_v2 = vadd.f32 %v6314_v1, %v7675_v45  ;;  %v419_v3 = vpop.f32.mrb[21].mxu0  ;;  %6363 = vmatmul.mubr.msk.f32.gmra.mrb[16].mxu1 %vm553_vm2, %v527_v62  ;;  %v529_v6 = vmax.f32 %v415_v58, %v497_v63  ;;  %v84_v62 = vld [vmem:[%s9573_s1 + $0x120] sm:$0xff]  ;;  %v86_v1 = vld [vmem:[%s9573_s1 + $0x130] sm:$0xff] }
 0x101   :  { %v528_v4 = vmax.f32 %v410_v61, %v496_v0  ;;  %v420_v5 = vadd.f32 %v7675_v45, %v419_v3  ;;  %v52_v61 = vld [vmem:[%s9573_s1 + $0x20] sm:$0xff]  ;;  %v54_v0 = vld [vmem:[%s9573_s1 + $0x30] sm:$0xff] }
 0x102   :  { %v499_v7 = vmul.f32 0.05, %v425_v2  ;;  %v7108_v63 = vpack.i.bf16 %v52_v61, %v84_v62  ;;  %v56_v3 = vld [vmem:[%s9573_s1 + $0x40] sm:$0xff] }
 0x103   :  { %v498_v8 = vmul.f32 0.05, %v420_v5  ;;  %v6317_v9 = vpop.f32.mrb[22].mxu0  ;;  %6365 = vmatprep.mubr.msk.f32.mxu1 %vm553_vm2, %v528_v4  ;;  %v88_v4 = vld [vmem:[%s9573_s1 + $0x140] sm:$0xff] }
 0x104   :  { %v435_v10 = vadd.f32 %v6317_v9, %v7675_v45  ;;  %v429_v11 = vpop.f32.mrb[23].mxu0  ;;  %6366 = vmatmul.mubr.msk.f32.gmra.mrb[18].mxu1 %vm553_vm2, %v529_v6  ;;  %v531_v14 = vmax.f32 %v425_v2, %v499_v7  ;;  %v7110_v2 = vpack.i.bf16 %v54_v0, %v86_v1  ;;  %v58_v6 = vld [vmem:[%s9573_s1 + $0x50] sm:$0xff]  ;;  %v60_v9 = vld [vmem:[%s9573_s1 + $0x60] sm:$0xff] }
 0x105   :  { %v530_v12 = vmax.f32 %v420_v5, %v498_v8  ;;  %v430_v13 = vadd.f32 %v7675_v45, %v429_v11  ;;  %v7112_v5 = vpack.i.bf16 %v56_v3, %v88_v4  ;;  %v90_v7 = vld [vmem:[%s9573_s1 + $0x150] sm:$0xff] }
 0x106   :  { %v501_v15 = vmul.f32 0.05, %v435_v10  ;;  %v7114_v8 = vpack.i.bf16 %v58_v6, %v90_v7 }
 0x107   :  { %v500_v16 = vmul.f32 0.05, %v430_v13  ;;  %v6320_v17 = vpop.f32.mrb[24].mxu0  ;;  %6368 = vmatprep.mubr.msk.f32.mxu1 %vm553_vm2, %v530_v12  ;;  %v62_v12 = vld [vmem:[%s9573_s1 + $0x70] sm:$0xff] }
 0x108   :  { %v445_v18 = vadd.f32 %v6320_v17, %v7675_v45  ;;  %v439_v19 = vpop.f32.mrb[25].mxu0  ;;  %6369 = vmatmul.mubr.msk.f32.gmra.mrb[20].mxu1 %vm553_vm2, %v531_v14  ;;  %v533_v22 = vmax.f32 %v435_v10, %v501_v15  ;;  %v92_v10 = vld [vmem:[%s9573_s1 + $0x160] sm:$0xff] }
 0x109   :  { %v532_v20 = vmax.f32 %v430_v13, %v500_v16  ;;  %v440_v21 = vadd.f32 %v7675_v45, %v439_v19  ;;  %v7116_v11 = vpack.i.bf16 %v60_v9, %v92_v10  ;;  %v94_v13 = vld [vmem:[%s9573_s1 + $0x170] sm:$0xff]  ;;  %v64_v15 = vld [vmem:[%s9573_s1 + $0x80] sm:$0xff] }
 0x10a   :  { %v503_v23 = vmul.f32 0.05, %v445_v18  ;;  %v7118_v14 = vpack.i.bf16 %v62_v12, %v94_v13  ;;  %v96_v16 = vld [vmem:[%s9573_s1 + $0x180] sm:$0xff]  ;;  %v98_v19 = vld [vmem:[%s9573_s1 + $0x190] sm:$0xff] }
 0x10b   :  { %v502_v24 = vmul.f32 0.05, %v440_v21  ;;  %v6323_v25 = vpop.f32.mrb[26].mxu0  ;;  %6371 = vmatprep.mubr.msk.f32.mxu1 %vm553_vm2, %v532_v20  ;;  %v7120_v17 = vpack.i.bf16 %v64_v15, %v96_v16 }
 0x10c   :  { %v455_v26 = vadd.f32 %v6323_v25, %v7675_v45  ;;  %v449_v27 = vpop.f32.mrb[27].mxu0  ;;  %6372 = vmatmul.mubr.msk.f32.gmra.mrb[22].mxu1 %vm553_vm2, %v533_v22  ;;  %v535_v30 = vmax.f32 %v445_v18, %v503_v23  ;;  %v66_v18 = vld [vmem:[%s9573_s1 + $0x90] sm:$0xff]  ;;  %v100_v22 = vld [vmem:[%s9573_s1 + $0x1a0] sm:$0xff] }
 0x10d   :  { %v534_v28 = vmax.f32 %v440_v21, %v502_v24  ;;  %v450_v29 = vadd.f32 %v7675_v45, %v449_v27  ;;  %v7122_v20 = vpack.i.bf16 %v66_v18, %v98_v19  ;;  %v68_v21 = vld [vmem:[%s9573_s1 + $0xa0] sm:$0xff]  ;;  %v70_v24 = vld [vmem:[%s9573_s1 + $0xb0] sm:$0xff] }
 0x10e   :  { %v505_v31 = vmul.f32 0.05, %v455_v26  ;;  %v7124_v23 = vpack.i.bf16 %v68_v21, %v100_v22  ;;  %v102_v25 = vld [vmem:[%s9573_s1 + $0x1b0] sm:$0xff]  ;;  %v72_v27 = vld [vmem:[%s9573_s1 + $0xc0] sm:$0xff] }
 0x10f   :  { %v504_v32 = vmul.f32 0.05, %v450_v29  ;;  %v6326_v33 = vpop.f32.mrb[28].mxu0  ;;  %6374 = vmatprep.mubr.msk.f32.mxu1 %vm553_vm2, %v534_v28  ;;  %v104_v28 = vld [vmem:[%s9573_s1 + $0x1c0] sm:$0xff] }
 0x110   :  { %v465_v34 = vadd.f32 %v6326_v33, %v7675_v45  ;;  %v459_v36 = vpop.f32.mrb[29].mxu0  ;;  %6375 = vmatmul.mubr.msk.f32.gmra.mrb[24].mxu1 %vm553_vm2, %v535_v30  ;;  %v537_v40 = vmax.f32 %v455_v26, %v505_v31  ;;  %v7126_v26 = vpack.i.bf16 %v70_v24, %v102_v25  ;;  %v74_v30 = vld [vmem:[%s9573_s1 + $0xd0] sm:$0xff]  ;;  %v76_v33 = vld [vmem:[%s9573_s1 + $0xe0] sm:$0xff] }
 0x111   :  { %v536_v37 = vmax.f32 %v450_v29, %v504_v32  ;;  %v460_v39 = vadd.f32 %v7675_v45, %v459_v36  ;;  %v7128_v29 = vpack.i.bf16 %v72_v27, %v104_v28  ;;  %v106_v31 = vld [vmem:[%s9573_s1 + $0x1d0] sm:$0xff] }
 0x112   :  { %v507_v41 = vmul.f32 0.05, %v465_v34  ;;  %v7130_v32 = vpack.i.bf16 %v74_v30, %v106_v31 }
 0x113   :  { %v506_v43 = vmul.f32 0.05, %v460_v39  ;;  %v6329_v46 = vpop.f32.mrb[30].mxu0  ;;  %6377 = vmatprep.mubr.msk.f32.mxu1 %vm553_vm2, %v536_v37  ;;  %v78_v37 = vld [vmem:[%s9573_s1 + $0xf0] sm:$0xff] }
 0x114   :  { %v475_v47 = vadd.f32 %v6329_v46, %v7675_v45  ;;  %v469_v48 = vpop.f32.mrb[31].mxu0  ;;  %6378 = vmatmul.mubr.msk.f32.gmra.mrb[26].mxu1 %vm553_vm2, %v537_v40  ;;  %v539_v51 = vmax.f32 %v465_v34, %v507_v41  ;;  %v108_v34 = vld [vmem:[%s9573_s1 + $0x1e0] sm:$0xff] }
 0x115   :  { %v538_v49 = vmax.f32 %v460_v39, %v506_v43  ;;  %v470_v50 = vadd.f32 %v7675_v45, %v469_v48  ;;  %v80_v45 = vld [vmem:[%s9573_s1 + $0x100] sm:$0xff]  ;;  %v7132_v36 = vpack.i.bf16 %v76_v33, %v108_v34  ;;  %v110_v39 = vld [vmem:[%s9573_s1 + $0x1f0] sm:$0xff] }
 0x116   :  { %v509_v52 = vmul.f32 0.05, %v475_v47  ;;  %v7104_v58 = vpack.i.bf16 %v48_v56, %v80_v45  ;;  %v7840_v40 = vld [vmem:[%s9578_s6] ss:$0 sm:$0xff]  ;;  %v7134_v43 = vpack.i.bf16 %v78_v37, %v110_v39 }
 0x117   :  { %v508_v53 = vmul.f32 0.05, %v470_v50  ;;  %6380 = vmatprep.mubr.msk.f32.mxu1 %vm553_vm2, %v538_v49 }
 0x118   :  { %6381 = vmatmul.mubr.msk.f32.gmra.mrb[28].mxu1 %vm553_vm2, %v539_v51  ;;  %v541_v55 = vmax.f32 %v475_v47, %v509_v52  ;;  %7105 = vxpose.xlu0.b32.start [1/16] %v7104_v58, 128 }
 0x119   :  { %v540_v54 = vmax.f32 %v470_v50, %v508_v53 }
 0x11b   :  { %6383 = vmatprep.mubr.msk.f32.mxu1 %vm553_vm2, %v540_v54 }
 0x11c   :  { %6384 = vmatmul.mubr.msk.f32.gmra.mrb[30].mxu1 %vm553_vm2, %v541_v55  ;;  %7107 = vxpose.xlu0.b32.cont [2/16] %v7106_v60, 128 }
 0x120   :  { %7109 = vxpose.xlu0.b32.cont [3/16] %v7108_v63, 128 }
 0x124   :  { %7111 = vxpose.xlu0.b32.cont [4/16] %v7110_v2, 128 }
 0x128   :  { %7113 = vxpose.xlu0.b32.cont [5/16] %v7112_v5, 128 }
 0x12c   :  { %7115 = vxpose.xlu0.b32.cont [6/16] %v7114_v8, 128 }
 0x130   :  { %7117 = vxpose.xlu0.b32.cont [7/16] %v7116_v11, 128 }
 0x134   :  { %7119 = vxpose.xlu0.b32.cont [8/16] %v7118_v14, 128 }
 0x138   :  { %7121 = vxpose.xlu0.b32.cont [9/16] %v7120_v17, 128 }
 0x13c   :  { %7123 = vxpose.xlu0.b32.cont [10/16] %v7122_v20, 128 }
 0x140   :  { %7125 = vxpose.xlu0.b32.cont [11/16] %v7124_v23, 128 }
 0x144   :  { %7127 = vxpose.xlu0.b32.cont [12/16] %v7126_v26, 128 }
 0x148   :  { %7129 = vxpose.xlu0.b32.cont [13/16] %v7128_v29, 128 }
 0x14c   :  { %7131 = vxpose.xlu0.b32.cont [14/16] %v7130_v32, 128 }
 0x150   :  { %7133 = vxpose.xlu0.b32.cont [15/16] %v7132_v36, 128 }
 0x154   :  { %7135 = vxpose.xlu0.b32.end [16/16] %v7134_v43, 128 }
 0x1b3   :  { %v6340_v41 = vpop.f32.mrb[0].mxu1 }
 0x1b4   :  { %v722_v46 = vadd.f32 %v6340_v41, %v7840_v40  ;;  %v716_v47 = vpop.f32.mrb[1].mxu1 }
 0x1b5   :  { %v717_v48 = vadd.f32 %v7840_v40, %v716_v47 }
 0x1b6   :  { %v876_v49 = vmul.f32 0.05, %v722_v46 }
 0x1b7   :  { %v875_v50 = vmul.f32 0.05, %v717_v48  ;;  %v6343_v51 = vpop.f32.mrb[2].mxu1 }
 0x1b8   :  { %v732_v52 = vadd.f32 %v6343_v51, %v7840_v40  ;;  %v726_v53 = vpop.f32.mrb[3].mxu1  ;;  %v908_v56 = vmax.f32 %v722_v46, %v876_v49 }
 0x1b9   :  { %v907_v54 = vmax.f32 %v717_v48, %v875_v50  ;;  %v727_v55 = vadd.f32 %v7840_v40, %v726_v53 }
 0x1ba   :  { %v878_v45 = vmul.f32 0.05, %v732_v52 }
 0x1bb   :  { %v877_v57 = vmul.f32 0.05, %v727_v55  ;;  %v6346_v58 = vpop.f32.mrb[4].mxu1  ;;  %6394 = vmatprep.mubr.msk.f32.mxu0 %vm553_vm2, %v907_v54 }
 0x1bc   :  { %v742_v59 = vadd.f32 %v6346_v58, %v7840_v40  ;;  %v736_v60 = vpop.f32.mrb[5].mxu1  ;;  %6395 = vmatmul.mubr.msk.f32.vlgmr.msra.gmra.mrb[32].mxu0 %vm553_vm2, %v908_v56  ;;  %v910_v63 = vmax.f32 %v732_v52, %v878_v45 }
 0x1bd   :  { %v909_v61 = vmax.f32 %v727_v55, %v877_v57  ;;  %v737_v62 = vadd.f32 %v7840_v40, %v736_v60 }
 0x1be   :  { %v880_v0 = vmul.f32 0.05, %v742_v59 }
 0x1bf   :  { %v879_v1 = vmul.f32 0.05, %v737_v62  ;;  %v6349_v2 = vpop.f32.mrb[6].mxu1  ;;  %6397 = vmatprep.mubr.msk.f32.mxu0 %vm553_vm2, %v909_v61 }
 0x1c0   :  { %v752_v3 = vadd.f32 %v6349_v2, %v7840_v40  ;;  %v746_v4 = vpop.f32.mrb[7].mxu1  ;;  %6398 = vmatmul.mubr.msk.f32.gmra.mrb[34].mxu0 %vm553_vm2, %v910_v63  ;;  %v912_v7 = vmax.f32 %v742_v59, %v880_v0 }
 0x1c1   :  { %v911_v5 = vmax.f32 %v737_v62, %v879_v1  ;;  %v747_v6 = vadd.f32 %v7840_v40, %v746_v4 }
 0x1c2   :  { %v882_v8 = vmul.f32 0.05, %v752_v3 }
 0x1c3   :  { %v881_v9 = vmul.f32 0.05, %v747_v6  ;;  %v6352_v10 = vpop.f32.mrb[8].mxu1  ;;  %6400 = vmatprep.mubr.msk.f32.mxu0 %vm553_vm2, %v911_v5 }
 0x1c4   :  { %v762_v11 = vadd.f32 %v6352_v10, %v7840_v40  ;;  %v756_v12 = vpop.f32.mrb[9].mxu1  ;;  %6401 = vmatmul.mubr.msk.f32.gmra.mrb[36].mxu0 %vm553_vm2, %v912_v7  ;;  %v914_v15 = vmax.f32 %v752_v3, %v882_v8 }
 0x1c5   :  { %v913_v13 = vmax.f32 %v747_v6, %v881_v9  ;;  %v757_v14 = vadd.f32 %v7840_v40, %v756_v12 }
 0x1c6   :  { %v884_v16 = vmul.f32 0.05, %v762_v11 }
 0x1c7   :  { %v883_v17 = vmul.f32 0.05, %v757_v14  ;;  %v6355_v18 = vpop.f32.mrb[10].mxu1  ;;  %6403 = vmatprep.mubr.msk.f32.mxu0 %vm553_vm2, %v913_v13 }
 0x1c8   :  { %v772_v19 = vadd.f32 %v6355_v18, %v7840_v40  ;;  %v766_v20 = vpop.f32.mrb[11].mxu1  ;;  %6404 = vmatmul.mubr.msk.f32.gmra.mrb[38].mxu0 %vm553_vm2, %v914_v15  ;;  %v916_v23 = vmax.f32 %v762_v11, %v884_v16 }
 0x1c9   :  { %v915_v21 = vmax.f32 %v757_v14, %v883_v17  ;;  %v767_v22 = vadd.f32 %v7840_v40, %v766_v20 }
 0x1ca   :  { %v886_v24 = vmul.f32 0.05, %v772_v19 }
 0x1cb   :  { %v885_v25 = vmul.f32 0.05, %v767_v22  ;;  %v6358_v26 = vpop.f32.mrb[12].mxu1  ;;  %6406 = vmatprep.mubr.msk.f32.mxu0 %vm553_vm2, %v915_v21 }
 0x1cc   :  { %v782_v27 = vadd.f32 %v6358_v26, %v7840_v40  ;;  %v776_v28 = vpop.f32.mrb[13].mxu1  ;;  %6407 = vmatmul.mubr.msk.f32.gmra.mrb[40].mxu0 %vm553_vm2, %v916_v23  ;;  %v918_v31 = vmax.f32 %v772_v19, %v886_v24 }
 0x1cd   :  { %v917_v29 = vmax.f32 %v767_v22, %v885_v25  ;;  %v777_v30 = vadd.f32 %v7840_v40, %v776_v28 }
 0x1ce   :  { %v888_v32 = vmul.f32 0.05, %v782_v27 }
 0x1cf   :  { %v887_v33 = vmul.f32 0.05, %v777_v30  ;;  %v6361_v34 = vpop.f32.mrb[14].mxu1  ;;  %6409 = vmatprep.mubr.msk.f32.mxu0 %vm553_vm2, %v917_v29 }
 0x1d0   :  { %v792_v36 = vadd.f32 %v6361_v34, %v7840_v40  ;;  %v786_v37 = vpop.f32.mrb[15].mxu1  ;;  %6410 = vmatmul.mubr.msk.f32.gmra.mrb[42].mxu0 %vm553_vm2, %v918_v31  ;;  %v920_v43 = vmax.f32 %v782_v27, %v888_v32 }
 0x1d1   :  { %v919_v39 = vmax.f32 %v777_v30, %v887_v33  ;;  %v787_v41 = vadd.f32 %v7840_v40, %v786_v37 }
 0x1d2   :  { %v890_v46 = vmul.f32 0.05, %v792_v36 }
 0x1d3   :  { %v889_v47 = vmul.f32 0.05, %v787_v41  ;;  %v6364_v48 = vpop.f32.mrb[16].mxu1  ;;  %6412 = vmatprep.mubr.msk.f32.mxu0 %vm553_vm2, %v919_v39 }
 0x1d4   :  { %v802_v49 = vadd.f32 %v6364_v48, %v7840_v40  ;;  %v796_v50 = vpop.f32.mrb[17].mxu1  ;;  %6413 = vmatmul.mubr.msk.f32.gmra.mrb[44].mxu0 %vm553_vm2, %v920_v43  ;;  %v922_v53 = vmax.f32 %v792_v36, %v890_v46 }
 0x1d5   :  { %v921_v51 = vmax.f32 %v787_v41, %v889_v47  ;;  %v797_v52 = vadd.f32 %v7840_v40, %v796_v50 }
 0x1d6   :  { %v892_v54 = vmul.f32 0.05, %v802_v49 }
 0x1d7   :  { %v891_v55 = vmul.f32 0.05, %v797_v52  ;;  %v6367_v56 = vpop.f32.mrb[18].mxu1  ;;  %6415 = vmatprep.mubr.msk.f32.mxu0 %vm553_vm2, %v921_v51 }
 0x1d8   :  { %v812_v45 = vadd.f32 %v6367_v56, %v7840_v40  ;;  %v806_v57 = vpop.f32.mrb[19].mxu1  ;;  %6416 = vmatmul.mubr.msk.f32.gmra.mrb[46].mxu0 %vm553_vm2, %v922_v53  ;;  %v924_v60 = vmax.f32 %v802_v49, %v892_v54 }
 0x1d9   :  { %v923_v58 = vmax.f32 %v797_v52, %v891_v55  ;;  %v807_v59 = vadd.f32 %v7840_v40, %v806_v57  ;;  %v49_v55 = vld [vmem:[%s9573_s1 + $0x8] sm:$0xff]  ;;  %v83_v57 = vld [vmem:[%s9573_s1 + $0x118] sm:$0xff] }
 0x1da   :  { %v894_v61 = vmul.f32 0.05, %v812_v45 }
 0x1db   :  { %v893_v62 = vmul.f32 0.05, %v807_v59  ;;  %v6370_v63 = vpop.f32.mrb[20].mxu1  ;;  %6418 = vmatprep.mubr.msk.f32.mxu0 %vm553_vm2, %v923_v58 }
 0x1dc   :  { %v822_v0 = vadd.f32 %v6370_v63, %v7840_v40  ;;  %v816_v1 = vpop.f32.mrb[21].mxu1  ;;  %6419 = vmatmul.mubr.msk.f32.gmra.mrb[48].mxu0 %vm553_vm2, %v924_v60  ;;  %v926_v4 = vmax.f32 %v812_v45, %v894_v61  ;;  %v51_v45 = vld [vmem:[%s9573_s1 + $0x18] sm:$0xff]  ;;  %v53_v60 = vld [vmem:[%s9573_s1 + $0x28] sm:$0xff] }
 0x1dd   :  { %v925_v2 = vmax.f32 %v807_v59, %v893_v62  ;;  %v817_v3 = vadd.f32 %v7840_v40, %v816_v1  ;;  %v7218_v58 = vpack.i.bf16 %v51_v45, %v83_v57  ;;  %v9650_v59 = vmov 0.0|0.0   ;;  %v85_v61 = vld [vmem:[%s9573_s1 + $0x128] sm:$0xff]  ;;  %v55_v63 = vld [vmem:[%s9573_s1 + $0x38] sm:$0xff] }
 0x1de   :  { %v896_v5 = vmul.f32 0.05, %v822_v0  ;;  %6948 = vmatprep.subr.bf16.mxu1 %v9650_v59  ;;  %v7220_v62 = vpack.i.bf16 %v53_v60, %v85_v61  ;;  %v8041_v60 = vld [vmem:[%s9579_s7] ss:$0 sm:$0xff] }
 0x1df   :  { %v895_v6 = vmul.f32 0.05, %v817_v3  ;;  %v6373_v7 = vpop.f32.mrb[22].mxu1  ;;  %6421 = vmatprep.mubr.msk.f32.mxu0 %vm553_vm2, %v925_v2  ;;  %v57_v2 = vld [vmem:[%s9573_s1 + $0x48] sm:$0xff] }
 0x1e0   :  { %v832_v8 = vadd.f32 %v6373_v7, %v7840_v40  ;;  %v826_v9 = vpop.f32.mrb[23].mxu1  ;;  %6422 = vmatmul.mubr.msk.f32.gmra.mrb[50].mxu0 %vm553_vm2, %v926_v4  ;;  %v928_v12 = vmax.f32 %v822_v0, %v896_v5  ;;  %v87_v0 = vld [vmem:[%s9573_s1 + $0x138] sm:$0xff] }
 0x1e1   :  { %v927_v10 = vmax.f32 %v817_v3, %v895_v6  ;;  %v827_v11 = vadd.f32 %v7840_v40, %v826_v9  ;;  %v7222_v1 = vpack.i.bf16 %v55_v63, %v87_v0  ;;  %v89_v3 = vld [vmem:[%s9573_s1 + $0x148] sm:$0xff]  ;;  %v59_v5 = vld [vmem:[%s9573_s1 + $0x58] sm:$0xff] }
 0x1e2   :  { %v898_v13 = vmul.f32 0.05, %v832_v8  ;;  %v7224_v4 = vpack.i.bf16 %v57_v2, %v89_v3  ;;  %v91_v6 = vld [vmem:[%s9573_s1 + $0x158] sm:$0xff]  ;;  %v93_v9 = vld [vmem:[%s9573_s1 + $0x168] sm:$0xff] }
 0x1e3   :  { %v897_v14 = vmul.f32 0.05, %v827_v11  ;;  %v6376_v15 = vpop.f32.mrb[24].mxu1  ;;  %6424 = vmatprep.mubr.msk.f32.mxu0 %vm553_vm2, %v927_v10  ;;  %v7226_v7 = vpack.i.bf16 %v59_v5, %v91_v6 }
 0x1e4   :  { %v842_v16 = vadd.f32 %v6376_v15, %v7840_v40  ;;  %v836_v17 = vpop.f32.mrb[25].mxu1  ;;  %6425 = vmatmul.mubr.msk.f32.gmra.mrb[52].mxu0 %vm553_vm2, %v928_v12  ;;  %v930_v20 = vmax.f32 %v832_v8, %v898_v13  ;;  %v61_v8 = vld [vmem:[%s9573_s1 + $0x68] sm:$0xff]  ;;  %v95_v12 = vld [vmem:[%s9573_s1 + $0x178] sm:$0xff] }
 0x1e5   :  { %v929_v18 = vmax.f32 %v827_v11, %v897_v14  ;;  %v837_v19 = vadd.f32 %v7840_v40, %v836_v17  ;;  %v7228_v10 = vpack.i.bf16 %v61_v8, %v93_v9  ;;  %v63_v11 = vld [vmem:[%s9573_s1 + $0x78] sm:$0xff]  ;;  %v65_v14 = vld [vmem:[%s9573_s1 + $0x88] sm:$0xff] }
 0x1e6   :  { %v900_v21 = vmul.f32 0.05, %v842_v16  ;;  %v7230_v13 = vpack.i.bf16 %v63_v11, %v95_v12  ;;  %v97_v15 = vld [vmem:[%s9573_s1 + $0x188] sm:$0xff]  ;;  %v67_v17 = vld [vmem:[%s9573_s1 + $0x98] sm:$0xff] }
 0x1e7   :  { %v899_v22 = vmul.f32 0.05, %v837_v19  ;;  %v6379_v23 = vpop.f32.mrb[26].mxu1  ;;  %6427 = vmatprep.mubr.msk.f32.mxu0 %vm553_vm2, %v929_v18  ;;  %v99_v18 = vld [vmem:[%s9573_s1 + $0x198] sm:$0xff] }
 0x1e8   :  { %v852_v24 = vadd.f32 %v6379_v23, %v7840_v40  ;;  %v846_v25 = vpop.f32.mrb[27].mxu1  ;;  %6428 = vmatmul.mubr.msk.f32.gmra.mrb[54].mxu0 %vm553_vm2, %v930_v20  ;;  %v932_v28 = vmax.f32 %v842_v16, %v900_v21  ;;  %v7232_v16 = vpack.i.bf16 %v65_v14, %v97_v15  ;;  %v69_v20 = vld [vmem:[%s9573_s1 + $0xa8] sm:$0xff]  ;;  %v71_v23 = vld [vmem:[%s9573_s1 + $0xb8] sm:$0xff] }
 0x1e9   :  { %v931_v26 = vmax.f32 %v837_v19, %v899_v22  ;;  %v847_v27 = vadd.f32 %v7840_v40, %v846_v25  ;;  %v7234_v19 = vpack.i.bf16 %v67_v17, %v99_v18  ;;  %v101_v21 = vld [vmem:[%s9573_s1 + $0x1a8] sm:$0xff] }
 0x1ea   :  { %v902_v29 = vmul.f32 0.05, %v852_v24  ;;  %v7236_v22 = vpack.i.bf16 %v69_v20, %v101_v21 }
 0x1eb   :  { %v901_v30 = vmul.f32 0.05, %v847_v27  ;;  %v6382_v31 = vpop.f32.mrb[28].mxu1  ;;  %6430 = vmatprep.mubr.msk.f32.mxu0 %vm553_vm2, %v931_v26  ;;  %v73_v26 = vld [vmem:[%s9573_s1 + $0xc8] sm:$0xff] }
 0x1ec   :  { %v862_v32 = vadd.f32 %v6382_v31, %v7840_v40  ;;  %v856_v33 = vpop.f32.mrb[29].mxu1  ;;  %6431 = vmatmul.mubr.msk.f32.gmra.mrb[56].mxu0 %vm553_vm2, %v932_v28  ;;  %v934_v37 = vmax.f32 %v852_v24, %v902_v29  ;;  %v103_v24 = vld [vmem:[%s9573_s1 + $0x1b8] sm:$0xff] }
 0x1ed   :  { %v933_v34 = vmax.f32 %v847_v27, %v901_v30  ;;  %v857_v36 = vadd.f32 %v7840_v40, %v856_v33  ;;  %v7238_v25 = vpack.i.bf16 %v71_v23, %v103_v24  ;;  %v105_v27 = vld [vmem:[%s9573_s1 + $0x1c8] sm:$0xff]  ;;  %v75_v29 = vld [vmem:[%s9573_s1 + $0xd8] sm:$0xff] }
 0x1ee   :  { %v904_v39 = vmul.f32 0.05, %v862_v32  ;;  %v7240_v28 = vpack.i.bf16 %v73_v26, %v105_v27  ;;  %v107_v30 = vld [vmem:[%s9573_s1 + $0x1d8] sm:$0xff]  ;;  %v109_v33 = vld [vmem:[%s9573_s1 + $0x1e8] sm:$0xff] }
 0x1ef   :  { %v903_v41 = vmul.f32 0.05, %v857_v36  ;;  %v6385_v43 = vpop.f32.mrb[30].mxu1  ;;  %6433 = vmatprep.mubr.msk.f32.mxu0 %vm553_vm2, %v933_v34  ;;  %v7242_v31 = vpack.i.bf16 %v75_v29, %v107_v30 }
 0x1f0   :  { %v872_v46 = vadd.f32 %v6385_v43, %v7840_v40  ;;  %v866_v47 = vpop.f32.mrb[31].mxu1  ;;  %6434 = vmatmul.mubr.msk.f32.gmra.mrb[58].mxu0 %vm553_vm2, %v934_v37  ;;  %v936_v50 = vmax.f32 %v862_v32, %v904_v39  ;;  %v77_v32 = vld [vmem:[%s9573_s1 + $0xe8] sm:$0xff]  ;;  %v111_v37 = vld [vmem:[%s9573_s1 + $0x1f8] sm:$0xff] }
 0x1f1   :  { %v935_v48 = vmax.f32 %v857_v36, %v903_v41  ;;  %v867_v49 = vadd.f32 %v7840_v40, %v866_v47  ;;  %v81_v40 = vld [vmem:[%s9573_s1 + $0x108] sm:$0xff]  ;;  %v7244_v34 = vpack.i.bf16 %v77_v32, %v109_v33  ;;  %v79_v36 = vld [vmem:[%s9573_s1 + $0xf8] sm:$0xff]  ;;  %v8003_v41 = vpop.trf.xlu0 }
 0x1f2   :  { %v906_v51 = vmul.f32 0.05, %v872_v46  ;;  %v7216_v56 = vpack.i.bf16 %v49_v55, %v81_v40  ;;  %v7246_v39 = vpack.i.bf16 %v79_v36, %v111_v37  ;;  %v7137_v43 = vunpack.i.l.bf16 %v8003_v41 }
 0x1f3   :  { %v905_v52 = vmul.f32 0.05, %v867_v49  ;;  %6436 = vmatprep.mubr.msk.f32.mxu0 %vm553_vm2, %v935_v48 }
 0x1f4   :  { %6437 = vmatmul.mubr.msk.f32.gmra.mrb[60].mxu0 %vm553_vm2, %v936_v50  ;;  %v938_v54 = vmax.f32 %v872_v46, %v906_v51  ;;  %7217 = vxpose.xlu1.b32.start [1/16] %v7216_v56, 128 }
 0x1f5   :  { %v937_v53 = vmax.f32 %v867_v49, %v905_v52  ;;  %1463 = vmatprep.mubr.f32.mxu1 %v7137_v43  ;;  %v8008_v46 = vpop.trf.xlu0 }
 0x1f7   :  { %6439 = vmatprep.mubr.msk.f32.mxu0 %vm553_vm2, %v937_v53 }
 0x1f8   :  { %6440 = vmatmul.mubr.msk.f32.gmra.mrb[62].mxu0 %vm553_vm2, %v938_v54  ;;  %7219 = vxpose.xlu1.b32.cont [2/16] %v7218_v58, 128 }
 0x1f9   :  { %v8010_v47 = vpop.trf.xlu0 }
 0x1fc   :  { %7221 = vxpose.xlu1.b32.cont [3/16] %v7220_v62, 128 }
 0x1fd   :  { %v8012_v48 = vpop.trf.xlu0 }
 0x200   :  { %7223 = vxpose.xlu1.b32.cont [4/16] %v7222_v1, 128 }
 0x201   :  { %v8014_v49 = vpop.trf.xlu0 }
 0x204   :  { %7225 = vxpose.xlu1.b32.cont [5/16] %v7224_v4, 128 }
 0x205   :  { %v8016_v50 = vpop.trf.xlu0 }
 0x208   :  { %7227 = vxpose.xlu1.b32.cont [6/16] %v7226_v7, 128 }
 0x209   :  { %v8018_v51 = vpop.trf.xlu0 }
 0x20c   :  { %7229 = vxpose.xlu1.b32.cont [7/16] %v7228_v10, 128 }
 0x20d   :  { %v8020_v52 = vpop.trf.xlu0 }
 0x210   :  { %7231 = vxpose.xlu1.b32.cont [8/16] %v7230_v13, 128 }
 0x211   :  { %v8022_v53 = vpop.trf.xlu0 }
 0x214   :  { %7233 = vxpose.xlu1.b32.cont [9/16] %v7232_v16, 128 }
 0x215   :  { %v8024_v54 = vpop.trf.xlu0 }
 0x218   :  { %7235 = vxpose.xlu1.b32.cont [10/16] %v7234_v19, 128 }
 0x219   :  { %v8026_v55 = vpop.trf.xlu0 }
 0x21c   :  { %7237 = vxpose.xlu1.b32.cont [11/16] %v7236_v22, 128 }
 0x21d   :  { %v8028_v40 = vpop.trf.xlu0 }
 0x220   :  { %7239 = vxpose.xlu1.b32.cont [12/16] %v7238_v25, 128 }
 0x221   :  { %v8030_v56 = vpop.trf.xlu0 }
 0x224   :  { %7241 = vxpose.xlu1.b32.cont [13/16] %v7240_v28, 128 }
 0x225   :  { %v8032_v45 = vpop.trf.xlu0 }
 0x228   :  { %7243 = vxpose.xlu1.b32.cont [14/16] %v7242_v31, 128 }
 0x229   :  { %v8034_v57 = vpop.trf.xlu0 }
 0x22c   :  { %7245 = vxpose.xlu1.b32.cont [15/16] %v7244_v34, 128 }
 0x22d   :  { %v8036_v58 = vpop.trf.xlu0 }
 0x230   :  { %7247 = vxpose.xlu1.b32.end [16/16] %v7246_v39, 128 }
 0x274   :  { %v8044_v0 = vpop.trf.xlu1 }
 0x278   :  { %v8048_v6 = vpop.trf.xlu1 }
 0x27c   :  { %v8053_v12 = vpop.trf.xlu1 }
 0x280   :  { %v8058_v18 = vpop.trf.xlu1 }
 0x284   :  { %v8063_v24 = vpop.trf.xlu1 }
 0x288   :  { %v8068_v30 = vpop.trf.xlu1 }
 0x28c   :  { %v8073_v37 = vpop.trf.xlu1 }
 0x28f   :  { %v6396_v61 = vpop.f32.mrb[32].mxu0 }
 0x290   :  { %v1118_v62 = vadd.f32 %v6396_v61, %v8041_v60  ;;  %v1112_v63 = vpop.f32.mrb[33].mxu0 }
 0x291   :  { %v1113_v1 = vadd.f32 %v8041_v60, %v1112_v63 }
 0x293   :  { %v6949_v2 = vpack.c.bf16 %v1118_v62, %v1113_v1  ;;  %v6399_v3 = vpop.f32.mrb[34].mxu0 }
 0x294   :  { %v1128_v4 = vadd.f32 %v6399_v3, %v8041_v60  ;;  %v1122_v5 = vpop.f32.mrb[35].mxu0 }
 0x295   :  { %v1123_v7 = vadd.f32 %v8041_v60, %v1122_v5  ;;  %6950 = vmatpush1.bf16.msra.mxu1 %v6949_v2  ;;  %v8078_v2 = vpop.trf.xlu1 }
 0x296   :  { %6951 = vmatprep.subr.bf16.mxu1 %v9650_v59 }
 0x297   :  { %v6952_v8 = vpack.c.bf16 %v1128_v4, %v1123_v7  ;;  %v6402_v9 = vpop.f32.mrb[36].mxu0 }
 0x298   :  { %v1138_v10 = vadd.f32 %v6402_v9, %v8041_v60  ;;  %v1132_v11 = vpop.f32.mrb[37].mxu0 }
 0x299   :  { %v1133_v13 = vadd.f32 %v8041_v60, %v1132_v11  ;;  %6953 = vmatpush1.bf16.msra.mxu1 %v6952_v8  ;;  %v8083_v9 = vpop.trf.xlu1 }
 0x29a   :  { %6954 = vmatprep.subr.bf16.mxu1 %v9650_v59 }
 0x29b   :  { %v6955_v14 = vpack.c.bf16 %v1138_v10, %v1133_v13  ;;  %v6405_v15 = vpop.f32.mrb[38].mxu0 }
 0x29c   :  { %v1148_v16 = vadd.f32 %v6405_v15, %v8041_v60  ;;  %v1142_v17 = vpop.f32.mrb[39].mxu0 }
 0x29d   :  { %v1143_v19 = vadd.f32 %v8041_v60, %v1142_v17  ;;  %6956 = vmatpush1.bf16.msra.mxu1 %v6955_v14 }
 0x29e   :  { %6957 = vmatprep.subr.bf16.mxu1 %v9650_v59 }
 0x29f   :  { %v6958_v20 = vpack.c.bf16 %v1148_v16, %v1143_v19  ;;  %v6408_v21 = vpop.f32.mrb[40].mxu0  ;;  %v8088_v16 = vpop.trf.xlu1 }
 0x2a0   :  { %v1158_v22 = vadd.f32 %v6408_v21, %v8041_v60  ;;  %v1152_v23 = vpop.f32.mrb[41].mxu0 }
 0x2a1   :  { %v1153_v25 = vadd.f32 %v8041_v60, %v1152_v23  ;;  %6959 = vmatpush1.bf16.msra.mxu1 %v6958_v20 }
 0x2a2   :  { %6960 = vmatprep.subr.bf16.mxu1 %v9650_v59 }
 0x2a3   :  { %v6961_v26 = vpack.c.bf16 %v1158_v22, %v1153_v25  ;;  %v6411_v27 = vpop.f32.mrb[42].mxu0  ;;  %v8093_v23 = vpop.trf.xlu1 }
 0x2a4   :  { %v1168_v28 = vadd.f32 %v6411_v27, %v8041_v60  ;;  %v1162_v29 = vpop.f32.mrb[43].mxu0 }
 0x2a5   :  { %v1163_v31 = vadd.f32 %v8041_v60, %v1162_v29  ;;  %6962 = vmatpush1.bf16.msra.mxu1 %v6961_v26 }
 0x2a6   :  { %6963 = vmatprep.subr.bf16.mxu1 %v9650_v59 }
 0x2a7   :  { %v6964_v32 = vpack.c.bf16 %v1168_v28, %v1163_v31  ;;  %v6414_v33 = vpop.f32.mrb[44].mxu0  ;;  %v8098_v31 = vpop.trf.xlu1 }
 0x2a8   :  { %v1178_v34 = vadd.f32 %v6414_v33, %v8041_v60  ;;  %v1172_v36 = vpop.f32.mrb[45].mxu0 }
 0x2a9   :  { %v1173_v39 = vadd.f32 %v8041_v60, %v1172_v36  ;;  %6965 = vmatpush1.bf16.msra.mxu1 %v6964_v32 }
 0x2aa   :  { %6966 = vmatprep.subr.bf16.mxu1 %v9650_v59 }
 0x2ab   :  { %v6967_v61 = vpack.c.bf16 %v1178_v34, %v1173_v39  ;;  %v6417_v62 = vpop.f32.mrb[46].mxu0 }
 0x2ac   :  { %v1188_v63 = vadd.f32 %v6417_v62, %v8041_v60  ;;  %v1182_v1 = vpop.f32.mrb[47].mxu0 }
 0x2ad   :  { %v1183_v3 = vadd.f32 %v8041_v60, %v1182_v1  ;;  %6968 = vmatpush1.bf16.msra.mxu1 %v6967_v61  ;;  %v8103_v61 = vpop.trf.xlu1 }
 0x2ae   :  { %6969 = vmatprep.subr.bf16.mxu1 %v9650_v59 }
 0x2af   :  { %v6970_v4 = vpack.c.bf16 %v1188_v63, %v1183_v3  ;;  %v6420_v5 = vpop.f32.mrb[48].mxu0 }
 0x2b0   :  { %v1198_v7 = vadd.f32 %v6420_v5, %v8041_v60  ;;  %v1192_v8 = vpop.f32.mrb[49].mxu0 }
 0x2b1   :  { %v1193_v10 = vadd.f32 %v8041_v60, %v1192_v8  ;;  %6971 = vmatpush1.bf16.msra.mxu1 %v6970_v4  ;;  %v8108_v5 = vpop.trf.xlu1 }
 0x2b2   :  { %6972 = vmatprep.subr.bf16.mxu1 %v9650_v59 }
 0x2b3   :  { %v6973_v11 = vpack.c.bf16 %v1198_v7, %v1193_v10  ;;  %v6423_v13 = vpop.f32.mrb[50].mxu0 }
 0x2b4   :  { %v1208_v14 = vadd.f32 %v6423_v13, %v8041_v60  ;;  %v1202_v15 = vpop.f32.mrb[51].mxu0 }
 0x2b5   :  { %v1203_v17 = vadd.f32 %v8041_v60, %v1202_v15  ;;  %6974 = vmatpush1.bf16.msra.mxu1 %v6973_v11 }
 0x2b6   :  { %6975 = vmatprep.subr.bf16.mxu1 %v9650_v59 }
 0x2b7   :  { %v6976_v19 = vpack.c.bf16 %v1208_v14, %v1203_v17  ;;  %v6426_v20 = vpop.f32.mrb[52].mxu0  ;;  %v8113_v14 = vpop.trf.xlu1 }
 0x2b8   :  { %v1218_v21 = vadd.f32 %v6426_v20, %v8041_v60  ;;  %v1212_v22 = vpop.f32.mrb[53].mxu0 }
 0x2b9   :  { %v1213_v25 = vadd.f32 %v8041_v60, %v1212_v22  ;;  %6977 = vmatpush1.bf16.msra.mxu1 %v6976_v19 }
 0x2ba   :  { %6978 = vmatprep.subr.bf16.mxu1 %v9650_v59 }
 0x2bb   :  { %v6979_v26 = vpack.c.bf16 %v1218_v21, %v1213_v25  ;;  %v6429_v27 = vpop.f32.mrb[54].mxu0  ;;  %v8118_v22 = vpop.trf.xlu1 }
 0x2bc   :  { %v1228_v28 = vadd.f32 %v6429_v27, %v8041_v60  ;;  %v1222_v29 = vpop.f32.mrb[55].mxu0  ;;  %v9649_v27 = vunpack.i.h.bf16 %v8003_v41 }
 0x2bd   :  { %v1223_v32 = vadd.f32 %v8041_v60, %v1222_v29  ;;  %6980 = vmatpush1.bf16.msra.mxu1 %v6979_v26  ;;  %v9647_v29 = vunpack.i.h.bf16 %v8008_v46 }
 0x2be   :  { %6981 = vmatprep.subr.bf16.mxu1 %v9650_v59 }
 0x2bf   :  { %v6982_v33 = vpack.c.bf16 %v1228_v28, %v1223_v32  ;;  %v6432_v34 = vpop.f32.mrb[56].mxu0  ;;  %v9648_v28 = vunpack.i.l.bf16 %v8008_v46  ;;  %v9646_v32 = vunpack.i.l.bf16 %v8010_v47 }
 0x2c0   :  { %v1238_v36 = vadd.f32 %v6432_v34, %v8041_v60  ;;  %v1232_v39 = vpop.f32.mrb[57].mxu0  ;;  %v9643_v34 = vunpack.i.h.bf16 %v8012_v48 }
 0x2c1   :  { %v1233_v62 = vadd.f32 %v8041_v60, %v1232_v39  ;;  %6983 = vmatpush1.bf16.msra.mxu1 %v6982_v33  ;;  %v9644_v33 = vunpack.i.l.bf16 %v8012_v48  ;;  %v9641_v39 = vunpack.i.h.bf16 %v8014_v49 }
 0x2c2   :  { %6984 = vmatprep.subr.bf16.mxu1 %v9650_v59 }
 0x2c3   :  { %v6985_v63 = vpack.c.bf16 %v1238_v36, %v1233_v62  ;;  %v6435_v1 = vpop.f32.mrb[58].mxu0  ;;  %v9642_v36 = vunpack.i.l.bf16 %v8014_v49  ;;  %v9640_v62 = vunpack.i.l.bf16 %v8016_v50 }
 0x2c4   :  { %v1248_v3 = vadd.f32 %v6435_v1, %v8041_v60  ;;  %v1242_v4 = vpop.f32.mrb[59].mxu0  ;;  %v9638_v1 = vunpack.i.l.bf16 %v8018_v51 }
 0x2c5   :  { %v1243_v7 = vadd.f32 %v8041_v60, %v1242_v4  ;;  %6986 = vmatpush1.bf16.msra.mxu1 %v6985_v63  ;;  %v9639_v63 = vunpack.i.h.bf16 %v8016_v50  ;;  %v9636_v4 = vunpack.i.l.bf16 %v8020_v52 }
 0x2c6   :  { %6987 = vmatprep.subr.bf16.mxu1 %v9650_v59 }
 0x2c7   :  { %v6988_v8 = vpack.c.bf16 %v1248_v3, %v1243_v7  ;;  %v6438_v10 = vpop.f32.mrb[60].mxu0  ;;  %v9637_v3 = vunpack.i.h.bf16 %v8018_v51  ;;  %v9634_v7 = vunpack.i.h.bf16 %v8020_v52 }
 0x2c8   :  { %v1258_v11 = vadd.f32 %v6438_v10, %v8041_v60  ;;  %v1252_v13 = vpop.f32.mrb[61].mxu0  ;;  %v9630_v10 = vunpack.i.h.bf16 %v8022_v53 }
 0x2c9   :  { %v1253_v15 = vadd.f32 %v8041_v60, %v1252_v13  ;;  %6989 = vmatpush1.bf16.msra.mxu1 %v6988_v8  ;;  %v9632_v8 = vunpack.i.l.bf16 %v8022_v53  ;;  %v9624_v13 = vunpack.i.h.bf16 %v8024_v54 }
 0x2ca   :  { %6990 = vmatprep.subr.bf16.mxu1 %v9650_v59 }
 0x2cb   :  { %v6991_v17 = vpack.c.bf16 %v1258_v11, %v1253_v15  ;;  %v6441_v19 = vpop.f32.mrb[62].mxu0  ;;  %v9629_v11 = vunpack.i.l.bf16 %v8024_v54  ;;  %v9607_v15 = vunpack.i.l.bf16 %v8026_v55 }
 0x2cc   :  { %v1268_v20 = vadd.f32 %v6441_v19, %v8041_v60  ;;  %v1262_v21 = vpop.f32.mrb[63].mxu0  ;;  %v9588_v19 = vunpack.i.l.bf16 %v8028_v40 }
 0x2cd   :  { %v1263_v25 = vadd.f32 %v8041_v60, %v1262_v21  ;;  %6992 = vmatpush1.bf16.msra.mxu1 %v6991_v17  ;;  %v9645_v60 = vunpack.i.h.bf16 %v8010_v47  ;;  %v9587_v17 = vunpack.i.h.bf16 %v8026_v55  ;;  %v9590_v21 = vunpack.i.l.bf16 %v8030_v56 }
 0x2ce   :  { %6993 = vmatprep.subr.bf16.mxu1 %v9650_v59 }
 0x2cf   :  { %v6994_v26 = vpack.c.bf16 %v1268_v20, %v1263_v25  ;;  %v9589_v20 = vunpack.i.h.bf16 %v8028_v40  ;;  %v9591_v25 = vunpack.i.h.bf16 %v8030_v56 }
 0x2d1   :  { %6995 = vmatpush1.bf16.msra.mxu1 %v6994_v26  ;;  %v9592_v26 = vunpack.i.l.bf16 %v8032_v45 }
 0x2d4   :  { %1464 = vmatmul.mubr.f32.vlgmr.msra.gmra.mrb[32].mxu1 %v9649_v27 }
 0x2d5   :  { %1468 = vmatprep.mubr.f32.mxu1 %v9648_v28 }
 0x2d8   :  { %1469 = vmatmul.mubr.f32.gmra.mrb[34].mxu1 %v9647_v29 }
 0x2d9   :  { %1473 = vmatprep.mubr.f32.mxu1 %v9646_v32 }
 0x2dc   :  { %1474 = vmatmul.mubr.f32.gmra.mrb[36].mxu1 %v9645_v60 }
 0x2dd   :  { %1478 = vmatprep.mubr.f32.mxu1 %v9644_v33 }
 0x2e0   :  { %1479 = vmatmul.mubr.f32.gmra.mrb[38].mxu1 %v9643_v34 }
 0x2e1   :  { %1483 = vmatprep.mubr.f32.mxu1 %v9642_v36 }
 0x2e4   :  { %1484 = vmatmul.mubr.f32.gmra.mrb[40].mxu1 %v9641_v39 }
 0x2e5   :  { %1488 = vmatprep.mubr.f32.mxu1 %v9640_v62 }
 0x2e8   :  { %1489 = vmatmul.mubr.f32.gmra.mrb[42].mxu1 %v9639_v63 }
 0x2e9   :  { %1493 = vmatprep.mubr.f32.mxu1 %v9638_v1 }
 0x2ec   :  { %1494 = vmatmul.mubr.f32.gmra.mrb[44].mxu1 %v9637_v3 }
 0x2ed   :  { %1498 = vmatprep.mubr.f32.mxu1 %v9636_v4 }
 0x2f0   :  { %1499 = vmatmul.mubr.f32.gmra.mrb[46].mxu1 %v9634_v7 }
 0x2f1   :  { %1503 = vmatprep.mubr.f32.mxu1 %v9632_v8 }
 0x2f4   :  { %1504 = vmatmul.mubr.f32.gmra.mrb[48].mxu1 %v9630_v10 }
 0x2f5   :  { %1508 = vmatprep.mubr.f32.mxu1 %v9629_v11 }
 0x2f8   :  { %1509 = vmatmul.mubr.f32.gmra.mrb[50].mxu1 %v9624_v13  ;;  %v9635_v13 = vunpack.i.h.bf16 %v8118_v22 }
 0x2f9   :  { %1513 = vmatprep.mubr.f32.mxu1 %v9607_v15 }
 0x2fc   :  { %1514 = vmatmul.mubr.f32.gmra.mrb[52].mxu1 %v9587_v17  ;;  %v9593_v17 = vunpack.i.h.bf16 %v8032_v45 }
 0x2fd   :  { %1518 = vmatprep.mubr.f32.mxu1 %v9588_v19  ;;  %v9594_v19 = vunpack.i.l.bf16 %v8034_v57 }
 0x300   :  { %1519 = vmatmul.mubr.f32.gmra.mrb[54].mxu1 %v9589_v20  ;;  %v9595_v20 = vunpack.i.h.bf16 %v8034_v57 }
 0x301   :  { %1523 = vmatprep.mubr.f32.mxu1 %v9590_v21  ;;  %v9596_v21 = vunpack.i.l.bf16 %v8036_v58 }
 0x304   :  { %1524 = vmatmul.mubr.f32.gmra.mrb[56].mxu1 %v9591_v25  ;;  %v9597_v25 = vunpack.i.h.bf16 %v8036_v58 }
 0x305   :  { %1528 = vmatprep.mubr.f32.mxu1 %v9592_v26  ;;  %v9598_v26 = vunpack.i.l.bf16 %v8044_v0 }
 0x308   :  { %1529 = vmatmul.mubr.f32.gmra.mrb[58].mxu1 %v9593_v17  ;;  %v9599_v17 = vunpack.i.h.bf16 %v8044_v0 }
 0x309   :  { %1533 = vmatprep.mubr.f32.mxu1 %v9594_v19  ;;  %v9600_v19 = vunpack.i.l.bf16 %v8048_v6 }
 0x30c   :  { %1534 = vmatmul.mubr.f32.gmra.mrb[60].mxu1 %v9595_v20  ;;  %v9601_v20 = vunpack.i.h.bf16 %v8048_v6 }
 0x30d   :  { %1538 = vmatprep.mubr.f32.mxu1 %v9596_v21  ;;  %v9602_v21 = vunpack.i.l.bf16 %v8053_v12 }
 0x310   :  { %1539 = vmatmul.mubr.f32.gmra.mrb[62].mxu1 %v9597_v25  ;;  %v9603_v25 = vunpack.i.h.bf16 %v8053_v12 }
 0x311   :  { %1543 = vmatprep.mubr.f32.mxu1 %v9598_v26  ;;  %v9604_v26 = vunpack.i.l.bf16 %v8058_v18 }
 0x314   :  { %1544 = vmatmul.mubr.f32.gmra.mrb[64].mxu1 %v9599_v17  ;;  %v9605_v17 = vunpack.i.h.bf16 %v8058_v18 }
 0x315   :  { %1548 = vmatprep.mubr.f32.mxu1 %v9600_v19  ;;  %v9606_v19 = vunpack.i.l.bf16 %v8063_v24 }
 0x318   :  { %1549 = vmatmul.mubr.f32.gmra.mrb[66].mxu1 %v9601_v20  ;;  %v9608_v20 = vunpack.i.h.bf16 %v8063_v24 }
 0x319   :  { %1553 = vmatprep.mubr.f32.mxu1 %v9602_v21  ;;  %v9609_v21 = vunpack.i.l.bf16 %v8068_v30 }
 0x31c   :  { %1554 = vmatmul.mubr.f32.gmra.mrb[68].mxu1 %v9603_v25  ;;  %v9610_v25 = vunpack.i.h.bf16 %v8068_v30 }
 0x31d   :  { %1558 = vmatprep.mubr.f32.mxu1 %v9604_v26  ;;  %v9611_v26 = vunpack.i.l.bf16 %v8073_v37 }
 0x320   :  { %1559 = vmatmul.mubr.f32.gmra.mrb[70].mxu1 %v9605_v17  ;;  %v1624_v17 = vld [vmem:[%s9580_s8] sm:$0xff] }
 0x321   :  { %1563 = vmatprep.mubr.f32.mxu1 %v9606_v19  ;;  %v1625_v19 = vld [vmem:[%s9580_s8 + $0x8] sm:$0xff] }
 0x322   :  { %v8256_v15 = vpack.c.bf16 %v1625_v19, %v1624_v17  ;;  %v9614_v17 = vunpack.i.h.bf16 %v8078_v2  ;;  %v9615_v19 = vunpack.i.l.bf16 %v8083_v9 }
 0x324   :  { %1564 = vmatmul.mubr.f32.gmra.mrb[72].mxu1 %v9608_v20  ;;  %v9612_v20 = vunpack.i.h.bf16 %v8073_v37  ;;  %6997 = vmatprep.subr.bf16.mxu0 %v8256_v15 }
 0x325   :  { %1568 = vmatprep.mubr.f32.mxu1 %v9609_v21  ;;  %v9613_v21 = vunpack.i.l.bf16 %v8078_v2  ;;  %6999 = vmatpush3.bf16.msra.mxu0 %v8256_v15 }
 0x328   :  { %1569 = vmatmul.mubr.f32.gmra.mrb[74].mxu1 %v9610_v25  ;;  %v9616_v25 = vunpack.i.h.bf16 %v8083_v9 }
 0x329   :  { %1573 = vmatprep.mubr.f32.mxu1 %v9611_v26  ;;  %v9617_v26 = vunpack.i.l.bf16 %v8088_v16 }
 0x32c   :  { %1574 = vmatmul.mubr.f32.gmra.mrb[76].mxu1 %v9612_v20  ;;  %v9618_v20 = vunpack.i.h.bf16 %v8088_v16 }
 0x32d   :  { %1578 = vmatprep.mubr.f32.mxu1 %v9613_v21  ;;  %v9619_v21 = vunpack.i.l.bf16 %v8093_v23 }
 0x330   :  { %1579 = vmatmul.mubr.f32.gmra.mrb[78].mxu1 %v9614_v17  ;;  %v9620_v17 = vunpack.i.h.bf16 %v8093_v23 }
 0x331   :  { %1583 = vmatprep.mubr.f32.mxu1 %v9615_v19  ;;  %v9621_v19 = vunpack.i.l.bf16 %v8098_v31 }
 0x334   :  { %1584 = vmatmul.mubr.f32.gmra.mrb[80].mxu1 %v9616_v25  ;;  %v9622_v25 = vunpack.i.h.bf16 %v8098_v31 }
 0x335   :  { %1588 = vmatprep.mubr.f32.mxu1 %v9617_v26  ;;  %v9623_v26 = vunpack.i.l.bf16 %v8103_v61 }
 0x338   :  { %1589 = vmatmul.mubr.f32.gmra.mrb[82].mxu1 %v9618_v20  ;;  %v9627_v20 = vunpack.i.h.bf16 %v8103_v61 }
 0x339   :  { %1593 = vmatprep.mubr.f32.mxu1 %v9619_v21  ;;  %v9626_v21 = vunpack.i.l.bf16 %v8108_v5 }
 0x33c   :  { %1594 = vmatmul.mubr.f32.gmra.mrb[84].mxu1 %v9620_v17  ;;  %v9625_v17 = vunpack.i.h.bf16 %v8108_v5 }
 0x33d   :  { %1598 = vmatprep.mubr.f32.mxu1 %v9621_v19  ;;  %v9628_v19 = vunpack.i.l.bf16 %v8113_v14 }
 0x340   :  { %1599 = vmatmul.mubr.f32.gmra.mrb[86].mxu1 %v9622_v25  ;;  %v9631_v25 = vunpack.i.h.bf16 %v8113_v14 }
 0x341   :  { %1603 = vmatprep.mubr.f32.mxu1 %v9623_v26  ;;  %v9633_v26 = vunpack.i.l.bf16 %v8118_v22 }
 0x344   :  { %1604 = vmatmul.mubr.f32.gmra.mrb[88].mxu1 %v9627_v20 }
 0x345   :  { %1608 = vmatprep.mubr.f32.mxu1 %v9626_v21 }
 0x348   :  { %1609 = vmatmul.mubr.f32.gmra.mrb[90].mxu1 %v9625_v17 }
 0x349   :  { %1613 = vmatprep.mubr.f32.mxu1 %v9628_v19 }
 0x34c   :  { %1614 = vmatmul.mubr.f32.gmra.mrb[92].mxu1 %v9631_v25 }
 0x34d   :  { %1618 = vmatprep.mubr.f32.mxu1 %v9633_v26 }
 0x350   :  { %1619 = vmatmul.mubr.f32.gmra.mrb[94].mxu1 %v9635_v13 }
 0x3a7   :  { %v1465_v17 = vpop.f32.mrb[32].mxu1 }
 0x3a8   :  { %v1467_v21 = vpop.f32.mrb[33].mxu1  ;;  %6446 = vmatprep.mubr.msk.f32.mxu0 %vm1633_vm3, %v1465_v17 }
 0x3ab   :  { %v1470_v20 = vpop.f32.mrb[34].mxu1 }
 0x3ac   :  { %v1472_v19 = vpop.f32.mrb[35].mxu1  ;;  %6447 = vmatmul.mubr.msk.f32.vlgmr.msra.gmra.mrb[64].mxu0 %vm1633_vm3, %v1470_v20 }
 0x3af   :  { %v1475_v11 = vpop.f32.mrb[36].mxu1 }
 0x3b0   :  { %v1477_v10 = vpop.f32.mrb[37].mxu1  ;;  %6449 = vmatprep.mubr.msk.f32.mxu0 %vm1633_vm3, %v1475_v11 }
 0x3b3   :  { %v1480_v25 = vpop.f32.mrb[38].mxu1 }
 0x3b4   :  { %v1482_v8 = vpop.f32.mrb[39].mxu1  ;;  %6450 = vmatmul.mubr.msk.f32.gmra.mrb[66].mxu0 %vm1633_vm3, %v1480_v25 }
 0x3b7   :  { %v1485_v26 = vpop.f32.mrb[40].mxu1 }
 0x3b8   :  { %v1487_v7 = vpop.f32.mrb[41].mxu1  ;;  %6452 = vmatprep.mubr.msk.f32.mxu0 %vm1633_vm3, %v1485_v26 }
 0x3bb   :  { %v1490_v13 = vpop.f32.mrb[42].mxu1 }
 0x3bc   :  { %v1492_v21 = vpop.f32.mrb[43].mxu1  ;;  %6453 = vmatmul.mubr.msk.f32.gmra.mrb[68].mxu0 %vm1633_vm3, %v1490_v13 }
 0x3bf   :  { %v1495_v17 = vpop.f32.mrb[44].mxu1 }
 0x3c0   :  { %v1497_v19 = vpop.f32.mrb[45].mxu1  ;;  %6455 = vmatprep.mubr.msk.f32.mxu0 %vm1633_vm3, %v1495_v17 }
 0x3c3   :  { %v1500_v20 = vpop.f32.mrb[46].mxu1 }
 0x3c4   :  { %v1502_v10 = vpop.f32.mrb[47].mxu1  ;;  %6456 = vmatmul.mubr.msk.f32.gmra.mrb[70].mxu0 %vm1633_vm3, %v1500_v20 }
 0x3c7   :  { %v1505_v11 = vpop.f32.mrb[48].mxu1 }
 0x3c8   :  { %v1507_v8 = vpop.f32.mrb[49].mxu1  ;;  %6458 = vmatprep.mubr.msk.f32.mxu0 %vm1633_vm3, %v1505_v11 }
 0x3cb   :  { %v1510_v25 = vpop.f32.mrb[50].mxu1 }
 0x3cc   :  { %v1512_v7 = vpop.f32.mrb[51].mxu1  ;;  %6459 = vmatmul.mubr.msk.f32.gmra.mrb[72].mxu0 %vm1633_vm3, %v1510_v25 }
 0x3cf   :  { %v1515_v26 = vpop.f32.mrb[52].mxu1 }
 0x3d0   :  { %v1517_v21 = vpop.f32.mrb[53].mxu1  ;;  %6461 = vmatprep.mubr.msk.f32.mxu0 %vm1633_vm3, %v1515_v26 }
 0x3d3   :  { %v1520_v13 = vpop.f32.mrb[54].mxu1 }
 0x3d4   :  { %v1522_v19 = vpop.f32.mrb[55].mxu1  ;;  %6462 = vmatmul.mubr.msk.f32.gmra.mrb[74].mxu0 %vm1633_vm3, %v1520_v13 }
 0x3d7   :  { %v1525_v17 = vpop.f32.mrb[56].mxu1 }
 0x3d8   :  { %v1527_v10 = vpop.f32.mrb[57].mxu1  ;;  %6464 = vmatprep.mubr.msk.f32.mxu0 %vm1633_vm3, %v1525_v17 }
 0x3db   :  { %v1530_v20 = vpop.f32.mrb[58].mxu1 }
 0x3dc   :  { %v1532_v8 = vpop.f32.mrb[59].mxu1  ;;  %6465 = vmatmul.mubr.msk.f32.gmra.mrb[76].mxu0 %vm1633_vm3, %v1530_v20 }
 0x3df   :  { %v1535_v11 = vpop.f32.mrb[60].mxu1 }
 0x3e0   :  { %v1537_v7 = vpop.f32.mrb[61].mxu1  ;;  %6467 = vmatprep.mubr.msk.f32.mxu0 %vm1633_vm3, %v1535_v11 }
 0x3e3   :  { %v1540_v25 = vpop.f32.mrb[62].mxu1 }
 0x3e4   :  { %v1542_v21 = vpop.f32.mrb[63].mxu1  ;;  %6468 = vmatmul.mubr.msk.f32.gmra.mrb[78].mxu0 %vm1633_vm3, %v1540_v25 }
 0x3e7   :  { %v1545_v26 = vpop.f32.mrb[64].mxu1 }
 0x3e8   :  { %v1547_v19 = vpop.f32.mrb[65].mxu1  ;;  %6470 = vmatprep.mubr.msk.f32.mxu0 %vm1633_vm3, %v1545_v26  ;;  %v2019_v26 = vld [vmem:[%s9581_s9] sm:$0xff] }
 0x3eb   :  { %v1550_v13 = vpop.f32.mrb[66].mxu1 }
 0x3ec   :  { %v1552_v10 = vpop.f32.mrb[67].mxu1  ;;  %6471 = vmatmul.mubr.msk.f32.gmra.mrb[80].mxu0 %vm1633_vm3, %v1550_v13  ;;  %v2020_v13 = vld [vmem:[%s9581_s9 + $0x8] sm:$0xff] }
 0x3ed   :  { %v8349_v10 = vpack.c.bf16 %v2020_v13, %v2019_v26 }
 0x3ef   :  { %v1555_v17 = vpop.f32.mrb[68].mxu1  ;;  %7001 = vmatprep.subr.bf16.mxu0 %v8349_v10 }
 0x3f0   :  { %v1557_v8 = vpop.f32.mrb[69].mxu1  ;;  %6473 = vmatprep.mubr.msk.f32.mxu0 %vm1633_vm3, %v1555_v17  ;;  %7003 = vmatpush3.bf16.msra.mxu0 %v8349_v10 }
 0x3f3   :  { %v1560_v20 = vpop.f32.mrb[70].mxu1 }
 0x3f4   :  { %v1562_v7 = vpop.f32.mrb[71].mxu1  ;;  %6474 = vmatmul.mubr.msk.f32.gmra.mrb[82].mxu0 %vm1633_vm3, %v1560_v20  ;;  %v2021_v20 = vld [vmem:[%s9581_s9 + $0x10] sm:$0xff] }
 0x3f5   :  { %v2022_v7 = vld [vmem:[%s9581_s9 + $0x18] sm:$0xff] }
 0x3f7   :  { %v1565_v11 = vpop.f32.mrb[72].mxu1 }
 0x3f8   :  { %v1567_v21 = vpop.f32.mrb[73].mxu1  ;;  %6476 = vmatprep.mubr.msk.f32.mxu0 %vm1633_vm3, %v1565_v11  ;;  %v8360_v11 = vpack.c.bf16 %v2022_v7, %v2021_v20 }
 0x3fa   :  { %7005 = vmatprep.subr.bf16.mxu0 %v8360_v11 }
 0x3fb   :  { %v1570_v25 = vpop.f32.mrb[74].mxu1  ;;  %7007 = vmatpush3.bf16.msra.mxu0 %v8360_v11 }
 0x3fc   :  { %v1572_v19 = vpop.f32.mrb[75].mxu1  ;;  %6477 = vmatmul.mubr.msk.f32.gmra.mrb[84].mxu0 %vm1633_vm3, %v1570_v25 }
 0x3fd   :  { %v7328_v19 = vld [vmem:[%s9574_s2] sm:$0xf] }
 0x3fe   :  { %6606 = vmatprep.subr.msk.mxu0 %vm249_vm0, %v7328_v19 }
 0x3ff   :  { %v1575_v17 = vpop.f32.mrb[76].mxu1 }
 0x400   :  { %v1577_v8 = vpop.f32.mrb[77].mxu1  ;;  %6479 = vmatprep.mubr.msk.f32.mxu0 %vm1633_vm3, %v1575_v17 }
 0x403   :  { %v1580_v21 = vpop.f32.mrb[78].mxu1 }
 0x404   :  { %v1582_v25 = vpop.f32.mrb[79].mxu1  ;;  %6480 = vmatmul.mubr.msk.f32.gmra.mrb[86].mxu0 %vm1633_vm3, %v1580_v21 }
 0x407   :  { %v1585_v26 = vpop.f32.mrb[80].mxu1 }
 0x408   :  { %v1587_v13 = vpop.f32.mrb[81].mxu1  ;;  %6482 = vmatprep.mubr.msk.f32.mxu0 %vm1633_vm3, %v1585_v26 }
 0x40b   :  { %v1590_v17 = vpop.f32.mrb[82].mxu1 }
 0x40c   :  { %v1592_v8 = vpop.f32.mrb[83].mxu1  ;;  %6483 = vmatmul.mubr.msk.f32.gmra.mrb[88].mxu0 %vm1633_vm3, %v1590_v17 }
 0x40f   :  { %v1595_v20 = vpop.f32.mrb[84].mxu1 }
 0x410   :  { %v1597_v7 = vpop.f32.mrb[85].mxu1  ;;  %6485 = vmatprep.mubr.msk.f32.mxu0 %vm1633_vm3, %v1595_v20  ;;  %v8380_v20 = vld [vmem:[%s9583_s11] ss:$0 sm:$0xff] }
 0x413   :  { %v1600_v21 = vpop.f32.mrb[86].mxu1 }
 0x414   :  { %v1602_v25 = vpop.f32.mrb[87].mxu1  ;;  %6486 = vmatmul.mubr.msk.f32.gmra.mrb[90].mxu0 %vm1633_vm3, %v1600_v21 }
 0x417   :  { %v1605_v4 = vpop.f32.mrb[88].mxu1 }
 0x418   :  { %v1607_v3 = vpop.f32.mrb[89].mxu1  ;;  %6488 = vmatprep.mubr.msk.f32.mxu0 %vm1633_vm3, %v1605_v4 }
 0x41b   :  { %v1610_v1 = vpop.f32.mrb[90].mxu1 }
 0x41c   :  { %v1612_v13 = vpop.f32.mrb[91].mxu1  ;;  %6489 = vmatmul.mubr.msk.f32.gmra.mrb[92].mxu0 %vm1633_vm3, %v1610_v1 }
 0x41f   :  { %v1615_v26 = vpop.f32.mrb[92].mxu1 }
 0x420   :  { %v1617_v8 = vpop.f32.mrb[93].mxu1  ;;  %6491 = vmatprep.mubr.msk.f32.mxu0 %vm1633_vm3, %v1615_v26 }
 0x423   :  { %v1620_v17 = vpop.f32.mrb[94].mxu1 }
 0x424   :  { %v1622_v7 = vpop.f32.mrb[95].mxu1  ;;  %6492 = vmatmul.mubr.msk.f32.gmra.mrb[94].mxu0 %vm1633_vm3, %v1620_v17 }
 0x47f   :  { %v6448_v3 = vpop.f32.mrb[64].mxu0 }
 0x480   :  { %v1802_v4 = vadd.f32 %v6448_v3, %v8380_v20  ;;  %v1796_v21 = vpop.f32.mrb[65].mxu0 }
 0x481   :  { %v1797_v25 = vadd.f32 %v8380_v20, %v1796_v21 }
 0x482   :  { %v1956_v1 = vmul.f32 0.05, %v1802_v4 }
 0x483   :  { %v1955_v13 = vmul.f32 0.05, %v1797_v25 }
 0x484   :  { %v1988_v63 = vmax.f32 %v1802_v4, %v1956_v1 }
 0x485   :  { %v1987_v8 = vmax.f32 %v1797_v25, %v1955_v13 }
 0x487   :  { %v6451_v26 = vpop.f32.mrb[66].mxu0  ;;  %6502 = vmatprep.mubr.msk.f32.mxu0 %vm553_vm2, %v1987_v8 }
 0x488   :  { %v1812_v17 = vadd.f32 %v6451_v26, %v8380_v20  ;;  %v1806_v7 = vpop.f32.mrb[67].mxu0  ;;  %6503 = vmatmul.mubr.msk.f32.vlgmr.msra.gmra.mrb[96].mxu0 %vm553_vm2, %v1988_v63 }
 0x489   :  { %v1807_v62 = vadd.f32 %v8380_v20, %v1806_v7  ;;  %6607 = vmatpush3.msk.msra.mxu0 %vm249_vm0, %v7328_v19 }
 0x48a   :  { %v1958_v3 = vmul.f32 0.05, %v1812_v17  ;;  %7025 = vmatprep.subr.bf16.mxu0 %v7661_v42 }
 0x48b   :  { %v1957_v21 = vmul.f32 0.05, %v1807_v62 }
 0x48c   :  { %v1990_v36 = vmax.f32 %v1812_v17, %v1958_v3 }
 0x48d   :  { %v1989_v39 = vmax.f32 %v1807_v62, %v1957_v21 }
 0x48f   :  { %v6454_v25 = vpop.f32.mrb[68].mxu0  ;;  %6505 = vmatprep.mubr.msk.f32.mxu0 %vm553_vm2, %v1989_v39 }
 0x490   :  { %v1822_v4 = vadd.f32 %v6454_v25, %v8380_v20  ;;  %v1816_v1 = vpop.f32.mrb[69].mxu0  ;;  %6506 = vmatmul.mubr.msk.f32.gmra.mrb[98].mxu0 %vm553_vm2, %v1990_v36  ;;  %v2415_v36 = vld [vmem:[%s9582_s10] sm:$0xff] }
 0x491   :  { %v1817_v63 = vadd.f32 %v8380_v20, %v1816_v1 }
 0x492   :  { %v1960_v13 = vmul.f32 0.05, %v1822_v4 }
 0x493   :  { %v1959_v8 = vmul.f32 0.05, %v1817_v63 }
 0x494   :  { %v1992_v19 = vmax.f32 %v1822_v4, %v1960_v13  ;;  %v2416_v4 = vld [vmem:[%s9582_s10 + $0x8] sm:$0xff] }
 0x495   :  { %v1991_v26 = vmax.f32 %v1817_v63, %v1959_v8  ;;  %v8404_v63 = vpack.c.bf16 %v2416_v4, %v2415_v36 }
 0x497   :  { %v6457_v7 = vpop.f32.mrb[70].mxu0  ;;  %6508 = vmatprep.mubr.msk.f32.mxu0 %vm553_vm2, %v1991_v26  ;;  %7009 = vmatprep.subr.bf16.mxu1 %v8404_v63 }
 0x498   :  { %v1832_v62 = vadd.f32 %v6457_v7, %v8380_v20  ;;  %v1826_v17 = vpop.f32.mrb[71].mxu0  ;;  %6509 = vmatmul.mubr.msk.f32.gmra.mrb[100].mxu0 %vm553_vm2, %v1992_v19  ;;  %7011 = vmatpush3.bf16.msra.mxu1 %v8404_v63 }
 0x499   :  { %v1827_v39 = vadd.f32 %v8380_v20, %v1826_v17 }
 0x49a   :  { %v1962_v3 = vmul.f32 0.05, %v1832_v62 }
 0x49b   :  { %v1961_v21 = vmul.f32 0.05, %v1827_v39 }
 0x49c   :  { %v1994_v1 = vmax.f32 %v1832_v62, %v1962_v3 }
 0x49d   :  { %v1993_v25 = vmax.f32 %v1827_v39, %v1961_v21 }
 0x49f   :  { %v6460_v13 = vpop.f32.mrb[72].mxu0  ;;  %6511 = vmatprep.mubr.msk.f32.mxu0 %vm553_vm2, %v1993_v25 }
 0x4a0   :  { %v1842_v8 = vadd.f32 %v6460_v13, %v8380_v20  ;;  %v1836_v26 = vpop.f32.mrb[73].mxu0  ;;  %6512 = vmatmul.mubr.msk.f32.gmra.mrb[102].mxu0 %vm553_vm2, %v1994_v1 }
 0x4a1   :  { %v1837_v19 = vadd.f32 %v8380_v20, %v1836_v26 }
 0x4a2   :  { %v1964_v7 = vmul.f32 0.05, %v1842_v8 }
 0x4a3   :  { %v1963_v17 = vmul.f32 0.05, %v1837_v19 }
 0x4a4   :  { %v1996_v62 = vmax.f32 %v1842_v8, %v1964_v7 }
 0x4a5   :  { %v1995_v39 = vmax.f32 %v1837_v19, %v1963_v17 }
 0x4a7   :  { %v6463_v3 = vpop.f32.mrb[74].mxu0  ;;  %6514 = vmatprep.mubr.msk.f32.mxu0 %vm553_vm2, %v1995_v39 }
 0x4a8   :  { %v1852_v21 = vadd.f32 %v6463_v3, %v8380_v20  ;;  %v1846_v25 = vpop.f32.mrb[75].mxu0  ;;  %6515 = vmatmul.mubr.msk.f32.gmra.mrb[104].mxu0 %vm553_vm2, %v1996_v62 }
 0x4a9   :  { %v1847_v36 = vadd.f32 %v8380_v20, %v1846_v25 }
 0x4aa   :  { %v1966_v4 = vmul.f32 0.05, %v1852_v21 }
 0x4ab   :  { %v1965_v1 = vmul.f32 0.05, %v1847_v36 }
 0x4ac   :  { %v1998_v26 = vmax.f32 %v1852_v21, %v1966_v4 }
 0x4ad   :  { %v1997_v13 = vmax.f32 %v1847_v36, %v1965_v1 }
 0x4af   :  { %v6466_v34 = vpop.f32.mrb[76].mxu0  ;;  %6517 = vmatprep.mubr.msk.f32.mxu0 %vm553_vm2, %v1997_v13 }
 0x4b0   :  { %v1862_v19 = vadd.f32 %v6466_v34, %v8380_v20  ;;  %v1856_v8 = vpop.f32.mrb[77].mxu0  ;;  %6518 = vmatmul.mubr.msk.f32.gmra.mrb[106].mxu0 %vm553_vm2, %v1998_v26 }
 0x4b1   :  { %v1857_v7 = vadd.f32 %v8380_v20, %v1856_v8 }
 0x4b2   :  { %v1968_v17 = vmul.f32 0.05, %v1862_v19 }
 0x4b3   :  { %v1967_v39 = vmul.f32 0.05, %v1857_v7 }
 0x4b4   :  { %v2000_v62 = vmax.f32 %v1862_v19, %v1968_v17 }
 0x4b5   :  { %v1999_v3 = vmax.f32 %v1857_v7, %v1967_v39 }
 0x4b7   :  { %v6469_v33 = vpop.f32.mrb[78].mxu0  ;;  %6520 = vmatprep.mubr.msk.f32.mxu0 %vm553_vm2, %v1999_v3 }
 0x4b8   :  { %v1872_v25 = vadd.f32 %v6469_v33, %v8380_v20  ;;  %v1866_v21 = vpop.f32.mrb[79].mxu0  ;;  %6521 = vmatmul.mubr.msk.f32.gmra.mrb[108].mxu0 %vm553_vm2, %v2000_v62 }
 0x4b9   :  { %v1867_v36 = vadd.f32 %v8380_v20, %v1866_v21 }
 0x4ba   :  { %v1970_v34 = vmul.f32 0.05, %v1872_v25 }
 0x4bb   :  { %v1969_v4 = vmul.f32 0.05, %v1867_v36 }
 0x4bc   :  { %v2002_v13 = vmax.f32 %v1872_v25, %v1970_v34 }
 0x4bd   :  { %v2001_v1 = vmax.f32 %v1867_v36, %v1969_v4 }
 0x4bf   :  { %v6472_v26 = vpop.f32.mrb[80].mxu0  ;;  %6523 = vmatprep.mubr.msk.f32.mxu0 %vm553_vm2, %v2001_v1 }
 0x4c0   :  { %v1882_v8 = vadd.f32 %v6472_v26, %v8380_v20  ;;  %v1876_v19 = vpop.f32.mrb[81].mxu0  ;;  %6524 = vmatmul.mubr.msk.f32.gmra.mrb[110].mxu0 %vm553_vm2, %v2002_v13 }
 0x4c1   :  { %v1877_v7 = vadd.f32 %v8380_v20, %v1876_v19 }
 0x4c2   :  { %v1972_v33 = vmul.f32 0.05, %v1882_v8 }
 0x4c3   :  { %v1971_v17 = vmul.f32 0.05, %v1877_v7 }
 0x4c4   :  { %v2004_v3 = vmax.f32 %v1882_v8, %v1972_v33 }
 0x4c5   :  { %v2003_v39 = vmax.f32 %v1877_v7, %v1971_v17 }
 0x4c7   :  { %v6475_v62 = vpop.f32.mrb[82].mxu0  ;;  %6526 = vmatprep.mubr.msk.f32.mxu0 %vm553_vm2, %v2003_v39 }
 0x4c8   :  { %v1892_v21 = vadd.f32 %v6475_v62, %v8380_v20  ;;  %v1886_v25 = vpop.f32.mrb[83].mxu0  ;;  %6527 = vmatmul.mubr.msk.f32.gmra.mrb[112].mxu0 %vm553_vm2, %v2004_v3 }
 0x4c9   :  { %v1887_v36 = vadd.f32 %v8380_v20, %v1886_v25 }
 0x4ca   :  { %v1974_v34 = vmul.f32 0.05, %v1892_v21 }
 0x4cb   :  { %v1973_v4 = vmul.f32 0.05, %v1887_v36 }
 0x4cc   :  { %v2006_v13 = vmax.f32 %v1892_v21, %v1974_v34 }
 0x4cd   :  { %v2005_v1 = vmax.f32 %v1887_v36, %v1973_v4 }
 0x4cf   :  { %v6478_v26 = vpop.f32.mrb[84].mxu0  ;;  %6529 = vmatprep.mubr.msk.f32.mxu0 %vm553_vm2, %v2005_v1 }
 0x4d0   :  { %v1902_v19 = vadd.f32 %v6478_v26, %v8380_v20  ;;  %v1896_v8 = vpop.f32.mrb[85].mxu0  ;;  %6530 = vmatmul.mubr.msk.f32.gmra.mrb[114].mxu0 %vm553_vm2, %v2006_v13  ;;  %v2417_v13 = vld [vmem:[%s9582_s10 + $0x10] sm:$0xff]  ;;  %v2418_v26 = vld [vmem:[%s9582_s10 + $0x18] sm:$0xff] }
 0x4d1   :  { %v1897_v7 = vadd.f32 %v8380_v20, %v1896_v8  ;;  %v8446_v8 = vpack.c.bf16 %v2418_v26, %v2417_v13 }
 0x4d2   :  { %v1976_v33 = vmul.f32 0.05, %v1902_v19 }
 0x4d3   :  { %v1975_v17 = vmul.f32 0.05, %v1897_v7  ;;  %7013 = vmatprep.subr.bf16.mxu1 %v8446_v8 }
 0x4d4   :  { %v2008_v3 = vmax.f32 %v1902_v19, %v1976_v33  ;;  %7015 = vmatpush3.bf16.msra.mxu1 %v8446_v8 }
 0x4d5   :  { %v2007_v39 = vmax.f32 %v1897_v7, %v1975_v17  ;;  %7017 = vmatprep.subr.bf16.mxu1 %v7638_v35 }
 0x4d7   :  { %v6481_v62 = vpop.f32.mrb[86].mxu0  ;;  %6532 = vmatprep.mubr.msk.f32.mxu0 %vm553_vm2, %v2007_v39 }
 0x4d8   :  { %v1912_v25 = vadd.f32 %v6481_v62, %v8380_v20  ;;  %v1906_v21 = vpop.f32.mrb[87].mxu0  ;;  %6533 = vmatmul.mubr.msk.f32.gmra.mrb[116].mxu0 %vm553_vm2, %v2008_v3 }
 0x4d9   :  { %v1907_v36 = vadd.f32 %v8380_v20, %v1906_v21 }
 0x4da   :  { %v1978_v34 = vmul.f32 0.05, %v1912_v25 }
 0x4db   :  { %v1977_v4 = vmul.f32 0.05, %v1907_v36 }
 0x4dc   :  { %v2010_v19 = vmax.f32 %v1912_v25, %v1978_v34 }
 0x4dd   :  { %v2009_v1 = vmax.f32 %v1907_v36, %v1977_v4 }
 0x4df   :  { %v6484_v7 = vpop.f32.mrb[88].mxu0  ;;  %6535 = vmatprep.mubr.msk.f32.mxu0 %vm553_vm2, %v2009_v1 }
 0x4e0   :  { %v1922_v33 = vadd.f32 %v6484_v7, %v8380_v20  ;;  %v1916_v17 = vpop.f32.mrb[89].mxu0  ;;  %6536 = vmatmul.mubr.msk.f32.gmra.mrb[118].mxu0 %vm553_vm2, %v2010_v19 }
 0x4e1   :  { %v1917_v39 = vadd.f32 %v8380_v20, %v1916_v17 }
 0x4e2   :  { %v1980_v3 = vmul.f32 0.05, %v1922_v33 }
 0x4e3   :  { %v1979_v62 = vmul.f32 0.05, %v1917_v39 }
 0x4e4   :  { %v2012_v21 = vmax.f32 %v1922_v33, %v1980_v3 }
 0x4e5   :  { %v2011_v25 = vmax.f32 %v1917_v39, %v1979_v62 }
 0x4e7   :  { %v6487_v36 = vpop.f32.mrb[90].mxu0  ;;  %6538 = vmatprep.mubr.msk.f32.mxu0 %vm553_vm2, %v2011_v25 }
 0x4e8   :  { %v1932_v34 = vadd.f32 %v6487_v36, %v8380_v20  ;;  %v1926_v4 = vpop.f32.mrb[91].mxu0  ;;  %6539 = vmatmul.mubr.msk.f32.gmra.mrb[120].mxu0 %vm553_vm2, %v2012_v21 }
 0x4e9   :  { %v1927_v1 = vadd.f32 %v8380_v20, %v1926_v4 }
 0x4ea   :  { %v1982_v13 = vmul.f32 0.05, %v1932_v34 }
 0x4eb   :  { %v1981_v26 = vmul.f32 0.05, %v1927_v1 }
 0x4ec   :  { %v2014_v7 = vmax.f32 %v1932_v34, %v1982_v13 }
 0x4ed   :  { %v2013_v19 = vmax.f32 %v1927_v1, %v1981_v26 }
 0x4ef   :  { %v6490_v17 = vpop.f32.mrb[92].mxu0  ;;  %6541 = vmatprep.mubr.msk.f32.mxu0 %vm553_vm2, %v2013_v19 }
 0x4f0   :  { %v1942_v39 = vadd.f32 %v6490_v17, %v8380_v20  ;;  %v1936_v33 = vpop.f32.mrb[93].mxu0  ;;  %6542 = vmatmul.mubr.msk.f32.gmra.mrb[122].mxu0 %vm553_vm2, %v2014_v7  ;;  %v2843_v17 = vld [vmem:[%s9572_s0 + $0x100] sm:$0xff] }
 0x4f1   :  { %v1937_v3 = vadd.f32 %v8380_v20, %v1936_v33  ;;  %v2847_v33 = vld [vmem:[%s9572_s0 + $0x120] sm:$0xff] }
 0x4f2   :  { %v1984_v62 = vmul.f32 0.05, %v1942_v39 }
 0x4f3   :  { %v1983_v25 = vmul.f32 0.05, %v1937_v3 }
 0x4f4   :  { %v2016_v21 = vmax.f32 %v1942_v39, %v1984_v62  ;;  %v2846_v39 = vld [vmem:[%s9572_s0 + $0x118] sm:$0xff] }
 0x4f5   :  { %v2015_v36 = vmax.f32 %v1937_v3, %v1983_v25  ;;  %v2848_v3 = vld [vmem:[%s9572_s0 + $0x128] sm:$0xff]  ;;  %v2850_v62 = vld [vmem:[%s9572_s0 + $0x138] sm:$0xff]  ;;  %v2851_v25 = vld [vmem:[%s9572_s0 + $0x140] sm:$0xff] }
 0x4f7   :  { %v6493_v60 = vpop.f32.mrb[94].mxu0  ;;  %6544 = vmatprep.mubr.msk.f32.mxu0 %vm553_vm2, %v2015_v36  ;;  %v2853_v36 = vld [vmem:[%s9572_s0 + $0x150] sm:$0xff] }
 0x4f8   :  { %v1952_v4 = vadd.f32 %v6493_v60, %v8380_v20  ;;  %v1946_v34 = vpop.f32.mrb[95].mxu0  ;;  %6545 = vmatmul.mubr.msk.f32.gmra.mrb[124].mxu0 %vm553_vm2, %v2016_v21  ;;  %v2844_v60 = vld [vmem:[%s9572_s0 + $0x108] sm:$0xff]  ;;  %v2854_v21 = vld [vmem:[%s9572_s0 + $0x158] sm:$0xff] }
 0x4f9   :  { %v1947_v1 = vadd.f32 %v8380_v20, %v1946_v34  ;;  %v2845_v20 = vld [vmem:[%s9572_s0 + $0x110] sm:$0xff]  ;;  %v2856_v34 = vld [vmem:[%s9572_s0 + $0x168] sm:$0xff] }
 0x4fa   :  { %v1986_v13 = vmul.f32 0.05, %v1952_v4 }
 0x4fb   :  { %v1985_v26 = vmul.f32 0.05, %v1947_v1 }
 0x4fc   :  { %v2018_v7 = vmax.f32 %v1952_v4, %v1986_v13  ;;  %v2855_v4 = vld [vmem:[%s9572_s0 + $0x160] sm:$0xff]  ;;  %v2858_v13 = vld [vmem:[%s9572_s0 + $0x178] sm:$0xff] }
 0x4fd   :  { %v2017_v19 = vmax.f32 %v1947_v1, %v1985_v26  ;;  %v2857_v1 = vld [vmem:[%s9572_s0 + $0x170] sm:$0xff]  ;;  %v2859_v26 = vld [vmem:[%s9572_s0 + $0x180] sm:$0xff] }
 0x4ff   :  { %6547 = vmatprep.mubr.msk.f32.mxu0 %vm553_vm2, %v2017_v19  ;;  %v2860_v19 = vld [vmem:[%s9572_s0 + $0x188] sm:$0xff] }
 0x500   :  { %6548 = vmatmul.mubr.msk.f32.gmra.mrb[126].mxu0 %vm553_vm2, %v2018_v7  ;;  %v2861_v7 = vld [vmem:[%s9572_s0 + $0x190] sm:$0xff] }
 0x501   :  { %6608 = vmatprep.mubr.msk.f32.mxu0 %vm152_vm1, %v2843_v17  ;;  %v2862_v17 = vld [vmem:[%s9572_s0 + $0x198] sm:$0xff] }
 0x504   :  { %6609 = vmatmul.mubr.msk.f32.vlgmr.msra.gmra.mrb[128].mxu0 %vm152_vm1, %v2844_v60  ;;  %v2863_v60 = vld [vmem:[%s9572_s0 + $0x1a0] sm:$0xff] }
 0x505   :  { %6611 = vmatprep.mubr.msk.f32.mxu0 %vm152_vm1, %v2845_v20  ;;  %7027 = vmatpush3.bf16.msra.mxu0 %v7661_v42  ;;  %v2849_v42 = vld [vmem:[%s9572_s0 + $0x130] sm:$0xff]  ;;  %v2864_v20 = vld [vmem:[%s9572_s0 + $0x1a8] sm:$0xff] }
 0x506   :  { %7029 = vmatprep.subr.bf16.mxu0 %v7666_v44 }
 0x508   :  { %6612 = vmatmul.mubr.msk.f32.gmra.mrb[130].mxu0 %vm152_vm1, %v2846_v39  ;;  %v2865_v39 = vld [vmem:[%s9572_s0 + $0x1b0] sm:$0xff] }
 0x509   :  { %6614 = vmatprep.mubr.msk.f32.mxu0 %vm152_vm1, %v2847_v33  ;;  %7031 = vmatpush3.bf16.msra.mxu0 %v7666_v44  ;;  %v2852_v44 = vld [vmem:[%s9572_s0 + $0x148] sm:$0xff]  ;;  %v2866_v33 = vld [vmem:[%s9572_s0 + $0x1b8] sm:$0xff] }
 0x50a   :  { %7081 = vmatprep.subr.bf16.mxu0 %v8256_v15 }
 0x50c   :  { %6615 = vmatmul.mubr.msk.f32.gmra.mrb[132].mxu0 %vm152_vm1, %v2848_v3  ;;  %v2867_v3 = vld [vmem:[%s9572_s0 + $0x1c0] sm:$0xff] }
 0x50d   :  { %6617 = vmatprep.mubr.msk.f32.mxu0 %vm152_vm1, %v2849_v42  ;;  %v2868_v42 = vld [vmem:[%s9572_s0 + $0x1c8] sm:$0xff] }
 0x510   :  { %6618 = vmatmul.mubr.msk.f32.gmra.mrb[134].mxu0 %vm152_vm1, %v2850_v62  ;;  %v2869_v62 = vld [vmem:[%s9572_s0 + $0x1d0] sm:$0xff] }
 0x511   :  { %6620 = vmatprep.mubr.msk.f32.mxu0 %vm152_vm1, %v2851_v25  ;;  %v2870_v25 = vld [vmem:[%s9572_s0 + $0x1d8] sm:$0xff] }
 0x514   :  { %6621 = vmatmul.mubr.msk.f32.gmra.mrb[136].mxu0 %vm152_vm1, %v2852_v44  ;;  %v2871_v44 = vld [vmem:[%s9572_s0 + $0x1e0] sm:$0xff] }
 0x515   :  { %6623 = vmatprep.mubr.msk.f32.mxu0 %vm152_vm1, %v2853_v36  ;;  %v2872_v36 = vld [vmem:[%s9572_s0 + $0x1e8] sm:$0xff] }
 0x518   :  { %6624 = vmatmul.mubr.msk.f32.gmra.mrb[138].mxu0 %vm152_vm1, %v2854_v21  ;;  %v2873_v21 = vld [vmem:[%s9572_s0 + $0x1f0] sm:$0xff] }
 0x519   :  { %6626 = vmatprep.mubr.msk.f32.mxu0 %vm152_vm1, %v2855_v4  ;;  %v2874_v4 = vld [vmem:[%s9572_s0 + $0x1f8] sm:$0xff] }
 0x51c   :  { %6627 = vmatmul.mubr.msk.f32.gmra.mrb[140].mxu0 %vm152_vm1, %v2856_v34  ;;  %v8604_v34 = vld [vmem:[%s9584_s12] ss:$0 sm:$0xff] }
 0x51d   :  { %6629 = vmatprep.mubr.msk.f32.mxu0 %vm152_vm1, %v2857_v1 }
 0x520   :  { %6630 = vmatmul.mubr.msk.f32.gmra.mrb[142].mxu0 %vm152_vm1, %v2858_v13 }
 0x521   :  { %6632 = vmatprep.mubr.msk.f32.mxu0 %vm152_vm1, %v2859_v26 }
 0x524   :  { %6633 = vmatmul.mubr.msk.f32.gmra.mrb[144].mxu0 %vm152_vm1, %v2860_v19 }
 0x525   :  { %6635 = vmatprep.mubr.msk.f32.mxu0 %vm152_vm1, %v2861_v7 }
 0x528   :  { %6636 = vmatmul.mubr.msk.f32.gmra.mrb[146].mxu0 %vm152_vm1, %v2862_v17 }
 0x529   :  { %6638 = vmatprep.mubr.msk.f32.mxu0 %vm152_vm1, %v2863_v60 }
 0x52c   :  { %6639 = vmatmul.mubr.msk.f32.gmra.mrb[148].mxu0 %vm152_vm1, %v2864_v20 }
 0x52d   :  { %6641 = vmatprep.mubr.msk.f32.mxu0 %vm152_vm1, %v2865_v39 }
 0x530   :  { %6642 = vmatmul.mubr.msk.f32.gmra.mrb[150].mxu0 %vm152_vm1, %v2866_v33 }
 0x531   :  { %6644 = vmatprep.mubr.msk.f32.mxu0 %vm152_vm1, %v2867_v3 }
 0x534   :  { %6645 = vmatmul.mubr.msk.f32.gmra.mrb[152].mxu0 %vm152_vm1, %v2868_v42 }
 0x535   :  { %6647 = vmatprep.mubr.msk.f32.mxu0 %vm152_vm1, %v2869_v62 }
 0x538   :  { %6648 = vmatmul.mubr.msk.f32.gmra.mrb[154].mxu0 %vm152_vm1, %v2870_v25 }
 0x539   :  { %6650 = vmatprep.mubr.msk.f32.mxu0 %vm152_vm1, %v2871_v44 }
 0x53c   :  { %6651 = vmatmul.mubr.msk.f32.gmra.mrb[156].mxu0 %vm152_vm1, %v2872_v36 }
 0x53d   :  { %6653 = vmatprep.mubr.msk.f32.mxu0 %vm152_vm1, %v2873_v21 }
 0x540   :  { %6654 = vmatmul.mubr.msk.f32.gmra.mrb[158].mxu0 %vm152_vm1, %v2874_v4 }
 0x55b   :  { %v6504_v1 = vpop.f32.mrb[96].mxu0 }
 0x55c   :  { %v2198_v13 = vadd.f32 %v6504_v1, %v8604_v34  ;;  %v2192_v26 = vpop.f32.mrb[97].mxu0 }
 0x55d   :  { %v2193_v19 = vadd.f32 %v8604_v34, %v2192_v26 }
 0x55e   :  { %v2352_v7 = vmul.f32 0.05, %v2198_v13 }
 0x55f   :  { %v2351_v17 = vmul.f32 0.05, %v2193_v19 }
 0x560   :  { %v2384_v20 = vmax.f32 %v2198_v13, %v2352_v7 }
 0x561   :  { %v2383_v60 = vmax.f32 %v2193_v19, %v2351_v17 }
 0x563   :  { %v6507_v39 = vpop.f32.mrb[98].mxu0  ;;  %6558 = vmatprep.mubr.msk.f32.mxu1 %vm553_vm2, %v2383_v60 }
 0x564   :  { %v2208_v33 = vadd.f32 %v6507_v39, %v8604_v34  ;;  %v2202_v3 = vpop.f32.mrb[99].mxu0  ;;  %6559 = vmatmul.mubr.msk.f32.vlgmr.msra.gmra.mrb[96].mxu1 %vm553_vm2, %v2384_v20 }
 0x565   :  { %v2203_v42 = vadd.f32 %v8604_v34, %v2202_v3  ;;  %7019 = vmatpush3.bf16.msra.mxu1 %v7638_v35 }
 0x566   :  { %v2354_v62 = vmul.f32 0.05, %v2208_v33  ;;  %7021 = vmatprep.subr.bf16.mxu1 %v7648_v38 }
 0x567   :  { %v2353_v25 = vmul.f32 0.05, %v2203_v42 }
 0x568   :  { %v2386_v36 = vmax.f32 %v2208_v33, %v2354_v62 }
 0x569   :  { %v2385_v44 = vmax.f32 %v2203_v42, %v2353_v25  ;;  %7023 = vmatpush3.bf16.msra.mxu1 %v7648_v38 }
 0x56a   :  { %7032 = vmatprep.subr.bf16.mxu1 %v9650_v59 }
 0x56b   :  { %v6510_v21 = vpop.f32.mrb[100].mxu0  ;;  %6561 = vmatprep.mubr.msk.f32.mxu1 %vm553_vm2, %v2385_v44 }
 0x56c   :  { %v2218_v4 = vadd.f32 %v6510_v21, %v8604_v34  ;;  %v2212_v1 = vpop.f32.mrb[101].mxu0  ;;  %6562 = vmatmul.mubr.msk.f32.gmra.mrb[98].mxu1 %vm553_vm2, %v2386_v36 }
 0x56d   :  { %v2213_v35 = vadd.f32 %v8604_v34, %v2212_v1 }
 0x56e   :  { %v2356_v13 = vmul.f32 0.05, %v2218_v4 }
 0x56f   :  { %v2355_v26 = vmul.f32 0.05, %v2213_v35 }
 0x570   :  { %v2388_v7 = vmax.f32 %v2218_v4, %v2356_v13 }
 0x571   :  { %v2387_v19 = vmax.f32 %v2213_v35, %v2355_v26 }
 0x573   :  { %v6513_v17 = vpop.f32.mrb[102].mxu0  ;;  %6564 = vmatprep.mubr.msk.f32.mxu1 %vm553_vm2, %v2387_v19 }
 0x574   :  { %v2228_v38 = vadd.f32 %v6513_v17, %v8604_v34  ;;  %v2222_v60 = vpop.f32.mrb[103].mxu0  ;;  %6565 = vmatmul.mubr.msk.f32.gmra.mrb[100].mxu1 %vm553_vm2, %v2388_v7 }
 0x575   :  { %v2223_v20 = vadd.f32 %v8604_v34, %v2222_v60 }
 0x576   :  { %v2358_v39 = vmul.f32 0.05, %v2228_v38 }
 0x577   :  { %v2357_v33 = vmul.f32 0.05, %v2223_v20 }
 0x578   :  { %v2390_v42 = vmax.f32 %v2228_v38, %v2358_v39 }
 0x579   :  { %v2389_v3 = vmax.f32 %v2223_v20, %v2357_v33 }
 0x57b   :  { %v6516_v62 = vpop.f32.mrb[104].mxu0  ;;  %6567 = vmatprep.mubr.msk.f32.mxu1 %vm553_vm2, %v2389_v3 }
 0x57c   :  { %v2238_v25 = vadd.f32 %v6516_v62, %v8604_v34  ;;  %v2232_v44 = vpop.f32.mrb[105].mxu0  ;;  %6568 = vmatmul.mubr.msk.f32.gmra.mrb[102].mxu1 %vm553_vm2, %v2390_v42 }
 0x57d   :  { %v2233_v36 = vadd.f32 %v8604_v34, %v2232_v44 }
 0x57e   :  { %v2360_v21 = vmul.f32 0.05, %v2238_v25 }
 0x57f   :  { %v2359_v4 = vmul.f32 0.05, %v2233_v36 }
 0x580   :  { %v2392_v35 = vmax.f32 %v2238_v25, %v2360_v21 }
 0x581   :  { %v2391_v1 = vmax.f32 %v2233_v36, %v2359_v4 }
 0x583   :  { %v6519_v13 = vpop.f32.mrb[106].mxu0  ;;  %6570 = vmatprep.mubr.msk.f32.mxu1 %vm553_vm2, %v2391_v1 }
 0x584   :  { %v2248_v26 = vadd.f32 %v6519_v13, %v8604_v34  ;;  %v2242_v19 = vpop.f32.mrb[107].mxu0  ;;  %6571 = vmatmul.mubr.msk.f32.gmra.mrb[104].mxu1 %vm553_vm2, %v2392_v35 }
 0x585   :  { %v2243_v7 = vadd.f32 %v8604_v34, %v2242_v19 }
 0x586   :  { %v2362_v17 = vmul.f32 0.05, %v2248_v26 }
 0x587   :  { %v2361_v38 = vmul.f32 0.05, %v2243_v7 }
 0x588   :  { %v2394_v20 = vmax.f32 %v2248_v26, %v2362_v17 }
 0x589   :  { %v2393_v60 = vmax.f32 %v2243_v7, %v2361_v38 }
 0x58b   :  { %v6522_v39 = vpop.f32.mrb[108].mxu0  ;;  %6573 = vmatprep.mubr.msk.f32.mxu1 %vm553_vm2, %v2393_v60 }
 0x58c   :  { %v2258_v33 = vadd.f32 %v6522_v39, %v8604_v34  ;;  %v2252_v3 = vpop.f32.mrb[109].mxu0  ;;  %6574 = vmatmul.mubr.msk.f32.gmra.mrb[106].mxu1 %vm553_vm2, %v2394_v20 }
 0x58d   :  { %v2253_v42 = vadd.f32 %v8604_v34, %v2252_v3 }
 0x58e   :  { %v2364_v62 = vmul.f32 0.05, %v2258_v33 }
 0x58f   :  { %v2363_v25 = vmul.f32 0.05, %v2253_v42 }
 0x590   :  { %v2396_v36 = vmax.f32 %v2258_v33, %v2364_v62 }
 0x591   :  { %v2395_v44 = vmax.f32 %v2253_v42, %v2363_v25 }
 0x593   :  { %v6525_v21 = vpop.f32.mrb[110].mxu0  ;;  %6576 = vmatprep.mubr.msk.f32.mxu1 %vm553_vm2, %v2395_v44 }
 0x594   :  { %v2268_v4 = vadd.f32 %v6525_v21, %v8604_v34  ;;  %v2262_v1 = vpop.f32.mrb[111].mxu0  ;;  %6577 = vmatmul.mubr.msk.f32.gmra.mrb[108].mxu1 %vm553_vm2, %v2396_v36 }
 0x595   :  { %v2263_v35 = vadd.f32 %v8604_v34, %v2262_v1 }
 0x596   :  { %v2366_v13 = vmul.f32 0.05, %v2268_v4 }
 0x597   :  { %v2365_v26 = vmul.f32 0.05, %v2263_v35 }
 0x598   :  { %v2398_v7 = vmax.f32 %v2268_v4, %v2366_v13 }
 0x599   :  { %v2397_v19 = vmax.f32 %v2263_v35, %v2365_v26 }
 0x59b   :  { %v6528_v17 = vpop.f32.mrb[112].mxu0  ;;  %6579 = vmatprep.mubr.msk.f32.mxu1 %vm553_vm2, %v2397_v19 }
 0x59c   :  { %v2278_v38 = vadd.f32 %v6528_v17, %v8604_v34  ;;  %v2272_v60 = vpop.f32.mrb[113].mxu0  ;;  %6580 = vmatmul.mubr.msk.f32.gmra.mrb[110].mxu1 %vm553_vm2, %v2398_v7 }
 0x59d   :  { %v2273_v20 = vadd.f32 %v8604_v34, %v2272_v60 }
 0x59e   :  { %v2368_v39 = vmul.f32 0.05, %v2278_v38 }
 0x59f   :  { %v2367_v33 = vmul.f32 0.05, %v2273_v20 }
 0x5a0   :  { %v2400_v42 = vmax.f32 %v2278_v38, %v2368_v39 }
 0x5a1   :  { %v2399_v3 = vmax.f32 %v2273_v20, %v2367_v33 }
 0x5a3   :  { %v6531_v62 = vpop.f32.mrb[114].mxu0  ;;  %6582 = vmatprep.mubr.msk.f32.mxu1 %vm553_vm2, %v2399_v3 }
 0x5a4   :  { %v2288_v25 = vadd.f32 %v6531_v62, %v8604_v34  ;;  %v2282_v44 = vpop.f32.mrb[115].mxu0  ;;  %6583 = vmatmul.mubr.msk.f32.gmra.mrb[112].mxu1 %vm553_vm2, %v2400_v42 }
 0x5a5   :  { %v2283_v36 = vadd.f32 %v8604_v34, %v2282_v44 }
 0x5a6   :  { %v2370_v21 = vmul.f32 0.05, %v2288_v25 }
 0x5a7   :  { %v2369_v4 = vmul.f32 0.05, %v2283_v36 }
 0x5a8   :  { %v2402_v35 = vmax.f32 %v2288_v25, %v2370_v21 }
 0x5a9   :  { %v2401_v1 = vmax.f32 %v2283_v36, %v2369_v4 }
 0x5ab   :  { %v6534_v13 = vpop.f32.mrb[116].mxu0  ;;  %6585 = vmatprep.mubr.msk.f32.mxu1 %vm553_vm2, %v2401_v1 }
 0x5ac   :  { %v2298_v26 = vadd.f32 %v6534_v13, %v8604_v34  ;;  %v2292_v19 = vpop.f32.mrb[117].mxu0  ;;  %6586 = vmatmul.mubr.msk.f32.gmra.mrb[114].mxu1 %vm553_vm2, %v2402_v35 }
 0x5ad   :  { %v2293_v7 = vadd.f32 %v8604_v34, %v2292_v19 }
 0x5ae   :  { %v2372_v17 = vmul.f32 0.05, %v2298_v26 }
 0x5af   :  { %v2371_v38 = vmul.f32 0.05, %v2293_v7 }
 0x5b0   :  { %v2404_v20 = vmax.f32 %v2298_v26, %v2372_v17 }
 0x5b1   :  { %v2403_v60 = vmax.f32 %v2293_v7, %v2371_v38 }
 0x5b3   :  { %v6537_v39 = vpop.f32.mrb[118].mxu0  ;;  %6588 = vmatprep.mubr.msk.f32.mxu1 %vm553_vm2, %v2403_v60 }
 0x5b4   :  { %v2308_v33 = vadd.f32 %v6537_v39, %v8604_v34  ;;  %v2302_v3 = vpop.f32.mrb[119].mxu0  ;;  %6589 = vmatmul.mubr.msk.f32.gmra.mrb[116].mxu1 %vm553_vm2, %v2404_v20 }
 0x5b5   :  { %v2303_v42 = vadd.f32 %v8604_v34, %v2302_v3 }
 0x5b6   :  { %v2374_v62 = vmul.f32 0.05, %v2308_v33 }
 0x5b7   :  { %v2373_v25 = vmul.f32 0.05, %v2303_v42 }
 0x5b8   :  { %v2406_v36 = vmax.f32 %v2308_v33, %v2374_v62 }
 0x5b9   :  { %v2405_v44 = vmax.f32 %v2303_v42, %v2373_v25 }
 0x5bb   :  { %v6540_v21 = vpop.f32.mrb[120].mxu0  ;;  %6591 = vmatprep.mubr.msk.f32.mxu1 %vm553_vm2, %v2405_v44 }
 0x5bc   :  { %v2318_v4 = vadd.f32 %v6540_v21, %v8604_v34  ;;  %v2312_v1 = vpop.f32.mrb[121].mxu0  ;;  %6592 = vmatmul.mubr.msk.f32.gmra.mrb[118].mxu1 %vm553_vm2, %v2406_v36 }
 0x5bd   :  { %v2313_v35 = vadd.f32 %v8604_v34, %v2312_v1 }
 0x5be   :  { %v2376_v13 = vmul.f32 0.05, %v2318_v4 }
 0x5bf   :  { %v2375_v26 = vmul.f32 0.05, %v2313_v35 }
 0x5c0   :  { %v2408_v7 = vmax.f32 %v2318_v4, %v2376_v13 }
 0x5c1   :  { %v2407_v19 = vmax.f32 %v2313_v35, %v2375_v26 }
 0x5c3   :  { %v6543_v17 = vpop.f32.mrb[122].mxu0  ;;  %6594 = vmatprep.mubr.msk.f32.mxu1 %vm553_vm2, %v2407_v19 }
 0x5c4   :  { %v2328_v38 = vadd.f32 %v6543_v17, %v8604_v34  ;;  %v2322_v60 = vpop.f32.mrb[123].mxu0  ;;  %6595 = vmatmul.mubr.msk.f32.gmra.mrb[120].mxu1 %vm553_vm2, %v2408_v7 }
 0x5c5   :  { %v2323_v20 = vadd.f32 %v8604_v34, %v2322_v60 }
 0x5c6   :  { %v2378_v39 = vmul.f32 0.05, %v2328_v38 }
 0x5c7   :  { %v2377_v33 = vmul.f32 0.05, %v2323_v20 }
 0x5c8   :  { %v2410_v42 = vmax.f32 %v2328_v38, %v2378_v39 }
 0x5c9   :  { %v2409_v3 = vmax.f32 %v2323_v20, %v2377_v33  ;;  %v8675_v20 = vld [vmem:[%s9577_s5] ss:$0 sm:$0xff] }
 0x5cb   :  { %v6546_v62 = vpop.f32.mrb[124].mxu0  ;;  %6597 = vmatprep.mubr.msk.f32.mxu1 %vm553_vm2, %v2409_v3 }
 0x5cc   :  { %v2338_v25 = vadd.f32 %v6546_v62, %v8604_v34  ;;  %v2332_v44 = vpop.f32.mrb[125].mxu0  ;;  %6598 = vmatmul.mubr.msk.f32.gmra.mrb[122].mxu1 %vm553_vm2, %v2410_v42 }
 0x5cd   :  { %v2333_v36 = vadd.f32 %v8604_v34, %v2332_v44 }
 0x5ce   :  { %v2380_v21 = vmul.f32 0.05, %v2338_v25 }
 0x5cf   :  { %v2379_v4 = vmul.f32 0.05, %v2333_v36 }
 0x5d0   :  { %v2412_v35 = vmax.f32 %v2338_v25, %v2380_v21 }
 0x5d1   :  { %v2411_v1 = vmax.f32 %v2333_v36, %v2379_v4 }
 0x5d3   :  { %v6549_v13 = vpop.f32.mrb[126].mxu0  ;;  %6600 = vmatprep.mubr.msk.f32.mxu1 %vm553_vm2, %v2411_v1 }
 0x5d4   :  { %v2348_v26 = vadd.f32 %v6549_v13, %v8604_v34  ;;  %v2342_v19 = vpop.f32.mrb[127].mxu0  ;;  %6601 = vmatmul.mubr.msk.f32.gmra.mrb[124].mxu1 %vm553_vm2, %v2412_v35 }
 0x5d5   :  { %v2343_v7 = vadd.f32 %v8604_v34, %v2342_v19 }
 0x5d6   :  { %v2382_v17 = vmul.f32 0.05, %v2348_v26 }
 0x5d7   :  { %v2381_v38 = vmul.f32 0.05, %v2343_v7  ;;  %v6610_v60 = vpop.f32.mrb[128].mxu0 }
 0x5d8   :  { %v3043_v39 = vadd.f32 %v8675_v20, %v6610_v60  ;;  %v3037_v33 = vpop.f32.mrb[129].mxu0  ;;  %v2414_v62 = vmax.f32 %v2348_v26, %v2382_v17 }
 0x5d9   :  { %v2413_v3 = vmax.f32 %v2343_v7, %v2381_v38  ;;  %v3038_v42 = vadd.f32 %v8675_v20, %v3037_v33 }
 0x5da   :  { %v3197_v25 = vmul.f32 0.05, %v3043_v39 }
 0x5db   :  { %v3196_v44 = vmul.f32 0.05, %v3038_v42  ;;  %6603 = vmatprep.mubr.msk.f32.mxu1 %vm553_vm2, %v2413_v3  ;;  %v6613_v34 = vpop.f32.mrb[130].mxu0 }
 0x5dc   :  { %v3053_v36 = vadd.f32 %v8675_v20, %v6613_v34  ;;  %6604 = vmatmul.mubr.msk.f32.gmra.mrb[126].mxu1 %vm553_vm2, %v2414_v62  ;;  %v3047_v21 = vpop.f32.mrb[131].mxu0  ;;  %v3229_v35 = vmax.f32 %v3043_v39, %v3197_v25 }
 0x5dd   :  { %v3228_v4 = vmax.f32 %v3038_v42, %v3196_v44  ;;  %v3048_v1 = vadd.f32 %v8675_v20, %v3047_v21 }
 0x5de   :  { %v3199_v13 = vmul.f32 0.05, %v3053_v36 }
 0x5df   :  { %v3198_v19 = vmul.f32 0.05, %v3048_v1  ;;  %v6616_v7 = vpop.f32.mrb[132].mxu0  ;;  %6664 = vmatprep.mubr.msk.f32.mxu1 %vm553_vm2, %v3228_v4 }
 0x5e0   :  { %v3063_v26 = vadd.f32 %v8675_v20, %v6616_v7  ;;  %v3057_v17 = vpop.f32.mrb[133].mxu0  ;;  %6665 = vmatmul.mubr.msk.f32.vlgmr.msra.gmra.mrb[128].mxu1 %vm553_vm2, %v3229_v35  ;;  %v3231_v33 = vmax.f32 %v3053_v36, %v3199_v13 }
 0x5e1   :  { %v3230_v38 = vmax.f32 %v3048_v1, %v3198_v19  ;;  %v3058_v60 = vadd.f32 %v8675_v20, %v3057_v17 }
 0x5e2   :  { %v3201_v3 = vmul.f32 0.05, %v3063_v26 }
 0x5e3   :  { %v3200_v62 = vmul.f32 0.05, %v3058_v60  ;;  %v6619_v42 = vpop.f32.mrb[134].mxu0  ;;  %6667 = vmatprep.mubr.msk.f32.mxu1 %vm553_vm2, %v3230_v38 }
 0x5e4   :  { %v3073_v39 = vadd.f32 %v8675_v20, %v6619_v42  ;;  %v3067_v25 = vpop.f32.mrb[135].mxu0  ;;  %6668 = vmatmul.mubr.msk.f32.gmra.mrb[130].mxu1 %vm553_vm2, %v3231_v33  ;;  %v3233_v21 = vmax.f32 %v3063_v26, %v3201_v3 }
 0x5e5   :  { %v3232_v44 = vmax.f32 %v3058_v60, %v3200_v62  ;;  %v3068_v34 = vadd.f32 %v8675_v20, %v3067_v25 }
 0x5e6   :  { %v3203_v4 = vmul.f32 0.05, %v3073_v39 }
 0x5e7   :  { %v3202_v35 = vmul.f32 0.05, %v3068_v34  ;;  %v6622_v1 = vpop.f32.mrb[136].mxu0  ;;  %6670 = vmatprep.mubr.msk.f32.mxu1 %vm553_vm2, %v3232_v44 }
 0x5e8   :  { %v3083_v36 = vadd.f32 %v8675_v20, %v6622_v1  ;;  %v3077_v13 = vpop.f32.mrb[137].mxu0  ;;  %6671 = vmatmul.mubr.msk.f32.gmra.mrb[132].mxu1 %vm553_vm2, %v3233_v21  ;;  %v3235_v17 = vmax.f32 %v3073_v39, %v3203_v4 }
 0x5e9   :  { %v3234_v19 = vmax.f32 %v3068_v34, %v3202_v35  ;;  %v3078_v7 = vadd.f32 %v8675_v20, %v3077_v13 }
 0x5ea   :  { %v3205_v38 = vmul.f32 0.05, %v3083_v36 }
 0x5eb   :  { %v3204_v33 = vmul.f32 0.05, %v3078_v7  ;;  %v6625_v60 = vpop.f32.mrb[138].mxu0  ;;  %6673 = vmatprep.mubr.msk.f32.mxu1 %vm553_vm2, %v3234_v19 }
 0x5ec   :  { %v3093_v26 = vadd.f32 %v8675_v20, %v6625_v60  ;;  %v3087_v3 = vpop.f32.mrb[139].mxu0  ;;  %6674 = vmatmul.mubr.msk.f32.gmra.mrb[134].mxu1 %vm553_vm2, %v3235_v17  ;;  %v3237_v25 = vmax.f32 %v3083_v36, %v3205_v38 }
 0x5ed   :  { %v3236_v62 = vmax.f32 %v3078_v7, %v3204_v33  ;;  %v3088_v42 = vadd.f32 %v8675_v20, %v3087_v3 }
 0x5ee   :  { %v3207_v44 = vmul.f32 0.05, %v3093_v26 }
 0x5ef   :  { %v3206_v21 = vmul.f32 0.05, %v3088_v42  ;;  %v6628_v34 = vpop.f32.mrb[140].mxu0  ;;  %6676 = vmatprep.mubr.msk.f32.mxu1 %vm553_vm2, %v3236_v62 }
 0x5f0   :  { %v3103_v39 = vadd.f32 %v8675_v20, %v6628_v34  ;;  %v3097_v4 = vpop.f32.mrb[141].mxu0  ;;  %6677 = vmatmul.mubr.msk.f32.gmra.mrb[136].mxu1 %vm553_vm2, %v3237_v25  ;;  %v3239_v13 = vmax.f32 %v3093_v26, %v3207_v44 }
 0x5f1   :  { %v3238_v35 = vmax.f32 %v3088_v42, %v3206_v21  ;;  %v3098_v1 = vadd.f32 %v8675_v20, %v3097_v4 }
 0x5f2   :  { %v3209_v19 = vmul.f32 0.05, %v3103_v39 }
 0x5f3   :  { %v3208_v17 = vmul.f32 0.05, %v3098_v1  ;;  %v6631_v7 = vpop.f32.mrb[142].mxu0  ;;  %6679 = vmatprep.mubr.msk.f32.mxu1 %vm553_vm2, %v3238_v35 }
 0x5f4   :  { %v3113_v36 = vadd.f32 %v8675_v20, %v6631_v7  ;;  %v3107_v38 = vpop.f32.mrb[143].mxu0  ;;  %6680 = vmatmul.mubr.msk.f32.gmra.mrb[138].mxu1 %vm553_vm2, %v3239_v13  ;;  %v3241_v3 = vmax.f32 %v3103_v39, %v3209_v19 }
 0x5f5   :  { %v3240_v33 = vmax.f32 %v3098_v1, %v3208_v17  ;;  %v3108_v60 = vadd.f32 %v8675_v20, %v3107_v38 }
 0x5f6   :  { %v3211_v62 = vmul.f32 0.05, %v3113_v36 }
 0x5f7   :  { %v3210_v25 = vmul.f32 0.05, %v3108_v60  ;;  %v6634_v42 = vpop.f32.mrb[144].mxu0  ;;  %6682 = vmatprep.mubr.msk.f32.mxu1 %vm553_vm2, %v3240_v33 }
 0x5f8   :  { %v3123_v26 = vadd.f32 %v8675_v20, %v6634_v42  ;;  %v3117_v44 = vpop.f32.mrb[145].mxu0  ;;  %6683 = vmatmul.mubr.msk.f32.gmra.mrb[140].mxu1 %vm553_vm2, %v3241_v3  ;;  %v3243_v4 = vmax.f32 %v3113_v36, %v3211_v62 }
 0x5f9   :  { %v3242_v21 = vmax.f32 %v3108_v60, %v3210_v25  ;;  %v3118_v34 = vadd.f32 %v8675_v20, %v3117_v44 }
 0x5fa   :  { %v3213_v35 = vmul.f32 0.05, %v3123_v26 }
 0x5fb   :  { %v3212_v13 = vmul.f32 0.05, %v3118_v34  ;;  %v6637_v1 = vpop.f32.mrb[146].mxu0  ;;  %6685 = vmatprep.mubr.msk.f32.mxu1 %vm553_vm2, %v3242_v21 }
 0x5fc   :  { %v3133_v39 = vadd.f32 %v8675_v20, %v6637_v1  ;;  %v3127_v19 = vpop.f32.mrb[147].mxu0  ;;  %6686 = vmatmul.mubr.msk.f32.gmra.mrb[142].mxu1 %vm553_vm2, %v3243_v4  ;;  %v3245_v38 = vmax.f32 %v3123_v26, %v3213_v35 }
 0x5fd   :  { %v3244_v17 = vmax.f32 %v3118_v34, %v3212_v13  ;;  %v3128_v7 = vadd.f32 %v8675_v20, %v3127_v19 }
 0x5fe   :  { %v3215_v33 = vmul.f32 0.05, %v3133_v39 }
 0x5ff   :  { %v3214_v3 = vmul.f32 0.05, %v3128_v7  ;;  %v6640_v60 = vpop.f32.mrb[148].mxu0  ;;  %6688 = vmatprep.mubr.msk.f32.mxu1 %vm553_vm2, %v3244_v17 }
 0x600   :  { %v3143_v36 = vadd.f32 %v8675_v20, %v6640_v60  ;;  %v3137_v62 = vpop.f32.mrb[149].mxu0  ;;  %6689 = vmatmul.mubr.msk.f32.gmra.mrb[144].mxu1 %vm553_vm2, %v3245_v38  ;;  %v3247_v44 = vmax.f32 %v3133_v39, %v3215_v33 }
 0x601   :  { %v3246_v25 = vmax.f32 %v3128_v7, %v3214_v3  ;;  %v3138_v42 = vadd.f32 %v8675_v20, %v3137_v62 }
 0x602   :  { %v3217_v21 = vmul.f32 0.05, %v3143_v36 }
 0x603   :  { %v3216_v4 = vmul.f32 0.05, %v3138_v42  ;;  %v6643_v34 = vpop.f32.mrb[150].mxu0  ;;  %6691 = vmatprep.mubr.msk.f32.mxu1 %vm553_vm2, %v3246_v25 }
 0x604   :  { %v3153_v26 = vadd.f32 %v8675_v20, %v6643_v34  ;;  %v3147_v35 = vpop.f32.mrb[151].mxu0  ;;  %6692 = vmatmul.mubr.msk.f32.gmra.mrb[146].mxu1 %vm553_vm2, %v3247_v44  ;;  %v3249_v19 = vmax.f32 %v3143_v36, %v3217_v21 }
 0x605   :  { %v3248_v13 = vmax.f32 %v3138_v42, %v3216_v4  ;;  %v3148_v1 = vadd.f32 %v8675_v20, %v3147_v35 }
 0x606   :  { %v3219_v17 = vmul.f32 0.05, %v3153_v26 }
 0x607   :  { %v3218_v38 = vmul.f32 0.05, %v3148_v1  ;;  %v6646_v7 = vpop.f32.mrb[152].mxu0  ;;  %6694 = vmatprep.mubr.msk.f32.mxu1 %vm553_vm2, %v3248_v13 }
 0x608   :  { %v3163_v39 = vadd.f32 %v8675_v20, %v6646_v7  ;;  %v3157_v33 = vpop.f32.mrb[153].mxu0  ;;  %6695 = vmatmul.mubr.msk.f32.gmra.mrb[148].mxu1 %vm553_vm2, %v3249_v19  ;;  %v3251_v62 = vmax.f32 %v3153_v26, %v3219_v17 }
 0x609   :  { %v3250_v3 = vmax.f32 %v3148_v1, %v3218_v38  ;;  %v3158_v60 = vadd.f32 %v8675_v20, %v3157_v33 }
 0x60a   :  { %v3221_v25 = vmul.f32 0.05, %v3163_v39 }
 0x60b   :  { %v3220_v44 = vmul.f32 0.05, %v3158_v60  ;;  %v6649_v42 = vpop.f32.mrb[154].mxu0  ;;  %6697 = vmatprep.mubr.msk.f32.mxu1 %vm553_vm2, %v3250_v3 }
 0x60c   :  { %v3173_v36 = vadd.f32 %v8675_v20, %v6649_v42  ;;  %v3167_v21 = vpop.f32.mrb[155].mxu0  ;;  %6698 = vmatmul.mubr.msk.f32.gmra.mrb[150].mxu1 %vm553_vm2, %v3251_v62  ;;  %v3253_v35 = vmax.f32 %v3163_v39, %v3221_v25 }
 0x60d   :  { %v3252_v4 = vmax.f32 %v3158_v60, %v3220_v44  ;;  %v3168_v34 = vadd.f32 %v8675_v20, %v3167_v21 }
 0x60e   :  { %v3223_v13 = vmul.f32 0.05, %v3173_v36 }
 0x60f   :  { %v3222_v19 = vmul.f32 0.05, %v3168_v34  ;;  %v6652_v1 = vpop.f32.mrb[156].mxu0  ;;  %6700 = vmatprep.mubr.msk.f32.mxu1 %vm553_vm2, %v3252_v4 }
 0x610   :  { %v3183_v26 = vadd.f32 %v8675_v20, %v6652_v1  ;;  %v3177_v17 = vpop.f32.mrb[157].mxu0  ;;  %6701 = vmatmul.mubr.msk.f32.gmra.mrb[152].mxu1 %vm553_vm2, %v3253_v35  ;;  %v3255_v33 = vmax.f32 %v3173_v36, %v3223_v13 }
 0x611   :  { %v3254_v38 = vmax.f32 %v3168_v34, %v3222_v19  ;;  %v3178_v7 = vadd.f32 %v8675_v20, %v3177_v17 }
 0x612   :  { %v3225_v3 = vmul.f32 0.05, %v3183_v26 }
 0x613   :  { %v3224_v62 = vmul.f32 0.05, %v3178_v7  ;;  %v6655_v60 = vpop.f32.mrb[158].mxu0  ;;  %6703 = vmatprep.mubr.msk.f32.mxu1 %vm553_vm2, %v3254_v38 }
 0x614   :  { %v3193_v39 = vadd.f32 %v8675_v20, %v6655_v60  ;;  %v3187_v25 = vpop.f32.mrb[159].mxu0  ;;  %6704 = vmatmul.mubr.msk.f32.gmra.mrb[154].mxu1 %vm553_vm2, %v3255_v33  ;;  %v3257_v21 = vmax.f32 %v3183_v26, %v3225_v3 }
 0x615   :  { %v3256_v44 = vmax.f32 %v3178_v7, %v3224_v62  ;;  %v3188_v42 = vadd.f32 %v8675_v20, %v3187_v25 }
 0x616   :  { %v3227_v4 = vmul.f32 0.05, %v3193_v39 }
 0x617   :  { %v3226_v35 = vmul.f32 0.05, %v3188_v42  ;;  %6706 = vmatprep.mubr.msk.f32.mxu1 %vm553_vm2, %v3256_v44 }
 0x618   :  { %6707 = vmatmul.mubr.msk.f32.gmra.mrb[156].mxu1 %vm553_vm2, %v3257_v21  ;;  %v3259_v34 = vmax.f32 %v3193_v39, %v3227_v4 }
 0x619   :  { %v3258_v36 = vmax.f32 %v3188_v42, %v3226_v35 }
 0x61b   :  { %6709 = vmatprep.mubr.msk.f32.mxu1 %vm553_vm2, %v3258_v36 }
 0x61c   :  { %6710 = vmatmul.mubr.msk.f32.gmra.mrb[158].mxu1 %vm553_vm2, %v3259_v34 }
 0x61d   :  { %4030 = vmatprep.mubr.f32.mxu1 %v7137_v43 }
 0x637   :  { %v8745_v13 = vpop.f32.mrb[96].mxu1 }
 0x638   :  { %v8747_v19 = vpop.f32.mrb[97].mxu1 }
 0x63f   :  { %v8749_v20 = vpop.f32.mrb[98].mxu1 }
 0x640   :  { %v8751_v1 = vpop.f32.mrb[99].mxu1 }
 0x647   :  { %v8753_v26 = vpop.f32.mrb[100].mxu1 }
 0x648   :  { %v8755_v17 = vpop.f32.mrb[101].mxu1 }
 0x64f   :  { %v8757_v38 = vpop.f32.mrb[102].mxu1 }
 0x650   :  { %v8759_v7 = vpop.f32.mrb[103].mxu1 }
 0x657   :  { %v8761_v33 = vpop.f32.mrb[104].mxu1 }
 0x658   :  { %9652 = vst [vmem:[#allocation5_spill] sm:$0xff] %v8761_v33  ;;  %v8763_v3 = vpop.f32.mrb[105].mxu1 }
 0x659   :  { %9653 = vst [vmem:[#allocation6_spill] sm:$0xff] %v8763_v3 }
 0x65f   :  { %v8765_v43 = vpop.f32.mrb[106].mxu1 }
 0x660   :  { %9654 = vst [vmem:[#allocation7_spill] sm:$0xff] %v8765_v43  ;;  %v8767_v62 = vpop.f32.mrb[107].mxu1 }
 0x661   :  { %9655 = vst [vmem:[#allocation8_spill] sm:$0xff] %v8767_v62 }
 0x667   :  { %v8769_v60 = vpop.f32.mrb[108].mxu1 }
 0x668   :  { %9656 = vst [vmem:[#allocation9_spill] sm:$0xff] %v8769_v60  ;;  %v8771_v39 = vpop.f32.mrb[109].mxu1 }
 0x669   :  { %9657 = vst [vmem:[#allocation10_spill] sm:$0xff] %v8771_v39 }
 0x66f   :  { %v8773_v25 = vpop.f32.mrb[110].mxu1 }
 0x670   :  { %9658 = vst [vmem:[#allocation11_spill] sm:$0xff] %v8773_v25  ;;  %v8775_v44 = vpop.f32.mrb[111].mxu1 }
 0x671   :  { %9659 = vst [vmem:[#allocation12_spill] sm:$0xff] %v8775_v44 }
 0x677   :  { %v8777_v42 = vpop.f32.mrb[112].mxu1 }
 0x678   :  { %9660 = vst [vmem:[#allocation13_spill] sm:$0xff] %v8777_v42  ;;  %v8779_v21 = vpop.f32.mrb[113].mxu1 }
 0x679   :  { %9661 = vst [vmem:[#allocation14_spill] sm:$0xff] %v8779_v21 }
 0x67f   :  { %v8781_v4 = vpop.f32.mrb[114].mxu1 }
 0x680   :  { %9662 = vst [vmem:[#allocation15_spill] sm:$0xff] %v8781_v4  ;;  %v8783_v35 = vpop.f32.mrb[115].mxu1 }
 0x681   :  { %9663 = vst [vmem:[#allocation16_spill] sm:$0xff] %v8783_v35 }
 0x687   :  { %v8785_v36 = vpop.f32.mrb[116].mxu1 }
 0x688   :  { %9664 = vst [vmem:[#allocation17_spill] sm:$0xff] %v8785_v36  ;;  %v8787_v34 = vpop.f32.mrb[117].mxu1 }
 0x689   :  { %9665 = vst [vmem:[#allocation18_spill] sm:$0xff] %v8787_v34 }
 0x68f   :  { %v8789_v32 = vpop.f32.mrb[118].mxu1 }
 0x690   :  { %9666 = vst [vmem:[#allocation19_spill] sm:$0xff] %v8789_v32  ;;  %v8791_v29 = vpop.f32.mrb[119].mxu1 }
 0x691   :  { %9667 = vst [vmem:[#allocation20_spill] sm:$0xff] %v8791_v29  ;;  %v8812_v29 = vld [vmem:[%s9578_s6] ss:$0 sm:$0xff] }
 0x697   :  { %v8793_v28 = vpop.f32.mrb[120].mxu1 }
 0x698   :  { %9668 = vst [vmem:[#allocation21_spill] sm:$0xff] %v8793_v28  ;;  %v8795_v27 = vpop.f32.mrb[121].mxu1 }
 0x699   :  { %9669 = vst [vmem:[#allocation22_spill] sm:$0xff] %v8795_v27 }
 0x69f   :  { %v8797_v59 = vpop.f32.mrb[122].mxu1 }
 0x6a0   :  { %9670 = vst [vmem:[#allocation23_spill] sm:$0xff] %v8797_v59  ;;  %v8799_v42 = vpop.f32.mrb[123].mxu1 }
 0x6a1   :  { %9671 = vst [vmem:[#allocation24_spill] sm:$0xff] %v8799_v42 }
 0x6a7   :  { %v8801_v21 = vpop.f32.mrb[124].mxu1 }
 0x6a8   :  { %9672 = vst [vmem:[#allocation25_spill] sm:$0xff] %v8801_v21  ;;  %v8803_v4 = vpop.f32.mrb[125].mxu1 }
 0x6a9   :  { %9673 = vst [vmem:[#allocation26_spill] sm:$0xff] %v8803_v4 }
 0x6af   :  { %v8805_v35 = vpop.f32.mrb[126].mxu1 }
 0x6b0   :  { %9674 = vst [vmem:[#allocation27_spill] sm:$0xff] %v8805_v35  ;;  %v8807_v36 = vpop.f32.mrb[127].mxu1 }
 0x6b1   :  { %9675 = vst [vmem:[#allocation28_spill] sm:$0xff] %v8807_v36 }
 0x6b3   :  { %v6666_v34 = vpop.f32.mrb[128].mxu1 }
 0x6b4   :  { %v3428_v27 = vadd.f32 %v8812_v29, %v6666_v34  ;;  %v3422_v28 = vpop.f32.mrb[129].mxu1 }
 0x6b5   :  { %v3423_v59 = vadd.f32 %v8812_v29, %v3422_v28 }
 0x6b6   :  { %v3582_v42 = vmul.f32 0.05, %v3428_v27 }
 0x6b7   :  { %v3581_v32 = vmul.f32 0.05, %v3423_v59  ;;  %v6669_v21 = vpop.f32.mrb[130].mxu1 }
 0x6b8   :  { %v3438_v4 = vadd.f32 %v8812_v29, %v6669_v21  ;;  %v3432_v44 = vpop.f32.mrb[131].mxu1  ;;  %v3614_v25 = vmax.f32 %v3428_v27, %v3582_v42 }
 0x6b9   :  { %v3613_v35 = vmax.f32 %v3423_v59, %v3581_v32  ;;  %v3433_v36 = vadd.f32 %v8812_v29, %v3432_v44 }
 0x6ba   :  { %v3584_v39 = vmul.f32 0.05, %v3438_v4 }
 0x6bb   :  { %v3583_v60 = vmul.f32 0.05, %v3433_v36  ;;  %v6672_v62 = vpop.f32.mrb[132].mxu1  ;;  %6720 = vmatprep.mubr.msk.f32.mxu0 %vm553_vm2, %v3613_v35 }
 0x6bc   :  { %v3448_v34 = vadd.f32 %v8812_v29, %v6672_v62  ;;  %v3442_v43 = vpop.f32.mrb[133].mxu1  ;;  %6721 = vmatmul.mubr.msk.f32.vlgmr.msra.gmra.mrb[160].mxu0 %vm553_vm2, %v3614_v25  ;;  %v3616_v21 = vmax.f32 %v3438_v4, %v3584_v39 }
 0x6bd   :  { %v3615_v28 = vmax.f32 %v3433_v36, %v3583_v60  ;;  %v3443_v3 = vadd.f32 %v8812_v29, %v3442_v43  ;;  %7083 = vmatpush3.bf16.msra.mxu0 %v8256_v15 }
 0x6be   :  { %v3586_v59 = vmul.f32 0.05, %v3448_v34  ;;  %7085 = vmatprep.subr.bf16.mxu0 %v8349_v10 }
 0x6bf   :  { %v3585_v27 = vmul.f32 0.05, %v3443_v3  ;;  %v6675_v32 = vpop.f32.mrb[134].mxu1  ;;  %6723 = vmatprep.mubr.msk.f32.mxu0 %vm553_vm2, %v3615_v28 }
 0x6c0   :  { %v3458_v44 = vadd.f32 %v8812_v29, %v6675_v32  ;;  %v3452_v42 = vpop.f32.mrb[135].mxu1  ;;  %6724 = vmatmul.mubr.msk.f32.gmra.mrb[162].mxu0 %vm553_vm2, %v3616_v21  ;;  %v3618_v25 = vmax.f32 %v3448_v34, %v3586_v59 }
 0x6c1   :  { %v3617_v62 = vmax.f32 %v3443_v3, %v3585_v27  ;;  %v3453_v60 = vadd.f32 %v8812_v29, %v3452_v42 }
 0x6c2   :  { %v3588_v43 = vmul.f32 0.05, %v3458_v44 }
 0x6c3   :  { %v3587_v35 = vmul.f32 0.05, %v3453_v60  ;;  %v6678_v15 = vpop.f32.mrb[136].mxu1  ;;  %6726 = vmatprep.mubr.msk.f32.mxu0 %vm553_vm2, %v3617_v62 }
 0x6c4   :  { %v3468_v39 = vadd.f32 %v8812_v29, %v6678_v15  ;;  %v3462_v4 = vpop.f32.mrb[137].mxu1  ;;  %6727 = vmatmul.mubr.msk.f32.gmra.mrb[164].mxu0 %vm553_vm2, %v3618_v25  ;;  %v3620_v32 = vmax.f32 %v3458_v44, %v3588_v43 }
 0x6c5   :  { %v3619_v36 = vmax.f32 %v3453_v60, %v3587_v35  ;;  %v3463_v28 = vadd.f32 %v8812_v29, %v3462_v4 }
 0x6c6   :  { %v3590_v33 = vmul.f32 0.05, %v3468_v39 }
 0x6c7   :  { %v3589_v21 = vmul.f32 0.05, %v3463_v28  ;;  %v6681_v3 = vpop.f32.mrb[138].mxu1  ;;  %6729 = vmatprep.mubr.msk.f32.mxu0 %vm553_vm2, %v3619_v36 }
 0x6c8   :  { %v3478_v34 = vadd.f32 %v8812_v29, %v6681_v3  ;;  %v3472_v59 = vpop.f32.mrb[139].mxu1  ;;  %6730 = vmatmul.mubr.msk.f32.gmra.mrb[166].mxu0 %vm553_vm2, %v3620_v32  ;;  %v3622_v62 = vmax.f32 %v3468_v39, %v3590_v33 }
 0x6c9   :  { %v3621_v27 = vmax.f32 %v3463_v28, %v3589_v21  ;;  %v3473_v42 = vadd.f32 %v8812_v29, %v3472_v59 }
 0x6ca   :  { %v3592_v15 = vmul.f32 0.05, %v3478_v34 }
 0x6cb   :  { %v3591_v25 = vmul.f32 0.05, %v3473_v42  ;;  %v6684_v60 = vpop.f32.mrb[140].mxu1  ;;  %6732 = vmatprep.mubr.msk.f32.mxu0 %vm553_vm2, %v3621_v27 }
 0x6cc   :  { %v3488_v44 = vadd.f32 %v8812_v29, %v6684_v60  ;;  %v3482_v43 = vpop.f32.mrb[141].mxu1  ;;  %6733 = vmatmul.mubr.msk.f32.gmra.mrb[168].mxu0 %vm553_vm2, %v3622_v62  ;;  %v3624_v36 = vmax.f32 %v3478_v34, %v3592_v15 }
 0x6cd   :  { %v3623_v35 = vmax.f32 %v3473_v42, %v3591_v25  ;;  %v3483_v4 = vadd.f32 %v8812_v29, %v3482_v43 }
 0x6ce   :  { %v3594_v3 = vmul.f32 0.05, %v3488_v44 }
 0x6cf   :  { %v3593_v32 = vmul.f32 0.05, %v3483_v4  ;;  %v6687_v28 = vpop.f32.mrb[142].mxu1  ;;  %6735 = vmatprep.mubr.msk.f32.mxu0 %vm553_vm2, %v3623_v35 }
 0x6d0   :  { %v3498_v33 = vadd.f32 %v8812_v29, %v6687_v28  ;;  %v3492_v39 = vpop.f32.mrb[143].mxu1  ;;  %6736 = vmatmul.mubr.msk.f32.gmra.mrb[170].mxu0 %vm553_vm2, %v3624_v36  ;;  %v3626_v27 = vmax.f32 %v3488_v44, %v3594_v3 }
 0x6d1   :  { %v3625_v21 = vmax.f32 %v3483_v4, %v3593_v32  ;;  %v3493_v59 = vadd.f32 %v8812_v29, %v3492_v39 }
 0x6d2   :  { %v3596_v60 = vmul.f32 0.05, %v3498_v33 }
 0x6d3   :  { %v3595_v62 = vmul.f32 0.05, %v3493_v59  ;;  %v6690_v42 = vpop.f32.mrb[144].mxu1  ;;  %6738 = vmatprep.mubr.msk.f32.mxu0 %vm553_vm2, %v3625_v21 }
 0x6d4   :  { %v3508_v34 = vadd.f32 %v8812_v29, %v6690_v42  ;;  %v3502_v15 = vpop.f32.mrb[145].mxu1  ;;  %6739 = vmatmul.mubr.msk.f32.gmra.mrb[172].mxu0 %vm553_vm2, %v3626_v27  ;;  %v3628_v35 = vmax.f32 %v3498_v33, %v3596_v60 }
 0x6d5   :  { %v3627_v25 = vmax.f32 %v3493_v59, %v3595_v62  ;;  %v3503_v43 = vadd.f32 %v8812_v29, %v3502_v15 }
 0x6d6   :  { %v3598_v28 = vmul.f32 0.05, %v3508_v34 }
 0x6d7   :  { %v3597_v36 = vmul.f32 0.05, %v3503_v43  ;;  %v6693_v4 = vpop.f32.mrb[146].mxu1  ;;  %6741 = vmatprep.mubr.msk.f32.mxu0 %vm553_vm2, %v3627_v25 }
 0x6d8   :  { %v3518_v44 = vadd.f32 %v8812_v29, %v6693_v4  ;;  %v3512_v3 = vpop.f32.mrb[147].mxu1  ;;  %6742 = vmatmul.mubr.msk.f32.gmra.mrb[174].mxu0 %vm553_vm2, %v3628_v35  ;;  %v3630_v21 = vmax.f32 %v3508_v34, %v3598_v28 }
 0x6d9   :  { %v3629_v32 = vmax.f32 %v3503_v43, %v3597_v36  ;;  %v3513_v39 = vadd.f32 %v8812_v29, %v3512_v3 }
 0x6da   :  { %v3600_v42 = vmul.f32 0.05, %v3518_v44 }
 0x6db   :  { %v3599_v27 = vmul.f32 0.05, %v3513_v39  ;;  %v6696_v59 = vpop.f32.mrb[148].mxu1  ;;  %6744 = vmatprep.mubr.msk.f32.mxu0 %vm553_vm2, %v3629_v32 }
 0x6dc   :  { %v3528_v33 = vadd.f32 %v8812_v29, %v6696_v59  ;;  %v3522_v60 = vpop.f32.mrb[149].mxu1  ;;  %6745 = vmatmul.mubr.msk.f32.gmra.mrb[176].mxu0 %vm553_vm2, %v3630_v21  ;;  %v3632_v25 = vmax.f32 %v3518_v44, %v3600_v42 }
 0x6dd   :  { %v3631_v62 = vmax.f32 %v3513_v39, %v3599_v27  ;;  %v3523_v15 = vadd.f32 %v8812_v29, %v3522_v60 }
 0x6de   :  { %v3602_v4 = vmul.f32 0.05, %v3528_v33 }
 0x6df   :  { %v3601_v35 = vmul.f32 0.05, %v3523_v15  ;;  %v6699_v43 = vpop.f32.mrb[150].mxu1  ;;  %6747 = vmatprep.mubr.msk.f32.mxu0 %vm553_vm2, %v3631_v62 }
 0x6e0   :  { %v3538_v34 = vadd.f32 %v8812_v29, %v6699_v43  ;;  %v3532_v28 = vpop.f32.mrb[151].mxu1  ;;  %6748 = vmatmul.mubr.msk.f32.gmra.mrb[178].mxu0 %vm553_vm2, %v3632_v25  ;;  %v3634_v32 = vmax.f32 %v3528_v33, %v3602_v4 }
 0x6e1   :  { %v3633_v36 = vmax.f32 %v3523_v15, %v3601_v35  ;;  %v3533_v3 = vadd.f32 %v8812_v29, %v3532_v28 }
 0x6e2   :  { %v3604_v59 = vmul.f32 0.05, %v3538_v34 }
 0x6e3   :  { %v3603_v21 = vmul.f32 0.05, %v3533_v3  ;;  %v6702_v39 = vpop.f32.mrb[152].mxu1  ;;  %6750 = vmatprep.mubr.msk.f32.mxu0 %vm553_vm2, %v3633_v36 }
 0x6e4   :  { %v3548_v44 = vadd.f32 %v8812_v29, %v6702_v39  ;;  %v3542_v42 = vpop.f32.mrb[153].mxu1  ;;  %6751 = vmatmul.mubr.msk.f32.gmra.mrb[180].mxu0 %vm553_vm2, %v3634_v32  ;;  %v3636_v62 = vmax.f32 %v3538_v34, %v3604_v59 }
 0x6e5   :  { %v3635_v27 = vmax.f32 %v3533_v3, %v3603_v21  ;;  %v3543_v60 = vadd.f32 %v8812_v29, %v3542_v42 }
 0x6e6   :  { %v3606_v43 = vmul.f32 0.05, %v3548_v44 }
 0x6e7   :  { %v3605_v25 = vmul.f32 0.05, %v3543_v60  ;;  %v6705_v15 = vpop.f32.mrb[154].mxu1  ;;  %6753 = vmatprep.mubr.msk.f32.mxu0 %vm553_vm2, %v3635_v27 }
 0x6e8   :  { %v3558_v33 = vadd.f32 %v8812_v29, %v6705_v15  ;;  %v3552_v4 = vpop.f32.mrb[155].mxu1  ;;  %6754 = vmatmul.mubr.msk.f32.gmra.mrb[182].mxu0 %vm553_vm2, %v3636_v62  ;;  %v3638_v36 = vmax.f32 %v3548_v44, %v3606_v43 }
 0x6e9   :  { %v3637_v35 = vmax.f32 %v3543_v60, %v3605_v25  ;;  %v3553_v28 = vadd.f32 %v8812_v29, %v3552_v4 }
 0x6ea   :  { %v3608_v39 = vmul.f32 0.05, %v3558_v33 }
 0x6eb   :  { %v3607_v32 = vmul.f32 0.05, %v3553_v28  ;;  %v6708_v3 = vpop.f32.mrb[156].mxu1  ;;  %6756 = vmatprep.mubr.msk.f32.mxu0 %vm553_vm2, %v3637_v35 }
 0x6ec   :  { %v3568_v34 = vadd.f32 %v8812_v29, %v6708_v3  ;;  %v3562_v59 = vpop.f32.mrb[157].mxu1  ;;  %6757 = vmatmul.mubr.msk.f32.gmra.mrb[184].mxu0 %vm553_vm2, %v3638_v36  ;;  %v3640_v27 = vmax.f32 %v3558_v33, %v3608_v39 }
 0x6ed   :  { %v3639_v21 = vmax.f32 %v3553_v28, %v3607_v32  ;;  %v3563_v42 = vadd.f32 %v8812_v29, %v3562_v59  ;;  %v8883_v32 = vld [vmem:[%s9579_s7] ss:$0 sm:$0xff] }
 0x6ee   :  { %v3610_v15 = vmul.f32 0.05, %v3568_v34 }
 0x6ef   :  { %v3609_v62 = vmul.f32 0.05, %v3563_v42  ;;  %v6711_v60 = vpop.f32.mrb[158].mxu1  ;;  %6759 = vmatprep.mubr.msk.f32.mxu0 %vm553_vm2, %v3639_v21 }
 0x6f0   :  { %v3578_v44 = vadd.f32 %v8812_v29, %v6711_v60  ;;  %v3572_v43 = vpop.f32.mrb[159].mxu1  ;;  %6760 = vmatmul.mubr.msk.f32.gmra.mrb[186].mxu0 %vm553_vm2, %v3640_v27  ;;  %v3642_v35 = vmax.f32 %v3568_v34, %v3610_v15  ;;  %v9676_v60 = vmov 0.0|0.0  }
 0x6f1   :  { %v3641_v25 = vmax.f32 %v3563_v42, %v3609_v62  ;;  %v3573_v4 = vadd.f32 %v8812_v29, %v3572_v43 }
 0x6f2   :  { %v3612_v3 = vmul.f32 0.05, %v3578_v44 }
 0x6f3   :  { %v3611_v36 = vmul.f32 0.05, %v3573_v4  ;;  %6762 = vmatprep.mubr.msk.f32.mxu0 %vm553_vm2, %v3641_v25 }
 0x6f4   :  { %6763 = vmatmul.mubr.msk.f32.gmra.mrb[188].mxu0 %vm553_vm2, %v3642_v35  ;;  %v3644_v28 = vmax.f32 %v3578_v44, %v3612_v3 }
 0x6f5   :  { %v3643_v33 = vmax.f32 %v3573_v4, %v3611_v36 }
 0x6f7   :  { %6765 = vmatprep.mubr.msk.f32.mxu0 %vm553_vm2, %v3643_v33 }
 0x6f8   :  { %6766 = vmatmul.mubr.msk.f32.gmra.mrb[190].mxu0 %vm553_vm2, %v3644_v28 }
 0x78f   :  { %v6722_v39 = vpop.f32.mrb[160].mxu0 }
 0x790   :  { %v3813_v29 = vadd.f32 %v8883_v32, %v6722_v39  ;;  %v3807_v34 = vpop.f32.mrb[161].mxu0 }
 0x791   :  { %v3808_v59 = vadd.f32 %v8883_v32, %v3807_v34 }
 0x793   :  { %v7033_v21 = vpack.c.bf16 %v3813_v29, %v3808_v59  ;;  %v6725_v42 = vpop.f32.mrb[162].mxu0 }
 0x794   :  { %v3823_v27 = vadd.f32 %v8883_v32, %v6725_v42  ;;  %v3817_v15 = vpop.f32.mrb[163].mxu0 }
 0x795   :  { %v3818_v62 = vadd.f32 %v8883_v32, %v3817_v15  ;;  %7034 = vmatpush1.bf16.msra.mxu1 %v7033_v21 }
 0x796   :  { %7035 = vmatprep.subr.bf16.mxu1 %v9676_v60 }
 0x797   :  { %v7036_v44 = vpack.c.bf16 %v3823_v27, %v3818_v62  ;;  %v6728_v43 = vpop.f32.mrb[164].mxu0 }
 0x798   :  { %v3833_v25 = vadd.f32 %v8883_v32, %v6728_v43  ;;  %v3827_v4 = vpop.f32.mrb[165].mxu0 }
 0x799   :  { %v3828_v35 = vadd.f32 %v8883_v32, %v3827_v4  ;;  %7037 = vmatpush1.bf16.msra.mxu1 %v7036_v44 }
 0x79a   :  { %7038 = vmatprep.subr.bf16.mxu1 %v9676_v60 }
 0x79b   :  { %v7039_v3 = vpack.c.bf16 %v3833_v25, %v3828_v35  ;;  %v6731_v36 = vpop.f32.mrb[166].mxu0 }
 0x79c   :  { %v3843_v33 = vadd.f32 %v8883_v32, %v6731_v36  ;;  %v3837_v28 = vpop.f32.mrb[167].mxu0 }
 0x79d   :  { %v3838_v39 = vadd.f32 %v8883_v32, %v3837_v28  ;;  %7040 = vmatpush1.bf16.msra.mxu1 %v7039_v3 }
 0x79e   :  { %7041 = vmatprep.subr.bf16.mxu1 %v9676_v60 }
 0x79f   :  { %v7042_v29 = vpack.c.bf16 %v3843_v33, %v3838_v39  ;;  %v6734_v34 = vpop.f32.mrb[168].mxu0 }
 0x7a0   :  { %v3853_v59 = vadd.f32 %v8883_v32, %v6734_v34  ;;  %v3847_v21 = vpop.f32.mrb[169].mxu0 }
 0x7a1   :  { %v3848_v42 = vadd.f32 %v8883_v32, %v3847_v21  ;;  %7043 = vmatpush1.bf16.msra.mxu1 %v7042_v29 }
 0x7a2   :  { %7044 = vmatprep.subr.bf16.mxu1 %v9676_v60 }
 0x7a3   :  { %v7045_v27 = vpack.c.bf16 %v3853_v59, %v3848_v42  ;;  %v6737_v15 = vpop.f32.mrb[170].mxu0 }
 0x7a4   :  { %v3863_v62 = vadd.f32 %v8883_v32, %v6737_v15  ;;  %v3857_v44 = vpop.f32.mrb[171].mxu0 }
 0x7a5   :  { %v3858_v43 = vadd.f32 %v8883_v32, %v3857_v44  ;;  %7046 = vmatpush1.bf16.msra.mxu1 %v7045_v27 }
 0x7a6   :  { %7047 = vmatprep.subr.bf16.mxu1 %v9676_v60 }
 0x7a7   :  { %v7048_v25 = vpack.c.bf16 %v3863_v62, %v3858_v43  ;;  %v6740_v4 = vpop.f32.mrb[172].mxu0 }
 0x7a8   :  { %v3873_v35 = vadd.f32 %v8883_v32, %v6740_v4  ;;  %v3867_v3 = vpop.f32.mrb[173].mxu0 }
 0x7a9   :  { %v3868_v36 = vadd.f32 %v8883_v32, %v3867_v3  ;;  %7049 = vmatpush1.bf16.msra.mxu1 %v7048_v25 }
 0x7aa   :  { %7050 = vmatprep.subr.bf16.mxu1 %v9676_v60 }
 0x7ab   :  { %v7051_v33 = vpack.c.bf16 %v3873_v35, %v3868_v36  ;;  %v6743_v28 = vpop.f32.mrb[174].mxu0 }
 0x7ac   :  { %v3883_v39 = vadd.f32 %v8883_v32, %v6743_v28  ;;  %v3877_v29 = vpop.f32.mrb[175].mxu0 }
 0x7ad   :  { %v3878_v34 = vadd.f32 %v8883_v32, %v3877_v29  ;;  %7052 = vmatpush1.bf16.msra.mxu1 %v7051_v33 }
 0x7ae   :  { %7053 = vmatprep.subr.bf16.mxu1 %v9676_v60 }
 0x7af   :  { %v7054_v59 = vpack.c.bf16 %v3883_v39, %v3878_v34  ;;  %v6746_v21 = vpop.f32.mrb[176].mxu0 }
 0x7b0   :  { %v3893_v42 = vadd.f32 %v8883_v32, %v6746_v21  ;;  %v3887_v27 = vpop.f32.mrb[177].mxu0 }
 0x7b1   :  { %v3888_v15 = vadd.f32 %v8883_v32, %v3887_v27  ;;  %7055 = vmatpush1.bf16.msra.mxu1 %v7054_v59 }
 0x7b2   :  { %7056 = vmatprep.subr.bf16.mxu1 %v9676_v60 }
 0x7b3   :  { %v7057_v62 = vpack.c.bf16 %v3893_v42, %v3888_v15  ;;  %v6749_v44 = vpop.f32.mrb[178].mxu0 }
 0x7b4   :  { %v3903_v43 = vadd.f32 %v8883_v32, %v6749_v44  ;;  %v3897_v25 = vpop.f32.mrb[179].mxu0 }
 0x7b5   :  { %v3898_v4 = vadd.f32 %v8883_v32, %v3897_v25  ;;  %7058 = vmatpush1.bf16.msra.mxu1 %v7057_v62 }
 0x7b6   :  { %7059 = vmatprep.subr.bf16.mxu1 %v9676_v60 }
 0x7b7   :  { %v7060_v35 = vpack.c.bf16 %v3903_v43, %v3898_v4  ;;  %v6752_v3 = vpop.f32.mrb[180].mxu0 }
 0x7b8   :  { %v3913_v36 = vadd.f32 %v8883_v32, %v6752_v3  ;;  %v3907_v33 = vpop.f32.mrb[181].mxu0 }
 0x7b9   :  { %v3908_v28 = vadd.f32 %v8883_v32, %v3907_v33  ;;  %7061 = vmatpush1.bf16.msra.mxu1 %v7060_v35 }
 0x7ba   :  { %7062 = vmatprep.subr.bf16.mxu1 %v9676_v60 }
 0x7bb   :  { %v7063_v39 = vpack.c.bf16 %v3913_v36, %v3908_v28  ;;  %v6755_v29 = vpop.f32.mrb[182].mxu0 }
 0x7bc   :  { %v3923_v34 = vadd.f32 %v8883_v32, %v6755_v29  ;;  %v3917_v59 = vpop.f32.mrb[183].mxu0 }
 0x7bd   :  { %v3918_v21 = vadd.f32 %v8883_v32, %v3917_v59  ;;  %7064 = vmatpush1.bf16.msra.mxu1 %v7063_v39 }
 0x7be   :  { %7065 = vmatprep.subr.bf16.mxu1 %v9676_v60 }
 0x7bf   :  { %v7066_v42 = vpack.c.bf16 %v3923_v34, %v3918_v21  ;;  %v6758_v27 = vpop.f32.mrb[184].mxu0 }
 0x7c0   :  { %v3933_v15 = vadd.f32 %v8883_v32, %v6758_v27  ;;  %v3927_v62 = vpop.f32.mrb[185].mxu0 }
 0x7c1   :  { %v3928_v44 = vadd.f32 %v8883_v32, %v3927_v62  ;;  %7067 = vmatpush1.bf16.msra.mxu1 %v7066_v42  ;;  %v9677_v62 = vunpack.i.h.bf16 %v8003_v41  ;;  %v9682_v41 = vunpack.i.l.bf16 %v8012_v48 }
 0x7c2   :  { %7068 = vmatprep.subr.bf16.mxu1 %v9676_v60 }
 0x7c3   :  { %v7069_v43 = vpack.c.bf16 %v3933_v15, %v3928_v44  ;;  %v6761_v25 = vpop.f32.mrb[186].mxu0  ;;  %v9678_v44 = vunpack.i.l.bf16 %v8008_v46 }
 0x7c4   :  { %v3943_v4 = vadd.f32 %v8883_v32, %v6761_v25  ;;  %v3937_v35 = vpop.f32.mrb[187].mxu0  ;;  %v9683_v25 = vunpack.i.h.bf16 %v8012_v48  ;;  %v9690_v48 = vunpack.i.l.bf16 %v8020_v52 }
 0x7c5   :  { %v3938_v3 = vadd.f32 %v8883_v32, %v3937_v35  ;;  %7070 = vmatpush1.bf16.msra.mxu1 %v7069_v43  ;;  %v9679_v43 = vunpack.i.h.bf16 %v8008_v46  ;;  %v9685_v46 = vunpack.i.h.bf16 %v8014_v49  ;;  %v9689_v35 = vunpack.i.h.bf16 %v8018_v51 }
 0x7c6   :  { %7071 = vmatprep.subr.bf16.mxu1 %v9676_v60 }
 0x7c7   :  { %v7072_v36 = vpack.c.bf16 %v3943_v4, %v3938_v3  ;;  %v6764_v33 = vpop.f32.mrb[188].mxu0  ;;  %v9686_v4 = vunpack.i.l.bf16 %v8016_v50  ;;  %v9691_v3 = vunpack.i.h.bf16 %v8020_v52  ;;  %v9698_v52 = vunpack.i.l.bf16 %v8028_v40 }
 0x7c8   :  { %v3953_v28 = vadd.f32 %v8883_v32, %v6764_v33  ;;  %v3947_v39 = vpop.f32.mrb[189].mxu0  ;;  %v9695_v33 = vunpack.i.h.bf16 %v8024_v54 }
 0x7c9   :  { %v3948_v29 = vadd.f32 %v8883_v32, %v3947_v39  ;;  %7073 = vmatpush1.bf16.msra.mxu1 %v7072_v36  ;;  %v9693_v36 = vunpack.i.h.bf16 %v8022_v53  ;;  %v9699_v39 = vunpack.i.h.bf16 %v8028_v40  ;;  %v9706_v40 = vunpack.i.l.bf16 %v8036_v58 }
 0x7ca   :  { %7074 = vmatprep.subr.bf16.mxu1 %v9676_v60 }
 0x7cb   :  { %v7075_v34 = vpack.c.bf16 %v3953_v28, %v3948_v29  ;;  %v6767_v59 = vpop.f32.mrb[190].mxu0  ;;  %v9697_v28 = vunpack.i.h.bf16 %v8026_v55  ;;  %v9701_v29 = vunpack.i.h.bf16 %v8030_v56 }
 0x7cc   :  { %v3963_v21 = vadd.f32 %v8883_v32, %v6767_v59  ;;  %v3957_v42 = vpop.f32.mrb[191].mxu0  ;;  %v9705_v59 = vunpack.i.h.bf16 %v8034_v57 }
 0x7cd   :  { %v3958_v27 = vadd.f32 %v8883_v32, %v3957_v42  ;;  %7076 = vmatpush1.bf16.msra.mxu1 %v7075_v34  ;;  %v9680_v32 = vunpack.i.l.bf16 %v8010_v47  ;;  %v9703_v34 = vunpack.i.h.bf16 %v8032_v45  ;;  %v9709_v42 = vunpack.i.h.bf16 %v8044_v0 }
 0x7ce   :  { %7077 = vmatprep.subr.bf16.mxu1 %v9676_v60  ;;  %v9681_v60 = vunpack.i.h.bf16 %v8010_v47  ;;  %v9688_v47 = vunpack.i.l.bf16 %v8018_v51  ;;  %v9696_v51 = vunpack.i.l.bf16 %v8026_v55  ;;  %v9704_v55 = vunpack.i.l.bf16 %v8034_v57 }
 0x7cf   :  { %v7078_v15 = vpack.c.bf16 %v3963_v21, %v3958_v27  ;;  %v9707_v21 = vunpack.i.h.bf16 %v8036_v58  ;;  %v9711_v27 = vunpack.i.h.bf16 %v8048_v6  ;;  %v9712_v57 = vunpack.i.l.bf16 %v8053_v12 }
 0x7d0   :  { %v9714_v58 = vunpack.i.l.bf16 %v8058_v18 }
 0x7d1   :  { %7079 = vmatpush1.bf16.msra.mxu1 %v7078_v15  ;;  %v9713_v15 = vunpack.i.h.bf16 %v8053_v12  ;;  %v9720_v12 = vunpack.i.l.bf16 %v8073_v37 }
 0x7d2   :  { %7093 = vmatprep.subr.bf16.mxu1 %v8404_v63 }
 0x7d4   :  { %4031 = vmatmul.mubr.f32.vlgmr.msra.gmra.mrb[160].mxu1 %v9677_v62  ;;  %v9715_v62 = vunpack.i.h.bf16 %v8058_v18  ;;  %v9722_v18 = vunpack.i.l.bf16 %v8078_v2 }
 0x7d5   :  { %4035 = vmatprep.mubr.f32.mxu1 %v9678_v44  ;;  %7095 = vmatpush3.bf16.msra.mxu1 %v8404_v63  ;;  %v9684_v63 = vunpack.i.l.bf16 %v8014_v49  ;;  %v9692_v49 = vunpack.i.l.bf16 %v8022_v53  ;;  %v9700_v53 = vunpack.i.l.bf16 %v8030_v56  ;;  %v9708_v56 = vunpack.i.l.bf16 %v8044_v0 }
 0x7d6   :  { %7097 = vmatprep.subr.bf16.mxu1 %v8446_v8  ;;  %v9716_v0 = vunpack.i.l.bf16 %v8063_v24  ;;  %v9717_v44 = vunpack.i.h.bf16 %v8063_v24  ;;  %v9724_v24 = vunpack.i.l.bf16 %v8083_v9 }
 0x7d8   :  { %4036 = vmatmul.mubr.f32.gmra.mrb[162].mxu1 %v9679_v43  ;;  %v9719_v43 = vunpack.i.h.bf16 %v8068_v30 }
 0x7d9   :  { %4040 = vmatprep.mubr.f32.mxu1 %v9680_v32  ;;  %7099 = vmatpush3.bf16.msra.mxu1 %v8446_v8  ;;  %v9687_v8 = vunpack.i.h.bf16 %v8016_v50  ;;  %v9694_v50 = vunpack.i.l.bf16 %v8024_v54  ;;  %v9702_v54 = vunpack.i.l.bf16 %v8032_v45  ;;  %v9710_v45 = vunpack.i.l.bf16 %v8048_v6 }
 0x7da   :  { %v9718_v6 = vunpack.i.l.bf16 %v8068_v30  ;;  %v9721_v32 = vunpack.i.h.bf16 %v8073_v37  ;;  %v9726_v30 = vunpack.i.l.bf16 %v8088_v16  ;;  %v9728_v37 = vunpack.i.l.bf16 %v8093_v23 }
 0x7dc   :  { %4041 = vmatmul.mubr.f32.gmra.mrb[164].mxu1 %v9681_v60  ;;  %v9723_v60 = vunpack.i.h.bf16 %v8078_v2  ;;  %v9730_v2 = vunpack.i.l.bf16 %v8098_v31 }
 0x7dd   :  { %4045 = vmatprep.mubr.f32.mxu1 %v9682_v41  ;;  %v9725_v41 = vunpack.i.h.bf16 %v8083_v9  ;;  %v9732_v9 = vunpack.i.l.bf16 %v8103_v61 }
 0x7e0   :  { %4046 = vmatmul.mubr.f32.gmra.mrb[166].mxu1 %v9683_v25  ;;  %v9727_v25 = vunpack.i.h.bf16 %v8088_v16  ;;  %v9734_v16 = vunpack.i.l.bf16 %v8108_v5 }
 0x7e1   :  { %4050 = vmatprep.mubr.f32.mxu1 %v9684_v63  ;;  %v9729_v63 = vunpack.i.h.bf16 %v8093_v23  ;;  %v9736_v23 = vunpack.i.l.bf16 %v8113_v14 }
 0x7e4   :  { %4051 = vmatmul.mubr.f32.gmra.mrb[168].mxu1 %v9685_v46  ;;  %v9731_v46 = vunpack.i.h.bf16 %v8098_v31  ;;  %v9738_v31 = vunpack.i.l.bf16 %v8118_v22 }
 0x7e5   :  { %4055 = vmatprep.mubr.f32.mxu1 %v9686_v4  ;;  %v9733_v4 = vunpack.i.h.bf16 %v8103_v61 }
 0x7e8   :  { %4056 = vmatmul.mubr.f32.gmra.mrb[170].mxu1 %v9687_v8  ;;  %v9735_v8 = vunpack.i.h.bf16 %v8108_v5 }
 0x7e9   :  { %4060 = vmatprep.mubr.f32.mxu1 %v9688_v47  ;;  %v9737_v47 = vunpack.i.h.bf16 %v8113_v14 }
 0x7ec   :  { %4061 = vmatmul.mubr.f32.gmra.mrb[172].mxu1 %v9689_v35  ;;  %v9739_v35 = vunpack.i.h.bf16 %v8118_v22 }
 0x7ed   :  { %4065 = vmatprep.mubr.f32.mxu1 %v9690_v48 }
 0x7f0   :  { %4066 = vmatmul.mubr.f32.gmra.mrb[174].mxu1 %v9691_v3 }
 0x7f1   :  { %4070 = vmatprep.mubr.f32.mxu1 %v9692_v49 }
 0x7f4   :  { %4071 = vmatmul.mubr.f32.gmra.mrb[176].mxu1 %v9693_v36 }
 0x7f5   :  { %4075 = vmatprep.mubr.f32.mxu1 %v9694_v50 }
 0x7f8   :  { %4076 = vmatmul.mubr.f32.gmra.mrb[178].mxu1 %v9695_v33 }
 0x7f9   :  { %4080 = vmatprep.mubr.f32.mxu1 %v9696_v51 }
 0x7fc   :  { %4081 = vmatmul.mubr.f32.gmra.mrb[180].mxu1 %v9697_v28 }
 0x7fd   :  { %4085 = vmatprep.mubr.f32.mxu1 %v9698_v52 }
 0x800   :  { %4086 = vmatmul.mubr.f32.gmra.mrb[182].mxu1 %v9699_v39 }
 0x801   :  { %4090 = vmatprep.mubr.f32.mxu1 %v9700_v53 }
 0x804   :  { %4091 = vmatmul.mubr.f32.gmra.mrb[184].mxu1 %v9701_v29 }
 0x805   :  { %4095 = vmatprep.mubr.f32.mxu1 %v9702_v54 }
 0x808   :  { %4096 = vmatmul.mubr.f32.gmra.mrb[186].mxu1 %v9703_v34 }
 0x809   :  { %4100 = vmatprep.mubr.f32.mxu1 %v9704_v55 }
 0x80c   :  { %4101 = vmatmul.mubr.f32.gmra.mrb[188].mxu1 %v9705_v59 }
 0x80d   :  { %4105 = vmatprep.mubr.f32.mxu1 %v9706_v40 }
 0x810   :  { %4106 = vmatmul.mubr.f32.gmra.mrb[190].mxu1 %v9707_v21 }
 0x811   :  { %4110 = vmatprep.mubr.f32.mxu1 %v9708_v56 }
 0x814   :  { %4111 = vmatmul.mubr.f32.gmra.mrb[192].mxu1 %v9709_v42 }
 0x815   :  { %4115 = vmatprep.mubr.f32.mxu1 %v9710_v45 }
 0x818   :  { %4116 = vmatmul.mubr.f32.gmra.mrb[194].mxu1 %v9711_v27 }
 0x819   :  { %4120 = vmatprep.mubr.f32.mxu1 %v9712_v57 }
 0x81c   :  { %4121 = vmatmul.mubr.f32.gmra.mrb[196].mxu1 %v9713_v15 }
 0x81d   :  { %4125 = vmatprep.mubr.f32.mxu1 %v9714_v58 }
 0x820   :  { %4126 = vmatmul.mubr.f32.gmra.mrb[198].mxu1 %v9715_v62 }
 0x821   :  { %4130 = vmatprep.mubr.f32.mxu1 %v9716_v0 }
 0x824   :  { %4131 = vmatmul.mubr.f32.gmra.mrb[200].mxu1 %v9717_v44 }
 0x825   :  { %4135 = vmatprep.mubr.f32.mxu1 %v9718_v6 }
 0x828   :  { %4136 = vmatmul.mubr.f32.gmra.mrb[202].mxu1 %v9719_v43 }
 0x829   :  { %4140 = vmatprep.mubr.f32.mxu1 %v9720_v12 }
 0x82c   :  { %4141 = vmatmul.mubr.f32.gmra.mrb[204].mxu1 %v9721_v32 }
 0x82d   :  { %4145 = vmatprep.mubr.f32.mxu1 %v9722_v18 }
 0x830   :  { %4146 = vmatmul.mubr.f32.gmra.mrb[206].mxu1 %v9723_v60 }
 0x831   :  { %4150 = vmatprep.mubr.f32.mxu1 %v9724_v24 }
 0x834   :  { %4151 = vmatmul.mubr.f32.gmra.mrb[208].mxu1 %v9725_v41 }
 0x835   :  { %4155 = vmatprep.mubr.f32.mxu1 %v9726_v30 }
 0x838   :  { %4156 = vmatmul.mubr.f32.gmra.mrb[210].mxu1 %v9727_v25 }
 0x839   :  { %4160 = vmatprep.mubr.f32.mxu1 %v9728_v37 }
 0x83c   :  { %4161 = vmatmul.mubr.f32.gmra.mrb[212].mxu1 %v9729_v63 }
 0x83d   :  { %4165 = vmatprep.mubr.f32.mxu1 %v9730_v2 }
 0x840   :  { %4166 = vmatmul.mubr.f32.gmra.mrb[214].mxu1 %v9731_v46 }
 0x841   :  { %4170 = vmatprep.mubr.f32.mxu1 %v9732_v9 }
 0x844   :  { %4171 = vmatmul.mubr.f32.gmra.mrb[216].mxu1 %v9733_v4 }
 0x845   :  { %4175 = vmatprep.mubr.f32.mxu1 %v9734_v16 }
 0x848   :  { %4176 = vmatmul.mubr.f32.gmra.mrb[218].mxu1 %v9735_v8 }
 0x849   :  { %4180 = vmatprep.mubr.f32.mxu1 %v9736_v23 }
 0x84c   :  { %4181 = vmatmul.mubr.f32.gmra.mrb[220].mxu1 %v9737_v47 }
 0x84d   :  { %4185 = vmatprep.mubr.f32.mxu1 %v9738_v31 }
 0x850   :  { %4186 = vmatmul.mubr.f32.gmra.mrb[222].mxu1 %v9739_v35 }
 0x8a7   :  { %v4032_v61 = vpop.f32.mrb[160].mxu1 }
 0x8a8   :  { %v4034_v48 = vpop.f32.mrb[161].mxu1  ;;  %6772 = vmatprep.mubr.msk.f32.mxu0 %vm1633_vm3, %v4032_v61 }
 0x8ab   :  { %v4037_v3 = vpop.f32.mrb[162].mxu1 }
 0x8ac   :  { %v4039_v49 = vpop.f32.mrb[163].mxu1  ;;  %6773 = vmatmul.mubr.msk.f32.vlgmr.msra.gmra.mrb[192].mxu0 %vm1633_vm3, %v4037_v3 }
 0x8ad   :  { %7087 = vmatpush3.bf16.msra.mxu0 %v8349_v10 }
 0x8ae   :  { %7089 = vmatprep.subr.bf16.mxu0 %v8360_v11 }
 0x8af   :  { %v4042_v5 = vpop.f32.mrb[164].mxu1 }
 0x8b0   :  { %v4044_v14 = vpop.f32.mrb[165].mxu1  ;;  %6775 = vmatprep.mubr.msk.f32.mxu0 %vm1633_vm3, %v4042_v5 }
 0x8b1   :  { %7091 = vmatpush3.bf16.msra.mxu0 %v8360_v11 }
 0x8b3   :  { %v4047_v22 = vpop.f32.mrb[166].mxu1 }
 0x8b4   :  { %v4049_v36 = vpop.f32.mrb[167].mxu1  ;;  %6776 = vmatmul.mubr.msk.f32.gmra.mrb[194].mxu0 %vm1633_vm3, %v4047_v22 }
 0x8b7   :  { %v4052_v50 = vpop.f32.mrb[168].mxu1 }
 0x8b8   :  { %v4054_v33 = vpop.f32.mrb[169].mxu1  ;;  %6778 = vmatprep.mubr.msk.f32.mxu0 %vm1633_vm3, %v4052_v50 }
 0x8b9   :  { %v9100_v33 = vld [vmem:[%s9583_s11] ss:$0 sm:$0xff] }
 0x8bb   :  { %v4057_v51 = vpop.f32.mrb[170].mxu1 }
 0x8bc   :  { %v4059_v28 = vpop.f32.mrb[171].mxu1  ;;  %6779 = vmatmul.mubr.msk.f32.gmra.mrb[196].mxu0 %vm1633_vm3, %v4057_v51 }
 0x8bf   :  { %v4062_v10 = vpop.f32.mrb[172].mxu1 }
 0x8c0   :  { %v4064_v52 = vpop.f32.mrb[173].mxu1  ;;  %6781 = vmatprep.mubr.msk.f32.mxu0 %vm1633_vm3, %v4062_v10 }
 0x8c3   :  { %v4067_v39 = vpop.f32.mrb[174].mxu1 }
 0x8c4   :  { %v4069_v53 = vpop.f32.mrb[175].mxu1  ;;  %6782 = vmatmul.mubr.msk.f32.gmra.mrb[198].mxu0 %vm1633_vm3, %v4067_v39 }
 0x8c7   :  { %v4072_v11 = vpop.f32.mrb[176].mxu1 }
 0x8c8   :  { %v4074_v29 = vpop.f32.mrb[177].mxu1  ;;  %6784 = vmatprep.mubr.msk.f32.mxu0 %vm1633_vm3, %v4072_v11 }
 0x8cb   :  { %v4077_v54 = vpop.f32.mrb[178].mxu1 }
 0x8cc   :  { %v4079_v34 = vpop.f32.mrb[179].mxu1  ;;  %6785 = vmatmul.mubr.msk.f32.gmra.mrb[200].mxu0 %vm1633_vm3, %v4077_v54 }
 0x8cf   :  { %v4082_v55 = vpop.f32.mrb[180].mxu1 }
 0x8d0   :  { %v4084_v59 = vpop.f32.mrb[181].mxu1  ;;  %6787 = vmatprep.mubr.msk.f32.mxu0 %vm1633_vm3, %v4082_v55 }
 0x8d3   :  { %v4087_v40 = vpop.f32.mrb[182].mxu1 }
 0x8d4   :  { %v4089_v21 = vpop.f32.mrb[183].mxu1  ;;  %6788 = vmatmul.mubr.msk.f32.gmra.mrb[202].mxu0 %vm1633_vm3, %v4087_v40 }
 0x8d7   :  { %v4092_v56 = vpop.f32.mrb[184].mxu1 }
 0x8d8   :  { %v4094_v42 = vpop.f32.mrb[185].mxu1  ;;  %6790 = vmatprep.mubr.msk.f32.mxu0 %vm1633_vm3, %v4092_v56 }
 0x8db   :  { %v4097_v45 = vpop.f32.mrb[186].mxu1 }
 0x8dc   :  { %v4099_v27 = vpop.f32.mrb[187].mxu1  ;;  %6791 = vmatmul.mubr.msk.f32.gmra.mrb[204].mxu0 %vm1633_vm3, %v4097_v45 }
 0x8df   :  { %v4102_v57 = vpop.f32.mrb[188].mxu1 }
 0x8e0   :  { %v4104_v15 = vpop.f32.mrb[189].mxu1  ;;  %6793 = vmatprep.mubr.msk.f32.mxu0 %vm1633_vm3, %v4102_v57 }
 0x8e3   :  { %v4107_v58 = vpop.f32.mrb[190].mxu1 }
 0x8e4   :  { %v4109_v62 = vpop.f32.mrb[191].mxu1  ;;  %6794 = vmatmul.mubr.msk.f32.gmra.mrb[206].mxu0 %vm1633_vm3, %v4107_v58 }
 0x8e7   :  { %v4112_v0 = vpop.f32.mrb[192].mxu1 }
 0x8e8   :  { %v4114_v44 = vpop.f32.mrb[193].mxu1  ;;  %6796 = vmatprep.mubr.msk.f32.mxu0 %vm1633_vm3, %v4112_v0 }
 0x8eb   :  { %v4117_v6 = vpop.f32.mrb[194].mxu1 }
 0x8ec   :  { %v4119_v43 = vpop.f32.mrb[195].mxu1  ;;  %6797 = vmatmul.mubr.msk.f32.gmra.mrb[208].mxu0 %vm1633_vm3, %v4117_v6 }
 0x8ef   :  { %v4122_v12 = vpop.f32.mrb[196].mxu1 }
 0x8f0   :  { %v4124_v32 = vpop.f32.mrb[197].mxu1  ;;  %6799 = vmatprep.mubr.msk.f32.mxu0 %vm1633_vm3, %v4122_v12 }
 0x8f3   :  { %v4127_v18 = vpop.f32.mrb[198].mxu1 }
 0x8f4   :  { %v4129_v60 = vpop.f32.mrb[199].mxu1  ;;  %6800 = vmatmul.mubr.msk.f32.gmra.mrb[210].mxu0 %vm1633_vm3, %v4127_v18 }
 0x8f7   :  { %v4132_v24 = vpop.f32.mrb[200].mxu1 }
 0x8f8   :  { %v4134_v41 = vpop.f32.mrb[201].mxu1  ;;  %6802 = vmatprep.mubr.msk.f32.mxu0 %vm1633_vm3, %v4132_v24 }
 0x8fb   :  { %v4137_v30 = vpop.f32.mrb[202].mxu1 }
 0x8fc   :  { %v4139_v25 = vpop.f32.mrb[203].mxu1  ;;  %6803 = vmatmul.mubr.msk.f32.gmra.mrb[212].mxu0 %vm1633_vm3, %v4137_v30 }
 0x8ff   :  { %v4142_v37 = vpop.f32.mrb[204].mxu1 }
 0x900   :  { %v4144_v63 = vpop.f32.mrb[205].mxu1  ;;  %6805 = vmatprep.mubr.msk.f32.mxu0 %vm1633_vm3, %v4142_v37 }
 0x903   :  { %v4147_v2 = vpop.f32.mrb[206].mxu1 }
 0x904   :  { %v4149_v46 = vpop.f32.mrb[207].mxu1  ;;  %6806 = vmatmul.mubr.msk.f32.gmra.mrb[214].mxu0 %vm1633_vm3, %v4147_v2 }
 0x907   :  { %v4152_v9 = vpop.f32.mrb[208].mxu1 }
 0x908   :  { %v4154_v4 = vpop.f32.mrb[209].mxu1  ;;  %6808 = vmatprep.mubr.msk.f32.mxu0 %vm1633_vm3, %v4152_v9 }
 0x90b   :  { %v4157_v16 = vpop.f32.mrb[210].mxu1 }
 0x90c   :  { %v4159_v8 = vpop.f32.mrb[211].mxu1  ;;  %6809 = vmatmul.mubr.msk.f32.gmra.mrb[216].mxu0 %vm1633_vm3, %v4157_v16 }
 0x90f   :  { %v4162_v23 = vpop.f32.mrb[212].mxu1 }
 0x910   :  { %v4164_v47 = vpop.f32.mrb[213].mxu1  ;;  %6811 = vmatprep.mubr.msk.f32.mxu0 %vm1633_vm3, %v4162_v23 }
 0x913   :  { %v4167_v31 = vpop.f32.mrb[214].mxu1 }
 0x914   :  { %v4169_v35 = vpop.f32.mrb[215].mxu1  ;;  %6812 = vmatmul.mubr.msk.f32.gmra.mrb[218].mxu0 %vm1633_vm3, %v4167_v31 }
 0x917   :  { %v4172_v61 = vpop.f32.mrb[216].mxu1 }
 0x918   :  { %v4174_v48 = vpop.f32.mrb[217].mxu1  ;;  %6814 = vmatprep.mubr.msk.f32.mxu0 %vm1633_vm3, %v4172_v61 }
 0x91b   :  { %v4177_v3 = vpop.f32.mrb[218].mxu1 }
 0x91c   :  { %v4179_v49 = vpop.f32.mrb[219].mxu1  ;;  %6815 = vmatmul.mubr.msk.f32.gmra.mrb[220].mxu0 %vm1633_vm3, %v4177_v3 }
 0x91f   :  { %v4182_v5 = vpop.f32.mrb[220].mxu1 }
 0x920   :  { %v4184_v14 = vpop.f32.mrb[221].mxu1  ;;  %6817 = vmatprep.mubr.msk.f32.mxu0 %vm1633_vm3, %v4182_v5 }
 0x923   :  { %v4187_v22 = vpop.f32.mrb[222].mxu1 }
 0x924   :  { %v4189_v36 = vpop.f32.mrb[223].mxu1  ;;  %6818 = vmatmul.mubr.msk.f32.gmra.mrb[222].mxu0 %vm1633_vm3, %v4187_v22 }
 0x97f   :  { %v6774_v50 = vpop.f32.mrb[192].mxu0 }
 0x980   :  { %v4359_v51 = vadd.f32 %v9100_v33, %v6774_v50  ;;  %v4353_v28 = vpop.f32.mrb[193].mxu0 }
 0x981   :  { %v4354_v10 = vadd.f32 %v9100_v33, %v4353_v28 }
 0x982   :  { %v4513_v52 = vmul.f32 0.05, %v4359_v51 }
 0x983   :  { %v4512_v39 = vmul.f32 0.05, %v4354_v10 }
 0x984   :  { %v4545_v11 = vmax.f32 %v4359_v51, %v4513_v52 }
 0x985   :  { %v4544_v53 = vmax.f32 %v4354_v10, %v4512_v39 }
 0x987   :  { %v6777_v29 = vpop.f32.mrb[194].mxu0  ;;  %6828 = vmatprep.mubr.msk.f32.mxu0 %vm553_vm2, %v4544_v53 }
 0x988   :  { %v4369_v54 = vadd.f32 %v9100_v33, %v6777_v29  ;;  %v4363_v34 = vpop.f32.mrb[195].mxu0  ;;  %6829 = vmatmul.mubr.msk.f32.vlgmr.msra.gmra.mrb[224].mxu0 %vm553_vm2, %v4545_v11 }
 0x989   :  { %v4364_v55 = vadd.f32 %v9100_v33, %v4363_v34 }
 0x98a   :  { %v4515_v59 = vmul.f32 0.05, %v4369_v54 }
 0x98b   :  { %v4514_v40 = vmul.f32 0.05, %v4364_v55 }
 0x98c   :  { %v4547_v56 = vmax.f32 %v4369_v54, %v4515_v59 }
 0x98d   :  { %v4546_v21 = vmax.f32 %v4364_v55, %v4514_v40 }
 0x98f   :  { %v6780_v42 = vpop.f32.mrb[196].mxu0  ;;  %6831 = vmatprep.mubr.msk.f32.mxu0 %vm553_vm2, %v4546_v21 }
 0x990   :  { %v4379_v45 = vadd.f32 %v9100_v33, %v6780_v42  ;;  %v4373_v27 = vpop.f32.mrb[197].mxu0  ;;  %6832 = vmatmul.mubr.msk.f32.gmra.mrb[226].mxu0 %vm553_vm2, %v4547_v56 }
 0x991   :  { %v4374_v57 = vadd.f32 %v9100_v33, %v4373_v27 }
 0x992   :  { %v4517_v15 = vmul.f32 0.05, %v4379_v45 }
 0x993   :  { %v4516_v58 = vmul.f32 0.05, %v4374_v57 }
 0x994   :  { %v4549_v0 = vmax.f32 %v4379_v45, %v4517_v15 }
 0x995   :  { %v4548_v62 = vmax.f32 %v4374_v57, %v4516_v58 }
 0x997   :  { %v6783_v44 = vpop.f32.mrb[198].mxu0  ;;  %6834 = vmatprep.mubr.msk.f32.mxu0 %vm553_vm2, %v4548_v62 }
 0x998   :  { %v4389_v6 = vadd.f32 %v9100_v33, %v6783_v44  ;;  %v4383_v43 = vpop.f32.mrb[199].mxu0  ;;  %6835 = vmatmul.mubr.msk.f32.gmra.mrb[228].mxu0 %vm553_vm2, %v4549_v0 }
 0x999   :  { %v4384_v12 = vadd.f32 %v9100_v33, %v4383_v43 }
 0x99a   :  { %v4519_v32 = vmul.f32 0.05, %v4389_v6 }
 0x99b   :  { %v4518_v18 = vmul.f32 0.05, %v4384_v12 }
 0x99c   :  { %v4551_v24 = vmax.f32 %v4389_v6, %v4519_v32 }
 0x99d   :  { %v4550_v60 = vmax.f32 %v4384_v12, %v4518_v18 }
 0x99f   :  { %v6786_v41 = vpop.f32.mrb[200].mxu0  ;;  %6837 = vmatprep.mubr.msk.f32.mxu0 %vm553_vm2, %v4550_v60 }
 0x9a0   :  { %v4399_v30 = vadd.f32 %v9100_v33, %v6786_v41  ;;  %v4393_v25 = vpop.f32.mrb[201].mxu0  ;;  %6838 = vmatmul.mubr.msk.f32.gmra.mrb[230].mxu0 %vm553_vm2, %v4551_v24 }
 0x9a1   :  { %v4394_v37 = vadd.f32 %v9100_v33, %v4393_v25 }
 0x9a2   :  { %v4521_v63 = vmul.f32 0.05, %v4399_v30 }
 0x9a3   :  { %v4520_v2 = vmul.f32 0.05, %v4394_v37 }
 0x9a4   :  { %v4553_v9 = vmax.f32 %v4399_v30, %v4521_v63 }
 0x9a5   :  { %v4552_v46 = vmax.f32 %v4394_v37, %v4520_v2 }
 0x9a7   :  { %v6789_v4 = vpop.f32.mrb[202].mxu0  ;;  %6840 = vmatprep.mubr.msk.f32.mxu0 %vm553_vm2, %v4552_v46 }
 0x9a8   :  { %v4409_v16 = vadd.f32 %v9100_v33, %v6789_v4  ;;  %v4403_v8 = vpop.f32.mrb[203].mxu0  ;;  %6841 = vmatmul.mubr.msk.f32.gmra.mrb[232].mxu0 %vm553_vm2, %v4553_v9 }
 0x9a9   :  { %v4404_v23 = vadd.f32 %v9100_v33, %v4403_v8 }
 0x9aa   :  { %v4523_v47 = vmul.f32 0.05, %v4409_v16 }
 0x9ab   :  { %v4522_v31 = vmul.f32 0.05, %v4404_v23 }
 0x9ac   :  { %v4555_v61 = vmax.f32 %v4409_v16, %v4523_v47 }
 0x9ad   :  { %v4554_v35 = vmax.f32 %v4404_v23, %v4522_v31 }
 0x9af   :  { %v6792_v48 = vpop.f32.mrb[204].mxu0  ;;  %6843 = vmatprep.mubr.msk.f32.mxu0 %vm553_vm2, %v4554_v35 }
 0x9b0   :  { %v4419_v3 = vadd.f32 %v9100_v33, %v6792_v48  ;;  %v4413_v49 = vpop.f32.mrb[205].mxu0  ;;  %6844 = vmatmul.mubr.msk.f32.gmra.mrb[234].mxu0 %vm553_vm2, %v4555_v61 }
 0x9b1   :  { %v4414_v5 = vadd.f32 %v9100_v33, %v4413_v49 }
 0x9b2   :  { %v4525_v14 = vmul.f32 0.05, %v4419_v3 }
 0x9b3   :  { %v4524_v22 = vmul.f32 0.05, %v4414_v5 }
 0x9b4   :  { %v4557_v50 = vmax.f32 %v4419_v3, %v4525_v14 }
 0x9b5   :  { %v4556_v36 = vmax.f32 %v4414_v5, %v4524_v22 }
 0x9b7   :  { %v6795_v51 = vpop.f32.mrb[206].mxu0  ;;  %6846 = vmatprep.mubr.msk.f32.mxu0 %vm553_vm2, %v4556_v36 }
 0x9b8   :  { %v4429_v28 = vadd.f32 %v9100_v33, %v6795_v51  ;;  %v4423_v10 = vpop.f32.mrb[207].mxu0  ;;  %6847 = vmatmul.mubr.msk.f32.gmra.mrb[236].mxu0 %vm553_vm2, %v4557_v50 }
 0x9b9   :  { %v4424_v52 = vadd.f32 %v9100_v33, %v4423_v10 }
 0x9ba   :  { %v4527_v39 = vmul.f32 0.05, %v4429_v28 }
 0x9bb   :  { %v4526_v53 = vmul.f32 0.05, %v4424_v52 }
 0x9bc   :  { %v4559_v29 = vmax.f32 %v4429_v28, %v4527_v39 }
 0x9bd   :  { %v4558_v11 = vmax.f32 %v4424_v52, %v4526_v53 }
 0x9bf   :  { %v6798_v54 = vpop.f32.mrb[208].mxu0  ;;  %6849 = vmatprep.mubr.msk.f32.mxu0 %vm553_vm2, %v4558_v11 }
 0x9c0   :  { %v4439_v34 = vadd.f32 %v9100_v33, %v6798_v54  ;;  %v4433_v55 = vpop.f32.mrb[209].mxu0  ;;  %6850 = vmatmul.mubr.msk.f32.gmra.mrb[238].mxu0 %vm553_vm2, %v4559_v29 }
 0x9c1   :  { %v4434_v59 = vadd.f32 %v9100_v33, %v4433_v55 }
 0x9c2   :  { %v4529_v40 = vmul.f32 0.05, %v4439_v34 }
 0x9c3   :  { %v4528_v21 = vmul.f32 0.05, %v4434_v59 }
 0x9c4   :  { %v4561_v42 = vmax.f32 %v4439_v34, %v4529_v40 }
 0x9c5   :  { %v4560_v56 = vmax.f32 %v4434_v59, %v4528_v21 }
 0x9c7   :  { %v6801_v45 = vpop.f32.mrb[210].mxu0  ;;  %6852 = vmatprep.mubr.msk.f32.mxu0 %vm553_vm2, %v4560_v56 }
 0x9c8   :  { %v4449_v27 = vadd.f32 %v9100_v33, %v6801_v45  ;;  %v4443_v57 = vpop.f32.mrb[211].mxu0  ;;  %6853 = vmatmul.mubr.msk.f32.gmra.mrb[240].mxu0 %vm553_vm2, %v4561_v42 }
 0x9c9   :  { %v4444_v15 = vadd.f32 %v9100_v33, %v4443_v57  ;;  %v9169_v57 = vld [vmem:[%s9584_s12] ss:$0 sm:$0xff] }
 0x9ca   :  { %v4531_v58 = vmul.f32 0.05, %v4449_v27 }
 0x9cb   :  { %v4530_v62 = vmul.f32 0.05, %v4444_v15 }
 0x9cc   :  { %v4563_v44 = vmax.f32 %v4449_v27, %v4531_v58 }
 0x9cd   :  { %v4562_v0 = vmax.f32 %v4444_v15, %v4530_v62 }
 0x9cf   :  { %v6804_v6 = vpop.f32.mrb[212].mxu0  ;;  %6855 = vmatprep.mubr.msk.f32.mxu0 %vm553_vm2, %v4562_v0 }
 0x9d0   :  { %v4459_v43 = vadd.f32 %v9100_v33, %v6804_v6  ;;  %v4453_v12 = vpop.f32.mrb[213].mxu0  ;;  %6856 = vmatmul.mubr.msk.f32.gmra.mrb[242].mxu0 %vm553_vm2, %v4563_v44 }
 0x9d1   :  { %v4454_v32 = vadd.f32 %v9100_v33, %v4453_v12 }
 0x9d2   :  { %v4533_v18 = vmul.f32 0.05, %v4459_v43 }
 0x9d3   :  { %v4532_v60 = vmul.f32 0.05, %v4454_v32 }
 0x9d4   :  { %v4565_v41 = vmax.f32 %v4459_v43, %v4533_v18 }
 0x9d5   :  { %v4564_v24 = vmax.f32 %v4454_v32, %v4532_v60 }
 0x9d7   :  { %v6807_v30 = vpop.f32.mrb[214].mxu0  ;;  %6858 = vmatprep.mubr.msk.f32.mxu0 %vm553_vm2, %v4564_v24 }
 0x9d8   :  { %v4469_v25 = vadd.f32 %v9100_v33, %v6807_v30  ;;  %v4463_v37 = vpop.f32.mrb[215].mxu0  ;;  %6859 = vmatmul.mubr.msk.f32.gmra.mrb[244].mxu0 %vm553_vm2, %v4565_v41 }
 0x9d9   :  { %v4464_v63 = vadd.f32 %v9100_v33, %v4463_v37 }
 0x9da   :  { %v4535_v2 = vmul.f32 0.05, %v4469_v25 }
 0x9db   :  { %v4534_v46 = vmul.f32 0.05, %v4464_v63 }
 0x9dc   :  { %v4567_v4 = vmax.f32 %v4469_v25, %v4535_v2 }
 0x9dd   :  { %v4566_v9 = vmax.f32 %v4464_v63, %v4534_v46 }
 0x9df   :  { %v6810_v16 = vpop.f32.mrb[216].mxu0  ;;  %6861 = vmatprep.mubr.msk.f32.mxu0 %vm553_vm2, %v4566_v9 }
 0x9e0   :  { %v4479_v8 = vadd.f32 %v9100_v33, %v6810_v16  ;;  %v4473_v23 = vpop.f32.mrb[217].mxu0  ;;  %6862 = vmatmul.mubr.msk.f32.gmra.mrb[246].mxu0 %vm553_vm2, %v4567_v4 }
 0x9e1   :  { %v4474_v47 = vadd.f32 %v9100_v33, %v4473_v23 }
 0x9e2   :  { %v4537_v31 = vmul.f32 0.05, %v4479_v8 }
 0x9e3   :  { %v4536_v35 = vmul.f32 0.05, %v4474_v47 }
 0x9e4   :  { %v4569_v48 = vmax.f32 %v4479_v8, %v4537_v31 }
 0x9e5   :  { %v4568_v61 = vmax.f32 %v4474_v47, %v4536_v35 }
 0x9e7   :  { %v6813_v3 = vpop.f32.mrb[218].mxu0  ;;  %6864 = vmatprep.mubr.msk.f32.mxu0 %vm553_vm2, %v4568_v61 }
 0x9e8   :  { %v4489_v49 = vadd.f32 %v9100_v33, %v6813_v3  ;;  %v4483_v5 = vpop.f32.mrb[219].mxu0  ;;  %6865 = vmatmul.mubr.msk.f32.gmra.mrb[248].mxu0 %vm553_vm2, %v4569_v48 }
 0x9e9   :  { %v4484_v14 = vadd.f32 %v9100_v33, %v4483_v5 }
 0x9ea   :  { %v4539_v22 = vmul.f32 0.05, %v4489_v49 }
 0x9eb   :  { %v4538_v36 = vmul.f32 0.05, %v4484_v14 }
 0x9ec   :  { %v4571_v51 = vmax.f32 %v4489_v49, %v4539_v22 }
 0x9ed   :  { %v4570_v50 = vmax.f32 %v4484_v14, %v4538_v36 }
 0x9ef   :  { %v6816_v28 = vpop.f32.mrb[220].mxu0  ;;  %6867 = vmatprep.mubr.msk.f32.mxu0 %vm553_vm2, %v4570_v50 }
 0x9f0   :  { %v4499_v10 = vadd.f32 %v9100_v33, %v6816_v28  ;;  %v4493_v52 = vpop.f32.mrb[221].mxu0  ;;  %6868 = vmatmul.mubr.msk.f32.gmra.mrb[250].mxu0 %vm553_vm2, %v4571_v51 }
 0x9f1   :  { %v4494_v39 = vadd.f32 %v9100_v33, %v4493_v52 }
 0x9f2   :  { %v4541_v53 = vmul.f32 0.05, %v4499_v10 }
 0x9f3   :  { %v4540_v11 = vmul.f32 0.05, %v4494_v39 }
 0x9f4   :  { %v4573_v54 = vmax.f32 %v4499_v10, %v4541_v53 }
 0x9f5   :  { %v4572_v29 = vmax.f32 %v4494_v39, %v4540_v11 }
 0x9f7   :  { %v6819_v34 = vpop.f32.mrb[222].mxu0  ;;  %6870 = vmatprep.mubr.msk.f32.mxu0 %vm553_vm2, %v4572_v29 }
 0x9f8   :  { %v4509_v55 = vadd.f32 %v9100_v33, %v6819_v34  ;;  %v4503_v59 = vpop.f32.mrb[223].mxu0  ;;  %6871 = vmatmul.mubr.msk.f32.gmra.mrb[252].mxu0 %vm553_vm2, %v4573_v54 }
 0x9f9   :  { %v4504_v40 = vadd.f32 %v9100_v33, %v4503_v59 }
 0x9fa   :  { %v4543_v21 = vmul.f32 0.05, %v4509_v55 }
 0x9fb   :  { %v4542_v56 = vmul.f32 0.05, %v4504_v40 }
 0x9fc   :  { %v4575_v45 = vmax.f32 %v4509_v55, %v4543_v21 }
 0x9fd   :  { %v4574_v42 = vmax.f32 %v4504_v40, %v4542_v56 }
 0x9ff   :  { %6873 = vmatprep.mubr.msk.f32.mxu0 %vm553_vm2, %v4574_v42 }
 0xa00   :  { %6874 = vmatmul.mubr.msk.f32.gmra.mrb[254].mxu0 %vm553_vm2, %v4575_v45 }
 0xa5b   :  { %v6830_v27 = vpop.f32.mrb[224].mxu0 }
 0xa5c   :  { %v4744_v15 = vadd.f32 %v9169_v57, %v6830_v27  ;;  %v4738_v58 = vpop.f32.mrb[225].mxu0 }
 0xa5d   :  { %v4739_v62 = vadd.f32 %v9169_v57, %v4738_v58 }
 0xa5e   :  { %v4898_v33 = vmul.f32 0.05, %v4744_v15 }
 0xa5f   :  { %v4897_v0 = vmul.f32 0.05, %v4739_v62 }
 0xa60   :  { %v4930_v6 = vmax.f32 %v4744_v15, %v4898_v33 }
 0xa61   :  { %v4929_v44 = vmax.f32 %v4739_v62, %v4897_v0 }
 0xa63   :  { %v6833_v43 = vpop.f32.mrb[226].mxu0  ;;  %6884 = vmatprep.mubr.msk.f32.mxu1 %vm553_vm2, %v4929_v44 }
 0xa64   :  { %v4754_v12 = vadd.f32 %v9169_v57, %v6833_v43  ;;  %v4748_v32 = vpop.f32.mrb[227].mxu0  ;;  %6885 = vmatmul.mubr.msk.f32.vlgmr.msra.gmra.mrb[224].mxu1 %vm553_vm2, %v4930_v6 }
 0xa65   :  { %v4749_v18 = vadd.f32 %v9169_v57, %v4748_v32 }
 0xa66   :  { %v4900_v60 = vmul.f32 0.05, %v4754_v12 }
 0xa67   :  { %v4899_v24 = vmul.f32 0.05, %v4749_v18 }
 0xa68   :  { %v4932_v30 = vmax.f32 %v4754_v12, %v4900_v60 }
 0xa69   :  { %v4931_v41 = vmax.f32 %v4749_v18, %v4899_v24 }
 0xa6b   :  { %v6836_v25 = vpop.f32.mrb[228].mxu0  ;;  %6887 = vmatprep.mubr.msk.f32.mxu1 %vm553_vm2, %v4931_v41 }
 0xa6c   :  { %v4764_v37 = vadd.f32 %v9169_v57, %v6836_v25  ;;  %v4758_v63 = vpop.f32.mrb[229].mxu0  ;;  %6888 = vmatmul.mubr.msk.f32.gmra.mrb[226].mxu1 %vm553_vm2, %v4932_v30 }
 0xa6d   :  { %v4759_v2 = vadd.f32 %v9169_v57, %v4758_v63 }
 0xa6e   :  { %v4902_v46 = vmul.f32 0.05, %v4764_v37 }
 0xa6f   :  { %v4901_v9 = vmul.f32 0.05, %v4759_v2 }
 0xa70   :  { %v4934_v16 = vmax.f32 %v4764_v37, %v4902_v46 }
 0xa71   :  { %v4933_v4 = vmax.f32 %v4759_v2, %v4901_v9 }
 0xa73   :  { %v6839_v8 = vpop.f32.mrb[230].mxu0  ;;  %6890 = vmatprep.mubr.msk.f32.mxu1 %vm553_vm2, %v4933_v4 }
 0xa74   :  { %v4774_v23 = vadd.f32 %v9169_v57, %v6839_v8  ;;  %v4768_v47 = vpop.f32.mrb[231].mxu0  ;;  %6891 = vmatmul.mubr.msk.f32.gmra.mrb[228].mxu1 %vm553_vm2, %v4934_v16 }
 0xa75   :  { %v4769_v31 = vadd.f32 %v9169_v57, %v4768_v47 }
 0xa76   :  { %v4904_v35 = vmul.f32 0.05, %v4774_v23 }
 0xa77   :  { %v4903_v61 = vmul.f32 0.05, %v4769_v31 }
 0xa78   :  { %v4936_v3 = vmax.f32 %v4774_v23, %v4904_v35 }
 0xa79   :  { %v4935_v48 = vmax.f32 %v4769_v31, %v4903_v61 }
 0xa7b   :  { %v6842_v49 = vpop.f32.mrb[232].mxu0  ;;  %6893 = vmatprep.mubr.msk.f32.mxu1 %vm553_vm2, %v4935_v48 }
 0xa7c   :  { %v4784_v5 = vadd.f32 %v9169_v57, %v6842_v49  ;;  %v4778_v14 = vpop.f32.mrb[233].mxu0  ;;  %6894 = vmatmul.mubr.msk.f32.gmra.mrb[230].mxu1 %vm553_vm2, %v4936_v3 }
 0xa7d   :  { %v4779_v22 = vadd.f32 %v9169_v57, %v4778_v14 }
 0xa7e   :  { %v4906_v36 = vmul.f32 0.05, %v4784_v5 }
 0xa7f   :  { %v4905_v50 = vmul.f32 0.05, %v4779_v22 }
 0xa80   :  { %v4938_v28 = vmax.f32 %v4784_v5, %v4906_v36 }
 0xa81   :  { %v4937_v51 = vmax.f32 %v4779_v22, %v4905_v50 }
 0xa83   :  { %v6845_v10 = vpop.f32.mrb[234].mxu0  ;;  %6896 = vmatprep.mubr.msk.f32.mxu1 %vm553_vm2, %v4937_v51 }
 0xa84   :  { %v4794_v52 = vadd.f32 %v9169_v57, %v6845_v10  ;;  %v4788_v39 = vpop.f32.mrb[235].mxu0  ;;  %6897 = vmatmul.mubr.msk.f32.gmra.mrb[232].mxu1 %vm553_vm2, %v4938_v28 }
 0xa85   :  { %v4789_v53 = vadd.f32 %v9169_v57, %v4788_v39 }
 0xa86   :  { %v4908_v11 = vmul.f32 0.05, %v4794_v52 }
 0xa87   :  { %v4907_v29 = vmul.f32 0.05, %v4789_v53 }
 0xa88   :  { %v4940_v34 = vmax.f32 %v4794_v52, %v4908_v11 }
 0xa89   :  { %v4939_v54 = vmax.f32 %v4789_v53, %v4907_v29 }
 0xa8b   :  { %v6848_v55 = vpop.f32.mrb[236].mxu0  ;;  %6899 = vmatprep.mubr.msk.f32.mxu1 %vm553_vm2, %v4939_v54 }
 0xa8c   :  { %v4804_v59 = vadd.f32 %v9169_v57, %v6848_v55  ;;  %v4798_v40 = vpop.f32.mrb[237].mxu0  ;;  %6900 = vmatmul.mubr.msk.f32.gmra.mrb[234].mxu1 %vm553_vm2, %v4940_v34 }
 0xa8d   :  { %v4799_v21 = vadd.f32 %v9169_v57, %v4798_v40 }
 0xa8e   :  { %v4910_v56 = vmul.f32 0.05, %v4804_v59 }
 0xa8f   :  { %v4909_v42 = vmul.f32 0.05, %v4799_v21 }
 0xa90   :  { %v4942_v27 = vmax.f32 %v4804_v59, %v4910_v56 }
 0xa91   :  { %v4941_v45 = vmax.f32 %v4799_v21, %v4909_v42 }
 0xa93   :  { %v6851_v15 = vpop.f32.mrb[238].mxu0  ;;  %6902 = vmatprep.mubr.msk.f32.mxu1 %vm553_vm2, %v4941_v45 }
 0xa94   :  { %v4814_v58 = vadd.f32 %v9169_v57, %v6851_v15  ;;  %v4808_v62 = vpop.f32.mrb[239].mxu0  ;;  %6903 = vmatmul.mubr.msk.f32.gmra.mrb[236].mxu1 %vm553_vm2, %v4942_v27 }
 0xa95   :  { %v4809_v33 = vadd.f32 %v9169_v57, %v4808_v62 }
 0xa96   :  { %v4912_v0 = vmul.f32 0.05, %v4814_v58 }
 0xa97   :  { %v4911_v44 = vmul.f32 0.05, %v4809_v33 }
 0xa98   :  { %v4944_v43 = vmax.f32 %v4814_v58, %v4912_v0 }
 0xa99   :  { %v4943_v6 = vmax.f32 %v4809_v33, %v4911_v44 }
 0xa9b   :  { %v6854_v12 = vpop.f32.mrb[240].mxu0  ;;  %6905 = vmatprep.mubr.msk.f32.mxu1 %vm553_vm2, %v4943_v6 }
 0xa9c   :  { %v4824_v32 = vadd.f32 %v9169_v57, %v6854_v12  ;;  %v4818_v18 = vpop.f32.mrb[241].mxu0  ;;  %6906 = vmatmul.mubr.msk.f32.gmra.mrb[238].mxu1 %vm553_vm2, %v4944_v43 }
 0xa9d   :  { %v4819_v60 = vadd.f32 %v9169_v57, %v4818_v18 }
 0xa9e   :  { %v4914_v24 = vmul.f32 0.05, %v4824_v32 }
 0xa9f   :  { %v4913_v41 = vmul.f32 0.05, %v4819_v60 }
 0xaa0   :  { %v4946_v25 = vmax.f32 %v4824_v32, %v4914_v24 }
 0xaa1   :  { %v4945_v30 = vmax.f32 %v4819_v60, %v4913_v41 }
 0xaa3   :  { %v6857_v37 = vpop.f32.mrb[242].mxu0  ;;  %6908 = vmatprep.mubr.msk.f32.mxu1 %vm553_vm2, %v4945_v30 }
 0xaa4   :  { %v4834_v63 = vadd.f32 %v9169_v57, %v6857_v37  ;;  %v4828_v2 = vpop.f32.mrb[243].mxu0  ;;  %6909 = vmatmul.mubr.msk.f32.gmra.mrb[240].mxu1 %vm553_vm2, %v4946_v25 }
 0xaa5   :  { %v4829_v46 = vadd.f32 %v9169_v57, %v4828_v2 }
 0xaa6   :  { %v4916_v9 = vmul.f32 0.05, %v4834_v63 }
 0xaa7   :  { %v4915_v4 = vmul.f32 0.05, %v4829_v46 }
 0xaa8   :  { %v4948_v8 = vmax.f32 %v4834_v63, %v4916_v9  ;;  %v9238_v63 = vld [vmem:[%s9585_s13] ss:$0 sm:$0xff]  ;;  %v7334_v9 = vld [vmem:[%s9572_s0 + $0x8] sm:$0xff] }
 0xaa9   :  { %v4947_v16 = vmax.f32 %v4829_v46, %v4915_v4  ;;  %v2594_v2 = vadd.f32 %v8745_v13, %v9238_v63  ;;  %v2589_v46 = vadd.f32 %v9238_v63, %v8747_v19  ;;  %v7336_v13 = vld [vmem:[%s9572_s0 + $0x108] sm:$0xff] }
 0xaab   :  { %v6860_v23 = vpop.f32.mrb[244].mxu0  ;;  %6911 = vmatprep.mubr.msk.f32.mxu1 %vm553_vm2, %v4947_v16  ;;  %v2748_v4 = vsub.f32 %v2594_v2, %v7334_v9  ;;  %v2624_v2 = vadd.f32 %v8757_v38, %v9238_v63  ;;  %v7347_v38 = vld [vmem:[%s9572_s0 + $0x30] sm:$0xff] }
 0xaac   :  { %v4844_v47 = vadd.f32 %v9169_v57, %v6860_v23  ;;  %v4838_v31 = vpop.f32.mrb[245].mxu0  ;;  %6912 = vmatmul.mubr.msk.f32.gmra.mrb[242].mxu1 %vm553_vm2, %v4948_v8  ;;  %v7335_v23 = vld [vmem:[%s9572_s0] sm:$0xff] }
 0xaad   :  { %v4839_v35 = vadd.f32 %v9169_v57, %v4838_v31 }
 0xaae   :  { %v4918_v61 = vmul.f32 0.05, %v4844_v47 }
 0xaaf   :  { %v4917_v48 = vmul.f32 0.05, %v4839_v35 }
 0xab0   :  { %v4950_v49 = vmax.f32 %v4844_v47, %v4918_v61  ;;  %v2747_v47 = vsub.f32 %v2589_v46, %v7335_v23 }
 0xab1   :  { %v4949_v3 = vmax.f32 %v4839_v35, %v4917_v48  ;;  %v7337_v35 = vld [vmem:[%s9572_s0 + $0x100] sm:$0xff]  ;;  %v2780_v48 = vmul.f32 %v2748_v4, %v2748_v4  ;;  %v2619_v4 = vadd.f32 %v9238_v63, %v8759_v7 }
 0xab3   :  { %v6863_v5 = vpop.f32.mrb[246].mxu0  ;;  %6914 = vmatprep.mubr.msk.f32.mxu1 %vm553_vm2, %v4949_v3  ;;  %v2604_v3 = vadd.f32 %v8749_v20, %v9238_v63  ;;  %v7339_v20 = vld [vmem:[%s9572_s0 + $0x10] sm:$0xff] }
 0xab4   :  { %v4854_v14 = vadd.f32 %v9169_v57, %v6863_v5  ;;  %v4848_v22 = vpop.f32.mrb[247].mxu0  ;;  %6915 = vmatmul.mubr.msk.f32.gmra.mrb[244].mxu1 %vm553_vm2, %v4950_v49  ;;  %v2779_v5 = vmul.f32 %v2747_v47, %v2747_v47 }
 0xab5   :  { %v4849_v36 = vadd.f32 %v9169_v57, %v4848_v22 }
 0xab6   :  { %v4920_v50 = vmul.f32 0.05, %v4854_v14 }
 0xab7   :  { %v4919_v51 = vmul.f32 0.05, %v4849_v36 }
 0xab8   :  { %v4952_v10 = vmax.f32 %v4854_v14, %v4920_v50  ;;  %v2599_v14 = vadd.f32 %v9238_v63, %v8751_v1 }
 0xab9   :  { %v4951_v28 = vmax.f32 %v4849_v36, %v4919_v51 }
 0xabb   :  { %v6866_v52 = vpop.f32.mrb[248].mxu0  ;;  %6917 = vmatprep.mubr.msk.f32.mxu1 %vm553_vm2, %v4951_v28  ;;  %v7338_v28 = vld [vmem:[%s9572_s0 + $0x18] sm:$0xff] }
 0xabc   :  { %v4864_v39 = vadd.f32 %v9169_v57, %v6866_v52  ;;  %v4858_v53 = vpop.f32.mrb[249].mxu0  ;;  %6918 = vmatmul.mubr.msk.f32.gmra.mrb[246].mxu1 %vm553_vm2, %v4952_v10  ;;  %v2750_v10 = vsub.f32 %v2604_v3, %v7338_v28 }
 0xabd   :  { %v4859_v11 = vadd.f32 %v9169_v57, %v4858_v53 }
 0xabe   :  { %v4922_v29 = vmul.f32 0.05, %v4864_v39 }
 0xabf   :  { %v4921_v54 = vmul.f32 0.05, %v4859_v11 }
 0xac0   :  { %v4954_v55 = vmax.f32 %v4864_v39, %v4922_v29 }
 0xac1   :  { %v4953_v34 = vmax.f32 %v4859_v11, %v4921_v54  ;;  %v2749_v11 = vsub.f32 %v2599_v14, %v7339_v20 }
 0xac3   :  { %v6869_v59 = vpop.f32.mrb[250].mxu0  ;;  %6920 = vmatprep.mubr.msk.f32.mxu1 %vm553_vm2, %v4953_v34  ;;  %v7340_v34 = vld [vmem:[%s9572_s0 + $0x118] sm:$0xff] }
 0xac4   :  { %v4874_v40 = vadd.f32 %v9169_v57, %v6869_v59  ;;  %v4868_v21 = vpop.f32.mrb[251].mxu0  ;;  %6921 = vmatmul.mubr.msk.f32.gmra.mrb[248].mxu1 %vm553_vm2, %v4954_v55  ;;  %v7341_v59 = vld [vmem:[%s9572_s0 + $0x110] sm:$0xff] }
 0xac5   :  { %v4869_v56 = vadd.f32 %v9169_v57, %v4868_v21  ;;  %v2782_v21 = vmul.f32 %v2750_v10, %v2750_v10 }
 0xac6   :  { %v4924_v42 = vmul.f32 0.05, %v4874_v40 }
 0xac7   :  { %v4923_v45 = vmul.f32 0.05, %v4869_v56 }
 0xac8   :  { %v4956_v15 = vmax.f32 %v4874_v40, %v4924_v42 }
 0xac9   :  { %v4955_v27 = vmax.f32 %v4869_v56, %v4923_v45  ;;  %v2614_v56 = vadd.f32 %v8753_v26, %v9238_v63  ;;  %v2781_v45 = vmul.f32 %v2749_v11, %v2749_v11  ;;  %v7343_v26 = vld [vmem:[%s9572_s0 + $0x20] sm:$0xff] }
 0xacb   :  { %v6872_v58 = vpop.f32.mrb[252].mxu0  ;;  %6923 = vmatprep.mubr.msk.f32.mxu1 %vm553_vm2, %v4955_v27  ;;  %v2609_v27 = vadd.f32 %v9238_v63, %v8755_v17 }
 0xacc   :  { %v4884_v62 = vadd.f32 %v9169_v57, %v6872_v58  ;;  %v4878_v33 = vpop.f32.mrb[253].mxu0  ;;  %6924 = vmatmul.mubr.msk.f32.gmra.mrb[250].mxu1 %vm553_vm2, %v4956_v15 }
 0xacd   :  { %v4879_v0 = vadd.f32 %v9169_v57, %v4878_v33 }
 0xace   :  { %v4926_v44 = vmul.f32 0.05, %v4884_v62 }
 0xacf   :  { %v4925_v6 = vmul.f32 0.05, %v4879_v0 }
 0xad0   :  { %v4958_v12 = vmax.f32 %v4884_v62, %v4926_v44 }
 0xad1   :  { %v4957_v43 = vmax.f32 %v4879_v0, %v4925_v6  ;;  %v7342_v0 = vld [vmem:[%s9572_s0 + $0x28] sm:$0xff] }
 0xad2   :  { %v2752_v44 = vsub.f32 %v2614_v56, %v7342_v0 }
 0xad3   :  { %v6875_v32 = vpop.f32.mrb[254].mxu0  ;;  %6926 = vmatprep.mubr.msk.f32.mxu1 %vm553_vm2, %v4957_v43 }
 0xad4   :  { %v4894_v18 = vadd.f32 %v9169_v57, %v6875_v32  ;;  %v4888_v60 = vpop.f32.mrb[255].mxu0  ;;  %6927 = vmatmul.mubr.msk.f32.gmra.mrb[252].mxu1 %vm553_vm2, %v4958_v12  ;;  %v2751_v12 = vsub.f32 %v2609_v27, %v7343_v26 }
 0xad5   :  { %v4889_v24 = vadd.f32 %v9169_v57, %v4888_v60  ;;  %v7344_v60 = vld [vmem:[%s9572_s0 + $0x128] sm:$0xff] }
 0xad6   :  { %v4928_v41 = vmul.f32 0.05, %v4894_v18  ;;  %v2783_v9 = vmul.f32 %v2751_v12, %v2751_v12 }
 0xad7   :  { %v4927_v30 = vmul.f32 0.05, %v4889_v24 }
 0xad8   :  { %v4960_v37 = vmax.f32 %v4894_v18, %v4928_v41 }
 0xad9   :  { %v4959_v25 = vmax.f32 %v4889_v24, %v4927_v30  ;;  %v7345_v30 = vld [vmem:[%s9572_s0 + $0x120] sm:$0xff] }
 0xadb   :  { %6929 = vmatprep.mubr.msk.f32.mxu1 %vm553_vm2, %v4959_v25 }
 0xadc   :  { %6930 = vmatmul.mubr.msk.f32.gmra.mrb[254].mxu1 %vm553_vm2, %v4960_v37  ;;  %v2784_v37 = vmul.f32 %v2752_v44, %v2752_v44 }
 0xb37   :  { %v6886_v57 = vpop.f32.mrb[224].mxu1 }
 0xb38   :  { %v5129_v16 = vadd.f32 %v6886_v57, %v9238_v63  ;;  %v5123_v8 = vpop.f32.mrb[225].mxu1 }
 0xb39   :  { %v5124_v31 = vadd.f32 %v9238_v63, %v5123_v8 }
 0xb3a   :  { %v5283_v19 = vsub.f32 %v5129_v16, %v7336_v13 }
 0xb3b   :  { %v5282_v61 = vsub.f32 %v5124_v31, %v7337_v35  ;;  %v7346_v31 = vld [vmem:[%s9572_s0 + $0x38] sm:$0xff] }
 0xb3c   :  { %v5315_v49 = vmul.f32 %v5283_v19, %v5283_v19  ;;  %v2754_v13 = vsub.f32 %v2624_v2, %v7346_v31 }
 0xb3d   :  { %v5314_v22 = vmul.f32 %v5282_v61, %v5282_v61  ;;  %v2753_v61 = vsub.f32 %v2619_v4, %v7347_v38  ;;  %v9744_v38 = vld [vmem:[#allocation9_spill] sm:$0xff] }
 0xb3e   :  { %v5347_v36 = vadd.f32 %v5315_v49, %v2780_v48  ;;  %v7348_v49 = vld [vmem:[%s9572_s0 + $0x138] sm:$0xff] }
 0xb3f   :  { %v5346_v50 = vadd.f32 %v5314_v22, %v2779_v5  ;;  %v6889_v51 = vpop.f32.mrb[226].mxu1  ;;  %v7349_v22 = vld [vmem:[%s9572_s0 + $0x130] sm:$0xff] }
 0xb40   :  { %v5379_v52 = vsel %vm152_vm1, %v5347_v36, 0.0  ;;  %v5139_v39 = vadd.f32 %v6889_v51, %v9238_v63  ;;  %v5133_v53 = vpop.f32.mrb[227].mxu1  ;;  %v9740_v51 = vld [vmem:[#allocation5_spill] sm:$0xff] }
 0xb41   :  { %v5378_v1 = vsel %vm152_vm1, %v5346_v50, 0.0  ;;  %v5134_v29 = vadd.f32 %v9238_v63, %v5133_v53  ;;  %v2786_v50 = vmul.f32 %v2754_v13, %v2754_v13  ;;  %v2634_v28 = vadd.f32 %v9740_v51, %v9238_v63  ;;  %v9741_v53 = vld [vmem:[#allocation6_spill] sm:$0xff]  ;;  %v7358_v51 = vld [vmem:[%s9572_s0 + $0x68] sm:$0xff] }
 0xb42   :  { %v5380_v54 = vadd.f32 %v5379_v52, %v5378_v1  ;;  %v5285_v55 = vsub.f32 %v5139_v39, %v7340_v34  ;;  %v2785_v39 = vmul.f32 %v2753_v61, %v2753_v61  ;;  %v2629_v20 = vadd.f32 %v9238_v63, %v9741_v53  ;;  %v7350_v34 = vld [vmem:[%s9572_s0 + $0x48] sm:$0xff]  ;;  %v7357_v13 = vld [vmem:[%s9572_s0 + $0x150] sm:$0xff] }
 0xb43   :  { %v5284_v40 = vsub.f32 %v5134_v29, %v7341_v59  ;;  %v2654_v61 = vadd.f32 %v9744_v38, %v9238_v63  ;;  %v7366_v38 = vld [vmem:[%s9572_s0 + $0x88] sm:$0xff] }
 0xb44   :  { %v5317_v42 = vmul.f32 %v5285_v55, %v5285_v55  ;;  %v2756_v55 = vsub.f32 %v2634_v28, %v7350_v34 }
 0xb45   :  { %v5316_v15 = vmul.f32 %v5284_v40, %v5284_v40  ;;  %v2760_v28 = vsub.f32 %v2654_v61, %v7358_v51 }
 0xb46   :  { %v5349_v58 = vadd.f32 %v5317_v42, %v2782_v21  ;;  %v7351_v21 = vld [vmem:[%s9572_s0 + $0x40] sm:$0xff]  ;;  %v2788_v44 = vmul.f32 %v2756_v55, %v2756_v55 }
 0xb47   :  { %v5348_v62 = vadd.f32 %v5316_v15, %v2781_v45  ;;  %v6892_v33 = vpop.f32.mrb[228].mxu1  ;;  %v2755_v56 = vsub.f32 %v2629_v20, %v7351_v21  ;;  %v7352_v15 = vld [vmem:[%s9572_s0 + $0x148] sm:$0xff]  ;;  %v7361_v55 = vld [vmem:[%s9572_s0 + $0x160] sm:$0xff]  ;;  %v9746_v21 = vld [vmem:[#allocation11_spill] sm:$0xff] }
 0xb48   :  { %v5149_v6 = vadd.f32 %v6892_v33, %v9238_v63  ;;  %v5143_v43 = vpop.f32.mrb[229].mxu1  ;;  %v5383_v41 = vsel %vm152_vm1, %v5349_v58, 0.0  ;;  %v7353_v33 = vld [vmem:[%s9572_s0 + $0x140] sm:$0xff] }
 0xb49   :  { %v5381_v32 = vsel %vm152_vm1, %v5348_v62, 0.0  ;;  %v5144_v17 = vadd.f32 %v9238_v63, %v5143_v43 }
 0xb4a   :  { %v5382_v18 = vadd.f32 %v5381_v32, %v5380_v54  ;;  %v5287_v24 = vsub.f32 %v5149_v6, %v7344_v60  ;;  %v9742_v6 = vld [vmem:[#allocation7_spill] sm:$0xff]  ;;  %v2787_v32 = vmul.f32 %v2755_v56, %v2755_v56  ;;  %v2664_v56 = vadd.f32 %v9746_v21, %v9238_v63 }
 0xb4b   :  { %v5286_v25 = vsub.f32 %v5144_v17, %v7345_v30  ;;  %v2644_v43 = vadd.f32 %v9742_v6, %v9238_v63  ;;  %v9743_v17 = vld [vmem:[#allocation8_spill] sm:$0xff]  ;;  %v7362_v6 = vld [vmem:[%s9572_s0 + $0x78] sm:$0xff] }
 0xb4c   :  { %v5319_v46 = vmul.f32 %v5287_v24, %v5287_v24  ;;  %v5384_v57 = vadd.f32 %v5383_v41, %v5382_v18  ;;  %v2639_v18 = vadd.f32 %v9238_v63, %v9743_v17  ;;  %v7370_v21 = vld [vmem:[%s9572_s0 + $0x98] sm:$0xff] }
 0xb4d   :  { %v5318_v16 = vmul.f32 %v5286_v25, %v5286_v25  ;;  %v7354_v25 = vld [vmem:[%s9572_s0 + $0x58] sm:$0xff] }
 0xb4e   :  { %v5351_v8 = vadd.f32 %v5319_v46, %v2784_v37  ;;  %v2758_v37 = vsub.f32 %v2644_v43, %v7354_v25  ;;  %v2762_v43 = vsub.f32 %v2664_v56, %v7362_v6 }
 0xb4f   :  { %v5350_v23 = vadd.f32 %v5318_v16, %v2783_v9  ;;  %v6895_v47 = vpop.f32.mrb[230].mxu1 }
 0xb50   :  { %v5159_v19 = vadd.f32 %v6895_v47, %v9238_v63  ;;  %v5153_v35 = vpop.f32.mrb[231].mxu1  ;;  %v5387_v14 = vsel %vm152_vm1, %v5351_v8, 0.0 }
 0xb51   :  { %v5385_v48 = vsel %vm152_vm1, %v5350_v23, 0.0  ;;  %v5154_v7 = vadd.f32 %v9238_v63, %v5153_v35  ;;  %v7356_v23 = vld [vmem:[%s9572_s0 + $0x158] sm:$0xff]  ;;  %v2790_v35 = vmul.f32 %v2758_v37, %v2758_v37  ;;  %v7365_v37 = vld [vmem:[%s9572_s0 + $0x170] sm:$0xff] }
 0xb52   :  { %v5386_v3 = vadd.f32 %v5385_v48, %v5384_v57  ;;  %v5289_v5 = vsub.f32 %v5159_v19, %v7348_v49  ;;  %v7355_v57 = vld [vmem:[%s9572_s0 + $0x50] sm:$0xff] }
 0xb53   :  { %v5288_v36 = vsub.f32 %v5154_v7, %v7349_v22  ;;  %v2757_v9 = vsub.f32 %v2639_v18, %v7355_v57  ;;  %v9745_v49 = vld [vmem:[#allocation10_spill] sm:$0xff]  ;;  %v9748_v57 = vld [vmem:[#allocation13_spill] sm:$0xff] }
 0xb54   :  { %v5321_v10 = vmul.f32 %v5289_v5, %v5289_v5  ;;  %v5388_v52 = vadd.f32 %v5387_v14, %v5386_v3  ;;  %v2649_v5 = vadd.f32 %v9238_v63, %v9745_v49 }
 0xb55   :  { %v5320_v11 = vmul.f32 %v5288_v36, %v5288_v36  ;;  %v2789_v3 = vmul.f32 %v2757_v9, %v2757_v9  ;;  %v2674_v9 = vadd.f32 %v9748_v57, %v9238_v63  ;;  %v7374_v57 = vld [vmem:[%s9572_s0 + $0xa8] sm:$0xff] }
 0xb56   :  { %v5353_v1 = vadd.f32 %v5321_v10, %v2786_v50 }
 0xb57   :  { %v5352_v29 = vadd.f32 %v5320_v11, %v2785_v39  ;;  %v6898_v54 = vpop.f32.mrb[232].mxu1  ;;  %v7359_v39 = vld [vmem:[%s9572_s0 + $0x60] sm:$0xff]  ;;  %v2764_v61 = vsub.f32 %v2674_v9, %v7366_v38 }
 0xb58   :  { %v5169_v59 = vadd.f32 %v6898_v54, %v9238_v63  ;;  %v5163_v40 = vpop.f32.mrb[233].mxu1  ;;  %v5391_v62 = vsel %vm152_vm1, %v5353_v1, 0.0  ;;  %v2759_v53 = vsub.f32 %v2649_v5, %v7359_v39  ;;  %v9750_v39 = vld [vmem:[#allocation15_spill] sm:$0xff] }
 0xb59   :  { %v5389_v42 = vsel %vm152_vm1, %v5352_v29, 0.0  ;;  %v5164_v45 = vadd.f32 %v9238_v63, %v5163_v40  ;;  %v7360_v29 = vld [vmem:[%s9572_s0 + $0x168] sm:$0xff]  ;;  %v2792_v40 = vmul.f32 %v2760_v28, %v2760_v28  ;;  %v7369_v28 = vld [vmem:[%s9572_s0 + $0x180] sm:$0xff] }
 0xb5a   :  { %v5390_v27 = vadd.f32 %v5389_v42, %v5388_v52  ;;  %v5291_v58 = vsub.f32 %v5169_v59, %v7352_v15  ;;  %v9747_v15 = vld [vmem:[#allocation12_spill] sm:$0xff] }
 0xb5b   :  { %v5290_v0 = vsub.f32 %v5164_v45, %v7353_v33 }
 0xb5c   :  { %v5323_v26 = vmul.f32 %v5291_v58, %v5291_v58  ;;  %v5392_v12 = vadd.f32 %v5391_v62, %v5390_v27  ;;  %v2791_v27 = vmul.f32 %v2759_v53, %v2759_v53  ;;  %v2659_v58 = vadd.f32 %v9238_v63, %v9747_v15 }
 0xb5d   :  { %v5322_v60 = vmul.f32 %v5290_v0, %v5290_v0  ;;  %v2684_v53 = vadd.f32 %v9750_v39, %v9238_v63  ;;  %v7378_v39 = vld [vmem:[%s9572_s0 + $0xb8] sm:$0xff] }
 0xb5e   :  { %v5355_v24 = vadd.f32 %v5323_v26, %v2788_v44 }
 0xb5f   :  { %v5354_v41 = vadd.f32 %v5322_v60, %v2787_v32  ;;  %v6901_v30 = vpop.f32.mrb[234].mxu1  ;;  %v7363_v32 = vld [vmem:[%s9572_s0 + $0x70] sm:$0xff]  ;;  %v2766_v56 = vsub.f32 %v2684_v53, %v7370_v21 }
 0xb60   :  { %v5179_v2 = vadd.f32 %v6901_v30, %v9238_v63  ;;  %v5173_v46 = vpop.f32.mrb[235].mxu1  ;;  %v5395_v31 = vsel %vm152_vm1, %v5355_v24, 0.0  ;;  %v2761_v17 = vsub.f32 %v2659_v58, %v7363_v32  ;;  %v9752_v32 = vld [vmem:[#allocation17_spill] sm:$0xff] }
 0xb61   :  { %v5393_v4 = vsel %vm152_vm1, %v5354_v41, 0.0  ;;  %v5174_v16 = vadd.f32 %v9238_v63, %v5173_v46  ;;  %v7364_v41 = vld [vmem:[%s9572_s0 + $0x178] sm:$0xff]  ;;  %v2794_v46 = vmul.f32 %v2762_v43, %v2762_v43  ;;  %v7373_v43 = vld [vmem:[%s9572_s0 + $0x190] sm:$0xff] }
 0xb62   :  { %v5394_v8 = vadd.f32 %v5393_v4, %v5392_v12  ;;  %v5293_v47 = vsub.f32 %v5179_v2, %v7356_v23  ;;  %v9749_v23 = vld [vmem:[#allocation14_spill] sm:$0xff] }
 0xb63   :  { %v5292_v19 = vsub.f32 %v5174_v16, %v7357_v13 }
 0xb64   :  { %v5325_v48 = vmul.f32 %v5293_v47, %v5293_v47  ;;  %v5396_v7 = vadd.f32 %v5395_v31, %v5394_v8  ;;  %v2793_v8 = vmul.f32 %v2761_v17, %v2761_v17  ;;  %v2669_v47 = vadd.f32 %v9238_v63, %v9749_v23 }
 0xb65   :  { %v5324_v14 = vmul.f32 %v5292_v19, %v5292_v19  ;;  %v2694_v17 = vadd.f32 %v9752_v32, %v9238_v63  ;;  %v7382_v32 = vld [vmem:[%s9572_s0 + $0xc8] sm:$0xff] }
 0xb66   :  { %v5357_v22 = vadd.f32 %v5325_v48, %v2790_v35 }
 0xb67   :  { %v5356_v36 = vadd.f32 %v5324_v14, %v2789_v3  ;;  %v6904_v50 = vpop.f32.mrb[236].mxu1  ;;  %v7367_v3 = vld [vmem:[%s9572_s0 + $0x80] sm:$0xff]  ;;  %v2768_v9 = vsub.f32 %v2694_v17, %v7374_v57 }
 0xb68   :  { %v5189_v10 = vadd.f32 %v6904_v50, %v9238_v63  ;;  %v5183_v52 = vpop.f32.mrb[237].mxu1  ;;  %v5399_v34 = vsel %vm152_vm1, %v5357_v22, 0.0  ;;  %v2763_v49 = vsub.f32 %v2669_v47, %v7367_v3  ;;  %v9754_v3 = vld [vmem:[#allocation19_spill] sm:$0xff] }
 0xb69   :  { %v5397_v20 = vsel %vm152_vm1, %v5356_v36, 0.0  ;;  %v5184_v11 = vadd.f32 %v9238_v63, %v5183_v52  ;;  %v7368_v36 = vld [vmem:[%s9572_s0 + $0x188] sm:$0xff]  ;;  %v2796_v52 = vmul.f32 %v2764_v61, %v2764_v61  ;;  %v7377_v61 = vld [vmem:[%s9572_s0 + $0x1a0] sm:$0xff] }
 0xb6a   :  { %v5398_v1 = vadd.f32 %v5397_v20, %v5396_v7  ;;  %v5295_v54 = vsub.f32 %v5189_v10, %v7360_v29  ;;  %v9751_v29 = vld [vmem:[#allocation16_spill] sm:$0xff] }
 0xb6b   :  { %v5294_v59 = vsub.f32 %v5184_v11, %v7361_v55 }
 0xb6c   :  { %v5327_v42 = vmul.f32 %v5295_v54, %v5295_v54  ;;  %v5400_v45 = vadd.f32 %v5399_v34, %v5398_v1  ;;  %v2795_v1 = vmul.f32 %v2763_v49, %v2763_v49  ;;  %v2679_v54 = vadd.f32 %v9238_v63, %v9751_v29 }
 0xb6d   :  { %v5326_v62 = vmul.f32 %v5294_v59, %v5294_v59  ;;  %v2704_v49 = vadd.f32 %v9754_v3, %v9238_v63  ;;  %v7386_v3 = vld [vmem:[%s9572_s0 + $0xd8] sm:$0xff] }
 0xb6e   :  { %v5359_v33 = vadd.f32 %v5327_v42, %v2792_v40 }
 0xb6f   :  { %v5358_v0 = vadd.f32 %v5326_v62, %v2791_v27  ;;  %v6907_v44 = vpop.f32.mrb[238].mxu1  ;;  %v7371_v27 = vld [vmem:[%s9572_s0 + $0x90] sm:$0xff]  ;;  %v2770_v53 = vsub.f32 %v2704_v49, %v7378_v39 }
 0xb70   :  { %v5199_v26 = vadd.f32 %v6907_v44, %v9238_v63  ;;  %v5193_v12 = vpop.f32.mrb[239].mxu1  ;;  %v5403_v25 = vsel %vm152_vm1, %v5359_v33, 0.0  ;;  %v2765_v15 = vsub.f32 %v2679_v54, %v7371_v27  ;;  %v9756_v27 = vld [vmem:[#allocation21_spill] sm:$0xff] }
 0xb71   :  { %v5401_v18 = vsel %vm152_vm1, %v5358_v0, 0.0  ;;  %v5194_v60 = vadd.f32 %v9238_v63, %v5193_v12  ;;  %v7372_v0 = vld [vmem:[%s9572_s0 + $0x198] sm:$0xff]  ;;  %v2798_v12 = vmul.f32 %v2766_v56, %v2766_v56  ;;  %v7381_v56 = vld [vmem:[%s9572_s0 + $0x1b0] sm:$0xff] }
 0xb72   :  { %v5402_v24 = vadd.f32 %v5401_v18, %v5400_v45  ;;  %v5297_v30 = vsub.f32 %v5199_v26, %v7364_v41  ;;  %v9753_v41 = vld [vmem:[#allocation18_spill] sm:$0xff] }
 0xb73   :  { %v5296_v2 = vsub.f32 %v5194_v60, %v7365_v37 }
 0xb74   :  { %v5329_v4 = vmul.f32 %v5297_v30, %v5297_v30  ;;  %v5404_v16 = vadd.f32 %v5403_v25, %v5402_v24  ;;  %v2797_v24 = vmul.f32 %v2765_v15, %v2765_v15  ;;  %v2689_v30 = vadd.f32 %v9238_v63, %v9753_v41 }
 0xb75   :  { %v5328_v31 = vmul.f32 %v5296_v2, %v5296_v2  ;;  %v2714_v15 = vadd.f32 %v9756_v27, %v9238_v63  ;;  %v7390_v27 = vld [vmem:[%s9572_s0 + $0xe8] sm:$0xff] }
 0xb76   :  { %v5361_v13 = vadd.f32 %v5329_v4, %v2794_v46 }
 0xb77   :  { %v5360_v19 = vadd.f32 %v5328_v31, %v2793_v8  ;;  %v6910_v35 = vpop.f32.mrb[240].mxu1  ;;  %v7375_v8 = vld [vmem:[%s9572_s0 + $0xa0] sm:$0xff]  ;;  %v2772_v17 = vsub.f32 %v2714_v15, %v7382_v32 }
 0xb78   :  { %v5209_v48 = vadd.f32 %v6910_v35, %v9238_v63  ;;  %v5203_v7 = vpop.f32.mrb[241].mxu1  ;;  %v5407_v51 = vsel %vm152_vm1, %v5361_v13, 0.0  ;;  %v2767_v23 = vsub.f32 %v2689_v30, %v7375_v8  ;;  %v9758_v8 = vld [vmem:[#allocation23_spill] sm:$0xff] }
 0xb79   :  { %v5405_v5 = vsel %vm152_vm1, %v5360_v19, 0.0  ;;  %v5204_v14 = vadd.f32 %v9238_v63, %v5203_v7  ;;  %v7376_v19 = vld [vmem:[%s9572_s0 + $0x1a8] sm:$0xff]  ;;  %v2800_v7 = vmul.f32 %v2768_v9, %v2768_v9  ;;  %v7385_v9 = vld [vmem:[%s9572_s0 + $0x1c0] sm:$0xff] }
 0xb7a   :  { %v5406_v22 = vadd.f32 %v5405_v5, %v5404_v16  ;;  %v5299_v50 = vsub.f32 %v5209_v48, %v7368_v36  ;;  %v9755_v36 = vld [vmem:[#allocation20_spill] sm:$0xff] }
 0xb7b   :  { %v5298_v10 = vsub.f32 %v5204_v14, %v7369_v28 }
 0xb7c   :  { %v5331_v20 = vmul.f32 %v5299_v50, %v5299_v50  ;;  %v5408_v11 = vadd.f32 %v5407_v51, %v5406_v22  ;;  %v2799_v22 = vmul.f32 %v2767_v23, %v2767_v23  ;;  %v2699_v50 = vadd.f32 %v9238_v63, %v9755_v36 }
 0xb7d   :  { %v5330_v34 = vmul.f32 %v5298_v10, %v5298_v10  ;;  %v2724_v23 = vadd.f32 %v9758_v8, %v9238_v63  ;;  %v7394_v8 = vld [vmem:[%s9572_s0 + $0xf8] sm:$0xff] }
 0xb7e   :  { %v5363_v55 = vadd.f32 %v5331_v20, %v2796_v52 }
 0xb7f   :  { %v5362_v59 = vadd.f32 %v5330_v34, %v2795_v1  ;;  %v6913_v40 = vpop.f32.mrb[242].mxu1  ;;  %v7379_v1 = vld [vmem:[%s9572_s0 + $0xb0] sm:$0xff]  ;;  %v2774_v49 = vsub.f32 %v2724_v23, %v7386_v3 }
 0xb80   :  { %v5219_v42 = vadd.f32 %v6913_v40, %v9238_v63  ;;  %v5213_v45 = vpop.f32.mrb[243].mxu1  ;;  %v5411_v6 = vsel %vm152_vm1, %v5363_v55, 0.0  ;;  %v2769_v29 = vsub.f32 %v2699_v50, %v7379_v1  ;;  %v9760_v1 = vld [vmem:[#allocation25_spill] sm:$0xff]  ;;  %v7397_v3 = vld [vmem:[%s9572_s0 + $0x1f0] sm:$0xff] }
 0xb81   :  { %v5409_v58 = vsel %vm152_vm1, %v5362_v59, 0.0  ;;  %v5214_v62 = vadd.f32 %v9238_v63, %v5213_v45  ;;  %v7380_v59 = vld [vmem:[%s9572_s0 + $0x1b8] sm:$0xff]  ;;  %v2802_v45 = vmul.f32 %v2770_v53, %v2770_v53  ;;  %v7389_v53 = vld [vmem:[%s9572_s0 + $0x1d0] sm:$0xff] }
 0xb82   :  { %v5410_v33 = vadd.f32 %v5409_v58, %v5408_v11  ;;  %v5301_v44 = vsub.f32 %v5219_v42, %v7372_v0  ;;  %v9757_v0 = vld [vmem:[#allocation22_spill] sm:$0xff] }
 0xb83   :  { %v5300_v26 = vsub.f32 %v5214_v62, %v7373_v43 }
 0xb84   :  { %v5333_v18 = vmul.f32 %v5301_v44, %v5301_v44  ;;  %v5412_v60 = vadd.f32 %v5411_v6, %v5410_v33  ;;  %v2801_v33 = vmul.f32 %v2769_v29, %v2769_v29  ;;  %v2709_v44 = vadd.f32 %v9238_v63, %v9757_v0 }
 0xb85   :  { %v5332_v25 = vmul.f32 %v5300_v26, %v5300_v26  ;;  %v2734_v29 = vadd.f32 %v9760_v1, %v9238_v63 }
 0xb86   :  { %v5365_v37 = vadd.f32 %v5333_v18, %v2798_v12 }
 0xb87   :  { %v5364_v2 = vadd.f32 %v5332_v25, %v2797_v24  ;;  %v6916_v46 = vpop.f32.mrb[244].mxu1  ;;  %v7383_v24 = vld [vmem:[%s9572_s0 + $0xc0] sm:$0xff]  ;;  %v2776_v15 = vsub.f32 %v2734_v29, %v7390_v27 }
 0xb88   :  { %v5229_v4 = vadd.f32 %v6916_v46, %v9238_v63  ;;  %v5223_v16 = vpop.f32.mrb[245].mxu1  ;;  %v5415_v38 = vsel %vm152_vm1, %v5365_v37, 0.0  ;;  %v2771_v41 = vsub.f32 %v2709_v44, %v7383_v24  ;;  %v9762_v24 = vld [vmem:[#allocation27_spill] sm:$0xff] }
 0xb89   :  { %v5413_v47 = vsel %vm152_vm1, %v5364_v2, 0.0  ;;  %v5224_v31 = vadd.f32 %v9238_v63, %v5223_v16  ;;  %v7384_v2 = vld [vmem:[%s9572_s0 + $0x1c8] sm:$0xff]  ;;  %v2804_v16 = vmul.f32 %v2772_v17, %v2772_v17  ;;  %v7393_v17 = vld [vmem:[%s9572_s0 + $0x1e0] sm:$0xff] }
 0xb8a   :  { %v5414_v13 = vadd.f32 %v5413_v47, %v5412_v60  ;;  %v5303_v35 = vsub.f32 %v5229_v4, %v7376_v19  ;;  %v9759_v19 = vld [vmem:[#allocation24_spill] sm:$0xff] }
 0xb8b   :  { %v5302_v48 = vsub.f32 %v5224_v31, %v7377_v61 }
 0xb8c   :  { %v5335_v5 = vmul.f32 %v5303_v35, %v5303_v35  ;;  %v5416_v14 = vadd.f32 %v5415_v38, %v5414_v13  ;;  %v2803_v13 = vmul.f32 %v2771_v41, %v2771_v41  ;;  %v2719_v35 = vadd.f32 %v9238_v63, %v9759_v19 }
 0xb8d   :  { %v5334_v51 = vmul.f32 %v5302_v48, %v5302_v48  ;;  %v2744_v41 = vadd.f32 %v9762_v24, %v9238_v63 }
 0xb8e   :  { %v5367_v28 = vadd.f32 %v5335_v5, %v2800_v7 }
 0xb8f   :  { %v5366_v10 = vadd.f32 %v5334_v51, %v2799_v22  ;;  %v6919_v52 = vpop.f32.mrb[246].mxu1  ;;  %v7387_v22 = vld [vmem:[%s9572_s0 + $0xd0] sm:$0xff]  ;;  %v2778_v23 = vsub.f32 %v2744_v41, %v7394_v8 }
 0xb90   :  { %v5239_v20 = vadd.f32 %v6919_v52, %v9238_v63  ;;  %v5233_v11 = vpop.f32.mrb[247].mxu1  ;;  %v5419_v21 = vsel %vm152_vm1, %v5367_v28, 0.0  ;;  %v2773_v36 = vsub.f32 %v2719_v35, %v7387_v22 }
 0xb91   :  { %v5417_v54 = vsel %vm152_vm1, %v5366_v10, 0.0  ;;  %v5234_v34 = vadd.f32 %v9238_v63, %v5233_v11  ;;  %v7388_v10 = vld [vmem:[%s9572_s0 + $0x1d8] sm:$0xff]  ;;  %v2806_v11 = vmul.f32 %v2774_v49, %v2774_v49 }
 0xb92   :  { %v5418_v55 = vadd.f32 %v5417_v54, %v5416_v14  ;;  %v5305_v40 = vsub.f32 %v5239_v20, %v7380_v59  ;;  %v9761_v59 = vld [vmem:[#allocation26_spill] sm:$0xff] }
 0xb93   :  { %v5304_v42 = vsub.f32 %v5234_v34, %v7381_v56 }
 0xb94   :  { %v5337_v58 = vmul.f32 %v5305_v40, %v5305_v40  ;;  %v5420_v62 = vadd.f32 %v5419_v21, %v5418_v55  ;;  %v2805_v55 = vmul.f32 %v2773_v36, %v2773_v36  ;;  %v2729_v40 = vadd.f32 %v9238_v63, %v9761_v59 }
 0xb95   :  { %v5336_v6 = vmul.f32 %v5304_v42, %v5304_v42 }
 0xb96   :  { %v5369_v43 = vadd.f32 %v5337_v58, %v2802_v45 }
 0xb97   :  { %v5368_v26 = vadd.f32 %v5336_v6, %v2801_v33  ;;  %v6922_v12 = vpop.f32.mrb[248].mxu1  ;;  %v7391_v33 = vld [vmem:[%s9572_s0 + $0xe0] sm:$0xff] }
 0xb98   :  { %v5249_v18 = vadd.f32 %v6922_v12, %v9238_v63  ;;  %v5243_v60 = vpop.f32.mrb[249].mxu1  ;;  %v5423_v57 = vsel %vm152_vm1, %v5369_v43, 0.0  ;;  %v2775_v0 = vsub.f32 %v2729_v40, %v7391_v33 }
 0xb99   :  { %v5421_v30 = vsel %vm152_vm1, %v5368_v26, 0.0  ;;  %v5244_v25 = vadd.f32 %v9238_v63, %v5243_v60  ;;  %v7392_v26 = vld [vmem:[%s9572_s0 + $0x1e8] sm:$0xff]  ;;  %v2808_v60 = vmul.f32 %v2776_v15, %v2776_v15 }
 0xb9a   :  { %v5422_v37 = vadd.f32 %v5421_v30, %v5420_v62  ;;  %v5307_v46 = vsub.f32 %v5249_v18, %v7384_v2  ;;  %v9763_v2 = vld [vmem:[#allocation28_spill] sm:$0xff] }
 0xb9b   :  { %v5306_v4 = vsub.f32 %v5244_v25, %v7385_v9 }
 0xb9c   :  { %v5339_v47 = vmul.f32 %v5307_v46, %v5307_v46  ;;  %v5424_v31 = vadd.f32 %v5423_v57, %v5422_v37  ;;  %v2807_v37 = vmul.f32 %v2775_v0, %v2775_v0  ;;  %v2739_v46 = vadd.f32 %v9238_v63, %v9763_v2 }
 0xb9d   :  { %v5338_v38 = vmul.f32 %v5306_v4, %v5306_v4 }
 0xb9e   :  { %v5371_v61 = vadd.f32 %v5339_v47, %v2804_v16 }
 0xb9f   :  { %v5370_v48 = vadd.f32 %v5338_v38, %v2803_v13  ;;  %v6925_v7 = vpop.f32.mrb[250].mxu1  ;;  %v7395_v13 = vld [vmem:[%s9572_s0 + $0xf0] sm:$0xff] }
 0xba0   :  { %v5259_v5 = vadd.f32 %v6925_v7, %v9238_v63  ;;  %v5253_v14 = vpop.f32.mrb[251].mxu1  ;;  %v5427_v39 = vsel %vm152_vm1, %v5371_v61, 0.0  ;;  %v2777_v19 = vsub.f32 %v2739_v46, %v7395_v13  ;;  %v7396_v61 = vld [vmem:[%s9572_s0 + $0x1f8] sm:$0xff]  ;;  %s7423_s0 = smov [#allocation2]  }
 0xba1   :  { %v5425_v50 = vsel %vm152_vm1, %v5370_v48, 0.0  ;;  %v5254_v51 = vadd.f32 %v9238_v63, %v5253_v14  ;;  %v2810_v14 = vmul.f32 %v2778_v23, %v2778_v23  ;;  %s5458_s4 = sshll.u32 %s7423_s0, 4  ;;  %s5459_s4 = int_to_ptr.vmem [resolvable:$true] %s5458_s4 }
 0xba2   :  { %v5426_v28 = vadd.f32 %v5425_v50, %v5424_v31  ;;  %v5309_v52 = vsub.f32 %v5259_v5, %v7388_v10  ;;  %v2809_v50 = vmul.f32 %v2777_v19, %v2777_v19  ;;  %s7398_s17 = scalar_lea.vmem %s5459_s4, 128  ;;  %p7403_p1 = scmp.lt.s32.totalorder %s5459_s4, %s5459_s4 }
 0xba3   :  { %v5308_v20 = vsub.f32 %v5254_v51, %v7389_v53  ;;  %p7399_p0 = scmp.ne.s32.totalorder %s5459_s4, %s7398_s17  ;;  %p7404_p2 = scmp.lt.s32.totalorder %s7398_s17, %s7398_s17 }
 0xba4   :  { %v5341_v54 = vmul.f32 %v5309_v52, %v5309_v52  ;;  %v5428_v34 = vadd.f32 %v5427_v39, %v5426_v28 }
 0xba5   :  { %v5340_v21 = vmul.f32 %v5308_v20, %v5308_v20  ;;  %p7405_p3 = por %p7404_p2, %p7403_p1 }
 0xba6   :  { %v5373_v56 = vadd.f32 %v5341_v54, %v2806_v11 }
 0xba7   :  { %v5372_v42 = vadd.f32 %v5340_v21, %v2805_v55  ;;  %v6928_v45 = vpop.f32.mrb[252].mxu1  ;;  %p7406_p4 = pnand %p7405_p3, %p7399_p0 }
 0xba8   :  { %v5269_v58 = vadd.f32 %v6928_v45, %v9238_v63  ;;  %v5263_v62 = vpop.f32.mrb[253].mxu1  ;;  %v5431_v32 = vsel %vm152_vm1, %v5373_v56, 0.0 }
 0xba9   :  { %v5429_v44 = vsel %vm152_vm1, %v5372_v42, 0.0  ;;  %v5264_v6 = vadd.f32 %v9238_v63, %v5263_v62 }
 0xbaa   :  { %v5430_v43 = vadd.f32 %v5429_v44, %v5428_v34  ;;  %v5311_v12 = vsub.f32 %v5269_v58, %v7392_v26 }
 0xbab   :  { %v5310_v18 = vsub.f32 %v5264_v6, %v7393_v17 }
 0xbac   :  { %v5343_v30 = vmul.f32 %v5311_v12, %v5311_v12  ;;  %v5432_v25 = vadd.f32 %v5431_v32, %v5430_v43 }
 0xbad   :  { %v5342_v57 = vmul.f32 %v5310_v18, %v5310_v18 }
 0xbae   :  { %v5375_v9 = vadd.f32 %v5343_v30, %v2808_v60 }
 0xbaf   :  { %v5374_v4 = vadd.f32 %v5342_v57, %v2807_v37  ;;  %v6931_v16 = vpop.f32.mrb[254].mxu1 }
 0xbb0   :  { %v5279_v47 = vadd.f32 %v6931_v16, %v9238_v63  ;;  %v5273_v31 = vpop.f32.mrb[255].mxu1  ;;  %v5435_v5 = vsel %vm152_vm1, %v5375_v9, 0.0 }
 0xbb1   :  { %v5433_v35 = vsel %vm152_vm1, %v5374_v4, 0.0  ;;  %v5274_v38 = vadd.f32 %v9238_v63, %v5273_v31 }
 0xbb2   :  { %v5313_v48 = vsub.f32 %v5279_v47, %v7396_v61  ;;  %v5434_v7 = vadd.f32 %v5433_v35, %v5432_v25 }
 0xbb3   :  { %v5312_v49 = vsub.f32 %v5274_v38, %v7397_v3 }
 0xbb4   :  { %v5345_v22 = vmul.f32 %v5313_v48, %v5313_v48  ;;  %v5436_v36 = vadd.f32 %v5435_v5, %v5434_v7 }
 0xbb5   :  { %v5344_v51 = vmul.f32 %v5312_v49, %v5312_v49 }
 0xbb6   :  { %v5377_v28 = vadd.f32 %v5345_v22, %v2810_v14 }
 0xbb7   :  { %v5376_v63 = vadd.f32 %v5344_v51, %v2809_v50 }
 0xbb8   :  { %v5439_v39 = vsel %vm152_vm1, %v5377_v28, 0.0 }
 0xbb9   :  { %v5437_v10 = vsel %vm152_vm1, %v5376_v63, 0.0 }
 0xbba   :  { %v5438_v52 = vadd.f32 %v5437_v10, %v5436_v36 }
 0xbbc   :  { %v5440_v53 = vadd.f32 %v5439_v39, %v5438_v52 }
 0xbbe   :  { %5441 = vadd.xlane.f32.xlu0 %v5440_v53 }
 0xc4b   :  { %v5442_v20 = vpop.xlane.xlu0 %5441 }
 0xc4c   :  { %v5443_v11 = vrot.slane %v5442_v20, 4 }
 0xc4e   :  { %v5444_v1 = vadd.f32 %v5443_v11, %v5442_v20 }
 0xc50   :  { %v5445_v29 = vrot.slane %v5444_v1, 2 }
 0xc52   :  { %v5446_v54 = vadd.f32 %v5445_v29, %v5444_v1 }
 0xc54   :  { %v5447_v34 = vrot.slane %v5446_v54, 1 }
 0xc56   :  { %v5448_v55 = vadd.f32 %v5447_v34, %v5446_v54 }
 0xc58   :  { %7100 = vpush %v5448_v55 }
 0xc89   :  { %s7101_s16 = spop %7100 }
 0xc8a   :  { %v5450_v59 = vstv %s7101_s16 }
 0xc8b   :  { %5451 = vst [vmem:[#allocation2] sm:$0xff] %v5450_v59 }
 0xc8c   :  { %7409 = shalt.err (!%p7406_p4)
}
 0xc8d   :  { %s7410_s19 = scalar_lea.hbm %s9586_s14, 128 }
 0xc8e   :  { %p7411_p5 = scmp.ne.s32.totalorder %s9586_s14, %s7410_s19  ;;  %p7414_p6 = scmp.lt.u32.totalorder %s7410_s19, %s9586_s14 }
 0xc90   :  { %p7416_p7 = pnand %p7414_p6, %p7411_p5 }
 0xc92   :  { %7419 = shalt.err (!%p7416_p7)
}
 0xc93   :  { %5461 = dma.vmem_to_hbm [thread:$0]  %s5459_s4, 128, %s9586_s14, [#allocation3]  }
 0xc94   :  { %7420 = dma.done.wait [#allocation3], 128  }
 0xc95   :  { %7421 = vsyncadd [#allocation3], 4294967168 }
 0xc96   :  { %5465 = vsyncpa [#allocation3], 1 }

</bundles_post_ra>
